<compile_context>
chip_gen: v5e
topology: v5e:2x2
jax: 0.10.0
libtpu: 0.0.40
codegen_flags: <defaults>
</compile_context>

<pallas_src>
import functools

import numpy as np
import jax
import jax.numpy as jnp
from jax.experimental import pallas as pl
from jax.experimental.pallas import tpu as pltpu

LANE = 128                    # vreg lane width
TRQ = 32                      # row quantum: covers f32(8)/bf16(16)/int8(32) sublane tiles
BLOCK_BYTES = 512 * 1024      # ~512 KiB f32 per input block (~85%+ of HBM roofline on v6e;
                              # kept v5e-friendly — could be raised to 1-2 MiB on v6e/v7x)
NCORES = 2                    # leading "parallel" grid axis (megacore on v7x; no-op on 1 TC)
MIN_SPLIT_ROWS = 256          # shard rows across TCs once each core gets >= 128 rows
MIN_PALLAS_ELEMS = 32 * 1024  # below this, launch overhead rivals data time -> plain jnp


def _round_up(x, m):
    return ((x + m - 1) // m) * m


# ---------------------------------------------------------------------------
# Pallas kernel: masked log-difference + lane/sublane-resident accumulation of
#   sum(mask), sum(diff), sum(diff^2)  into per-core (8, lanes) partial blocks.
# ---------------------------------------------------------------------------
def _make_sums_kernel(has_mask, tr, wd, steps, total_rows, needs_row_mask):
    def fold(x):
        # (tr, wd) -> (8, wd): pure-VPU vreg adds (no cross-lane XLU reduce and
        # no masked (1,1) stores in the hot loop); the final cross-lane /
        # cross-core reduce happens once, in JAX, on the tiny partial blocks.
        return jnp.sum(x.reshape(tr // 8, 8, wd), axis=0)

    def kernel(*refs):
        if has_mask:
            p_ref, t_ref, m_ref, n_ref, d_ref, d2_ref = refs
        else:
            p_ref, t_ref, n_ref, d_ref, d2_ref = refs

        step = pl.program_id(1)

        @pl.when(step == 0)
        def _():
            n_ref[...] = jnp.zeros_like(n_ref)
            d_ref[...] = jnp.zeros_like(d_ref)
            d2_ref[...] = jnp.zeros_like(d2_ref)

        # Streamed in native dtype (f32 or bf16); all math in f32.
        p = p_ref[...].astype(jnp.float32)
        t = t_ref[...].astype(jnp.float32)

        ok = None
        if needs_row_mask:
            # Last block over-runs the array: out-of-range VMEM rows hold
            # undefined data (possibly NaN), so select with `where`, never
            # multiply-by-zero.
            blk = pl.program_id(0) * steps + step
            row = blk * tr + jax.lax.broadcasted_iota(jnp.int32, (tr, wd), 0)
            ok = row < total_rows
            p = jnp.where(ok, p, 0.0)
            t = jnp.where(ok, t, 0.0)

        if has_mask:
            m = m_ref[...].astype(jnp.float32)       # int8 -> f32 in-register
            if needs_row_mask:
                m = jnp.where(ok, m, 0.0)
        else:
            m = (t > 0).astype(jnp.float32)          # scale 0: mask derived in-kernel

        # TODO(synk): on v7x, if a bundle dump shows the EUP slot binding, fold
        # the two logs into log((p*m+1e-6)/(t*m+1e-6)); the exact 2-log form is
        # kept because v5e/v6e stay HBM-bound at this arrival rate.
        diff = (jnp.log(p * m + 1e-6) - jnp.log(t * m + 1e-6)) * m

        n_ref[...] += fold(m)
        d_ref[...] += fold(diff)
        d2_ref[...] += fold(diff * diff)

    return kernel


def _scale_sums_pallas(pred, target, mask=None):
    """Returns (sum(mask), sum(diff), sum(diff**2)) as f32 scalars."""
    has_mask = mask is not None
    n = pred.size

    # Zero-copy 2-D view: lane-dense (n//128, 128) when possible, else (B*C*H, W).
    if n % LANE == 0:
        view = (n // LANE, LANE)
    else:
        view = (n // pred.shape[-1], pred.shape[-1])
    R, Wd = view

    inputs = [pred.reshape(view), target.reshape(view)]
    if has_mask:
        inputs.append(mask.reshape(view))

    # Row tiling: ~BLOCK_BYTES f32 per block; rows quantized to TRQ so the same
    # block shape is legal for f32 / bf16 / int8 operands.
    max_tr = max(TRQ, (BLOCK_BYTES // (Wd * 4)) // TRQ * TRQ)
    want_cores = NCORES if R >= MIN_SPLIT_ROWS else 1
    tr = min(max_tr, _round_up(pl.cdiv(R, want_cores), TRQ))
    nblocks = pl.cdiv(R, tr)
    # Only split across cores when the blocks divide evenly between them
    # (avoids fully out-of-range tail blocks).
    ncores = want_cores if nblocks % want_cores == 0 else 1
    steps = nblocks // ncores
    needs_row_mask = (ncores * steps * tr) != R

    kernel = _make_sums_kernel(has_mask, tr, Wd, steps, R, needs_row_mask)

    in_spec = pl.BlockSpec((tr, Wd), lambda c, i: (c * steps + i, 0))
    out_spec = pl.BlockSpec((None, 8, Wd), lambda c, i: (c, 0, 0))

    outs = pl.pallas_call(
        kernel,
        out_shape=[jax.ShapeDtypeStruct((ncores, 8, Wd), jnp.float32)] * 3,
        grid_spec=pltpu.PrefetchScalarGridSpec(
            num_scalar_prefetch=0,
            grid=(ncores, steps),
            in_specs=[in_spec] * len(inputs),
            out_specs=[out_spec] * 3,
        ),
        compiler_params=pltpu.CompilerParams(
            dimension_semantics=("parallel", "arbitrary")),
    )(*inputs)

    # Tiny final cross-lane / cross-core reduce in JAX (also improves accuracy).
    return [jnp.sum(o) for o in outs]


def _scale_sums_jnp(pred, target, mask=None):
    # Small pyramid levels: launch overhead would rival data time -> plain jnp.
    p = pred.astype(jnp.float32)
    t = target.astype(jnp.float32)
    m = (t > 0).astype(jnp.float32) if mask is None else mask.astype(jnp.float32)
    diff = (jnp.log(p * m + 1e-6) - jnp.log(t * m + 1e-6)) * m
    return jnp.sum(m), jnp.sum(diff), jnp.sum(diff * diff)


def _scale_sums(pred, target, mask=None):
    if pred.size >= MIN_PALLAS_ELEMS:
        return _scale_sums_pallas(pred, target, mask)
    return _scale_sums_jnp(pred, target, mask)


# ---------------------------------------------------------------------------
# Glue: pyramid downsampling matching F.interpolate semantics (XLA-level).
# ---------------------------------------------------------------------------
def _interp_taps(n_out, n_in):
    # align_corners=True source coords; f32 math to match the f32 reference.
    scale = (n_in - 1) / (n_out - 1) if n_out > 1 else 0.0
    src = np.arange(n_out, dtype=np.float32) * np.float32(scale)
    i0 = np.clip(np.floor(src).astype(np.int64), 0, n_in - 1)
    i1 = np.minimum(i0 + 1, n_in - 1)
    frac = (src - i0.astype(np.float32)).astype(np.float32)
    return (jnp.asarray(i0.astype(np.int32)), jnp.asarray(i1.astype(np.int32)),
            jnp.asarray(frac))


def _lerp_axis(x, n_out, axis):
    i0, i1, frac = _interp_taps(n_out, x.shape[axis])
    shape = [1] * x.ndim
    shape[axis] = n_out
    frac = frac.reshape(shape)
    x0 = jnp.take(x, i0, axis=axis)
    x1 = jnp.take(x, i1, axis=axis)
    return x0 * (1.0 - frac) + x1 * frac


def _bilinear_down(x, ho, wo):
    # F.interpolate(mode='bilinear', align_corners=True): each output sample is
    # a 2-tap lerp, applied directly with static indices (pure VPU, exact f32,
    # no HIGHEST-precision multi-pass MXU matmuls).
    x = x.astype(jnp.float32)
    return _lerp_axis(_lerp_axis(x, ho, axis=2), wo, axis=3)


def _nearest_down(x, ho, wo):
    # F.interpolate(mode='nearest') to (h//2, w//2): src = floor(i*h/ho) == 2*i.
    return x[:, :, : 2 * ho : 2, : 2 * wo : 2]


# ---------------------------------------------------------------------------
# Full forward pass (ScaleShiftInvariantLoss.forward).
# ---------------------------------------------------------------------------
@functools.partial(jax.jit, static_argnames=("alpha", "scales"))
def scale_shift_invariant_loss(pred, target, alpha=0.5, scales=4):
    """pred/target: (B, 1, H, W), any float dtype.  Kept in native dtype in HBM;
    all math is f32 (matching torch's .float())."""
    total = jnp.float32(0.0)
    weight = 1.0
    cp, ct = pred, target
    cm = None  # scale 0: mask computed inside the kernel from target > 0
    for s in range(scales):
        nsum, dsum, d2sum = _scale_sums(cp, ct, cm)
        num_valid = nsum + 1e-8
        diff_sum = dsum / num_valid
        diff_sqr_sum = d2sum / num_valid
        total = total + weight * (diff_sqr_sum - alpha * diff_sum ** 2)
        weight /= 2.0
        if s < scales - 1:
            ho, wo = cp.shape[2] // 2, cp.shape[3] // 2
            if cm is None:
                # nearest-down of (target>0) == (stride-2-sliced raw target) > 0;
                # lower-scale masks are streamed as int8 (4x fewer HBM bytes).
                cm = (_nearest_down(ct, ho, wo) > 0).astype(jnp.int8)
            else:
                cm = _nearest_down(cm, ho, wo)
            cp = _bilinear_down(cp, ho, wo)
            ct = _bilinear_down(ct, ho, wo)
    return total


# ---------------------------------------------------------------------------
# Pure-JAX reference (gather-based interpolation, no Pallas).
# ---------------------------------------------------------------------------
def _ref_bilinear(x, ho, wo):
    _, _, h, w = x.shape

    def coords(n_out, n_in):
        scale = (n_in - 1) / (n_out - 1) if n_out > 1 else 0.0
        src = jnp.arange(n_out, dtype=jnp.float32) * scale
        i0 = jnp.clip(jnp.floor(src).astype(jnp.int32), 0, n_in - 1)
        i1 = jnp.clip(i0 + 1, 0, n_in - 1)
        frac = src - i0.astype(jnp.float32)
        return i0, i1, frac

    h0, h1, fh = coords(ho, h)
    w0, w1, fw = coords(wo, w)
    xh = (x[:, :, h0, :] * (1.0 - fh)[None, None, :, None]
          + x[:, :, h1, :] * fh[None, None, :, None])
    return (xh[:, :, :, w0] * (1.0 - fw)[None, None, None, :]
            + xh[:, :, :, w1] * fw[None, None, None, :])


def _ref_nearest(x, ho, wo):
    _, _, h, w = x.shape
    hi = jnp.clip(jnp.floor(jnp.arange(ho) * (h / ho)).astype(jnp.int32), 0, h - 1)
    wi = jnp.clip(jnp.floor(jnp.arange(wo) * (w / wo)).astype(jnp.int32), 0, w - 1)
    return x[:, :, hi, :][:, :, :, wi]


def _ref_loss(pred, target, alpha=0.5, scales=4):
    pred = pred.astype(jnp.float32)
    target = target.astype(jnp.float32)
    mask = (target > 0).astype(jnp.float32)
    total = jnp.float32(0.0)
    weight = 1.0
    cp, ct, cm = pred, target, mask
    for s in range(scales):
        diff = (jnp.log(cp * cm + 1e-6) - jnp.log(ct * cm + 1e-6)) * cm
        num_valid = jnp.sum(cm) + 1e-8
        diff_sum = jnp.sum(diff) / num_valid
        diff_sqr_sum = jnp.sum(diff ** 2) / num_valid
        total = total + weight * (diff_sqr_sum - alpha * diff_sum ** 2)
        weight /= 2.0
        if s < scales - 1:
            ho, wo = cp.shape[2] // 2, cp.shape[3] // 2
            cp = _ref_bilinear(cp, ho, wo)
            ct = _ref_bilinear(ct, ho, wo)
            cm = _ref_nearest(cm, ho, wo)
    return total


if __name__ == "__main__":
    key = jax.random.PRNGKey(0)
    k1, k2, k3 = jax.random.split(key, 3)
    B, C, H, W = 2, 1, 512, 512
    pred = jax.random.uniform(k1, (B, C, H, W), jnp.float32, 0.1, 10.0)
    depth = jax.random.uniform(k2, (B, C, H, W), jnp.float32, 0.1, 10.0)
    holes = jax.random.uniform(k3, (B, C, H, W)) < 0.2
    target = jnp.where(holes, 0.0, depth)   # zeros = invalid pixels (mask == 0)

    # f32 inputs: exercises multi-step 2-core accumulation + int8-mask scales.
    out = jax.block_until_ready(scale_shift_invariant_loss(pred, target))
    ref = _ref_loss(pred, target)
    assert jnp.allclose(out, ref, rtol=1e-4, atol=1e-5), (out, ref)

    # bf16 inputs: streamed as bf16 by the kernel, cast to f32 in-kernel.
    out_bf = jax.block_until_ready(
        scale_shift_invariant_loss(pred.astype(jnp.bfloat16),
                                   target.astype(jnp.bfloat16)))
    ref_bf = _ref_loss(pred.astype(jnp.bfloat16), target.astype(jnp.bfloat16))
    assert jnp.allclose(out_bf, ref_bf, rtol=1e-4, atol=1e-4), (out_bf, ref_bf)

    # Odd spatial size: exercises the ragged-tail (row-masked) kernel path.
    p_odd, t_odd = pred[:, :, :498, :], target[:, :, :498, :]
    out_odd = jax.block_until_ready(scale_shift_invariant_loss(p_odd, t_odd))
    ref_odd = _ref_loss(p_odd, t_odd)
    assert jnp.allclose(out_odd, ref_odd, rtol=1e-4, atol=1e-5), (out_odd, ref_odd)

    print("KERNEL_OK")
</pallas_src>

<mosaic_0001>
module attributes {stable_mosaic.version = 11 : i64} {
  func.func @kernel(%arg0: i32, %arg1: i32, %arg2: memref<128x128xf32, #tpu.memory_space<vmem>>, %arg3: memref<128x128xf32, #tpu.memory_space<vmem>>, %arg4: memref<128x128xi8, #tpu.memory_space<vmem>>, %arg5: memref<1x8x128xf32, #tpu.memory_space<vmem>>, %arg6: memref<1x8x128xf32, #tpu.memory_space<vmem>>, %arg7: memref<1x8x128xf32, #tpu.memory_space<vmem>>) attributes {dimension_semantics = [#tpu.dimension_semantics<parallel>, #tpu.dimension_semantics<arbitrary>], iteration_bounds = array<i64: 2, 1>, scalar_prefetch = 0 : i64, scratch_operands = 0 : i64, tpu.core_type = #tpu.core_type<tc>, window_params = [{transform_indices = @transform_0, window_bounds = array<i64: 128, 128>}, {transform_indices = @transform_1, window_bounds = array<i64: 128, 128>}, {transform_indices = @transform_2, window_bounds = array<i64: 128, 128>}, {transform_indices = @transform_3, window_bounds = array<i64: 1, 8, 128>}, {transform_indices = @transform_4, window_bounds = array<i64: 1, 8, 128>}, {transform_indices = @transform_5, window_bounds = array<i64: 1, 8, 128>}]} {
    %c0_i32 = arith.constant 0 : i32
    %0 = arith.cmpi eq, %arg1, %c0_i32 : i32
    %1 = arith.extui %0 : i1 to i32
    %c0_i32_0 = arith.constant 0 : i32
    %2 = arith.cmpi ne, %1, %c0_i32_0 : i32
    scf.if %2 {
      %cst_28 = arith.constant 0.000000e+00 : f32
      %42 = vector.broadcast %cst_28 : f32 to vector<8x128xf32>
      %c0_29 = arith.constant 0 : index
      %c0_30 = arith.constant 0 : index
      %c0_31 = arith.constant 0 : index
      %43 = vector.load %arg5[%c0_29, %c0_30, %c0_31] : memref<1x8x128xf32, #tpu.memory_space<vmem>>, vector<1x8x128xf32>
      %44 = vector.shape_cast %43 : vector<1x8x128xf32> to vector<8x128xf32>
      %45 = vector.shape_cast %42 : vector<8x128xf32> to vector<1x8x128xf32>
      tpu.vector_store %arg5[%c0_29, %c0_30, %c0_31], %45 {strides = array<i32>} : memref<1x8x128xf32, #tpu.memory_space<vmem>>, vector<1x8x128xf32>,
      %cst_32 = arith.constant 0.000000e+00 : f32
      %46 = vector.broadcast %cst_32 : f32 to vector<8x128xf32>
      %c0_33 = arith.constant 0 : index
      %c0_34 = arith.constant 0 : index
      %c0_35 = arith.constant 0 : index
      %47 = vector.load %arg6[%c0_33, %c0_34, %c0_35] : memref<1x8x128xf32, #tpu.memory_space<vmem>>, vector<1x8x128xf32>
      %48 = vector.shape_cast %47 : vector<1x8x128xf32> to vector<8x128xf32>
      %49 = vector.shape_cast %46 : vector<8x128xf32> to vector<1x8x128xf32>
      tpu.vector_store %arg6[%c0_33, %c0_34, %c0_35], %49 {strides = array<i32>} : memref<1x8x128xf32, #tpu.memory_space<vmem>>, vector<1x8x128xf32>,
      %cst_36 = arith.constant 0.000000e+00 : f32
      %50 = vector.broadcast %cst_36 : f32 to vector<8x128xf32>
      %c0_37 = arith.constant 0 : index
      %c0_38 = arith.constant 0 : index
      %c0_39 = arith.constant 0 : index
      %51 = vector.load %arg7[%c0_37, %c0_38, %c0_39] : memref<1x8x128xf32, #tpu.memory_space<vmem>>, vector<1x8x128xf32>
      %52 = vector.shape_cast %51 : vector<1x8x128xf32> to vector<8x128xf32>
      %53 = vector.shape_cast %50 : vector<8x128xf32> to vector<1x8x128xf32>
      tpu.vector_store %arg7[%c0_37, %c0_38, %c0_39], %53 {strides = array<i32>} : memref<1x8x128xf32, #tpu.memory_space<vmem>>, vector<1x8x128xf32>,
    } else {
    }
    %c0 = arith.constant 0 : index
    %c0_1 = arith.constant 0 : index
    %3 = vector.load %arg2[%c0, %c0_1] : memref<128x128xf32, #tpu.memory_space<vmem>>, vector<128x128xf32>
    %c0_2 = arith.constant 0 : index
    %c0_3 = arith.constant 0 : index
    %4 = vector.load %arg3[%c0_2, %c0_3] : memref<128x128xf32, #tpu.memory_space<vmem>>, vector<128x128xf32>
    %c0_4 = arith.constant 0 : index
    %c0_5 = arith.constant 0 : index
    %5 = vector.load %arg4[%c0_4, %c0_5] : memref<128x128xi8, #tpu.memory_space<vmem>>, vector<128x128xi8>
    %6 = arith.sitofp %5 : vector<128x128xi8> to vector<128x128xf32>
    %7 = arith.mulf %3, %6 : vector<128x128xf32>
    %cst = arith.constant 9.99999997E-7 : f32
    %8 = vector.broadcast %cst : f32 to vector<128x128xf32>
    %9 = arith.addf %7, %8 : vector<128x128xf32>
    %10 = math.log %9 : vector<128x128xf32>
    %11 = arith.mulf %4, %6 : vector<128x128xf32>
    %cst_6 = arith.constant 9.99999997E-7 : f32
    %12 = vector.broadcast %cst_6 : f32 to vector<128x128xf32>
    %13 = arith.addf %11, %12 : vector<128x128xf32>
    %14 = math.log %13 : vector<128x128xf32>
    %15 = arith.subf %10, %14 : vector<128x128xf32>
    %16 = arith.mulf %15, %6 : vector<128x128xf32>
    %c0_7 = arith.constant 0 : index
    %c0_8 = arith.constant 0 : index
    %c0_9 = arith.constant 0 : index
    %17 = vector.load %arg5[%c0_7, %c0_8, %c0_9] : memref<1x8x128xf32, #tpu.memory_space<vmem>>, vector<1x8x128xf32>
    %18 = vector.shape_cast %17 : vector<1x8x128xf32> to vector<8x128xf32>
    %19 = vector.shape_cast %6 : vector<128x128xf32> to vector<16x8x128xf32>
    %cst_10 = arith.constant dense<0.000000e+00> : vector<8x128xf32>
    %20 = vector.multi_reduction <add>, %19, %cst_10 [0] : vector<16x8x128xf32> to vector<8x128xf32>
    %21 = arith.addf %18, %20 : vector<8x128xf32>
    %c0_11 = arith.constant 0 : index
    %c0_12 = arith.constant 0 : index
    %c0_13 = arith.constant 0 : index
    %22 = vector.load %arg5[%c0_11, %c0_12, %c0_13] : memref<1x8x128xf32, #tpu.memory_space<vmem>>, vector<1x8x128xf32>
    %23 = vector.shape_cast %22 : vector<1x8x128xf32> to vector<8x128xf32>
    %24 = vector.shape_cast %21 : vector<8x128xf32> to vector<1x8x128xf32>
    tpu.vector_store %arg5[%c0_11, %c0_12, %c0_13], %24 {strides = array<i32>} : memref<1x8x128xf32, #tpu.memory_space<vmem>>, vector<1x8x128xf32>,
    %c0_14 = arith.constant 0 : index
    %c0_15 = arith.constant 0 : index
    %c0_16 = arith.constant 0 : index
    %25 = vector.load %arg6[%c0_14, %c0_15, %c0_16] : memref<1x8x128xf32, #tpu.memory_space<vmem>>, vector<1x8x128xf32>
    %26 = vector.shape_cast %25 : vector<1x8x128xf32> to vector<8x128xf32>
    %27 = vector.shape_cast %16 : vector<128x128xf32> to vector<16x8x128xf32>
    %cst_17 = arith.constant dense<0.000000e+00> : vector<8x128xf32>
    %28 = vector.multi_reduction <add>, %27, %cst_17 [0] : vector<16x8x128xf32> to vector<8x128xf32>
    %29 = arith.addf %26, %28 : vector<8x128xf32>
    %c0_18 = arith.constant 0 : index
    %c0_19 = arith.constant 0 : index
    %c0_20 = arith.constant 0 : index
    %30 = vector.load %arg6[%c0_18, %c0_19, %c0_20] : memref<1x8x128xf32, #tpu.memory_space<vmem>>, vector<1x8x128xf32>
    %31 = vector.shape_cast %30 : vector<1x8x128xf32> to vector<8x128xf32>
    %32 = vector.shape_cast %29 : vector<8x128xf32> to vector<1x8x128xf32>
    tpu.vector_store %arg6[%c0_18, %c0_19, %c0_20], %32 {strides = array<i32>} : memref<1x8x128xf32, #tpu.memory_space<vmem>>, vector<1x8x128xf32>,
    %c0_21 = arith.constant 0 : index
    %c0_22 = arith.constant 0 : index
    %c0_23 = arith.constant 0 : index
    %33 = vector.load %arg7[%c0_21, %c0_22, %c0_23] : memref<1x8x128xf32, #tpu.memory_space<vmem>>, vector<1x8x128xf32>
    %34 = vector.shape_cast %33 : vector<1x8x128xf32> to vector<8x128xf32>
    %35 = arith.mulf %16, %16 : vector<128x128xf32>
    %36 = vector.shape_cast %35 : vector<128x128xf32> to vector<16x8x128xf32>
    %cst_24 = arith.constant dense<0.000000e+00> : vector<8x128xf32>
    %37 = vector.multi_reduction <add>, %36, %cst_24 [0] : vector<16x8x128xf32> to vector<8x128xf32>
    %38 = arith.addf %34, %37 : vector<8x128xf32>
    %c0_25 = arith.constant 0 : index
    %c0_26 = arith.constant 0 : index
    %c0_27 = arith.constant 0 : index
    %39 = vector.load %arg7[%c0_25, %c0_26, %c0_27] : memref<1x8x128xf32, #tpu.memory_space<vmem>>, vector<1x8x128xf32>
    %40 = vector.shape_cast %39 : vector<1x8x128xf32> to vector<8x128xf32>
    %41 = vector.shape_cast %38 : vector<8x128xf32> to vector<1x8x128xf32>
    tpu.vector_store %arg7[%c0_25, %c0_26, %c0_27], %41 {strides = array<i32>} : memref<1x8x128xf32, #tpu.memory_space<vmem>>, vector<1x8x128xf32>,
    return
  }
  func.func @transform_0(%arg0: i32, %arg1: i32) -> (i32, i32) {
    %c1_i32 = arith.constant 1 : i32
    %0 = arith.muli %arg0, %c1_i32 : i32
    %1 = arith.addi %0, %arg1 : i32
    %c0_i32 = arith.constant 0 : i32
    %c0_i32_0 = arith.constant 0 : i32
    return %1, %c0_i32 : i32, i32
  }
  func.func @transform_1(%arg0: i32, %arg1: i32) -> (i32, i32) {
    %c1_i32 = arith.constant 1 : i32
    %0 = arith.muli %arg0, %c1_i32 : i32
    %1 = arith.addi %0, %arg1 : i32
    %c0_i32 = arith.constant 0 : i32
    %c0_i32_0 = arith.constant 0 : i32
    return %1, %c0_i32 : i32, i32
  }
  func.func @transform_2(%arg0: i32, %arg1: i32) -> (i32, i32) {
    %c1_i32 = arith.constant 1 : i32
    %0 = arith.muli %arg0, %c1_i32 : i32
    %1 = arith.addi %0, %arg1 : i32
    %c0_i32 = arith.constant 0 : i32
    %c0_i32_0 = arith.constant 0 : i32
    return %1, %c0_i32 : i32, i32
  }
  func.func @transform_3(%arg0: i32, %arg1: i32) -> (i32, i32, i32) {
    %c0_i32 = arith.constant 0 : i32
    %c0_i32_0 = arith.constant 0 : i32
    %c0_i32_1 = arith.constant 0 : i32
    return %arg0, %c0_i32, %c0_i32_0 : i32, i32, i32
  }
  func.func @transform_4(%arg0: i32, %arg1: i32) -> (i32, i32, i32) {
    %c0_i32 = arith.constant 0 : i32
    %c0_i32_0 = arith.constant 0 : i32
    %c0_i32_1 = arith.constant 0 : i32
    return %arg0, %c0_i32, %c0_i32_0 : i32, i32, i32
  }
  func.func @transform_5(%arg0: i32, %arg1: i32) -> (i32, i32, i32) {
    %c0_i32 = arith.constant 0 : i32
    %c0_i32_0 = arith.constant 0 : i32
    %c0_i32_1 = arith.constant 0 : i32
    return %arg0, %c0_i32, %c0_i32_0 : i32, i32, i32
  }
}

module attributes {stable_mosaic.version = 11 : i64} {
  func.func @kernel(%arg0: i32, %arg1: i32, %arg2: memref<512x128xf32, #tpu.memory_space<vmem>>, %arg3: memref<512x128xf32, #tpu.memory_space<vmem>>, %arg4: memref<512x128xi8, #tpu.memory_space<vmem>>, %arg5: memref<1x8x128xf32, #tpu.memory_space<vmem>>, %arg6: memref<1x8x128xf32, #tpu.memory_space<vmem>>, %arg7: memref<1x8x128xf32, #tpu.memory_space<vmem>>) attributes {dimension_semantics = [#tpu.dimension_semantics<parallel>, #tpu.dimension_semantics<arbitrary>], iteration_bounds = array<i64: 2, 1>, scalar_prefetch = 0 : i64, scratch_operands = 0 : i64, tpu.core_type = #tpu.core_type<tc>, window_params = [{transform_indices = @transform_0, window_bounds = array<i64: 512, 128>}, {transform_indices = @transform_1, window_bounds = array<i64: 512, 128>}, {transform_indices = @transform_2, window_bounds = array<i64: 512, 128>}, {transform_indices = @transform_3, window_bounds = array<i64: 1, 8, 128>}, {transform_indices = @transform_4, window_bounds = array<i64: 1, 8, 128>}, {transform_indices = @transform_5, window_bounds = array<i64: 1, 8, 128>}]} {
    %c0_i32 = arith.constant 0 : i32
    %0 = arith.cmpi eq, %arg1, %c0_i32 : i32
    %1 = arith.extui %0 : i1 to i32
    %c0_i32_0 = arith.constant 0 : i32
    %2 = arith.cmpi ne, %1, %c0_i32_0 : i32
    scf.if %2 {
      %cst_28 = arith.constant 0.000000e+00 : f32
      %42 = vector.broadcast %cst_28 : f32 to vector<8x128xf32>
      %c0_29 = arith.constant 0 : index
      %c0_30 = arith.constant 0 : index
      %c0_31 = arith.constant 0 : index
      %43 = vector.load %arg5[%c0_29, %c0_30, %c0_31] : memref<1x8x128xf32, #tpu.memory_space<vmem>>, vector<1x8x128xf32>
      %44 = vector.shape_cast %43 : vector<1x8x128xf32> to vector<8x128xf32>
      %45 = vector.shape_cast %42 : vector<8x128xf32> to vector<1x8x128xf32>
      tpu.vector_store %arg5[%c0_29, %c0_30, %c0_31], %45 {strides = array<i32>} : memref<1x8x128xf32, #tpu.memory_space<vmem>>, vector<1x8x128xf32>,
      %cst_32 = arith.constant 0.000000e+00 : f32
      %46 = vector.broadcast %cst_32 : f32 to vector<8x128xf32>
      %c0_33 = arith.constant 0 : index
      %c0_34 = arith.constant 0 : index
      %c0_35 = arith.constant 0 : index
      %47 = vector.load %arg6[%c0_33, %c0_34, %c0_35] : memref<1x8x128xf32, #tpu.memory_space<vmem>>, vector<1x8x128xf32>
      %48 = vector.shape_cast %47 : vector<1x8x128xf32> to vector<8x128xf32>
      %49 = vector.shape_cast %46 : vector<8x128xf32> to vector<1x8x128xf32>
      tpu.vector_store %arg6[%c0_33, %c0_34, %c0_35], %49 {strides = array<i32>} : memref<1x8x128xf32, #tpu.memory_space<vmem>>, vector<1x8x128xf32>,
      %cst_36 = arith.constant 0.000000e+00 : f32
      %50 = vector.broadcast %cst_36 : f32 to vector<8x128xf32>
      %c0_37 = arith.constant 0 : index
      %c0_38 = arith.constant 0 : index
      %c0_39 = arith.constant 0 : index
      %51 = vector.load %arg7[%c0_37, %c0_38, %c0_39] : memref<1x8x128xf32, #tpu.memory_space<vmem>>, vector<1x8x128xf32>
      %52 = vector.shape_cast %51 : vector<1x8x128xf32> to vector<8x128xf32>
      %53 = vector.shape_cast %50 : vector<8x128xf32> to vector<1x8x128xf32>
      tpu.vector_store %arg7[%c0_37, %c0_38, %c0_39], %53 {strides = array<i32>} : memref<1x8x128xf32, #tpu.memory_space<vmem>>, vector<1x8x128xf32>,
    } else {
    }
    %c0 = arith.constant 0 : index
    %c0_1 = arith.constant 0 : index
    %3 = vector.load %arg2[%c0, %c0_1] : memref<512x128xf32, #tpu.memory_space<vmem>>, vector<512x128xf32>
    %c0_2 = arith.constant 0 : index
    %c0_3 = arith.constant 0 : index
    %4 = vector.load %arg3[%c0_2, %c0_3] : memref<512x128xf32, #tpu.memory_space<vmem>>, vector<512x128xf32>
    %c0_4 = arith.constant 0 : index
    %c0_5 = arith.constant 0 : index
    %5 = vector.load %arg4[%c0_4, %c0_5] : memref<512x128xi8, #tpu.memory_space<vmem>>, vector<512x128xi8>
    %6 = arith.sitofp %5 : vector<512x128xi8> to vector<512x128xf32>
    %7 = arith.mulf %3, %6 : vector<512x128xf32>
    %cst = arith.constant 9.99999997E-7 : f32
    %8 = vector.broadcast %cst : f32 to vector<512x128xf32>
    %9 = arith.addf %7, %8 : vector<512x128xf32>
    %10 = math.log %9 : vector<512x128xf32>
    %11 = arith.mulf %4, %6 : vector<512x128xf32>
    %cst_6 = arith.constant 9.99999997E-7 : f32
    %12 = vector.broadcast %cst_6 : f32 to vector<512x128xf32>
    %13 = arith.addf %11, %12 : vector<512x128xf32>
    %14 = math.log %13 : vector<512x128xf32>
    %15 = arith.subf %10, %14 : vector<512x128xf32>
    %16 = arith.mulf %15, %6 : vector<512x128xf32>
    %c0_7 = arith.constant 0 : index
    %c0_8 = arith.constant 0 : index
    %c0_9 = arith.constant 0 : index
    %17 = vector.load %arg5[%c0_7, %c0_8, %c0_9] : memref<1x8x128xf32, #tpu.memory_space<vmem>>, vector<1x8x128xf32>
    %18 = vector.shape_cast %17 : vector<1x8x128xf32> to vector<8x128xf32>
    %19 = vector.shape_cast %6 : vector<512x128xf32> to vector<64x8x128xf32>
    %cst_10 = arith.constant dense<0.000000e+00> : vector<8x128xf32>
    %20 = vector.multi_reduction <add>, %19, %cst_10 [0] : vector<64x8x128xf32> to vector<8x128xf32>
    %21 = arith.addf %18, %20 : vector<8x128xf32>
    %c0_11 = arith.constant 0 : index
    %c0_12 = arith.constant 0 : index
    %c0_13 = arith.constant 0 : index
    %22 = vector.load %arg5[%c0_11, %c0_12, %c0_13] : memref<1x8x128xf32, #tpu.memory_space<vmem>>, vector<1x8x128xf32>
    %23 = vector.shape_cast %22 : vector<1x8x128xf32> to vector<8x128xf32>
    %24 = vector.shape_cast %21 : vector<8x128xf32> to vector<1x8x128xf32>
    tpu.vector_store %arg5[%c0_11, %c0_12, %c0_13], %24 {strides = array<i32>} : memref<1x8x128xf32, #tpu.memory_space<vmem>>, vector<1x8x128xf32>,
    %c0_14 = arith.constant 0 : index
    %c0_15 = arith.constant 0 : index
    %c0_16 = arith.constant 0 : index
    %25 = vector.load %arg6[%c0_14, %c0_15, %c0_16] : memref<1x8x128xf32, #tpu.memory_space<vmem>>, vector<1x8x128xf32>
    %26 = vector.shape_cast %25 : vector<1x8x128xf32> to vector<8x128xf32>
    %27 = vector.shape_cast %16 : vector<512x128xf32> to vector<64x8x128xf32>
    %cst_17 = arith.constant dense<0.000000e+00> : vector<8x128xf32>
    %28 = vector.multi_reduction <add>, %27, %cst_17 [0] : vector<64x8x128xf32> to vector<8x128xf32>
    %29 = arith.addf %26, %28 : vector<8x128xf32>
    %c0_18 = arith.constant 0 : index
    %c0_19 = arith.constant 0 : index
    %c0_20 = arith.constant 0 : index
    %30 = vector.load %arg6[%c0_18, %c0_19, %c0_20] : memref<1x8x128xf32, #tpu.memory_space<vmem>>, vector<1x8x128xf32>
    %31 = vector.shape_cast %30 : vector<1x8x128xf32> to vector<8x128xf32>
    %32 = vector.shape_cast %29 : vector<8x128xf32> to vector<1x8x128xf32>
    tpu.vector_store %arg6[%c0_18, %c0_19, %c0_20], %32 {strides = array<i32>} : memref<1x8x128xf32, #tpu.memory_space<vmem>>, vector<1x8x128xf32>,
    %c0_21 = arith.constant 0 : index
    %c0_22 = arith.constant 0 : index
    %c0_23 = arith.constant 0 : index
    %33 = vector.load %arg7[%c0_21, %c0_22, %c0_23] : memref<1x8x128xf32, #tpu.memory_space<vmem>>, vector<1x8x128xf32>
    %34 = vector.shape_cast %33 : vector<1x8x128xf32> to vector<8x128xf32>
    %35 = arith.mulf %16, %16 : vector<512x128xf32>
    %36 = vector.shape_cast %35 : vector<512x128xf32> to vector<64x8x128xf32>
    %cst_24 = arith.constant dense<0.000000e+00> : vector<8x128xf32>
    %37 = vector.multi_reduction <add>, %36, %cst_24 [0] : vector<64x8x128xf32> to vector<8x128xf32>
    %38 = arith.addf %34, %37 : vector<8x128xf32>
    %c0_25 = arith.constant 0 : index
    %c0_26 = arith.constant 0 : index
    %c0_27 = arith.constant 0 : index
    %39 = vector.load %arg7[%c0_25, %c0_26, %c0_27] : memref<1x8x128xf32, #tpu.memory_space<vmem>>, vector<1x8x128xf32>
    %40 = vector.shape_cast %39 : vector<1x8x128xf32> to vector<8x128xf32>
    %41 = vector.shape_cast %38 : vector<8x128xf32> to vector<1x8x128xf32>
    tpu.vector_store %arg7[%c0_25, %c0_26, %c0_27], %41 {strides = array<i32>} : memref<1x8x128xf32, #tpu.memory_space<vmem>>, vector<1x8x128xf32>,
    return
  }
  func.func @transform_0(%arg0: i32, %arg1: i32) -> (i32, i32) {
    %c1_i32 = arith.constant 1 : i32
    %0 = arith.muli %arg0, %c1_i32 : i32
    %1 = arith.addi %0, %arg1 : i32
    %c0_i32 = arith.constant 0 : i32
    %c0_i32_0 = arith.constant 0 : i32
    return %1, %c0_i32 : i32, i32
  }
  func.func @transform_1(%arg0: i32, %arg1: i32) -> (i32, i32) {
    %c1_i32 = arith.constant 1 : i32
    %0 = arith.muli %arg0, %c1_i32 : i32
    %1 = arith.addi %0, %arg1 : i32
    %c0_i32 = arith.constant 0 : i32
    %c0_i32_0 = arith.constant 0 : i32
    return %1, %c0_i32 : i32, i32
  }
  func.func @transform_2(%arg0: i32, %arg1: i32) -> (i32, i32) {
    %c1_i32 = arith.constant 1 : i32
    %0 = arith.muli %arg0, %c1_i32 : i32
    %1 = arith.addi %0, %arg1 : i32
    %c0_i32 = arith.constant 0 : i32
    %c0_i32_0 = arith.constant 0 : i32
    return %1, %c0_i32 : i32, i32
  }
  func.func @transform_3(%arg0: i32, %arg1: i32) -> (i32, i32, i32) {
    %c0_i32 = arith.constant 0 : i32
    %c0_i32_0 = arith.constant 0 : i32
    %c0_i32_1 = arith.constant 0 : i32
    return %arg0, %c0_i32, %c0_i32_0 : i32, i32, i32
  }
  func.func @transform_4(%arg0: i32, %arg1: i32) -> (i32, i32, i32) {
    %c0_i32 = arith.constant 0 : i32
    %c0_i32_0 = arith.constant 0 : i32
    %c0_i32_1 = arith.constant 0 : i32
    return %arg0, %c0_i32, %c0_i32_0 : i32, i32, i32
  }
  func.func @transform_5(%arg0: i32, %arg1: i32) -> (i32, i32, i32) {
    %c0_i32 = arith.constant 0 : i32
    %c0_i32_0 = arith.constant 0 : i32
    %c0_i32_1 = arith.constant 0 : i32
    return %arg0, %c0_i32, %c0_i32_0 : i32, i32, i32
  }
}

module attributes {stable_mosaic.version = 11 : i64} {
  func.func @kernel(%arg0: i32, %arg1: i32, %arg2: memref<1024x128xf32, #tpu.memory_space<vmem>>, %arg3: memref<1024x128xf32, #tpu.memory_space<vmem>>, %arg4: memref<1x8x128xf32, #tpu.memory_space<vmem>>, %arg5: memref<1x8x128xf32, #tpu.memory_space<vmem>>, %arg6: memref<1x8x128xf32, #tpu.memory_space<vmem>>) attributes {dimension_semantics = [#tpu.dimension_semantics<parallel>, #tpu.dimension_semantics<arbitrary>], iteration_bounds = array<i64: 2, 2>, scalar_prefetch = 0 : i64, scratch_operands = 0 : i64, tpu.core_type = #tpu.core_type<tc>, window_params = [{transform_indices = @transform_0, window_bounds = array<i64: 1024, 128>}, {transform_indices = @transform_1, window_bounds = array<i64: 1024, 128>}, {transform_indices = @transform_2, window_bounds = array<i64: 1, 8, 128>}, {transform_indices = @transform_3, window_bounds = array<i64: 1, 8, 128>}, {transform_indices = @transform_4, window_bounds = array<i64: 1, 8, 128>}]} {
    %c0_i32 = arith.constant 0 : i32
    %0 = arith.cmpi eq, %arg1, %c0_i32 : i32
    %1 = arith.extui %0 : i1 to i32
    %c0_i32_0 = arith.constant 0 : i32
    %2 = arith.cmpi ne, %1, %c0_i32_0 : i32
    scf.if %2 {
      %cst_27 = arith.constant 0.000000e+00 : f32
      %44 = vector.broadcast %cst_27 : f32 to vector<8x128xf32>
      %c0_28 = arith.constant 0 : index
      %c0_29 = arith.constant 0 : index
      %c0_30 = arith.constant 0 : index
      %45 = vector.load %arg4[%c0_28, %c0_29, %c0_30] : memref<1x8x128xf32, #tpu.memory_space<vmem>>, vector<1x8x128xf32>
      %46 = vector.shape_cast %45 : vector<1x8x128xf32> to vector<8x128xf32>
      %47 = vector.shape_cast %44 : vector<8x128xf32> to vector<1x8x128xf32>
      tpu.vector_store %arg4[%c0_28, %c0_29, %c0_30], %47 {strides = array<i32>} : memref<1x8x128xf32, #tpu.memory_space<vmem>>, vector<1x8x128xf32>,
      %cst_31 = arith.constant 0.000000e+00 : f32
      %48 = vector.broadcast %cst_31 : f32 to vector<8x128xf32>
      %c0_32 = arith.constant 0 : index
      %c0_33 = arith.constant 0 : index
      %c0_34 = arith.constant 0 : index
      %49 = vector.load %arg5[%c0_32, %c0_33, %c0_34] : memref<1x8x128xf32, #tpu.memory_space<vmem>>, vector<1x8x128xf32>
      %50 = vector.shape_cast %49 : vector<1x8x128xf32> to vector<8x128xf32>
      %51 = vector.shape_cast %48 : vector<8x128xf32> to vector<1x8x128xf32>
      tpu.vector_store %arg5[%c0_32, %c0_33, %c0_34], %51 {strides = array<i32>} : memref<1x8x128xf32, #tpu.memory_space<vmem>>, vector<1x8x128xf32>,
      %cst_35 = arith.constant 0.000000e+00 : f32
      %52 = vector.broadcast %cst_35 : f32 to vector<8x128xf32>
      %c0_36 = arith.constant 0 : index
      %c0_37 = arith.constant 0 : index
      %c0_38 = arith.constant 0 : index
      %53 = vector.load %arg6[%c0_36, %c0_37, %c0_38] : memref<1x8x128xf32, #tpu.memory_space<vmem>>, vector<1x8x128xf32>
      %54 = vector.shape_cast %53 : vector<1x8x128xf32> to vector<8x128xf32>
      %55 = vector.shape_cast %52 : vector<8x128xf32> to vector<1x8x128xf32>
      tpu.vector_store %arg6[%c0_36, %c0_37, %c0_38], %55 {strides = array<i32>} : memref<1x8x128xf32, #tpu.memory_space<vmem>>, vector<1x8x128xf32>,
    } else {
    }
    %c0 = arith.constant 0 : index
    %c0_1 = arith.constant 0 : index
    %3 = vector.load %arg2[%c0, %c0_1] : memref<1024x128xf32, #tpu.memory_space<vmem>>, vector<1024x128xf32>
    %c0_2 = arith.constant 0 : index
    %c0_3 = arith.constant 0 : index
    %4 = vector.load %arg3[%c0_2, %c0_3] : memref<1024x128xf32, #tpu.memory_space<vmem>>, vector<1024x128xf32>
    %cst = arith.constant 0.000000e+00 : f32
    %5 = vector.broadcast %cst : f32 to vector<1024x128xf32>
    %6 = arith.cmpf ogt, %4, %5 : vector<1024x128xf32>
    %7 = arith.extui %6 : vector<1024x128xi1> to vector<1024x128xi32>
    %8 = arith.sitofp %7 : vector<1024x128xi32> to vector<1024x128xf32>
    %9 = arith.mulf %3, %8 : vector<1024x128xf32>
    %cst_4 = arith.constant 9.99999997E-7 : f32
    %10 = vector.broadcast %cst_4 : f32 to vector<1024x128xf32>
    %11 = arith.addf %9, %10 : vector<1024x128xf32>
    %12 = math.log %11 : vector<1024x128xf32>
    %13 = arith.mulf %4, %8 : vector<1024x128xf32>
    %cst_5 = arith.constant 9.99999997E-7 : f32
    %14 = vector.broadcast %cst_5 : f32 to vector<1024x128xf32>
    %15 = arith.addf %13, %14 : vector<1024x128xf32>
    %16 = math.log %15 : vector<1024x128xf32>
    %17 = arith.subf %12, %16 : vector<1024x128xf32>
    %18 = arith.mulf %17, %8 : vector<1024x128xf32>
    %c0_6 = arith.constant 0 : index
    %c0_7 = arith.constant 0 : index
    %c0_8 = arith.constant 0 : index
    %19 = vector.load %arg4[%c0_6, %c0_7, %c0_8] : memref<1x8x128xf32, #tpu.memory_space<vmem>>, vector<1x8x128xf32>
    %20 = vector.shape_cast %19 : vector<1x8x128xf32> to vector<8x128xf32>
    %21 = vector.shape_cast %8 : vector<1024x128xf32> to vector<128x8x128xf32>
    %cst_9 = arith.constant dense<0.000000e+00> : vector<8x128xf32>
    %22 = vector.multi_reduction <add>, %21, %cst_9 [0] : vector<128x8x128xf32> to vector<8x128xf32>
    %23 = arith.addf %20, %22 : vector<8x128xf32>
    %c0_10 = arith.constant 0 : index
    %c0_11 = arith.constant 0 : index
    %c0_12 = arith.constant 0 : index
    %24 = vector.load %arg4[%c0_10, %c0_11, %c0_12] : memref<1x8x128xf32, #tpu.memory_space<vmem>>, vector<1x8x128xf32>
    %25 = vector.shape_cast %24 : vector<1x8x128xf32> to vector<8x128xf32>
    %26 = vector.shape_cast %23 : vector<8x128xf32> to vector<1x8x128xf32>
    tpu.vector_store %arg4[%c0_10, %c0_11, %c0_12], %26 {strides = array<i32>} : memref<1x8x128xf32, #tpu.memory_space<vmem>>, vector<1x8x128xf32>,
    %c0_13 = arith.constant 0 : index
    %c0_14 = arith.constant 0 : index
    %c0_15 = arith.constant 0 : index
    %27 = vector.load %arg5[%c0_13, %c0_14, %c0_15] : memref<1x8x128xf32, #tpu.memory_space<vmem>>, vector<1x8x128xf32>
    %28 = vector.shape_cast %27 : vector<1x8x128xf32> to vector<8x128xf32>
    %29 = vector.shape_cast %18 : vector<1024x128xf32> to vector<128x8x128xf32>
    %cst_16 = arith.constant dense<0.000000e+00> : vector<8x128xf32>
    %30 = vector.multi_reduction <add>, %29, %cst_16 [0] : vector<128x8x128xf32> to vector<8x128xf32>
    %31 = arith.addf %28, %30 : vector<8x128xf32>
    %c0_17 = arith.constant 0 : index
    %c0_18 = arith.constant 0 : index
    %c0_19 = arith.constant 0 : index
    %32 = vector.load %arg5[%c0_17, %c0_18, %c0_19] : memref<1x8x128xf32, #tpu.memory_space<vmem>>, vector<1x8x128xf32>
    %33 = vector.shape_cast %32 : vector<1x8x128xf32> to vector<8x128xf32>
    %34 = vector.shape_cast %31 : vector<8x128xf32> to vector<1x8x128xf32>
    tpu.vector_store %arg5[%c0_17, %c0_18, %c0_19], %34 {strides = array<i32>} : memref<1x8x128xf32, #tpu.memory_space<vmem>>, vector<1x8x128xf32>,
    %c0_20 = arith.constant 0 : index
    %c0_21 = arith.constant 0 : index
    %c0_22 = arith.constant 0 : index
    %35 = vector.load %arg6[%c0_20, %c0_21, %c0_22] : memref<1x8x128xf32, #tpu.memory_space<vmem>>, vector<1x8x128xf32>
    %36 = vector.shape_cast %35 : vector<1x8x128xf32> to vector<8x128xf32>
    %37 = arith.mulf %18, %18 : vector<1024x128xf32>
    %38 = vector.shape_cast %37 : vector<1024x128xf32> to vector<128x8x128xf32>
    %cst_23 = arith.constant dense<0.000000e+00> : vector<8x128xf32>
    %39 = vector.multi_reduction <add>, %38, %cst_23 [0] : vector<128x8x128xf32> to vector<8x128xf32>
    %40 = arith.addf %36, %39 : vector<8x128xf32>
    %c0_24 = arith.constant 0 : index
    %c0_25 = arith.constant 0 : index
    %c0_26 = arith.constant 0 : index
    %41 = vector.load %arg6[%c0_24, %c0_25, %c0_26] : memref<1x8x128xf32, #tpu.memory_space<vmem>>, vector<1x8x128xf32>
    %42 = vector.shape_cast %41 : vector<1x8x128xf32> to vector<8x128xf32>
    %43 = vector.shape_cast %40 : vector<8x128xf32> to vector<1x8x128xf32>
    tpu.vector_store %arg6[%c0_24, %c0_25, %c0_26], %43 {strides = array<i32>} : memref<1x8x128xf32, #tpu.memory_space<vmem>>, vector<1x8x128xf32>,
    return
  }
  func.func @transform_0(%arg0: i32, %arg1: i32) -> (i32, i32) {
    %c2_i32 = arith.constant 2 : i32
    %0 = arith.muli %arg0, %c2_i32 : i32
    %1 = arith.addi %0, %arg1 : i32
    %c0_i32 = arith.constant 0 : i32
    %c0_i32_0 = arith.constant 0 : i32
    return %1, %c0_i32 : i32, i32
  }
  func.func @transform_1(%arg0: i32, %arg1: i32) -> (i32, i32) {
    %c2_i32 = arith.constant 2 : i32
    %0 = arith.muli %arg0, %c2_i32 : i32
    %1 = arith.addi %0, %arg1 : i32
    %c0_i32 = arith.constant 0 : i32
    %c0_i32_0 = arith.constant 0 : i32
    return %1, %c0_i32 : i32, i32
  }
  func.func @transform_2(%arg0: i32, %arg1: i32) -> (i32, i32, i32) {
    %c0_i32 = arith.constant 0 : i32
    %c0_i32_0 = arith.constant 0 : i32
    %c0_i32_1 = arith.constant 0 : i32
    return %arg0, %c0_i32, %c0_i32_0 : i32, i32, i32
  }
  func.func @transform_3(%arg0: i32, %arg1: i32) -> (i32, i32, i32) {
    %c0_i32 = arith.constant 0 : i32
    %c0_i32_0 = arith.constant 0 : i32
    %c0_i32_1 = arith.constant 0 : i32
    return %arg0, %c0_i32, %c0_i32_0 : i32, i32, i32
  }
  func.func @transform_4(%arg0: i32, %arg1: i32) -> (i32, i32, i32) {
    %c0_i32 = arith.constant 0 : i32
    %c0_i32_0 = arith.constant 0 : i32
    %c0_i32_1 = arith.constant 0 : i32
    return %arg0, %c0_i32, %c0_i32_0 : i32, i32, i32
  }
}

</mosaic_0001>

<bundles_post_ra>
// kernel: scale_shift_invariant_loss.5
= control target key start
LH: loop header
LB: loop body
LE: loop exit
PB: predicated region body
PF: predicated region fallthrough
CT: control target
= control target key end

     0   :  { %s985_s18 = smov 0   ;;  %s987_s19 = smov 0   ;;  %s1230_s0 = inlined_call_operand.vmem [shape: f32[256,128], index: 0, kind: input, shape index: {}]   ;;  %s1231_s1 = inlined_call_operand.vmem [shape: f32[256,128], index: 1, kind: input, shape index: {}]   ;;  %s1232_s2 = inlined_call_operand.vmem [shape: s8[256,128], index: 2, kind: input, shape index: {}]   ;;  %s1233_s3 = inlined_call_operand.vmem [shape: f32[2,8,128], index: 3, kind: output, shape index: {0}]   ;;  %s1234_s4 = inlined_call_operand.vmem [shape: f32[2,8,128], index: 4, kind: output, shape index: {1}]   ;;  %s1235_s5 = inlined_call_operand.vmem [shape: f32[2,8,128], index: 5, kind: output, shape index: {2}]  }
   0x1   :  { %s989_s20 = smov 0  }
   0x2 LB: > { %s28_s21 = sadd.s32 1, %s949_s19  ;;  %p791_p0 = scmp.ge.s32.totalorder %s953_s20, 1  ;;  %s953_s20 = sphi %s989_s20, %s16_s20   ;;  %s949_s19 = sphi %s987_s19, %s1237_s19   ;;  %s945_s18 = sphi %s985_s18, %s1236_s18  }
   0x3   : > { %p30_p1 = scmp.ge.s32.totalorder %s28_s21, 2  ;;  %p239_p2 = scmp.lt.s32.totalorder %s953_s20, 3 }
   0x5   : > { %s1239_s21 = smov (%p30_p1, %s28_s21), 0  ;;  %p240_p3 = pnand %p791_p0, %p239_p2 }
   0x6   : > { %s792_s22 = sshll.u32 (!%p240_p3), %s945_s18, 4  ;;  %p311_p5 = scmp.lt.s32.totalorder (!%p240_p3), %s945_s18, 1 }
   0x7   : > { %243 = sbr.rel (%p240_p3) target bundleno = 96 (0x60), region = 32  ;;  %p289_p4 = scmp.lt.s32.totalorder (!%p240_p3), %s792_s22, 31 }
   0xc   : > { %s1241_s22 = smov (!%p289_p4, %s792_s22), 31  ;;  %s1243_s18 = smov (!%p311_p5, %s945_s18), 1 }
   0xd   : > { %s797_s23 = sshll.u32 %s1241_s22, 1  ;;  %s793_s27 = sshll.u32 %s1241_s22, 3 }
   0xe   : > { %s308_s26 = scalar_lea.vmem %s1232_s2, %s797_s23  ;;  %s1022_s30 = scalar_lea.vmem %s1230_s0, %s793_s27 }
   0xf   : > { %v804_v0 = vld [vmem:[%s308_s26] sm:$0xff]   ;;  %v836_v4 = vld [vmem:[%s308_s26 + $0x8] sm:$0xff]   ;;  %v838_v12 = vld [vmem:[%s308_s26 + $0x10] sm:$0xff]   ;;  %s1070_s8 = scalar_lea.vmem %s1231_s1, %s793_s27  ;;  %s1146_s9 = sshll.u32 %s1243_s18, 3 }
  0x10   : > { %v805_v1 = vunpack.c.0.s8 %v804_v0  ;;  %v806_v2 = vunpack.c.1.s8 %v804_v0  ;;  %v809_v3 = vunpack.c.2.s8 %v804_v0  ;;  %v810_v5 = vunpack.c.3.s8 %v804_v0  ;;  %v330_v15 = vld [vmem:[%s1022_s30] sm:$0xff]  ;;  %v331_v17 = vld [vmem:[%s1022_s30 + $0x8] sm:$0xff]  ;;  %v332_v21 = vld [vmem:[%s1022_s30 + $0x10] sm:$0xff]  ;;  %s314_s12 = scalar_lea.vmem %s1233_s3, %s1146_s9  ;;  %s318_s15 = scalar_lea.vmem %s1234_s4, %s1146_s9 }
  0x11   : > { %v813_v8 = vunpack.c.0.s8 %v836_v4  ;;  %v814_v11 = vunpack.c.1.s8 %v836_v4  ;;  %v817_v16 = vunpack.c.2.s8 %v836_v4  ;;  %v818_v18 = vunpack.c.3.s8 %v836_v4  ;;  %v333_v23 = vld [vmem:[%s1022_s30 + $0x18] sm:$0xff]  ;;  %v334_v29 = vld [vmem:[%s1022_s30 + $0x20] sm:$0xff]  ;;  %v335_v33 = vld [vmem:[%s1022_s30 + $0x28] sm:$0xff]  ;;  %s322_s18 = scalar_lea.vmem %s1235_s5, %s1146_s9 }
  0x12   : > { %v1013_v6 = vcvt.s32.f32 %v805_v1  ;;  %v1015_v7 = vcvt.s32.f32 %v806_v2  ;;  %v1024_v9 = vcvt.s32.f32 %v809_v3  ;;  %v1028_v13 = vcvt.s32.f32 %v810_v5  ;;  %v1039_v26 = vld [vmem:[%s308_s26 + $0x18] sm:$0xff]   ;;  %v336_v38 = vld [vmem:[%s1022_s30 + $0x30] sm:$0xff]  ;;  %v338_v47 = vld [vmem:[%s1022_s30 + $0x40] sm:$0xff] }
  0x13   : > { %v1033_v19 = vcvt.s32.f32 %v813_v8  ;;  %v821_v22 = vunpack.c.0.s8 %v838_v12  ;;  %v822_v25 = vunpack.c.1.s8 %v838_v12  ;;  %v1041_v27 = vcvt.s32.f32 %v814_v11  ;;  %v337_v42 = vld [vmem:[%s1022_s30 + $0x38] sm:$0xff]  ;;  %v339_v52 = vld [vmem:[%s1022_s30 + $0x48] sm:$0xff]  ;;  %v340_v57 = vld [vmem:[%s1022_s30 + $0x50] sm:$0xff] }
  0x14   : > { %v571_v10 = vadd.f32 %v1015_v7, %v1013_v6  ;;  %v410_v24 = vmul.f32 %v1013_v6, %v330_v15  ;;  %v411_v30 = vmul.f32 %v1015_v7, %v331_v17  ;;  %v825_v31 = vunpack.c.2.s8 %v838_v12  ;;  %v341_v61 = vld [vmem:[%s1022_s30 + $0x58] sm:$0xff]  ;;  %v346_v1 = vld [vmem:[%s1070_s8] sm:$0xff]  ;;  %v347_v5 = vld [vmem:[%s1070_s8 + $0x8] sm:$0xff] }
  0x15   : > { %v1046_v32 = vcvt.s32.f32 %v817_v16  ;;  %v412_v34 = vmul.f32 %v1024_v9, %v332_v21  ;;  %v826_v35 = vunpack.c.3.s8 %v838_v12  ;;  %v1050_v36 = vcvt.s32.f32 %v818_v18  ;;  %v348_v12 = vld [vmem:[%s1070_s8 + $0x10] sm:$0xff]  ;;  %v349_v17 = vld [vmem:[%s1070_s8 + $0x18] sm:$0xff] }
  0x16   : > { %v572_v14 = vadd.f32 %v571_v10, %v1024_v9  ;;  %v413_v39 = vmul.f32 %v1028_v13, %v333_v23  ;;  %v829_v40 = vunpack.c.0.s8 %v1039_v26  ;;  %v1056_v41 = vcvt.s32.f32 %v821_v22  ;;  %v350_v22 = vld [vmem:[%s1070_s8 + $0x20] sm:$0xff] }
  0x17   : > { %v414_v43 = vmul.f32 %v1033_v19, %v334_v29  ;;  %v426_v44 = vadd.f32 1e-06, %v410_v24  ;;  %v1060_v45 = vcvt.s32.f32 %v822_v25  ;;  %v415_v48 = vmul.f32 %v1041_v27, %v335_v33 }
  0x18   : > { %v573_v20 = vadd.f32 %v572_v14, %v1028_v13  ;;  %v427_v49 = vadd.f32 1e-06, %v411_v30  ;;  %v830_v50 = vunpack.c.1.s8 %v1039_v26  ;;  %v1073_v51 = vcvt.s32.f32 %v825_v31 }
  0x19   : > { %v416_v53 = vmul.f32 %v1046_v32, %v336_v38  ;;  %v428_v54 = vadd.f32 1e-06, %v412_v34  ;;  %v1077_v55 = vcvt.s32.f32 %v826_v35  ;;  %v417_v58 = vmul.f32 %v1050_v36, %v337_v42  ;;  %v342_v34 = vld [vmem:[%s1022_s30 + $0x60] sm:$0xff] }
  0x1a   : > { %v574_v28 = vadd.f32 %v573_v20, %v1033_v19  ;;  %v429_v59 = vadd.f32 1e-06, %v413_v39  ;;  %v833_v60 = vunpack.c.2.s8 %v1039_v26  ;;  %v418_v62 = vmul.f32 %v1056_v41, %v338_v47  ;;  %v343_v47 = vld [vmem:[%s1022_s30 + $0x68] sm:$0xff] }
  0x1b   : > { %v430_v63 = vadd.f32 1e-06, %v414_v43  ;;  %867 = vlog2.f32 %v426_v44  ;;  %v419_v2 = vmul.f32 %v1060_v45, %v339_v52  ;;  %v431_v3 = vadd.f32 1e-06, %v415_v48  ;;  %v344_v48 = vld [vmem:[%s1022_s30 + $0x70] sm:$0xff] }
  0x1c   : > { %v575_v37 = vadd.f32 %v574_v28, %v1041_v27  ;;  %869 = vlog2.f32 %v427_v49  ;;  %v834_v4 = vunpack.c.3.s8 %v1039_v26  ;;  %v420_v8 = vmul.f32 %v1073_v51, %v340_v57  ;;  %v351_v28 = vld [vmem:[%s1070_s8 + $0x28] sm:$0xff] }
  0x1d   : > { %v432_v10 = vadd.f32 1e-06, %v416_v53  ;;  %871 = vlog2.f32 %v428_v54  ;;  %v421_v14 = vmul.f32 %v1077_v55, %v341_v61  ;;  %v433_v15 = vadd.f32 1e-06, %v417_v58  ;;  %v353_v54 = vld [vmem:[%s1070_s8 + $0x38] sm:$0xff] }
  0x1e   : > { %v576_v46 = vadd.f32 %v575_v37, %v1046_v32  ;;  %873 = vlog2.f32 %v429_v59  ;;  %v1094_v16 = vcvt.s32.f32 %v829_v40  ;;  %v434_v18 = vadd.f32 1e-06, %v418_v62  ;;  %v352_v40 = vld [vmem:[%s1070_s8 + $0x30] sm:$0xff] }
  0x1f   : > { %875 = vlog2.f32 %v430_v63  ;;  %v474_v20 = vmul.f32 %v1013_v6, %v346_v1  ;;  %v435_v23 = vadd.f32 1e-06, %v419_v2  ;;  %v475_v24 = vmul.f32 %v1015_v7, %v347_v5 }
  0x20   : > { %v577_v56 = vadd.f32 %v576_v46, %v1050_v36  ;;  %877 = vlog2.f32 %v431_v3  ;;  %v1104_v26 = vcvt.s32.f32 %v830_v50  ;;  %v436_v29 = vadd.f32 1e-06, %v420_v8  ;;  %v355_v8 = vld [vmem:[%s1070_s8 + $0x48] sm:$0xff] }
  0x21   : > { %v1102_v25 = vpop.eup %867  ;;  %879 = vlog2.f32 %v432_v10  ;;  %v476_v30 = vmul.f32 %v1024_v9, %v348_v12  ;;  %v437_v35 = vadd.f32 1e-06, %v421_v14  ;;  %v477_v37 = vmul.f32 %v1028_v13, %v349_v17  ;;  %v356_v14 = vld [vmem:[%s1070_s8 + $0x50] sm:$0xff] }
  0x22   : > { %v578_v0 = vadd.f32 %v577_v56, %v1056_v41  ;;  %v1108_v31 = vpop.eup %869  ;;  %881 = vlog2.f32 %v433_v15  ;;  %v1115_v39 = vcvt.s32.f32 %v833_v60  ;;  %v478_v42 = vmul.f32 %v1033_v19, %v350_v22  ;;  %v354_v60 = vld [vmem:[%s1070_s8 + $0x40] sm:$0xff] }
  0x23   : > { %v1113_v38 = vpop.eup %871  ;;  %883 = vlog2.f32 %v434_v18  ;;  %v490_v43 = vadd.f32 1e-06, %v474_v20  ;;  %v479_v49 = vmul.f32 %v1041_v27, %v351_v28  ;;  %v491_v50 = vadd.f32 1e-06, %v475_v24  ;;  %v357_v24 = vld [vmem:[%s1070_s8 + $0x58] sm:$0xff]  ;;  %v358_v28 = vld [vmem:[%s1070_s8 + $0x60] sm:$0xff] }
  0x24   : > { %v579_v11 = vadd.f32 %v578_v0, %v1060_v45  ;;  %v1119_v44 = vpop.eup %873  ;;  %885 = vlog2.f32 %v435_v23  ;;  %v1130_v53 = vcvt.s32.f32 %v834_v4  ;;  %v422_v56 = vmul.f32 %v1094_v16, %v342_v34  ;;  %v345_v0 = vld [vmem:[%s1022_s30 + $0x78] sm:$0xff] }
  0x25   : > { %v1128_v52 = vpop.eup %875  ;;  %887 = vlog2.f32 %v436_v29  ;;  %v492_v57 = vadd.f32 1e-06, %v476_v30  ;;  %v480_v61 = vmul.f32 %v1046_v32, %v352_v40  ;;  %v493_v62 = vadd.f32 1e-06, %v477_v37 }
  0x26   : > { %v580_v21 = vadd.f32 %v579_v11, %v1073_v51  ;;  %v1134_v58 = vpop.eup %877  ;;  %889 = vlog2.f32 %v437_v35  ;;  %v423_v1 = vmul.f32 %v1104_v26, %v343_v47  ;;  %v424_v2 = vmul.f32 %v1115_v39, %v344_v48  ;;  %v359_v48 = vld [vmem:[%s1070_s8 + $0x68] sm:$0xff] }
  0x27   : > { %v1139_v63 = vpop.eup %879  ;;  %v494_v3 = vadd.f32 1e-06, %v478_v42  ;;  %891 = vlog2.f32 %v490_v43  ;;  %v481_v10 = vmul.f32 %v1050_v36, %v353_v54  ;;  %v495_v11 = vadd.f32 1e-06, %v479_v49 }
  0x28   : > { %v581_v33 = vadd.f32 %v580_v21, %v1077_v55  ;;  %v1144_v4 = vpop.eup %881  ;;  %893 = vlog2.f32 %v491_v50  ;;  %v438_v15 = vadd.f32 1e-06, %v422_v56  ;;  %v482_v17 = vmul.f32 %v1056_v41, %v354_v60 }
  0x29   : > { %v1151_v12 = vpop.eup %883  ;;  %895 = vlog2.f32 %v492_v57  ;;  %v425_v21 = vmul.f32 %v1130_v53, %v345_v0  ;;  %v496_v22 = vadd.f32 1e-06, %v480_v61  ;;  %v439_v29 = vadd.f32 1e-06, %v423_v1  ;;  %v360_v1 = vld [vmem:[%s1070_s8 + $0x70] sm:$0xff] }
  0x2a   : > { %v582_v46 = vadd.f32 %v581_v33, %v1094_v16  ;;  %v1155_v18 = vpop.eup %885  ;;  %897 = vlog2.f32 %v493_v62  ;;  %v440_v30 = vadd.f32 1e-06, %v424_v2  ;;  %v483_v33 = vmul.f32 %v1060_v45, %v355_v8 }
  0x2b   : > { %v1159_v23 = vpop.eup %887  ;;  %899 = vlog2.f32 %v494_v3  ;;  %v484_v35 = vmul.f32 %v1073_v51, %v356_v14  ;;  %v497_v37 = vadd.f32 1e-06, %v481_v10  ;;  %v443_v42 = vmul.f32 0.6931472, %v1102_v25 }
  0x2c   : > { %v583_v59 = vadd.f32 %v582_v46, %v1104_v26  ;;  %v1168_v34 = vpop.eup %889  ;;  %901 = vlog2.f32 %v495_v11  ;;  %v445_v43 = vmul.f32 0.6931472, %v1108_v31  ;;  %v498_v46 = vadd.f32 1e-06, %v482_v17 }
  0x2d   : > { %v892_v40 = vpop.eup %891  ;;  %903 = vlog2.f32 %v438_v15  ;;  %v485_v49 = vmul.f32 %v1077_v55, %v357_v24  ;;  %v486_v50 = vmul.f32 %v1094_v16, %v358_v28  ;;  %v447_v57 = vmul.f32 0.6931472, %v1113_v38  ;;  %v361_v15 = vld [vmem:[%s1070_s8 + $0x78] sm:$0xff] }
  0x2e   : > { %v584_v5 = vadd.f32 %v583_v59, %v1115_v39  ;;  %v894_v47 = vpop.eup %893  ;;  %v507_v54 = vmul.f32 0.6931472, %v892_v40  ;;  %905 = vlog2.f32 %v496_v22  ;;  %v499_v59 = vadd.f32 1e-06, %v483_v33 }
  0x2f   : > { %v896_v56 = vpop.eup %895  ;;  %907 = vlog2.f32 %v439_v29  ;;  %v509_v25 = vmul.f32 0.6931472, %v894_v47  ;;  %v449_v31 = vmul.f32 0.6931472, %v1119_v44  ;;  %v500_v61 = vadd.f32 1e-06, %v484_v35 }
  0x30   : > { %v585_v20 = vadd.f32 %v584_v5, %v1130_v53  ;;  %v898_v60 = vpop.eup %897  ;;  %v511_v62 = vmul.f32 0.6931472, %v896_v56  ;;  %909 = vlog2.f32 %v497_v37  ;;  %v538_v3 = vsub.f32 %v443_v42, %v507_v54 }
  0x31   : > { %v900_v0 = vpop.eup %899  ;;  %v513_v2 = vmul.f32 0.6931472, %v898_v60  ;;  %911 = vlog2.f32 %v498_v46  ;;  %v539_v5 = vsub.f32 %v445_v43, %v509_v25  ;;  %v441_v10 = vadd.f32 1e-06, %v425_v21 }
  0x32   : > { %587 = vst [vmem:[%s314_s12] sm:$0xff] %v585_v20  ;;  %v902_v8 = vpop.eup %901  ;;  %913 = vlog2.f32 %v440_v30  ;;  %v487_v38 = vmul.f32 %v1104_v26, %v359_v48  ;;  %v501_v11 = vadd.f32 1e-06, %v485_v49  ;;  %v451_v44 = vmul.f32 0.6931472, %v1128_v52 }
  0x33   : > { %v1180_v14 = vpop.eup %903  ;;  %v515_v17 = vmul.f32 0.6931472, %v900_v0  ;;  %915 = vlog2.f32 %v499_v59  ;;  %v540_v20 = vsub.f32 %v447_v57, %v511_v62  ;;  %v453_v24 = vmul.f32 0.6931472, %v1134_v58 }
  0x34   : > { %v906_v22 = vpop.eup %905  ;;  %v488_v28 = vmul.f32 %v1115_v39, %v360_v1  ;;  %v502_v29 = vadd.f32 1e-06, %v486_v50  ;;  %917 = vlog2.f32 %v500_v61  ;;  %v517_v30 = vmul.f32 0.6931472, %v902_v8 }
  0x35   : > { %v1186_v21 = vpop.eup %907  ;;  %v541_v33 = vsub.f32 %v449_v31, %v513_v2  ;;  %v554_v35 = vmul.f32 %v538_v3, %v1013_v6  ;;  %v555_v37 = vmul.f32 %v539_v5, %v1015_v7  ;;  %v455_v52 = vmul.f32 0.6931472, %v1139_v63 }
  0x36   : > { %v910_v40 = vpop.eup %909  ;;  %v489_v42 = vmul.f32 %v1130_v53, %v361_v15  ;;  %v503_v43 = vadd.f32 1e-06, %v487_v38  ;;  %919 = vlog2.f32 %v501_v11  ;;  %v519_v46 = vmul.f32 0.6931472, %v906_v22 }
  0x37   : > { %v912_v58 = vpop.eup %911  ;;  %v542_v47 = vsub.f32 %v451_v44, %v515_v17  ;;  %v556_v48 = vmul.f32 %v540_v20, %v1024_v9  ;;  %v589_v49 = vadd.f32 %v555_v37, %v554_v35  ;;  %v457_v54 = vmul.f32 0.6931472, %v1144_v4 }
  0x38   : > { %v914_v50 = vpop.eup %913  ;;  %v504_v56 = vadd.f32 1e-06, %v488_v28  ;;  %921 = vlog2.f32 %v502_v29  ;;  %v521_v7 = vmul.f32 0.6931472, %v910_v40  ;;  %v543_v57 = vsub.f32 %v453_v24, %v517_v30 }
  0x39   : > { %v916_v6 = vpop.eup %915  ;;  %v557_v63 = vmul.f32 %v541_v33, %v1028_v13  ;;  %v590_v59 = vadd.f32 %v589_v49, %v556_v48  ;;  %v459_v60 = vmul.f32 0.6931472, %v1151_v12  ;;  %923 = vlog2.f32 %v441_v10 }
  0x3a   : > { %v918_v25 = vpop.eup %917  ;;  %v505_v31 = vadd.f32 1e-06, %v489_v42  ;;  %v523_v61 = vmul.f32 0.6931472, %v912_v58  ;;  %925 = vlog2.f32 %v503_v43  ;;  %v544_v9 = vsub.f32 %v455_v52, %v519_v46 }
  0x3b   : > { %v558_v62 = vmul.f32 %v542_v47, %v1033_v19  ;;  %v591_v0 = vadd.f32 %v590_v59, %v557_v63  ;;  %v461_v1 = vmul.f32 0.6931472, %v1155_v18  ;;  %927 = vlog2.f32 %v504_v56 }
  0x3c   : > { %v920_v4 = vpop.eup %919  ;;  %v525_v2 = vmul.f32 0.6931472, %v916_v6  ;;  %v545_v3 = vsub.f32 %v457_v54, %v521_v7  ;;  %v559_v13 = vmul.f32 %v543_v57, %v1041_v27  ;;  %v463_v12 = vmul.f32 0.6931472, %v1159_v23 }
  0x3d   : > { %v592_v5 = vadd.f32 %v591_v0, %v558_v62  ;;  %v527_v10 = vmul.f32 0.6931472, %v918_v25  ;;  %929 = vlog2.f32 %v505_v31  ;;  %v546_v38 = vsub.f32 %v459_v60, %v523_v61 }
  0x3e   : > { %v922_v8 = vpop.eup %921  ;;  %v560_v11 = vmul.f32 %v544_v9, %v1046_v32  ;;  %v607_v19 = vmul.f32 %v554_v35, %v554_v35  ;;  %v608_v44 = vmul.f32 %v555_v37, %v555_v37  ;;  %v465_v18 = vmul.f32 0.6931472, %v1168_v34 }
  0x3f   : > { %v593_v15 = vadd.f32 %v592_v5, %v559_v13  ;;  %v924_v17 = vpop.eup %923  ;;  %v529_v20 = vmul.f32 0.6931472, %v920_v4  ;;  %v547_v24 = vsub.f32 %v461_v1, %v525_v2  ;;  %v561_v27 = vmul.f32 %v545_v3, %v1050_v36 }
  0x40   : > { %v926_v22 = vpop.eup %925  ;;  %v609_v29 = vmul.f32 %v556_v48, %v556_v48  ;;  %v467_v23 = vmul.f32 0.6931472, %v1180_v14  ;;  %v531_v33 = vmul.f32 0.6931472, %v922_v8  ;;  %v548_v40 = vsub.f32 %v463_v12, %v527_v10 }
  0x41   : > { %v594_v28 = vadd.f32 %v593_v15, %v560_v11  ;;  %v928_v30 = vpop.eup %927  ;;  %v562_v32 = vmul.f32 %v546_v38, %v1056_v41  ;;  %v610_v35 = vmul.f32 %v557_v63, %v557_v63  ;;  %v623_v37 = vadd.f32 %v608_v44, %v607_v19 }
  0x42   : > { %v469_v34 = vmul.f32 0.6931472, %v1186_v21  ;;  %v533_v43 = vmul.f32 0.6931472, %v926_v22  ;;  %v549_v58 = vsub.f32 %v465_v18, %v529_v20  ;;  %v563_v46 = vmul.f32 %v547_v24, %v1060_v45 }
  0x43   : > { %v595_v52 = vadd.f32 %v594_v28, %v561_v27  ;;  %v930_v42 = vpop.eup %929  ;;  %v611_v47 = vmul.f32 %v558_v62, %v558_v62  ;;  %v624_v48 = vadd.f32 %v623_v37, %v609_v29  ;;  %v471_v49 = vmul.f32 0.6931472, %v914_v50 }
  0x44   : > { %v535_v54 = vmul.f32 0.6931472, %v928_v30  ;;  %v550_v14 = vsub.f32 %v467_v23, %v531_v33  ;;  %v564_v56 = vmul.f32 %v548_v40, %v1073_v51  ;;  %v612_v41 = vmul.f32 %v559_v13, %v559_v13 }
  0x45   : > { %v596_v36 = vadd.f32 %v595_v52, %v562_v32  ;;  %v625_v7 = vadd.f32 %v624_v48, %v610_v35  ;;  %v473_v57 = vmul.f32 0.6931472, %v924_v17  ;;  %v537_v63 = vmul.f32 0.6931472, %v930_v42 }
  0x46   : > { %v551_v59 = vsub.f32 %v469_v34, %v533_v43  ;;  %v565_v21 = vmul.f32 %v549_v58, %v1077_v55  ;;  %v613_v60 = vmul.f32 %v560_v11, %v560_v11  ;;  %v552_v45 = vsub.f32 %v471_v49, %v535_v54 }
  0x47   : > { %v597_v6 = vadd.f32 %v596_v36, %v563_v46  ;;  %v626_v31 = vadd.f32 %v625_v7, %v611_v47  ;;  %v566_v61 = vmul.f32 %v550_v14, %v1094_v16  ;;  %v614_v50 = vmul.f32 %v561_v27, %v561_v27 }
  0x48   : > { %v553_v0 = vsub.f32 %v473_v57, %v537_v63  ;;  %v567_v51 = vmul.f32 %v551_v59, %v1104_v26  ;;  %v615_v1 = vmul.f32 %v562_v32, %v562_v32  ;;  %v568_v3 = vmul.f32 %v552_v45, %v1115_v39 }
  0x49   : > { %v598_v25 = vadd.f32 %v597_v6, %v564_v56  ;;  %v627_v62 = vadd.f32 %v626_v31, %v612_v41  ;;  %v616_v55 = vmul.f32 %v563_v46, %v563_v46  ;;  %v617_v10 = vmul.f32 %v564_v56, %v564_v56 }
  0x4a   : > { %v569_v8 = vmul.f32 %v553_v0, %v1130_v53  ;;  %v618_v11 = vmul.f32 %v565_v21, %v565_v21  ;;  %v619_v26 = vmul.f32 %v566_v61, %v566_v61  ;;  %v620_v39 = vmul.f32 %v567_v51, %v567_v51 }
  0x4b   : > { %v599_v9 = vadd.f32 %v598_v25, %v565_v21  ;;  %v628_v2 = vadd.f32 %v627_v62, %v613_v60  ;;  %v621_v17 = vmul.f32 %v568_v3, %v568_v3 }
  0x4c   : > { %v622_v20 = vmul.f32 %v569_v8, %v569_v8 }
  0x4d   : > { %v600_v4 = vadd.f32 %v599_v9, %v566_v61  ;;  %v629_v5 = vadd.f32 %v628_v2, %v614_v50 }
  0x4f   : > { %v601_v13 = vadd.f32 %v600_v4, %v567_v51  ;;  %v630_v16 = vadd.f32 %v629_v5, %v615_v1 }
  0x51   : > { %v602_v12 = vadd.f32 %v601_v13, %v568_v3  ;;  %v631_v15 = vadd.f32 %v630_v16, %v616_v55 }
  0x53   : > { %v603_v38 = vadd.f32 %v602_v12, %v569_v8  ;;  %v632_v19 = vadd.f32 %v631_v15, %v617_v10 }
  0x55   : > { %605 = vst [vmem:[%s318_s15] sm:$0xff] %v603_v38  ;;  %v633_v44 = vadd.f32 %v632_v19, %v618_v11 }
  0x57   : > { %v634_v18 = vadd.f32 %v633_v44, %v619_v26 }
  0x59   : > { %v635_v53 = vadd.f32 %v634_v18, %v620_v39 }
  0x5b   : > { %v636_v22 = vadd.f32 %v635_v53, %v621_v17 }
  0x5d   : > { %v637_v24 = vadd.f32 %v636_v22, %v622_v20 }
  0x5f   : > { %639 = vst [vmem:[%s322_s18] sm:$0xff] %v637_v24 }
  0x60 PF: > { %s16_s20 = sadd.s32 1, %s953_s20   ;;  %s1236_s18 = smov %s949_s19 }
  0x61   : > { %p13_p6 = scmp.ge.s32.totalorder %s16_s20, 4   ;;  %s1237_s19 = smov %s1239_s21 }
  0x63   :  { %15 = sbr.rel (!%p13_p6) target bundleno = 2 (0x2), region = 96 }

// kernel: scale_shift_invariant_loss.4
= control target key start
LH: loop header
LB: loop body
LE: loop exit
PB: predicated region body
PF: predicated region fallthrough
CT: control target
= control target key end

     0   :  { %s2002_s18 = smov 0   ;;  %s2004_s19 = smov 0   ;;  %s3709_s0 = inlined_call_operand.vmem [shape: f32[1024,128], index: 0, kind: input, shape index: {}]   ;;  %s3710_s1 = inlined_call_operand.vmem [shape: f32[1024,128], index: 1, kind: input, shape index: {}]   ;;  %s3711_s2 = inlined_call_operand.vmem [shape: s8[1024,128], index: 2, kind: input, shape index: {}]   ;;  %s3712_s3 = inlined_call_operand.vmem [shape: f32[2,8,128], index: 3, kind: output, shape index: {0}]   ;;  %s3713_s4 = inlined_call_operand.vmem [shape: f32[2,8,128], index: 4, kind: output, shape index: {1}]   ;;  %s3714_s5 = inlined_call_operand.vmem [shape: f32[2,8,128], index: 5, kind: output, shape index: {2}]  }
   0x1   :  { %s2006_s20 = smov 0  }
   0x2 LB: > { %s28_s21 = sadd.s32 1, %s1966_s19  ;;  %p1655_p0 = scmp.ge.s32.totalorder %s1970_s20, 1  ;;  %s1970_s20 = sphi %s2006_s20, %s16_s20   ;;  %s1966_s19 = sphi %s2004_s19, %s4397_s19   ;;  %s1962_s18 = sphi %s2002_s18, %s4396_s18  }
   0x3   : > { %p30_p1 = scmp.ge.s32.totalorder %s28_s21, 2  ;;  %p239_p2 = scmp.lt.s32.totalorder %s1970_s20, 3 }
   0x5   : > { %s4399_s21 = smov (%p30_p1, %s28_s21), 0  ;;  %p240_p3 = pnand %p1655_p0, %p239_p2 }
   0x7   : > { %243 = sbr.rel (%p240_p3) target bundleno = 394 (0x18a), region = 32 }
   0xc   : > { %s1660_s22 = sshll.u32 %s1962_s18, 4  ;;  %s1656_s24 = sshll.u32 %s1962_s18, 6 }
   0xd   : > { %p305_p4 = scmp.lt.s32.totalorder %s1660_s22, 31  ;;  %p289_p5 = scmp.lt.s32.totalorder %s1656_s24, 127 }
   0xe   : > { %p311_p6 = scmp.lt.s32.totalorder %s1962_s18, 1 }
   0xf   : > { %s4401_s22 = smov (!%p305_p4, %s1660_s22), 31  ;;  %s4403_s24 = smov (!%p289_p5, %s1656_s24), 127 }
  0x10   : > { %s1661_s23 = sshll.u32 %s4401_s22, 3  ;;  %s1657_s28 = sshll.u32 %s4403_s24, 3 }
  0x11   : > { %s2027_s27 = scalar_lea.vmem %s3711_s2, %s1661_s23  ;;  %s2052_s6 = scalar_lea.vmem %s3709_s0, %s1657_s28 }
  0x12   : > { %v467_v0 = vld [vmem:[%s2027_s27 + $0x48] sm:$0xff]  ;;  %v468_v1 = vld [vmem:[%s2027_s27 + $0x50] sm:$0xff]  ;;  %v469_v2 = vld [vmem:[%s2027_s27 + $0x58] sm:$0xff]  ;;  %s2382_s9 = scalar_lea.vmem %s3710_s1, %s1657_s28  ;;  %s4405_s18 = smov (!%p311_p6, %s1962_s18), 1 }
  0x13   : > { %v470_v3 = vld [vmem:[%s2027_s27 + $0x60] sm:$0xff]  ;;  %v510_v4 = vunpack.c.0.s8 %v467_v0  ;;  %v511_v5 = vunpack.c.1.s8 %v467_v0  ;;  %v512_v6 = vunpack.c.2.s8 %v467_v0  ;;  %v513_v7 = vunpack.c.3.s8 %v467_v0  ;;  %v471_v8 = vld [vmem:[%s2027_s27 + $0x68] sm:$0xff]  ;;  %v472_v13 = vld [vmem:[%s2027_s27 + $0x70] sm:$0xff]  ;;  %s1662_s10 = sshll.u32 %s4405_s18, 3 }
  0x14   : > { %v514_v9 = vunpack.c.0.s8 %v468_v1  ;;  %v515_v10 = vunpack.c.1.s8 %v468_v1  ;;  %v516_v11 = vunpack.c.2.s8 %v468_v1  ;;  %v517_v12 = vunpack.c.3.s8 %v468_v1  ;;  %v473_v18 = vld [vmem:[%s2027_s27 + $0x78] sm:$0xff]  ;;  %v366_v43 = vld [vmem:[%s2052_s6 + $0x120] sm:$0xff]  ;;  %v367_v44 = vld [vmem:[%s2052_s6 + $0x128] sm:$0xff]  ;;  %s314_s13 = scalar_lea.vmem %s3712_s3, %s1662_s10  ;;  %s318_s16 = scalar_lea.vmem %s3713_s4, %s1662_s10 }
  0x15   : > { %v518_v14 = vunpack.c.0.s8 %v469_v2  ;;  %v519_v15 = vunpack.c.1.s8 %v469_v2  ;;  %v520_v16 = vunpack.c.2.s8 %v469_v2  ;;  %v521_v17 = vunpack.c.3.s8 %v469_v2  ;;  %v368_v45 = vld [vmem:[%s2052_s6 + $0x130] sm:$0xff]  ;;  %v369_v46 = vld [vmem:[%s2052_s6 + $0x138] sm:$0xff]  ;;  %v370_v51 = vld [vmem:[%s2052_s6 + $0x140] sm:$0xff]  ;;  %s322_s22 = scalar_lea.vmem %s3714_s5, %s1662_s10 }
  0x16   : > { %v522_v19 = vunpack.c.0.s8 %v470_v3  ;;  %v523_v20 = vunpack.c.1.s8 %v470_v3  ;;  %v524_v21 = vunpack.c.2.s8 %v470_v3  ;;  %v525_v22 = vunpack.c.3.s8 %v470_v3  ;;  %v371_v52 = vld [vmem:[%s2052_s6 + $0x148] sm:$0xff]  ;;  %v372_v53 = vld [vmem:[%s2052_s6 + $0x150] sm:$0xff]  ;;  %v373_v58 = vld [vmem:[%s2052_s6 + $0x158] sm:$0xff] }
  0x17   : > { %v526_v23 = vunpack.c.0.s8 %v471_v8  ;;  %v527_v24 = vunpack.c.1.s8 %v471_v8  ;;  %v528_v25 = vunpack.c.2.s8 %v471_v8  ;;  %v529_v26 = vunpack.c.3.s8 %v471_v8  ;;  %v374_v59 = vld [vmem:[%s2052_s6 + $0x160] sm:$0xff]  ;;  %v375_v60 = vld [vmem:[%s2052_s6 + $0x168] sm:$0xff]  ;;  %v376_v1 = vld [vmem:[%s2052_s6 + $0x170] sm:$0xff] }
  0x18   : > { %v530_v27 = vunpack.c.0.s8 %v472_v13  ;;  %v531_v28 = vunpack.c.1.s8 %v472_v13  ;;  %v532_v29 = vunpack.c.2.s8 %v472_v13  ;;  %v533_v30 = vunpack.c.3.s8 %v472_v13  ;;  %v377_v2 = vld [vmem:[%s2052_s6 + $0x178] sm:$0xff]  ;;  %v378_v3 = vld [vmem:[%s2052_s6 + $0x180] sm:$0xff]  ;;  %v379_v8 = vld [vmem:[%s2052_s6 + $0x188] sm:$0xff] }
  0x19   : > { %v534_v31 = vunpack.c.0.s8 %v473_v18  ;;  %v535_v32 = vunpack.c.1.s8 %v473_v18  ;;  %v536_v33 = vunpack.c.2.s8 %v473_v18  ;;  %v537_v34 = vunpack.c.3.s8 %v473_v18 }
  0x1a   : > { %v2039_v35 = vcvt.s32.f32 %v510_v4  ;;  %v2041_v36 = vcvt.s32.f32 %v511_v5  ;;  %v2043_v37 = vcvt.s32.f32 %v512_v6  ;;  %v2045_v38 = vcvt.s32.f32 %v513_v7 }
  0x1b   : > { %v2054_v39 = vcvt.s32.f32 %v514_v9  ;;  %v2056_v40 = vcvt.s32.f32 %v515_v10  ;;  %v2058_v41 = vcvt.s32.f32 %v516_v11  ;;  %v2060_v42 = vcvt.s32.f32 %v517_v12  ;;  %v380_v9 = vld [vmem:[%s2052_s6 + $0x190] sm:$0xff]  ;;  %v381_v10 = vld [vmem:[%s2052_s6 + $0x198] sm:$0xff] }
  0x1c   : > { %3872 = vst [vmem:[#allocation2_spill] sm:$0xff] %v2039_v35  ;;  %v2066_v47 = vcvt.s32.f32 %v518_v14  ;;  %v2068_v48 = vcvt.s32.f32 %v519_v15  ;;  %v2070_v49 = vcvt.s32.f32 %v520_v16  ;;  %v2072_v50 = vcvt.s32.f32 %v521_v17  ;;  %v382_v15 = vld [vmem:[%s2052_s6 + $0x1a0] sm:$0xff]  ;;  %v383_v16 = vld [vmem:[%s2052_s6 + $0x1a8] sm:$0xff]  ;;  %v384_v17 = vld [vmem:[%s2052_s6 + $0x1b0] sm:$0xff] }
  0x1d   : > { %3873 = vst [vmem:[#allocation3_spill] sm:$0xff] %v2041_v36  ;;  %v2077_v54 = vcvt.s32.f32 %v522_v19  ;;  %v2079_v55 = vcvt.s32.f32 %v523_v20  ;;  %v2081_v56 = vcvt.s32.f32 %v524_v21  ;;  %v2083_v57 = vcvt.s32.f32 %v525_v22  ;;  %v385_v22 = vld [vmem:[%s2052_s6 + $0x1b8] sm:$0xff] }
  0x1e   : > { %3874 = vst [vmem:[#allocation4_spill] sm:$0xff] %v2043_v37  ;;  %v2088_v61 = vcvt.s32.f32 %v526_v23  ;;  %v2090_v62 = vcvt.s32.f32 %v527_v24  ;;  %v2092_v63 = vcvt.s32.f32 %v528_v25  ;;  %v2094_v0 = vcvt.s32.f32 %v529_v26  ;;  %v386_v23 = vld [vmem:[%s2052_s6 + $0x1c0] sm:$0xff]  ;;  %v387_v24 = vld [vmem:[%s2052_s6 + $0x1c8] sm:$0xff] }
  0x1f   : > { %3875 = vst [vmem:[#allocation5_spill] sm:$0xff] %v2045_v38  ;;  %v2099_v4 = vcvt.s32.f32 %v530_v27  ;;  %v2101_v5 = vcvt.s32.f32 %v531_v28  ;;  %v2103_v6 = vcvt.s32.f32 %v532_v29  ;;  %v2105_v7 = vcvt.s32.f32 %v533_v30  ;;  %v388_v29 = vld [vmem:[%s2052_s6 + $0x1d0] sm:$0xff]  ;;  %v389_v30 = vld [vmem:[%s2052_s6 + $0x1d8] sm:$0xff] }
  0x20   : > { %3876 = vst [vmem:[#allocation6_spill] sm:$0xff] %v2054_v39  ;;  %v2110_v11 = vcvt.s32.f32 %v534_v31  ;;  %v2112_v12 = vcvt.s32.f32 %v535_v32  ;;  %v2114_v13 = vcvt.s32.f32 %v536_v33  ;;  %v2116_v14 = vcvt.s32.f32 %v537_v34  ;;  %v390_v31 = vld [vmem:[%s2052_s6 + $0x1e0] sm:$0xff] }
  0x21   : > { %3877 = vst [vmem:[#allocation7_spill] sm:$0xff] %v2056_v40  ;;  %v2122_v18 = vmul.f32 %v2039_v35, %v366_v43  ;;  %v2125_v19 = vmul.f32 %v2041_v36, %v367_v44  ;;  %v2128_v20 = vmul.f32 %v2043_v37, %v368_v45  ;;  %v2131_v21 = vmul.f32 %v2045_v38, %v369_v46  ;;  %v391_v44 = vld [vmem:[%s2052_s6 + $0x1e8] sm:$0xff]  ;;  %v392_v45 = vld [vmem:[%s2052_s6 + $0x1f0] sm:$0xff]  ;;  %v393_v46 = vld [vmem:[%s2052_s6 + $0x1f8] sm:$0xff] }
  0x22   : > { %3878 = vst [vmem:[#allocation8_spill] sm:$0xff] %v2058_v41  ;;  %v2137_v25 = vmul.f32 %v2054_v39, %v370_v51  ;;  %v2140_v26 = vmul.f32 %v2056_v40, %v371_v52  ;;  %v2143_v27 = vmul.f32 %v2058_v41, %v372_v53  ;;  %v2146_v28 = vmul.f32 %v2060_v42, %v373_v58 }
  0x23   : > { %3879 = vst [vmem:[#allocation9_spill] sm:$0xff] %v2060_v42  ;;  %v2152_v32 = vmul.f32 %v2066_v47, %v374_v59  ;;  %v2155_v33 = vmul.f32 %v2068_v48, %v375_v60  ;;  %v2158_v34 = vmul.f32 %v2070_v49, %v376_v1  ;;  %v2161_v43 = vmul.f32 %v2072_v50, %v377_v2  ;;  %v333_v42 = vld [vmem:[%s2052_s6 + $0x18] sm:$0xff] }
  0x24   : > { %3880 = vst [vmem:[#allocation10_spill] sm:$0xff] %v2066_v47  ;;  %v2167_v51 = vmul.f32 %v2077_v54, %v378_v3  ;;  %v2170_v52 = vmul.f32 %v2079_v55, %v379_v8  ;;  %v2173_v53 = vmul.f32 %v2081_v56, %v380_v9  ;;  %v2176_v58 = vmul.f32 %v2083_v57, %v381_v10  ;;  %v332_v47 = vld [vmem:[%s2052_s6 + $0x10] sm:$0xff] }
  0x25   : > { %3881 = vst [vmem:[#allocation11_spill] sm:$0xff] %v2068_v48  ;;  %v2179_v59 = vmul.f32 %v2088_v61, %v382_v15  ;;  %v2182_v60 = vmul.f32 %v2090_v62, %v383_v16  ;;  %v2185_v1 = vmul.f32 %v2092_v63, %v384_v17  ;;  %v2188_v2 = vmul.f32 %v2094_v0, %v385_v22  ;;  %v458_v15 = vld [vmem:[%s2027_s27] sm:$0xff] }
  0x26   : > { %3882 = vst [vmem:[#allocation12_spill] sm:$0xff] %v2070_v49  ;;  %v2191_v3 = vmul.f32 %v2099_v4, %v386_v23  ;;  %v2194_v8 = vmul.f32 %v2101_v5, %v387_v24  ;;  %v2197_v9 = vmul.f32 %v2103_v6, %v388_v29  ;;  %v2200_v10 = vmul.f32 %v2105_v7, %v389_v30  ;;  %v459_v24 = vld [vmem:[%s2027_s27 + $0x8] sm:$0xff]  ;;  %v460_v29 = vld [vmem:[%s2027_s27 + $0x10] sm:$0xff]  ;;  %v330_v49 = vld [vmem:[%s2052_s6] sm:$0xff] }
  0x27   : > { %3883 = vst [vmem:[#allocation13_spill] sm:$0xff] %v2072_v50  ;;  %v2204_v16 = vmul.f32 %v2110_v11, %v390_v31  ;;  %v2207_v17 = vmul.f32 %v2112_v12, %v391_v44  ;;  %v2210_v22 = vmul.f32 %v2114_v13, %v392_v45  ;;  %v2213_v23 = vmul.f32 %v2116_v14, %v393_v46  ;;  %v2220_v44 = vld [vmem:[%s2027_s27 + $0x28] sm:$0xff] }
  0x28   : > { %3884 = vst [vmem:[#allocation14_spill] sm:$0xff] %v2077_v54  ;;  %v474_v30 = vunpack.c.0.s8 %v458_v15  ;;  %v477_v31 = vunpack.c.3.s8 %v458_v15  ;;  %v480_v45 = vunpack.c.2.s8 %v459_v24  ;;  %v483_v46 = vunpack.c.1.s8 %v460_v29 }
  0x29   : > { %3885 = vst [vmem:[#allocation15_spill] sm:$0xff] %v2079_v55 }
  0x2a   : > { %3886 = vst [vmem:[#allocation16_spill] sm:$0xff] %v2081_v56  ;;  %v2253_v50 = vcvt.s32.f32 %v477_v31  ;;  %v2260_v48 = vcvt.s32.f32 %v480_v45 }
  0x2b   : > { %3887 = vst [vmem:[#allocation17_spill] sm:$0xff] %v2083_v57 }
  0x2c   : > { %3888 = vst [vmem:[#allocation18_spill] sm:$0xff] %v2088_v61 }
  0x2d   : > { %3889 = vst [vmem:[#allocation19_spill] sm:$0xff] %v2090_v62 }
  0x2e   : > { %3890 = vst [vmem:[#allocation20_spill] sm:$0xff] %v2092_v63 }
  0x2f   : > { %3891 = vst [vmem:[#allocation21_spill] sm:$0xff] %v2094_v0  ;;  %v496_v0 = vunpack.c.2.s8 %v2220_v44 }
  0x30   : > { %3892 = vst [vmem:[#allocation22_spill] sm:$0xff] %v2099_v4  ;;  %v495_v4 = vunpack.c.1.s8 %v2220_v44 }
  0x31   : > { %3893 = vst [vmem:[#allocation23_spill] sm:$0xff] %v2101_v5 }
  0x32   : > { %3894 = vst [vmem:[#allocation24_spill] sm:$0xff] %v2103_v6  ;;  %v2229_v6 = vld [vmem:[%s2027_s27 + $0x40] sm:$0xff] }
  0x33   : > { %3895 = vst [vmem:[#allocation25_spill] sm:$0xff] %v2105_v7  ;;  %v508_v56 = vunpack.c.2.s8 %v2229_v6  ;;  %v509_v55 = vunpack.c.3.s8 %v2229_v6 }
  0x34   : > { %3896 = vst [vmem:[#allocation26_spill] sm:$0xff] %v2110_v11 }
  0x35   : > { %3897 = vst [vmem:[#allocation27_spill] sm:$0xff] %v2112_v12  ;;  %v2335_v37 = vcvt.s32.f32 %v508_v56  ;;  %v346_v56 = vld [vmem:[%s2052_s6 + $0x80] sm:$0xff] }
  0x36   : > { %3898 = vst [vmem:[#allocation28_spill] sm:$0xff] %v2114_v13 }
  0x37   : > { %3899 = vst [vmem:[#allocation29_spill] sm:$0xff] %v2116_v14  ;;  %v484_v14 = vunpack.c.2.s8 %v460_v29 }
  0x38   : > { %3900 = vst [vmem:[#allocation30_spill] sm:$0xff] %v2140_v26 }
  0x39   : > { %3901 = vst [vmem:[#allocation31_spill] sm:$0xff] %v2143_v27  ;;  %v343_v27 = vld [vmem:[%s2052_s6 + $0x68] sm:$0xff] }
  0x3a   : > { %3902 = vst [vmem:[#allocation32_spill] sm:$0xff] %v2146_v28  ;;  %v338_v28 = vld [vmem:[%s2052_s6 + $0x40] sm:$0xff] }
  0x3b   : > { %3903 = vst [vmem:[#allocation33_spill] sm:$0xff] %v2152_v32  ;;  %v334_v32 = vld [vmem:[%s2052_s6 + $0x20] sm:$0xff] }
  0x3c   : > { %3904 = vst [vmem:[#allocation34_spill] sm:$0xff] %v2155_v33 }
  0x3d   : > { %3905 = vst [vmem:[#allocation35_spill] sm:$0xff] %v2158_v34 }
  0x3e   : > { %3906 = vst [vmem:[#allocation36_spill] sm:$0xff] %v2161_v43  ;;  %v2247_v43 = vcvt.s32.f32 %v474_v30  ;;  %v2266_v30 = vcvt.s32.f32 %v483_v46 }
  0x3f   : > { %3907 = vst [vmem:[#allocation37_spill] sm:$0xff] %v2167_v51  ;;  %v507_v51 = vunpack.c.1.s8 %v2229_v6 }
  0x40   : > { %3908 = vst [vmem:[#allocation38_spill] sm:$0xff] %v2170_v52 }
  0x41   : > { %3909 = vst [vmem:[#allocation39_spill] sm:$0xff] %v2173_v53 }
  0x42   : > { %3910 = vst [vmem:[#allocation40_spill] sm:$0xff] %v2176_v58 }
  0x43   : > { %3911 = vst [vmem:[#allocation41_spill] sm:$0xff] %v2179_v59 }
  0x44   : > { %3912 = vst [vmem:[#allocation42_spill] sm:$0xff] %v2182_v60  ;;  %v2226_v60 = vld [vmem:[%s2027_s27 + $0x38] sm:$0xff] }
  0x45   : > { %3913 = vst [vmem:[#allocation43_spill] sm:$0xff] %v2185_v1  ;;  %v485_v1 = vunpack.c.3.s8 %v460_v29  ;;  %v502_v52 = vunpack.c.0.s8 %v2226_v60  ;;  %v504_v61 = vunpack.c.2.s8 %v2226_v60  ;;  %v505_v57 = vunpack.c.3.s8 %v2226_v60 }
  0x46   : > { %3914 = vst [vmem:[#allocation44_spill] sm:$0xff] %v2188_v2  ;;  %v479_v2 = vunpack.c.1.s8 %v459_v24 }
  0x47   : > { %3915 = vst [vmem:[#allocation45_spill] sm:$0xff] %v2191_v3  ;;  %v476_v3 = vunpack.c.2.s8 %v458_v15  ;;  %v2271_v31 = vcvt.s32.f32 %v485_v1  ;;  %v2321_v39 = vcvt.s32.f32 %v504_v61  ;;  %v342_v61 = vld [vmem:[%s2052_s6 + $0x60] sm:$0xff] }
  0x48   : > { %3916 = vst [vmem:[#allocation46_spill] sm:$0xff] %v2194_v8  ;;  %v462_v8 = vld [vmem:[%s2027_s27 + $0x20] sm:$0xff] }
  0x49   : > { %3917 = vst [vmem:[#allocation47_spill] sm:$0xff] %v2197_v9  ;;  %v461_v9 = vld [vmem:[%s2027_s27 + $0x18] sm:$0xff]  ;;  %v491_v59 = vunpack.c.1.s8 %v462_v8  ;;  %v492_v5 = vunpack.c.2.s8 %v462_v8  ;;  %v493_v58 = vunpack.c.3.s8 %v462_v8  ;;  %v2251_v54 = vcvt.s32.f32 %v476_v3 }
  0x4a   : > { %3918 = vst [vmem:[#allocation48_spill] sm:$0xff] %v2200_v10  ;;  %v475_v10 = vunpack.c.1.s8 %v458_v15  ;;  %v486_v13 = vunpack.c.0.s8 %v461_v9  ;;  %v487_v12 = vunpack.c.1.s8 %v461_v9  ;;  %v488_v11 = vunpack.c.2.s8 %v461_v9 }
  0x4b   : > { %3919 = vst [vmem:[#allocation49_spill] sm:$0xff] %v2204_v16  ;;  %v478_v16 = vunpack.c.0.s8 %v459_v24  ;;  %v489_v7 = vunpack.c.3.s8 %v461_v9  ;;  %v490_v15 = vunpack.c.0.s8 %v462_v8  ;;  %v503_v8 = vunpack.c.1.s8 %v2226_v60 }
  0x4c   : > { %3920 = vst [vmem:[#allocation50_spill] sm:$0xff] %v2207_v17  ;;  %v482_v17 = vunpack.c.0.s8 %v460_v29  ;;  %v497_v29 = vunpack.c.3.s8 %v2220_v44  ;;  %v2257_v60 = vcvt.s32.f32 %v479_v2  ;;  %v2269_v3 = vcvt.s32.f32 %v484_v14 }
  0x4d   : > { %3921 = vst [vmem:[#allocation51_spill] sm:$0xff] %v2210_v22  ;;  %v481_v22 = vunpack.c.3.s8 %v459_v24  ;;  %v494_v24 = vunpack.c.0.s8 %v2220_v44  ;;  %v506_v44 = vunpack.c.0.s8 %v2229_v6  ;;  %v2255_v34 = vcvt.s32.f32 %v478_v16 }
  0x4e   : > { %3922 = vst [vmem:[#allocation52_spill] sm:$0xff] %v2213_v23  ;;  %v2223_v23 = vld [vmem:[%s2027_s27 + $0x30] sm:$0xff]  ;;  %v2264_v6 = vcvt.s32.f32 %v482_v17  ;;  %v2273_v16 = vcvt.s32.f32 %v486_v13  ;;  %v2275_v2 = vcvt.s32.f32 %v487_v12  ;;  %v2278_v45 = vcvt.s32.f32 %v488_v11 }
  0x4f   : > { %v498_v53 = vunpack.c.0.s8 %v2223_v23  ;;  %v499_v63 = vunpack.c.1.s8 %v2223_v23  ;;  %v500_v9 = vunpack.c.2.s8 %v2223_v23  ;;  %v501_v62 = vunpack.c.3.s8 %v2223_v23  ;;  %3923 = vst [vmem:[#allocation53_spill] sm:$0xff] %v2247_v43 }
  0x50   : > { %v2249_v23 = vcvt.s32.f32 %v475_v10  ;;  %3925 = vst [vmem:[#allocation55_spill] sm:$0xff] %v2251_v54  ;;  %v2262_v33 = vcvt.s32.f32 %v481_v22  ;;  %v331_v10 = vld [vmem:[%s2052_s6 + $0x8] sm:$0xff]  ;;  %v2280_v22 = vcvt.s32.f32 %v489_v7  ;;  %v2282_v17 = vcvt.s32.f32 %v490_v15 }
  0x51   : > { %3926 = vst [vmem:[#allocation56_spill] sm:$0xff] %v2253_v50  ;;  %v2284_v46 = vcvt.s32.f32 %v491_v59  ;;  %v2287_v14 = vcvt.s32.f32 %v492_v5  ;;  %v2289_v1 = vcvt.s32.f32 %v493_v58  ;;  %v2291_v13 = vcvt.s32.f32 %v494_v24  ;;  %v335_v5 = vld [vmem:[%s2052_s6 + $0x28] sm:$0xff] }
  0x52   : > { %3924 = vst [vmem:[#allocation54_spill] sm:$0xff] %v2249_v23  ;;  %v602_v12 = vmul.f32 %v2247_v43, %v330_v49  ;;  %v2295_v11 = vcvt.s32.f32 %v495_v4  ;;  %v2297_v7 = vcvt.s32.f32 %v496_v0  ;;  %v2299_v59 = vcvt.s32.f32 %v497_v29  ;;  %v336_v4 = vld [vmem:[%s2052_s6 + $0x30] sm:$0xff] }
  0x53   : > { %3927 = vst [vmem:[#allocation57_spill] sm:$0xff] %v2255_v34  ;;  %v603_v15 = vmul.f32 %v2249_v23, %v331_v10  ;;  %v2303_v41 = vcvt.s32.f32 %v498_v53  ;;  %v2305_v58 = vcvt.s32.f32 %v499_v63  ;;  %v2307_v49 = vcvt.s32.f32 %v500_v9  ;;  %v337_v10 = vld [vmem:[%s2052_s6 + $0x38] sm:$0xff]  ;;  %v339_v63 = vld [vmem:[%s2052_s6 + $0x48] sm:$0xff] }
  0x54   : > { %3928 = vst [vmem:[#allocation58_spill] sm:$0xff] %v2257_v60  ;;  %v604_v24 = vmul.f32 %v2251_v54, %v332_v47  ;;  %v2311_v40 = vcvt.s32.f32 %v501_v62  ;;  %v2313_v0 = vcvt.s32.f32 %v502_v52  ;;  %v2315_v29 = vcvt.s32.f32 %v503_v8  ;;  %v340_v52 = vld [vmem:[%s2052_s6 + $0x50] sm:$0xff]  ;;  %v341_v54 = vld [vmem:[%s2052_s6 + $0x58] sm:$0xff] }
  0x55   : > { %3929 = vst [vmem:[#allocation59_spill] sm:$0xff] %v2260_v48  ;;  %v605_v53 = vmul.f32 %v2253_v50, %v333_v42  ;;  %v2323_v9 = vcvt.s32.f32 %v505_v57  ;;  %v606_v47 = vmul.f32 %v2255_v34, %v334_v32  ;;  %v666_v62 = vadd.f32 1e-06, %v602_v12  ;;  %v345_v34 = vld [vmem:[%s2052_s6 + $0x78] sm:$0xff] }
  0x56   : > { %3930 = vst [vmem:[#allocation60_spill] sm:$0xff] %v2262_v33  ;;  %v2328_v38 = vcvt.s32.f32 %v506_v44  ;;  %v2330_v8 = vcvt.s32.f32 %v507_v51  ;;  %v607_v42 = vmul.f32 %v2257_v60, %v335_v5  ;;  %v667_v50 = vadd.f32 1e-06, %v603_v15  ;;  %v344_v44 = vld [vmem:[%s2052_s6 + $0x70] sm:$0xff]  ;;  %v347_v60 = vld [vmem:[%s2052_s6 + $0x88] sm:$0xff] }
  0x57   : > { %3931 = vst [vmem:[#allocation61_spill] sm:$0xff] %v2264_v6  ;;  %v2337_v57 = vcvt.s32.f32 %v509_v55  ;;  %v608_v32 = vmul.f32 %v2260_v48, %v336_v4  ;;  %v668_v12 = vadd.f32 1e-06, %v604_v24  ;;  %v609_v51 = vmul.f32 %v2262_v33, %v337_v10  ;;  %v348_v4 = vld [vmem:[%s2052_s6 + $0x90] sm:$0xff]  ;;  %v349_v48 = vld [vmem:[%s2052_s6 + $0x98] sm:$0xff] }
  0x58   : > { %3932 = vst [vmem:[#allocation62_spill] sm:$0xff] %v2266_v30  ;;  %v610_v36 = vmul.f32 %v2264_v6, %v338_v28  ;;  %v611_v15 = vmul.f32 %v2266_v30, %v339_v63  ;;  %v669_v5 = vadd.f32 1e-06, %v605_v53  ;;  %v612_v55 = vmul.f32 %v2269_v3, %v340_v52  ;;  %v350_v53 = vld [vmem:[%s2052_s6 + $0xa0] sm:$0xff]  ;;  %v351_v30 = vld [vmem:[%s2052_s6 + $0xa8] sm:$0xff] }
  0x59   : > { %3933 = vst [vmem:[#allocation63_spill] sm:$0xff] %v2269_v3  ;;  %v613_v26 = vmul.f32 %v2271_v31, %v341_v54  ;;  %v670_v24 = vadd.f32 1e-06, %v606_v47  ;;  %1692 = vlog2.f32 %v666_v62  ;;  %v614_v10 = vmul.f32 %v2273_v16, %v342_v61  ;;  %v352_v62 = vld [vmem:[%s2052_s6 + $0xb0] sm:$0xff] }
  0x5a   : > { %3934 = vst [vmem:[#allocation64_spill] sm:$0xff] %v2271_v31  ;;  %v615_v28 = vmul.f32 %v2275_v2, %v343_v27  ;;  %v671_v63 = vadd.f32 1e-06, %v607_v42  ;;  %1694 = vlog2.f32 %v667_v50  ;;  %v616_v52 = vmul.f32 %v2278_v45, %v344_v44  ;;  %v353_v31 = vld [vmem:[%s2052_s6 + $0xb8] sm:$0xff]  ;;  %v354_v50 = vld [vmem:[%s2052_s6 + $0xc0] sm:$0xff]  ;;  %v355_v42 = vld [vmem:[%s2052_s6 + $0xc8] sm:$0xff] }
  0x5b   : > { %3935 = vst [vmem:[#allocation65_spill] sm:$0xff] %v2273_v16  ;;  %v617_v54 = vmul.f32 %v2280_v22, %v345_v34  ;;  %v672_v47 = vadd.f32 1e-06, %v608_v32  ;;  %1696 = vlog2.f32 %v668_v12  ;;  %v618_v61 = vmul.f32 %v2282_v17, %v346_v56  ;;  %v356_v32 = vld [vmem:[%s2052_s6 + $0xd0] sm:$0xff]  ;;  %v357_v12 = vld [vmem:[%s2052_s6 + $0xd8] sm:$0xff] }
  0x5c   : > { %3936 = vst [vmem:[#allocation66_spill] sm:$0xff] %v2275_v2  ;;  %v619_v16 = vmul.f32 %v2284_v46, %v347_v60  ;;  %v673_v27 = vadd.f32 1e-06, %v609_v51  ;;  %1698 = vlog2.f32 %v669_v5  ;;  %v620_v44 = vmul.f32 %v2287_v14, %v348_v4  ;;  %v359_v4 = vld [vmem:[%s2052_s6 + $0xe8] sm:$0xff] }
  0x5d   : > { %3937 = vst [vmem:[#allocation67_spill] sm:$0xff] %v2278_v45  ;;  %v621_v45 = vmul.f32 %v2289_v1, %v349_v48  ;;  %v674_v34 = vadd.f32 1e-06, %v610_v36  ;;  %1700 = vlog2.f32 %v670_v24  ;;  %v622_v56 = vmul.f32 %v2291_v13, %v350_v53 }
  0x5e   : > { %3938 = vst [vmem:[#allocation68_spill] sm:$0xff] %v2280_v22  ;;  %v623_v60 = vmul.f32 %v2295_v11, %v351_v30  ;;  %v675_v51 = vadd.f32 1e-06, %v611_v15  ;;  %1702 = vlog2.f32 %v671_v63  ;;  %v624_v36 = vmul.f32 %v2297_v7, %v352_v62  ;;  %v360_v30 = vld [vmem:[%s2052_s6 + $0xf0] sm:$0xff]  ;;  %v361_v15 = vld [vmem:[%s2052_s6 + $0xf8] sm:$0xff] }
  0x5f   : > { %3939 = vst [vmem:[#allocation69_spill] sm:$0xff] %v2282_v17  ;;  %v2369_v5 = vpop.eup %1692  ;;  %v625_v48 = vmul.f32 %v2299_v59, %v353_v31  ;;  %v676_v24 = vadd.f32 1e-06, %v612_v55  ;;  %1704 = vlog2.f32 %v672_v47  ;;  %v626_v63 = vmul.f32 %v2303_v41, %v354_v50  ;;  %v362_v55 = vld [vmem:[%s2052_s6 + $0x100] sm:$0xff]  ;;  %v363_v47 = vld [vmem:[%s2052_s6 + $0x108] sm:$0xff]  ;;  %v365_v50 = vld [vmem:[%s2052_s6 + $0x118] sm:$0xff] }
  0x60   : > { %3940 = vst [vmem:[#allocation70_spill] sm:$0xff] %v2284_v46  ;;  %v358_v46 = vld [vmem:[%s2052_s6 + $0xe0] sm:$0xff]  ;;  %v627_v53 = vmul.f32 %v2305_v58, %v355_v42  ;;  %v677_v62 = vadd.f32 1e-06, %v613_v26  ;;  %1706 = vlog2.f32 %v673_v27  ;;  %v631_v26 = vmul.f32 %v2315_v29, %v359_v4  ;;  %v395_v17 = vld [vmem:[%s2382_s9 + $0x8] sm:$0xff] }
  0x61   : > { %3941 = vst [vmem:[#allocation71_spill] sm:$0xff] %v2287_v14  ;;  %1708 = vlog2.f32 %v674_v34  ;;  %v364_v14 = vld [vmem:[%s2052_s6 + $0x110] sm:$0xff]  ;;  %v630_v42 = vmul.f32 %v2313_v0, %v358_v46  ;;  %v679_v27 = vadd.f32 1e-06, %v615_v28  ;;  %v635_v46 = vmul.f32 %v2330_v8, %v363_v47 }
  0x62   : > { %3942 = vst [vmem:[#allocation72_spill] sm:$0xff] %v2289_v1  ;;  %v2375_v1 = vpop.eup %1694  ;;  %1710 = vlog2.f32 %v675_v51  ;;  %v636_v51 = vmul.f32 %v2335_v37, %v364_v14  ;;  %v637_v4 = vmul.f32 %v2337_v57, %v365_v50  ;;  %v685_v14 = vadd.f32 1e-06, %v621_v45 }
  0x63   : > { %3943 = vst [vmem:[#allocation73_spill] sm:$0xff] %v2291_v13  ;;  %v2388_v31 = vpop.eup %1696  ;;  %1712 = vlog2.f32 %v676_v24  ;;  %v688_v47 = vadd.f32 1e-06, %v624_v36  ;;  %v690_v50 = vadd.f32 1e-06, %v626_v63 }
  0x64   : > { %3944 = vst [vmem:[#allocation74_spill] sm:$0xff] %v2295_v11  ;;  %v678_v11 = vadd.f32 1e-06, %v614_v10  ;;  %v2394_v13 = vpop.eup %1698  ;;  %v680_v10 = vadd.f32 1e-06, %v616_v52  ;;  %1714 = vlog2.f32 %v677_v62 }
  0x65   : > { %3945 = vst [vmem:[#allocation75_spill] sm:$0xff] %v2297_v7  ;;  %v629_v7 = vmul.f32 %v2311_v40, %v357_v12  ;;  %v633_v12 = vmul.f32 %v2323_v9, %v361_v15  ;;  %v683_v52 = vadd.f32 1e-06, %v619_v16  ;;  %v2420_v15 = vmul.f32 %v2249_v23, %v395_v17  ;;  %v430_v17 = vld [vmem:[%s2382_s9 + $0x120] sm:$0xff] }
  0x66   : > { %3946 = vst [vmem:[#allocation76_spill] sm:$0xff] %v2299_v59  ;;  %v628_v59 = vmul.f32 %v2307_v49, %v356_v32  ;;  %v632_v32 = vmul.f32 %v2321_v39, %v360_v30  ;;  %1716 = vlog2.f32 %v678_v11  ;;  %v684_v62 = vadd.f32 1e-06, %v620_v44  ;;  %v431_v44 = vld [vmem:[%s2382_s9 + $0x128] sm:$0xff] }
  0x67   : > { %3947 = vst [vmem:[#allocation77_spill] sm:$0xff] %v2303_v41  ;;  %v394_v41 = vld [vmem:[%s2382_s9] sm:$0xff]  ;;  %1718 = vlog2.f32 %v679_v27  ;;  %v689_v16 = vadd.f32 1e-06, %v625_v48  ;;  %v691_v27 = vadd.f32 1e-06, %v627_v53 }
  0x68   : > { %3948 = vst [vmem:[#allocation78_spill] sm:$0xff] %v2305_v58  ;;  %v2400_v58 = vpop.eup %1700  ;;  %v2417_v24 = vmul.f32 %v2247_v43, %v394_v41  ;;  %1720 = vlog2.f32 %v680_v10  ;;  %v2429_v23 = vadd.f32 1e-06, %v628_v59  ;;  %v2435_v10 = vadd.f32 1e-06, %v629_v7  ;;  %v433_v48 = vld [vmem:[%s2382_s9 + $0x138] sm:$0xff] }
  0x69   : > { %3949 = vst [vmem:[#allocation79_spill] sm:$0xff] %v2307_v49  ;;  %v2406_v34 = vpop.eup %1702  ;;  %v2439_v36 = vadd.f32 1e-06, %v631_v26  ;;  %v434_v43 = vld [vmem:[%s2382_s9 + $0x140] sm:$0xff]  ;;  %v2445_v63 = vadd.f32 1e-06, %v632_v32 }
  0x6a   : > { %3950 = vst [vmem:[#allocation80_spill] sm:$0xff] %v2311_v40  ;;  %v634_v40 = vmul.f32 %v2328_v38, %v362_v55  ;;  %v2410_v28 = vpop.eup %1704  ;;  %v686_v55 = vadd.f32 1e-06, %v622_v56  ;;  %v432_v56 = vld [vmem:[%s2382_s9 + $0x130] sm:$0xff]  ;;  %v2447_v59 = vadd.f32 1e-06, %v633_v12 }
  0x6b   : > { %3951 = vst [vmem:[#allocation81_spill] sm:$0xff] %v2313_v0  ;;  %v681_v0 = vadd.f32 1e-06, %v617_v54  ;;  %v2414_v30 = vpop.eup %1706  ;;  %v2453_v53 = vadd.f32 1e-06, %v635_v46 }
  0x6c   : > { %3952 = vst [vmem:[#allocation82_spill] sm:$0xff] %v2315_v29  ;;  %v682_v29 = vadd.f32 1e-06, %v618_v61  ;;  %v2422_v54 = vpop.eup %1708  ;;  %v687_v61 = vadd.f32 1e-06, %v623_v60 }
  0x6d   : > { %3953 = vst [vmem:[#allocation83_spill] sm:$0xff] %v2321_v39  ;;  %v2424_v11 = vpop.eup %1710  ;;  %1722 = vlog2.f32 %v681_v0  ;;  %v2437_v60 = vadd.f32 1e-06, %v630_v42  ;;  %v2455_v42 = vadd.f32 1e-06, %v636_v51  ;;  %v435_v51 = vld [vmem:[%s2382_s9 + $0x148] sm:$0xff] }
  0x6e   : > { %3954 = vst [vmem:[#allocation84_spill] sm:$0xff] %v2323_v9  ;;  %v2426_v41 = vpop.eup %1712  ;;  %1724 = vlog2.f32 %v682_v29  ;;  %v2449_v29 = vadd.f32 1e-06, %v634_v40  ;;  %v2457_v26 = vadd.f32 1e-06, %v637_v4  ;;  %v436_v4 = vld [vmem:[%s2382_s9 + $0x150] sm:$0xff] }
  0x6f   : > { %3955 = vst [vmem:[#allocation85_spill] sm:$0xff] %v2328_v38  ;;  %v2431_v45 = vpop.eup %1714  ;;  %1726 = vlog2.f32 %v683_v52  ;;  %v2462_v32 = vadd.f32 1e-06, %v2122_v18  ;;  %v2465_v40 = vadd.f32 1e-06, %v2125_v19  ;;  %v2481_v18 = vmul.f32 %v2039_v35, %v430_v17  ;;  %v3965_v38 = vld [vmem:[#allocation4_spill] sm:$0xff] }
  0x70   : > { %3956 = vst [vmem:[#allocation86_spill] sm:$0xff] %v2330_v8  ;;  %v2441_v0 = vpop.eup %1716  ;;  %1728 = vlog2.f32 %v684_v62  ;;  %v2468_v12 = vadd.f32 1e-06, %v2128_v20  ;;  %v2475_v62 = vadd.f32 1e-06, %v2131_v21  ;;  %v437_v20 = vld [vmem:[%s2382_s9 + $0x158] sm:$0xff] }
  0x71   : > { %3957 = vst [vmem:[#allocation87_spill] sm:$0xff] %v2335_v37  ;;  %v2451_v7 = vpop.eup %1718  ;;  %1730 = vlog2.f32 %v685_v14  ;;  %v2478_v14 = vadd.f32 1e-06, %v2137_v25  ;;  %v3963_v8 = vld [vmem:[#allocation3_spill] sm:$0xff]  ;;  %v2494_v25 = vmul.f32 %v3965_v38, %v432_v56  ;;  %v440_v35 = vld [vmem:[%s2382_s9 + $0x170] sm:$0xff]  ;;  %v3968_v39 = vld [vmem:[#allocation5_spill] sm:$0xff] }
  0x72   : > { %3958 = vst [vmem:[#allocation88_spill] sm:$0xff] %v2337_v57  ;;  %v2459_v52 = vpop.eup %1720  ;;  %1732 = vlog2.f32 %v686_v55  ;;  %v438_v55 = vld [vmem:[%s2382_s9 + $0x160] sm:$0xff]  ;;  %v2491_v21 = vmul.f32 %v3963_v8, %v431_v44  ;;  %v439_v17 = vld [vmem:[%s2382_s9 + $0x168] sm:$0xff]  ;;  %v441_v56 = vld [vmem:[%s2382_s9 + $0x178] sm:$0xff] }
  0x73   : > { %3959 = vst [vmem:[#allocation89_spill] sm:$0xff] %v2417_v24  ;;  %v2470_v46 = vpop.eup %1722  ;;  %1734 = vlog2.f32 %v687_v61  ;;  %v3962_v57 = vld [vmem:[#allocation30_spill] sm:$0xff]  ;;  %v3972_v8 = vld [vmem:[#allocation32_spill] sm:$0xff] }
  0x74   : > { %3960 = vst [vmem:[#allocation90_spill] sm:$0xff] %v2420_v15  ;;  %v2483_v19 = vpop.eup %1724  ;;  %v2488_v37 = vadd.f32 1e-06, %v3962_v57  ;;  %1736 = vlog2.f32 %v688_v47  ;;  %v2504_v57 = vmul.f32 %v3968_v39, %v433_v48  ;;  %v3970_v47 = vld [vmem:[#allocation6_spill] sm:$0xff]  ;;  %v3977_v39 = vld [vmem:[#allocation33_spill] sm:$0xff] }
  0x75   : > { %3961 = vst [vmem:[#allocation91_spill] sm:$0xff] %v2481_v18  ;;  %v2496_v61 = vpop.eup %1726  ;;  %v3967_v18 = vld [vmem:[#allocation31_spill] sm:$0xff]  ;;  %1738 = vlog2.f32 %v689_v16  ;;  %v2507_v15 = vmul.f32 %v3970_v47, %v434_v43  ;;  %v442_v38 = vld [vmem:[%s2382_s9 + $0x180] sm:$0xff]  ;;  %v3975_v16 = vld [vmem:[#allocation8_spill] sm:$0xff] }
  0x76   : > { %3964 = vst [vmem:[#allocation30_spill] sm:$0xff] %v2491_v21  ;;  %v2501_v9 = vadd.f32 1e-06, %v3967_v18  ;;  %v2509_v44 = vpop.eup %1728  ;;  %1740 = vlog2.f32 %v690_v50  ;;  %v3973_v21 = vld [vmem:[#allocation7_spill] sm:$0xff]  ;;  %v2520_v49 = vmul.f32 %v3975_v16, %v436_v4  ;;  %v444_v47 = vld [vmem:[%s2382_s9 + $0x190] sm:$0xff]  ;;  %v3980_v50 = vld [vmem:[#allocation10_spill] sm:$0xff] }
  0x77   : > { %3966 = vst [vmem:[#allocation92_spill] sm:$0xff] %v2494_v25  ;;  %v2514_v25 = vadd.f32 1e-06, %v3972_v8  ;;  %v2517_v18 = vmul.f32 %v3973_v21, %v435_v51  ;;  %v2522_v48 = vpop.eup %1730  ;;  %v443_v43 = vld [vmem:[%s2382_s9 + $0x188] sm:$0xff]  ;;  %1742 = vlog2.f32 %v691_v27  ;;  %v2533_v24 = vmul.f32 %v3980_v50, %v438_v55  ;;  %v445_v4 = vld [vmem:[%s2382_s9 + $0x198] sm:$0xff]  ;;  %v446_v16 = vld [vmem:[%s2382_s9 + $0x1a0] sm:$0xff] }
  0x78   : > { %3969 = vst [vmem:[#allocation31_spill] sm:$0xff] %v2504_v57  ;;  %v3978_v57 = vld [vmem:[#allocation9_spill] sm:$0xff]  ;;  %v2535_v51 = vpop.eup %1732  ;;  %v3982_v21 = vld [vmem:[#allocation34_spill] sm:$0xff]  ;;  %1744 = vlog2.f32 %v2429_v23  ;;  %v3985_v27 = vld [vmem:[#allocation12_spill] sm:$0xff] }
  0x79   : > { %3971 = vst [vmem:[#allocation93_spill] sm:$0xff] %v2507_v15  ;;  %v2527_v15 = vadd.f32 1e-06, %v3977_v39  ;;  %v2530_v8 = vmul.f32 %v3978_v57, %v437_v20  ;;  %v3983_v39 = vld [vmem:[#allocation11_spill] sm:$0xff]  ;;  %v2547_v20 = vmul.f32 %v3985_v27, %v440_v35  ;;  %v2549_v55 = vpop.eup %1734  ;;  %v448_v57 = vld [vmem:[%s2382_s9 + $0x1b0] sm:$0xff]  ;;  %1746 = vlog2.f32 %v2435_v10  ;;  %v3990_v23 = vld [vmem:[#allocation14_spill] sm:$0xff] }
  0x7a   : > { %3974 = vst [vmem:[#allocation32_spill] sm:$0xff] %v2517_v18  ;;  %v2544_v18 = vmul.f32 %v3983_v39, %v439_v17  ;;  %v447_v50 = vld [vmem:[%s2382_s9 + $0x1a8] sm:$0xff]  ;;  %v2561_v17 = vmul.f32 %v3990_v23, %v442_v38  ;;  %v2563_v35 = vpop.eup %1736  ;;  %v449_v27 = vld [vmem:[%s2382_s9 + $0x1b8] sm:$0xff]  ;;  %v450_v39 = vld [vmem:[%s2382_s9 + $0x1c0] sm:$0xff]  ;;  %1748 = vlog2.f32 %v2437_v60 }
  0x7b   : > { %3976 = vst [vmem:[#allocation94_spill] sm:$0xff] %v2520_v49  ;;  %v2540_v49 = vadd.f32 1e-06, %v3982_v21  ;;  %v3988_v21 = vld [vmem:[#allocation13_spill] sm:$0xff]  ;;  %v3995_v10 = vld [vmem:[#allocation16_spill] sm:$0xff]  ;;  %v2577_v38 = vpop.eup %1738  ;;  %v451_v23 = vld [vmem:[%s2382_s9 + $0x1c8] sm:$0xff]  ;;  %1750 = vlog2.f32 %v2439_v36 }
  0x7c   : > { %3979 = vst [vmem:[#allocation33_spill] sm:$0xff] %v2530_v8  ;;  %v2558_v22 = vmul.f32 %v3988_v21, %v441_v56  ;;  %v2575_v56 = vmul.f32 %v3995_v10, %v444_v47  ;;  %v452_v21 = vld [vmem:[%s2382_s9 + $0x1d0] sm:$0xff]  ;;  %v4001_v60 = vld [vmem:[#allocation18_spill] sm:$0xff]  ;;  %v2591_v47 = vpop.eup %1740  ;;  %v453_v10 = vld [vmem:[%s2382_s9 + $0x1d8] sm:$0xff]  ;;  %1752 = vlog2.f32 %v2445_v63 }
  0x7d   : > { %3981 = vst [vmem:[#allocation95_spill] sm:$0xff] %v2533_v24  ;;  %v3987_v24 = vld [vmem:[#allocation35_spill] sm:$0xff]  ;;  %v4007_v36 = vld [vmem:[#allocation20_spill] sm:$0xff]  ;;  %1754 = vlog2.f32 %v2447_v59 }
  0x7e   : > { %3984 = vst [vmem:[#allocation34_spill] sm:$0xff] %v2544_v18  ;;  %v2554_v8 = vadd.f32 1e-06, %v3987_v24  ;;  %v3993_v24 = vld [vmem:[#allocation15_spill] sm:$0xff]  ;;  %v2603_v6 = vmul.f32 %v4007_v36, %v448_v57  ;;  %v4015_v57 = vld [vmem:[#allocation40_spill] sm:$0xff]  ;;  %1756 = vlog2.f32 %v2449_v29 }
  0x7f   : > { %3986 = vst [vmem:[#allocation96_spill] sm:$0xff] %v2547_v20  ;;  %v3992_v20 = vld [vmem:[#allocation36_spill] sm:$0xff]  ;;  %v2572_v2 = vmul.f32 %v3993_v24, %v443_v43  ;;  %v2589_v43 = vmul.f32 %v4001_v60, %v446_v16  ;;  %v454_v24 = vld [vmem:[%s2382_s9 + $0x1e0] sm:$0xff]  ;;  %v455_v16 = vld [vmem:[%s2382_s9 + $0x1e8] sm:$0xff]  ;;  %v2623_v36 = vadd.f32 1e-06, %v4015_v57  ;;  %1758 = vlog2.f32 %v2453_v53 }
  0x80   : > { %3989 = vst [vmem:[#allocation35_spill] sm:$0xff] %v2558_v22  ;;  %v2568_v18 = vadd.f32 1e-06, %v3992_v20  ;;  %v3999_v20 = vld [vmem:[#allocation17_spill] sm:$0xff]  ;;  %v456_v60 = vld [vmem:[%s2382_s9 + $0x1f0] sm:$0xff]  ;;  %v4023_v57 = vld [vmem:[#allocation26_spill] sm:$0xff]  ;;  %1760 = vlog2.f32 %v2455_v42 }
  0x81   : > { %3991 = vst [vmem:[#allocation97_spill] sm:$0xff] %v2561_v17  ;;  %v3998_v17 = vld [vmem:[#allocation37_spill] sm:$0xff]  ;;  %v2586_v3 = vmul.f32 %v3999_v20, %v445_v4  ;;  %v2605_v4 = vpop.eup %1742  ;;  %v4010_v20 = vld [vmem:[#allocation39_spill] sm:$0xff]  ;;  %1762 = vlog2.f32 %v2457_v26 }
  0x82   : > { %3994 = vst [vmem:[#allocation36_spill] sm:$0xff] %v2572_v2  ;;  %v2582_v22 = vadd.f32 1e-06, %v3998_v17  ;;  %v4005_v17 = vld [vmem:[#allocation19_spill] sm:$0xff]  ;;  %1764 = vlog2.f32 %v2462_v32  ;;  %v4046_v32 = vld [vmem:[#allocation52_spill] sm:$0xff] }
  0x83   : > { %3996 = vst [vmem:[#allocation98_spill] sm:$0xff] %v2575_v56  ;;  %v4004_v56 = vld [vmem:[#allocation38_spill] sm:$0xff]  ;;  %1766 = vlog2.f32 %v2465_v40  ;;  %v2710_v40 = vmul.f32 0.6931472, %v2388_v31  ;;  %v2727_v31 = vmul.f32 0.6931472, %v2410_v28 }
  0x84   : > { %3997 = vst [vmem:[#allocation99_spill] sm:$0xff] %v2577_v38  ;;  %v2596_v2 = vadd.f32 1e-06, %v4004_v56  ;;  %v2600_v38 = vmul.f32 %v4005_v17, %v447_v50  ;;  %v2619_v50 = vpop.eup %1744  ;;  %v457_v17 = vld [vmem:[%s2382_s9 + $0x1f8] sm:$0xff]  ;;  %1768 = vlog2.f32 %v2468_v12  ;;  %v2721_v12 = vmul.f32 0.6931472, %v2400_v58 }
  0x85   : > { %4000 = vst [vmem:[#allocation37_spill] sm:$0xff] %v2586_v3  ;;  %v4011_v3 = vld [vmem:[#allocation21_spill] sm:$0xff]  ;;  %v2632_v59 = vpop.eup %1746  ;;  %1770 = vlog2.f32 %v2475_v62  ;;  %v398_v62 = vld [vmem:[%s2382_s9 + $0x20] sm:$0xff]  ;;  %v2741_v58 = vmul.f32 0.6931472, %v2424_v11  ;;  %v400_v28 = vld [vmem:[%s2382_s9 + $0x30] sm:$0xff] }
  0x86   : > { %4002 = vst [vmem:[#allocation100_spill] sm:$0xff] %v2589_v43  ;;  %v2610_v43 = vadd.f32 1e-06, %v4010_v20  ;;  %v2614_v56 = vmul.f32 %v4011_v3, %v449_v27  ;;  %v4018_v20 = vld [vmem:[#allocation24_spill] sm:$0xff]  ;;  %v4020_v27 = vld [vmem:[#allocation41_spill] sm:$0xff]  ;;  %v2644_v29 = vpop.eup %1748  ;;  %1772 = vlog2.f32 %v2478_v14 }
  0x87   : > { %4003 = vst [vmem:[#allocation101_spill] sm:$0xff] %v2591_v47  ;;  %v4013_v47 = vld [vmem:[#allocation22_spill] sm:$0xff]  ;;  %v2635_v3 = vadd.f32 1e-06, %v4020_v27  ;;  %v4029_v27 = vld [vmem:[#allocation28_spill] sm:$0xff]  ;;  %v2656_v53 = vpop.eup %1750  ;;  %1774 = vlog2.f32 %v2488_v37 }
  0x88   : > { %4006 = vst [vmem:[#allocation38_spill] sm:$0xff] %v2600_v38  ;;  %v2617_v63 = vmul.f32 %v4013_v47, %v450_v39  ;;  %v4021_v39 = vld [vmem:[#allocation25_spill] sm:$0xff]  ;;  %v2668_v42 = vpop.eup %1752  ;;  %v2749_v14 = vmul.f32 0.6931472, %v2426_v41  ;;  %1776 = vlog2.f32 %v2501_v9  ;;  %v2761_v37 = vmul.f32 0.6931472, %v2451_v7 }
  0x89   : > { %4008 = vst [vmem:[#allocation102_spill] sm:$0xff] %v2603_v6  ;;  %v4016_v6 = vld [vmem:[#allocation23_spill] sm:$0xff]  ;;  %v2639_v47 = vmul.f32 %v4021_v39, %v453_v10  ;;  %v2767_v41 = vmul.f32 0.6931472, %v2470_v46  ;;  %1778 = vlog2.f32 %v2514_v25  ;;  %v2776_v9 = vmul.f32 0.6931472, %v2496_v61 }
  0x8a   : > { %4009 = vst [vmem:[#allocation103_spill] sm:$0xff] %v2605_v4  ;;  %v2627_v38 = vmul.f32 %v4016_v6, %v451_v23  ;;  %v2630_v4 = vmul.f32 %v4018_v20, %v452_v21  ;;  %v4026_v23 = vld [vmem:[#allocation42_spill] sm:$0xff]  ;;  %v4027_v21 = vld [vmem:[#allocation27_spill] sm:$0xff]  ;;  %v2779_v7 = vmul.f32 0.6931472, %v2509_v44  ;;  %1780 = vlog2.f32 %v2527_v15  ;;  %v4068_v61 = vld [vmem:[#allocation56_spill] sm:$0xff] }
  0x8b   : > { %4012 = vst [vmem:[#allocation39_spill] sm:$0xff] %v2614_v56  ;;  %v2647_v6 = vadd.f32 1e-06, %v4026_v23  ;;  %v2651_v20 = vmul.f32 %v4027_v21, %v455_v16  ;;  %v4032_v10 = vld [vmem:[#allocation43_spill] sm:$0xff]  ;;  %v4034_v23 = vld [vmem:[#allocation29_spill] sm:$0xff]  ;;  %v402_v46 = vld [vmem:[%s2382_s9 + $0x40] sm:$0xff]  ;;  %1782 = vlog2.f32 %v2540_v49 }
  0x8c   : > { %4014 = vst [vmem:[#allocation104_spill] sm:$0xff] %v2617_v63  ;;  %v2642_v63 = vmul.f32 %v4023_v57, %v454_v24  ;;  %v2659_v39 = vadd.f32 1e-06, %v4032_v10  ;;  %v4033_v24 = vld [vmem:[#allocation44_spill] sm:$0xff]  ;;  %v4037_v16 = vld [vmem:[#allocation45_spill] sm:$0xff]  ;;  %v2680_v10 = vpop.eup %1754  ;;  %1784 = vlog2.f32 %v2554_v8  ;;  %v4071_v49 = vld [vmem:[#allocation58_spill] sm:$0xff] }
  0x8d   : > { %4017 = vst [vmem:[#allocation40_spill] sm:$0xff] %v2627_v38  ;;  %v2662_v57 = vadd.f32 1e-06, %v4033_v24  ;;  %v2671_v21 = vadd.f32 1e-06, %v4037_v16  ;;  %v4041_v24 = vld [vmem:[#allocation48_spill] sm:$0xff]  ;;  %1786 = vlog2.f32 %v2568_v18 }
  0x8e   : > { %4019 = vst [vmem:[#allocation105_spill] sm:$0xff] %v2630_v4  ;;  %v2654_v4 = vmul.f32 %v4029_v27, %v456_v60  ;;  %v4038_v60 = vld [vmem:[#allocation46_spill] sm:$0xff]  ;;  %v2683_v26 = vadd.f32 1e-06, %v4041_v24  ;;  %v2701_v24 = vmul.f32 0.6931472, %v2369_v5 }
  0x8f   : > { %4022 = vst [vmem:[#allocation41_spill] sm:$0xff] %v2639_v47  ;;  %v2674_v27 = vadd.f32 1e-06, %v4038_v60  ;;  %v4043_v16 = vld [vmem:[#allocation50_spill] sm:$0xff]  ;;  %v2692_v60 = vpop.eup %1756  ;;  %v396_v5 = vld [vmem:[%s2382_s9 + $0x10] sm:$0xff]  ;;  %1788 = vlog2.f32 %v2582_v22 }
  0x90   : > { %4024 = vst [vmem:[#allocation106_spill] sm:$0xff] %v2642_v63  ;;  %v2787_v25 = vmul.f32 0.6931472, %v2522_v48  ;;  %v404_v15 = vld [vmem:[%s2382_s9 + $0x50] sm:$0xff]  ;;  %v4070_v48 = vld [vmem:[#allocation57_spill] sm:$0xff]  ;;  %v4076_v18 = vld [vmem:[#allocation62_spill] sm:$0xff] }
  0x91   : > { %4025 = vst [vmem:[#allocation107_spill] sm:$0xff] %v2644_v29  ;;  %v2666_v29 = vmul.f32 %v4034_v23, %v457_v17  ;;  %v4042_v17 = vld [vmem:[#allocation49_spill] sm:$0xff]  ;;  %v2689_v23 = vadd.f32 1e-06, %v4043_v16  ;;  %v2707_v16 = vmul.f32 0.6931472, %v2375_v1 }
  0x92   : > { %4028 = vst [vmem:[#allocation42_spill] sm:$0xff] %v2651_v20  ;;  %v2724_v1 = vmul.f32 0.6931472, %v2406_v34  ;;  %v2900_v20 = vmul.f32 0.6931472, %v2632_v59  ;;  %v4097_v63 = vld [vmem:[#allocation73_spill] sm:$0xff] }
  0x93   : > { %4030 = vst [vmem:[#allocation108_spill] sm:$0xff] %v2654_v4  ;;  %v4099_v59 = vld [vmem:[#allocation74_spill] sm:$0xff]  ;;  %v4103_v38 = vld [vmem:[#allocation76_spill] sm:$0xff] }
  0x94   : > { %4031 = vst [vmem:[#allocation109_spill] sm:$0xff] %v2656_v53  ;;  %v4039_v53 = vld [vmem:[#allocation47_spill] sm:$0xff] }
  0x95   : > { %4035 = vst [vmem:[#allocation43_spill] sm:$0xff] %v2666_v29  ;;  %v2677_v4 = vadd.f32 1e-06, %v4039_v53  ;;  %v4045_v53 = vld [vmem:[#allocation51_spill] sm:$0xff] }
  0x96   : > { %4036 = vst [vmem:[#allocation44_spill] sm:$0xff] %v2668_v42  ;;  %v2686_v42 = vadd.f32 1e-06, %v4042_v17  ;;  %v2695_v29 = vadd.f32 1e-06, %v4045_v53  ;;  %v2704_v17 = vpop.eup %1758  ;;  %1790 = vlog2.f32 %v2596_v2  ;;  %v4084_v2 = vld [vmem:[#allocation66_spill] sm:$0xff] }
  0x97   : > { %4040 = vst [vmem:[#allocation45_spill] sm:$0xff] %v2680_v10  ;;  %v2698_v10 = vadd.f32 1e-06, %v4046_v32  ;;  %v2713_v53 = vmul.f32 0.6931472, %v2394_v13  ;;  %v2716_v32 = vpop.eup %1760  ;;  %1792 = vlog2.f32 %v2610_v43 }
  0x98   : > { %4044 = vst [vmem:[#allocation46_spill] sm:$0xff] %v2692_v60  ;;  %v397_v60 = vld [vmem:[%s2382_s9 + $0x18] sm:$0xff]  ;;  %v2730_v13 = vpop.eup %1762  ;;  %1794 = vlog2.f32 %v2623_v36  ;;  %v4091_v36 = vld [vmem:[#allocation70_spill] sm:$0xff] }
  0x99   : > { %4047 = vst [vmem:[#allocation47_spill] sm:$0xff] %v2701_v24  ;;  %v2744_v34 = vpop.eup %1764  ;;  %v2886_v24 = vmul.f32 0.6931472, %v2619_v50  ;;  %1796 = vlog2.f32 %v2635_v3  ;;  %v4093_v50 = vld [vmem:[#allocation71_spill] sm:$0xff]  ;;  %v4095_v3 = vld [vmem:[#allocation72_spill] sm:$0xff] }
  0x9a   : > { %4048 = vst [vmem:[#allocation48_spill] sm:$0xff] %v2707_v16  ;;  %v2738_v16 = vmul.f32 0.6931472, %v2422_v54  ;;  %v2755_v54 = vmul.f32 0.6931472, %v2441_v0  ;;  %v2758_v11 = vpop.eup %1766  ;;  %1798 = vlog2.f32 %v2647_v6  ;;  %v4101_v6 = vld [vmem:[#allocation75_spill] sm:$0xff] }
  0x9b   : > { %4049 = vst [vmem:[#allocation49_spill] sm:$0xff] %v2710_v40  ;;  %v2735_v40 = vmul.f32 0.6931472, %v2414_v30  ;;  %v2752_v30 = vmul.f32 0.6931472, %v2431_v45  ;;  %v2770_v45 = vpop.eup %1768  ;;  %1800 = vlog2.f32 %v2659_v39  ;;  %v4105_v39 = vld [vmem:[#allocation77_spill] sm:$0xff] }
  0x9c   : > { %4050 = vst [vmem:[#allocation50_spill] sm:$0xff] %v2713_v53  ;;  %v399_v53 = vld [vmem:[%s2382_s9 + $0x28] sm:$0xff]  ;;  %v2773_v0 = vmul.f32 0.6931472, %v2483_v19 }
  0x9d   : > { %4051 = vst [vmem:[#allocation51_spill] sm:$0xff] %v2721_v12  ;;  %v4067_v19 = vld [vmem:[#allocation55_spill] sm:$0xff] }
  0x9e   : > { %4052 = vst [vmem:[#allocation52_spill] sm:$0xff] %v2724_v1  ;;  %v416_v1 = vld [vmem:[%s2382_s9 + $0xb0] sm:$0xff] }
  0x9f   : > { %4053 = vst [vmem:[#allocation110_spill] sm:$0xff] %v2727_v31  ;;  %v401_v31 = vld [vmem:[%s2382_s9 + $0x38] sm:$0xff] }
  0xa0   : > { %4054 = vst [vmem:[#allocation111_spill] sm:$0xff] %v2735_v40  ;;  %v2822_v8 = vmul.f32 %v2262_v33, %v401_v31  ;;  %v410_v33 = vld [vmem:[%s2382_s9 + $0x80] sm:$0xff] }
  0xa1   : > { %4055 = vst [vmem:[#allocation112_spill] sm:$0xff] %v2738_v16  ;;  %v2829_v16 = vmul.f32 0.6931472, %v2563_v35  ;;  %v4079_v35 = vld [vmem:[#allocation63_spill] sm:$0xff] }
  0xa2   : > { %4056 = vst [vmem:[#allocation113_spill] sm:$0xff] %v2741_v58  ;;  %v2764_v58 = vmul.f32 0.6931472, %v2459_v52  ;;  %v2782_v52 = vpop.eup %1770  ;;  %v2847_v22 = vmul.f32 %v4079_v35, %v404_v15  ;;  %1802 = vlog2.f32 %v2662_v57  ;;  %v4110_v57 = vld [vmem:[#allocation90_spill] sm:$0xff] }
  0xa3   : > { %4057 = vst [vmem:[#allocation114_spill] sm:$0xff] %v2749_v14  ;;  %v2796_v44 = vpop.eup %1772  ;;  %v409_v14 = vld [vmem:[%s2382_s9 + $0x78] sm:$0xff]  ;;  %1804 = vlog2.f32 %v2671_v21 }
  0xa4   : > { %4058 = vst [vmem:[#allocation115_spill] sm:$0xff] %v2752_v30  ;;  %v2815_v30 = vmul.f32 0.6931472, %v2549_v55  ;;  %v4075_v55 = vld [vmem:[#allocation61_spill] sm:$0xff] }
  0xa5   : > { %4059 = vst [vmem:[#allocation116_spill] sm:$0xff] %v2755_v54  ;;  %v407_v54 = vld [vmem:[%s2382_s9 + $0x68] sm:$0xff]  ;;  %v4113_v21 = vld [vmem:[#allocation81_spill] sm:$0xff] }
  0xa6   : > { %4060 = vst [vmem:[#allocation117_spill] sm:$0xff] %v2761_v37  ;;  %v406_v37 = vld [vmem:[%s2382_s9 + $0x60] sm:$0xff]  ;;  %v2864_v15 = vmul.f32 %v4084_v2, %v407_v54  ;;  %v417_v2 = vld [vmem:[%s2382_s9 + $0xb8] sm:$0xff] }
  0xa7   : > { %4061 = vst [vmem:[#allocation118_spill] sm:$0xff] %v2764_v58  ;;  %v2801_v58 = vmul.f32 0.6931472, %v2535_v51  ;;  %v4073_v51 = vld [vmem:[#allocation59_spill] sm:$0xff]  ;;  %v2929_v56 = vmul.f32 %v4103_v38, %v417_v2  ;;  %v923_v2 = vadd.f32 1e-06, %v4110_v57 }
  0xa8   : > { %4062 = vst [vmem:[#allocation119_spill] sm:$0xff] %v2767_v41  ;;  %v403_v41 = vld [vmem:[%s2382_s9 + $0x48] sm:$0xff]  ;;  %v4116_v57 = vld [vmem:[#allocation82_spill] sm:$0xff] }
  0xa9   : > { %4063 = vst [vmem:[#allocation120_spill] sm:$0xff] %v2773_v0  ;;  %v2791_v0 = vmul.f32 %v4067_v19, %v396_v5  ;;  %v2808_v5 = vmul.f32 %v4071_v49, %v399_v53  ;;  %v4077_v49 = vld [vmem:[#allocation99_spill] sm:$0xff] }
  0xaa   : > { %4064 = vst [vmem:[#allocation121_spill] sm:$0xff] %v2776_v9  ;;  %v2794_v9 = vmul.f32 %v4068_v61, %v397_v60  ;;  %v2810_v60 = vpop.eup %1774  ;;  %v2843_v40 = vmul.f32 0.6931472, %v4077_v49  ;;  %v4083_v49 = vld [vmem:[#allocation65_spill] sm:$0xff]  ;;  %v4085_v19 = vld [vmem:[#allocation103_spill] sm:$0xff]  ;;  %1806 = vlog2.f32 %v2674_v27 }
  0xab   : > { %4065 = vst [vmem:[#allocation122_spill] sm:$0xff] %v2779_v7  ;;  %v405_v7 = vld [vmem:[%s2382_s9 + $0x58] sm:$0xff]  ;;  %v2824_v53 = vpop.eup %1776  ;;  %v2872_v12 = vmul.f32 0.6931472, %v4085_v19  ;;  %1808 = vlog2.f32 %v2677_v4  ;;  %v2979_v4 = vmul.f32 0.6931472, %v2744_v34 }
  0xac   : > { %4066 = vst [vmem:[#allocation123_spill] sm:$0xff] %v2787_v25  ;;  %v2805_v25 = vmul.f32 %v4070_v48, %v398_v62  ;;  %v408_v62 = vld [vmem:[%s2382_s9 + $0x70] sm:$0xff]  ;;  %v2838_v31 = vpop.eup %1778  ;;  %v4081_v48 = vld [vmem:[#allocation101_spill] sm:$0xff]  ;;  %1810 = vlog2.f32 %v2683_v26  ;;  %v2988_v26 = vmul.f32 0.6931472, %v2770_v45 }
  0xad   : > { %4069 = vst [vmem:[#allocation124_spill] sm:$0xff] %v2801_v58  ;;  %v2819_v58 = vmul.f32 %v4073_v51, %v400_v28  ;;  %v2836_v28 = vmul.f32 %v4076_v18, %v403_v41  ;;  %v411_v51 = vld [vmem:[%s2382_s9 + $0x88] sm:$0xff]  ;;  %v2852_v41 = vpop.eup %1780  ;;  %v412_v18 = vld [vmem:[%s2382_s9 + $0x90] sm:$0xff]  ;;  %v2857_v61 = vmul.f32 0.6931472, %v4081_v48  ;;  %v4090_v19 = vld [vmem:[#allocation69_spill] sm:$0xff]  ;;  %1812 = vlog2.f32 %v2686_v42 }
  0xae   : > { %4072 = vst [vmem:[#allocation125_spill] sm:$0xff] %v2815_v30  ;;  %v2833_v30 = vmul.f32 %v4075_v55, %v402_v46  ;;  %v4080_v46 = vld [vmem:[#allocation64_spill] sm:$0xff]  ;;  %v413_v55 = vld [vmem:[%s2382_s9 + $0x98] sm:$0xff]  ;;  %v2866_v35 = vpop.eup %1782  ;;  %v4087_v48 = vld [vmem:[#allocation67_spill] sm:$0xff]  ;;  %1814 = vlog2.f32 %v2689_v23  ;;  %v2993_v34 = vmul.f32 0.6931472, %v2782_v52 }
  0xaf   : > { %4074 = vst [vmem:[#allocation126_spill] sm:$0xff] %v2829_v16  ;;  %v2850_v16 = vmul.f32 %v4080_v46, %v405_v7  ;;  %v414_v7 = vld [vmem:[%s2382_s9 + $0xa0] sm:$0xff]  ;;  %v415_v46 = vld [vmem:[%s2382_s9 + $0xa8] sm:$0xff]  ;;  %v2876_v43 = vmul.f32 %v4087_v48, %v408_v62  ;;  %v2881_v54 = vpop.eup %1784  ;;  %v2893_v62 = vmul.f32 %v4091_v36, %v411_v51  ;;  %v420_v48 = vld [vmem:[%s2382_s9 + $0xd0] sm:$0xff]  ;;  %v2996_v42 = vmul.f32 0.6931472, %v2796_v44 }
  0xb0   : > { %4078 = vst [vmem:[#allocation99_spill] sm:$0xff] %v2843_v40  ;;  %v2861_v40 = vmul.f32 %v4083_v49, %v406_v37  ;;  %v4088_v37 = vld [vmem:[#allocation68_spill] sm:$0xff]  ;;  %v418_v49 = vld [vmem:[%s2382_s9 + $0xc0] sm:$0xff]  ;;  %v421_v36 = vld [vmem:[%s2382_s9 + $0xd8] sm:$0xff]  ;;  %v2915_v47 = vmul.f32 %v4097_v63, %v414_v7  ;;  %1816 = vlog2.f32 %v2695_v29  ;;  %v3004_v45 = vmul.f32 0.6931472, %v2824_v53 }
  0xb1   : > { %4082 = vst [vmem:[#allocation101_spill] sm:$0xff] %v2857_v61  ;;  %v2879_v61 = vmul.f32 %v4088_v37, %v409_v14  ;;  %v2895_v14 = vpop.eup %1786  ;;  %v419_v37 = vld [vmem:[%s2382_s9 + $0xc8] sm:$0xff]  ;;  %v2932_v7 = vmul.f32 %v4105_v39, %v418_v49  ;;  %v4107_v63 = vld [vmem:[#allocation89_spill] sm:$0xff]  ;;  %v428_v49 = vld [vmem:[%s2382_s9 + $0x110] sm:$0xff]  ;;  %v2948_v39 = vmul.f32 0.6931472, %v2704_v17  ;;  %1818 = vlog2.f32 %v2698_v10 }
  0xb2   : > { %4086 = vst [vmem:[#allocation103_spill] sm:$0xff] %v2872_v12  ;;  %v2890_v12 = vmul.f32 %v4090_v19, %v410_v33  ;;  %v2907_v33 = vmul.f32 %v4095_v3, %v413_v55  ;;  %v2909_v51 = vpop.eup %1788  ;;  %v422_v19 = vld [vmem:[%s2382_s9 + $0xe0] sm:$0xff]  ;;  %v423_v3 = vld [vmem:[%s2382_s9 + $0xe8] sm:$0xff]  ;;  %v925_v23 = vadd.f32 1e-06, %v2794_v9 }
  0xb3   : > { %4089 = vst [vmem:[#allocation127_spill] sm:$0xff] %v2886_v24  ;;  %v2904_v24 = vmul.f32 %v4093_v50, %v412_v18  ;;  %v2921_v18 = vmul.f32 %v4101_v6, %v416_v1  ;;  %v2923_v55 = vpop.eup %1790  ;;  %v424_v50 = vld [vmem:[%s2382_s9 + $0xf0] sm:$0xff]  ;;  %v425_v1 = vld [vmem:[%s2382_s9 + $0xf8] sm:$0xff]  ;;  %v426_v6 = vld [vmem:[%s2382_s9 + $0x100] sm:$0xff]  ;;  %v3012_v44 = vmul.f32 0.6931472, %v2852_v41 }
  0xb4   : > { %4092 = vst [vmem:[#allocation128_spill] sm:$0xff] %v2900_v20  ;;  %v2918_v20 = vmul.f32 %v4099_v59, %v415_v46  ;;  %v922_v46 = vadd.f32 1e-06, %v4107_v63  ;;  %v1793_v59 = vpop.eup %1792  ;;  %v4112_v63 = vld [vmem:[#allocation80_spill] sm:$0xff]  ;;  %v4117_v17 = vld [vmem:[#allocation83_spill] sm:$0xff] }
  0xb5   : > { %4094 = vst [vmem:[#allocation129_spill] sm:$0xff] %v2904_v24  ;;  %v1795_v38 = vpop.eup %1794  ;;  %v2955_v24 = vmul.f32 %v4113_v21, %v422_v19  ;;  %v4120_v19 = vld [vmem:[#allocation84_spill] sm:$0xff]  ;;  %v926_v29 = vadd.f32 1e-06, %v2805_v25  ;;  %v3019_v53 = vmul.f32 0.6931472, %v2881_v54 }
  0xb6   : > { %4096 = vst [vmem:[#allocation130_spill] sm:$0xff] %v2907_v33  ;;  %v2973_v21 = vmul.f32 %v4120_v19, %v425_v1  ;;  %1820 = vlog2.f32 %v922_v46  ;;  %v927_v10 = vadd.f32 1e-06, %v2808_v5  ;;  %v3026_v41 = vmul.f32 0.6931472, %v2909_v51 }
  0xb7   : > { %4098 = vst [vmem:[#allocation131_spill] sm:$0xff] %v2915_v47  ;;  %v4109_v47 = vld [vmem:[#allocation79_spill] sm:$0xff]  ;;  %1822 = vlog2.f32 %v923_v2  ;;  %v928_v25 = vadd.f32 1e-06, %v2819_v58  ;;  %v929_v54 = vadd.f32 1e-06, %v2822_v8 }
  0xb8   : > { %4100 = vst [vmem:[#allocation132_spill] sm:$0xff] %v2918_v20  ;;  %v2942_v33 = vmul.f32 %v4109_v47, %v420_v48  ;;  %v2959_v48 = vmul.f32 0.6931472, %v2716_v32  ;;  %v2963_v47 = vmul.f32 %v4116_v57, %v423_v3  ;;  %v3035_v2 = vmul.f32 0.6931472, %v1795_v38 }
  0xb9   : > { %4102 = vst [vmem:[#allocation133_spill] sm:$0xff] %v2921_v18  ;;  %v4108_v18 = vld [vmem:[#allocation78_spill] sm:$0xff]  ;;  %v930_v51 = vadd.f32 1e-06, %v2833_v30  ;;  %v932_v38 = vadd.f32 1e-06, %v2847_v22 }
  0xba   : > { %4104 = vst [vmem:[#allocation134_spill] sm:$0xff] %v2929_v56  ;;  %v2939_v20 = vmul.f32 %v4108_v18, %v419_v37  ;;  %v427_v56 = vld [vmem:[%s2382_s9 + $0x108] sm:$0xff]  ;;  %v1797_v37 = vpop.eup %1796  ;;  %v429_v18 = vld [vmem:[%s2382_s9 + $0x118] sm:$0xff]  ;;  %v3068_v22 = vadd.f32 1e-06, %v2876_v43 }
  0xbb   : > { %4106 = vst [vmem:[#allocation135_spill] sm:$0xff] %v2932_v7  ;;  %v2952_v7 = vmul.f32 %v4112_v63, %v421_v36  ;;  %v1799_v27 = vpop.eup %1798  ;;  %v2969_v36 = vmul.f32 0.6931472, %v2730_v13  ;;  %v4122_v63 = vld [vmem:[#allocation85_spill] sm:$0xff]  ;;  %v4132_v43 = vld [vmem:[#allocation91_spill] sm:$0xff] }
  0xbc   : > { %4111 = vst [vmem:[#allocation89_spill] sm:$0xff] %v2948_v39  ;;  %v2966_v39 = vmul.f32 %v4117_v17, %v424_v50  ;;  %v2976_v32 = vmul.f32 %v4122_v63, %v426_v6  ;;  %v4124_v50 = vld [vmem:[#allocation86_spill] sm:$0xff]  ;;  %v4125_v17 = vld [vmem:[#allocation87_spill] sm:$0xff]  ;;  %v4126_v6 = vld [vmem:[#allocation88_spill] sm:$0xff]  ;;  %v3042_v58 = vmul.f32 0.6931472, %v1799_v27 }
  0xbd   : > { %4114 = vst [vmem:[#allocation90_spill] sm:$0xff] %v2955_v24  ;;  %v1801_v24 = vpop.eup %1800  ;;  %v891_v3 = vmul.f32 %v4124_v50, %v427_v56  ;;  %v892_v57 = vmul.f32 %v4125_v17, %v428_v49  ;;  %v893_v1 = vmul.f32 %v4126_v6, %v429_v18  ;;  %v924_v56 = vadd.f32 1e-06, %v2791_v0 }
  0xbe   : > { %4115 = vst [vmem:[#allocation136_spill] sm:$0xff] %v2959_v48  ;;  %v1803_v13 = vpop.eup %1802  ;;  %v3001_v49 = vmul.f32 0.6931472, %v2810_v60  ;;  %v3009_v18 = vmul.f32 0.6931472, %v2838_v31 }
  0xbf   : > { %4118 = vst [vmem:[#allocation137_spill] sm:$0xff] %v2966_v39  ;;  %v2985_v39 = vmul.f32 0.6931472, %v2758_v11  ;;  %v1805_v63 = vpop.eup %1804  ;;  %v3016_v60 = vmul.f32 0.6931472, %v2866_v35  ;;  %1824 = vlog2.f32 %v924_v56 }
  0xc0   : > { %4119 = vst [vmem:[#allocation138_spill] sm:$0xff] %v2969_v36  ;;  %v1807_v11 = vpop.eup %1806  ;;  %v3023_v31 = vmul.f32 0.6931472, %v2895_v14  ;;  %v3030_v35 = vmul.f32 0.6931472, %v2923_v55  ;;  %1826 = vlog2.f32 %v925_v23 }
  0xc1   : > { %4121 = vst [vmem:[#allocation139_spill] sm:$0xff] %v2973_v21  ;;  %v1809_v52 = vpop.eup %1808  ;;  %v3032_v6 = vmul.f32 0.6931472, %v1793_v59  ;;  %v3037_v14 = vmul.f32 0.6931472, %v1797_v37  ;;  %1828 = vlog2.f32 %v926_v29 }
  0xc2   : > { %4123 = vst [vmem:[#allocation140_spill] sm:$0xff] %v2976_v32  ;;  %v1811_v0 = vpop.eup %1810  ;;  %v3044_v56 = vmul.f32 0.6931472, %v1801_v24  ;;  %v931_v59 = vadd.f32 1e-06, %v2836_v28  ;;  %1830 = vlog2.f32 %v927_v10 }
  0xc3   : > { %v1813_v9 = vpop.eup %1812  ;;  %v3049_v8 = vmul.f32 0.6931472, %v1803_v13  ;;  %v3053_v37 = vadd.f32 1e-06, %v2850_v16  ;;  %1832 = vlog2.f32 %v928_v25  ;;  %v3057_v23 = vmul.f32 0.6931472, %v1805_v63 }
  0xc4   : > { %v1815_v46 = vpop.eup %1814  ;;  %v3060_v24 = vadd.f32 1e-06, %v2861_v40  ;;  %v955_v27 = vadd.f32 1e-06, %v891_v3  ;;  %1834 = vlog2.f32 %v929_v54  ;;  %v3065_v13 = vadd.f32 1e-06, %v2864_v15 }
  0xc5   : > { %v1817_v5 = vpop.eup %1816  ;;  %4129 = vst [vmem:[#allocation143_spill] sm:$0xff] %v3068_v22  ;;  %v956_v16 = vadd.f32 1e-06, %v892_v57  ;;  %1836 = vlog2.f32 %v930_v51  ;;  %v3072_v10 = vmul.f32 0.6931472, %v1807_v11  ;;  %v4134_v51 = vld [vmem:[#allocation129_spill] sm:$0xff] }
  0xc6   : > { %v3040_v17 = vpop.eup %1818  ;;  %4127 = vst [vmem:[#allocation141_spill] sm:$0xff] %v3060_v24  ;;  %v3075_v63 = vadd.f32 1e-06, %v2879_v61  ;;  %v957_v40 = vadd.f32 1e-06, %v893_v1  ;;  %1838 = vlog2.f32 %v931_v59  ;;  %v4136_v1 = vld [vmem:[#allocation30_spill] sm:$0xff] }
  0xc7   : > { %v3047_v55 = vpop.eup %1820  ;;  %4128 = vst [vmem:[#allocation142_spill] sm:$0xff] %v3065_v13  ;;  %v3079_v25 = vmul.f32 0.6931472, %v1809_v52  ;;  %v3082_v15 = vadd.f32 1e-06, %v2890_v12  ;;  %1840 = vlog2.f32 %v932_v38  ;;  %v4137_v12 = vld [vmem:[#allocation130_spill] sm:$0xff] }
  0xc8   : > { %v3055_v30 = vpop.eup %1822  ;;  %4130 = vst [vmem:[#allocation144_spill] sm:$0xff] %v3075_v63  ;;  %v958_v54 = vadd.f32 1e-06, %v4132_v43  ;;  %v3088_v11 = vadd.f32 1e-06, %v2893_v62  ;;  %1842 = vlog2.f32 %v955_v27  ;;  %v4139_v43 = vld [vmem:[#allocation92_spill] sm:$0xff] }
  0xc9   : > { %v3062_v28 = vpop.eup %1824  ;;  %4131 = vst [vmem:[#allocation145_spill] sm:$0xff] %v3082_v15  ;;  %v3091_v61 = vadd.f32 1e-06, %v4134_v51  ;;  %v959_v59 = vadd.f32 1e-06, %v4136_v1  ;;  %1844 = vlog2.f32 %v956_v16 }
  0xca   : > { %v3070_v29 = vpop.eup %1826  ;;  %4133 = vst [vmem:[#allocation91_spill] sm:$0xff] %v3088_v11  ;;  %v3096_v52 = vmul.f32 0.6931472, %v1811_v0  ;;  %v3099_v19 = vadd.f32 1e-06, %v4137_v12  ;;  %v4141_v11 = vld [vmem:[#allocation131_spill] sm:$0xff]  ;;  %1846 = vlog2.f32 %v957_v40 }
  0xcb   : > { %v3077_v3 = vpop.eup %1828  ;;  %4135 = vst [vmem:[#allocation129_spill] sm:$0xff] %v3091_v61  ;;  %v960_v38 = vadd.f32 1e-06, %v4139_v43  ;;  %v3104_v62 = vmul.f32 0.6931472, %v1813_v9  ;;  %v4143_v61 = vld [vmem:[#allocation31_spill] sm:$0xff]  ;;  %1848 = vlog2.f32 %v958_v54 }
  0xcc   : > { %v3085_v57 = vpop.eup %1830  ;;  %4138 = vst [vmem:[#allocation30_spill] sm:$0xff] %v3099_v19  ;;  %v3107_v51 = vadd.f32 1e-06, %v4141_v11  ;;  %v961_v1 = vadd.f32 1e-06, %v4143_v61  ;;  %v4145_v0 = vld [vmem:[#allocation132_spill] sm:$0xff]  ;;  %1850 = vlog2.f32 %v959_v59 }
  0xcd   : > { %v3094_v50 = vpop.eup %1832  ;;  %v3113_v63 = vadd.f32 1e-06, %v4145_v0  ;;  %v4147_v12 = vld [vmem:[#allocation133_spill] sm:$0xff]  ;;  %v3121_v9 = vmul.f32 0.6931472, %v1815_v46  ;;  %v4151_v11 = vld [vmem:[#allocation134_spill] sm:$0xff]  ;;  %1852 = vlog2.f32 %v960_v38 }
  0xce   : > { %v3102_v15 = vpop.eup %1834  ;;  %4142 = vst [vmem:[#allocation92_spill] sm:$0xff] %v3107_v51  ;;  %v3116_v19 = vadd.f32 1e-06, %v4147_v12  ;;  %v4149_v43 = vld [vmem:[#allocation93_spill] sm:$0xff]  ;;  %v3124_v51 = vadd.f32 1e-06, %v4151_v11  ;;  %1854 = vlog2.f32 %v961_v1 }
  0xcf   : > { %4140 = vst [vmem:[#allocation130_spill] sm:$0xff] %v3102_v15  ;;  %v3110_v27 = vpop.eup %1836  ;;  %v962_v16 = vadd.f32 1e-06, %v4149_v43  ;;  %v4153_v61 = vld [vmem:[#allocation32_spill] sm:$0xff]  ;;  %v3129_v0 = vmul.f32 0.6931472, %v1817_v5 }
  0xd0   : > { %4144 = vst [vmem:[#allocation131_spill] sm:$0xff] %v3110_v27  ;;  %v3119_v22 = vpop.eup %1838  ;;  %v963_v40 = vadd.f32 1e-06, %v4153_v61  ;;  %v3136_v46 = vadd.f32 1e-06, %v2939_v20  ;;  %v4164_v20 = vld [vmem:[#allocation34_spill] sm:$0xff] }
  0xd1   : > { %4146 = vst [vmem:[#allocation31_spill] sm:$0xff] %v3113_v63  ;;  %v3127_v32 = vpop.eup %1840  ;;  %v4155_v63 = vld [vmem:[#allocation135_spill] sm:$0xff]  ;;  %v3139_v11 = vadd.f32 1e-06, %v2942_v33  ;;  %v3143_v5 = vmul.f32 0.6931472, %v3040_v17  ;;  %1856 = vlog2.f32 %v962_v16 }
  0xd2   : > { %4148 = vst [vmem:[#allocation132_spill] sm:$0xff] %v3116_v19  ;;  %v3132_v12 = vadd.f32 1e-06, %v4155_v63  ;;  %v4157_v19 = vld [vmem:[#allocation94_spill] sm:$0xff]  ;;  %v1843_v54 = vpop.eup %1842  ;;  %v3149_v38 = vadd.f32 1e-06, %v2952_v7  ;;  %1858 = vlog2.f32 %v963_v40 }
  0xd3   : > { %4150 = vst [vmem:[#allocation133_spill] sm:$0xff] %v3119_v22  ;;  %v964_v43 = vadd.f32 1e-06, %v4157_v19  ;;  %v1845_v59 = vpop.eup %1844  ;;  %v4166_v1 = vld [vmem:[#allocation96_spill] sm:$0xff]  ;;  %v4169_v16 = vld [vmem:[#allocation35_spill] sm:$0xff]  ;;  %v4170_v40 = vld [vmem:[#allocation97_spill] sm:$0xff] }
  0xd4   : > { %4152 = vst [vmem:[#allocation93_spill] sm:$0xff] %v3124_v51  ;;  %v4160_v51 = vld [vmem:[#allocation33_spill] sm:$0xff]  ;;  %v1847_v19 = vpop.eup %1846  ;;  %v3152_v33 = vmul.f32 0.6931472, %v1845_v59  ;;  %v969_v13 = vadd.f32 1e-06, %v4169_v16 }
  0xd5   : > { %4154 = vst [vmem:[#allocation134_spill] sm:$0xff] %v3127_v32  ;;  %v965_v61 = vadd.f32 1e-06, %v4160_v51  ;;  %v4161_v32 = vld [vmem:[#allocation95_spill] sm:$0xff]  ;;  %v1849_v51 = vpop.eup %1848  ;;  %v3155_v22 = vmul.f32 0.6931472, %v1847_v19  ;;  %1860 = vlog2.f32 %v964_v43 }
  0xd6   : > { %4156 = vst [vmem:[#allocation32_spill] sm:$0xff] %v3132_v12  ;;  %v966_v63 = vadd.f32 1e-06, %v4161_v32  ;;  %v3146_v12 = vmul.f32 0.6931472, %v1843_v54  ;;  %v1851_v54 = vpop.eup %1850  ;;  %v4172_v16 = vld [vmem:[#allocation98_spill] sm:$0xff] }
  0xd7   : > { %4158 = vst [vmem:[#allocation135_spill] sm:$0xff] %v3136_v46  ;;  %v967_v46 = vadd.f32 1e-06, %v4164_v20  ;;  %v3160_v27 = vmul.f32 0.6931472, %v1849_v51  ;;  %1862 = vlog2.f32 %v965_v61  ;;  %v1853_v59 = vpop.eup %1852 }
  0xd8   : > { %4159 = vst [vmem:[#allocation94_spill] sm:$0xff] %v3139_v11  ;;  %v968_v11 = vadd.f32 1e-06, %v4166_v1  ;;  %v970_v20 = vadd.f32 1e-06, %v4170_v40  ;;  %1864 = vlog2.f32 %v966_v63  ;;  %v1855_v19 = vpop.eup %1854  ;;  %v4171_v1 = vld [vmem:[#allocation36_spill] sm:$0xff] }
  0xd9   : > { %4162 = vst [vmem:[#allocation33_spill] sm:$0xff] %v3146_v12  ;;  %v971_v32 = vadd.f32 1e-06, %v4171_v1  ;;  %v3170_v12 = vmul.f32 0.6931472, %v1853_v59  ;;  %1866 = vlog2.f32 %v967_v46  ;;  %v1857_v51 = vpop.eup %1856  ;;  %v4173_v40 = vld [vmem:[#allocation37_spill] sm:$0xff] }
  0xda   : > { %4163 = vst [vmem:[#allocation95_spill] sm:$0xff] %v3149_v38  ;;  %v3165_v38 = vmul.f32 0.6931472, %v1851_v54  ;;  %v972_v7 = vadd.f32 1e-06, %v4172_v16  ;;  %1868 = vlog2.f32 %v968_v11  ;;  %v1859_v54 = vpop.eup %1858  ;;  %v4174_v1 = vld [vmem:[#allocation100_spill] sm:$0xff] }
  0xdb   : > { %4165 = vst [vmem:[#allocation34_spill] sm:$0xff] %v3152_v33  ;;  %v3175_v33 = vmul.f32 0.6931472, %v1855_v19  ;;  %v973_v43 = vadd.f32 1e-06, %v4173_v40  ;;  %1870 = vlog2.f32 %v969_v13  ;;  %v1861_v59 = vpop.eup %1860  ;;  %v4175_v16 = vld [vmem:[#allocation38_spill] sm:$0xff] }
  0xdc   : > { %4167 = vst [vmem:[#allocation96_spill] sm:$0xff] %v3155_v22  ;;  %v3180_v22 = vmul.f32 0.6931472, %v1857_v51  ;;  %v974_v61 = vadd.f32 1e-06, %v4174_v1  ;;  %1872 = vlog2.f32 %v970_v20  ;;  %v4177_v40 = vld [vmem:[#allocation102_spill] sm:$0xff] }
  0xdd   : > { %v3185_v36 = vmul.f32 0.6931472, %v1859_v54  ;;  %v1863_v19 = vpop.eup %1862  ;;  %v975_v63 = vadd.f32 1e-06, %v4175_v16  ;;  %v3190_v48 = vmul.f32 0.6931472, %v1861_v59  ;;  %1874 = vlog2.f32 %v971_v32 }
  0xde   : > { %v1865_v51 = vpop.eup %1864  ;;  %v976_v46 = vadd.f32 1e-06, %v4177_v40  ;;  %v3195_v17 = vmul.f32 0.6931472, %v1863_v19  ;;  %1876 = vlog2.f32 %v972_v7  ;;  %v4179_v1 = vld [vmem:[#allocation39_spill] sm:$0xff]  ;;  %v4181_v16 = vld [vmem:[#allocation104_spill] sm:$0xff] }
  0xdf   : > { %4176 = vst [vmem:[#allocation35_spill] sm:$0xff] %v3190_v48  ;;  %v1867_v54 = vpop.eup %1866  ;;  %v977_v11 = vadd.f32 1e-06, %v4179_v1  ;;  %v3200_v24 = vmul.f32 0.6931472, %v1865_v51  ;;  %1878 = vlog2.f32 %v973_v43  ;;  %v4183_v40 = vld [vmem:[#allocation40_spill] sm:$0xff] }
  0xe0   : > { %4178 = vst [vmem:[#allocation97_spill] sm:$0xff] %v3195_v17  ;;  %v1869_v59 = vpop.eup %1868  ;;  %v978_v13 = vadd.f32 1e-06, %v4181_v16  ;;  %v3205_v15 = vmul.f32 0.6931472, %v1867_v54  ;;  %1880 = vlog2.f32 %v974_v61  ;;  %v4185_v1 = vld [vmem:[#allocation105_spill] sm:$0xff] }
  0xe1   : > { %4180 = vst [vmem:[#allocation36_spill] sm:$0xff] %v3200_v24  ;;  %v1871_v19 = vpop.eup %1870  ;;  %v979_v20 = vadd.f32 1e-06, %v4183_v40  ;;  %v3210_v21 = vmul.f32 0.6931472, %v1869_v59  ;;  %1882 = vlog2.f32 %v975_v63  ;;  %v4187_v16 = vld [vmem:[#allocation41_spill] sm:$0xff] }
  0xe2   : > { %4182 = vst [vmem:[#allocation98_spill] sm:$0xff] %v3205_v15  ;;  %v1873_v51 = vpop.eup %1872  ;;  %v980_v32 = vadd.f32 1e-06, %v4185_v1  ;;  %v3215_v48 = vmul.f32 0.6931472, %v1871_v19  ;;  %1884 = vlog2.f32 %v976_v46  ;;  %v4188_v40 = vld [vmem:[#allocation106_spill] sm:$0xff] }
  0xe3   : > { %4184 = vst [vmem:[#allocation37_spill] sm:$0xff] %v3210_v21  ;;  %v1875_v54 = vpop.eup %1874  ;;  %v981_v7 = vadd.f32 1e-06, %v4187_v16  ;;  %v3220_v17 = vmul.f32 0.6931472, %v1873_v51  ;;  %1886 = vlog2.f32 %v977_v11  ;;  %v4189_v1 = vld [vmem:[#allocation42_spill] sm:$0xff] }
  0xe4   : > { %4186 = vst [vmem:[#allocation100_spill] sm:$0xff] %v3215_v48  ;;  %v1877_v59 = vpop.eup %1876  ;;  %v982_v43 = vadd.f32 1e-06, %v4188_v40  ;;  %v3225_v24 = vmul.f32 0.6931472, %v1875_v54  ;;  %1888 = vlog2.f32 %v978_v13  ;;  %v4190_v16 = vld [vmem:[#allocation108_spill] sm:$0xff] }
  0xe5   : > { %v1879_v19 = vpop.eup %1878  ;;  %v983_v61 = vadd.f32 1e-06, %v4189_v1  ;;  %v3230_v15 = vmul.f32 0.6931472, %v1877_v59  ;;  %1890 = vlog2.f32 %v979_v20  ;;  %v984_v63 = vadd.f32 1e-06, %v4190_v16 }
  0xe6   : > { %v1881_v51 = vpop.eup %1880  ;;  %v3235_v21 = vmul.f32 0.6931472, %v1879_v19  ;;  %1892 = vlog2.f32 %v980_v32  ;;  %v4191_v40 = vld [vmem:[#allocation43_spill] sm:$0xff]  ;;  %v987_v1 = vmul.f32 0.6931472, %v3047_v55 }
  0xe7   : > { %v1883_v54 = vpop.eup %1882  ;;  %v985_v46 = vadd.f32 1e-06, %v4191_v40  ;;  %v3240_v48 = vmul.f32 0.6931472, %v1881_v51  ;;  %1894 = vlog2.f32 %v981_v7  ;;  %v989_v16 = vmul.f32 0.6931472, %v3055_v30 }
  0xe8   : > { %v1885_v59 = vpop.eup %1884  ;;  %v3245_v11 = vmul.f32 0.6931472, %v1883_v54  ;;  %1896 = vlog2.f32 %v982_v43  ;;  %v4192_v40 = vld [vmem:[#allocation90_spill] sm:$0xff]  ;;  %v3262_v32 = vadd.f32 1e-06, %v2963_v47  ;;  %v4195_v47 = vld [vmem:[#allocation47_spill] sm:$0xff] }
  0xe9   : > { %v1887_v19 = vpop.eup %1886  ;;  %v3250_v13 = vmul.f32 0.6931472, %v1885_v59  ;;  %1898 = vlog2.f32 %v983_v61  ;;  %v1166_v7 = vsub.f32 %v3037_v14, %v3240_v48  ;;  %v3255_v20 = vadd.f32 1e-06, %v4192_v40 }
  0xea   : > { %v1889_v51 = vpop.eup %1888  ;;  %v3257_v55 = vmul.f32 0.6931472, %v1887_v19  ;;  %1900 = vlog2.f32 %v984_v63  ;;  %v1167_v43 = vsub.f32 %v3042_v58, %v3245_v11  ;;  %4194 = vst [vmem:[#allocation102_spill] sm:$0xff] %v3262_v32  ;;  %v3267_v14 = vmul.f32 0.6931472, %v3062_v28 }
  0xeb   : > { %4193 = vst [vmem:[#allocation38_spill] sm:$0xff] %v3255_v20  ;;  %v1891_v54 = vpop.eup %1890  ;;  %v1099_v30 = vmul.f32 0.6931472, %v1889_v51  ;;  %1902 = vlog2.f32 %v985_v46  ;;  %v1168_v61 = vsub.f32 %v3044_v56, %v3250_v13  ;;  %v3270_v59 = vmul.f32 0.6931472, %v3070_v29  ;;  %v4196_v51 = vld [vmem:[#allocation48_spill] sm:$0xff] }
  0xec   : > { %v1893_v48 = vpop.eup %1892  ;;  %v1101_v63 = vmul.f32 0.6931472, %v1891_v54  ;;  %v1169_v58 = vsub.f32 %v3049_v8, %v3257_v55  ;;  %v1114_v40 = vsub.f32 %v4195_v47, %v987_v1  ;;  %v1115_v46 = vsub.f32 %v4196_v51, %v989_v16  ;;  %v4200_v51 = vld [vmem:[#allocation53_spill] sm:$0xff]  ;;  %v4201_v20 = vld [vmem:[#allocation54_spill] sm:$0xff] }
  0xed   : > { %v1895_v11 = vpop.eup %1894  ;;  %v1103_v19 = vmul.f32 0.6931472, %v1893_v48  ;;  %v1170_v32 = vsub.f32 %v3057_v23, %v1099_v30  ;;  %v3278_v13 = vmul.f32 0.6931472, %v3077_v3  ;;  %1904 = vlog2.f32 %v3053_v37  ;;  %v4198_v3 = vld [vmem:[#allocation49_spill] sm:$0xff]  ;;  %v4199_v37 = vld [vmem:[#allocation50_spill] sm:$0xff] }
  0xee   : > { %v1897_v56 = vpop.eup %1896  ;;  %v1105_v28 = vmul.f32 0.6931472, %v1895_v11  ;;  %v1171_v29 = vsub.f32 %v3072_v10, %v1101_v63  ;;  %v3283_v8 = vmul.f32 0.6931472, %v3085_v57  ;;  %v3286_v55 = vmul.f32 0.6931472, %v3094_v50 }
  0xef   : > { %v1899_v54 = vpop.eup %1898  ;;  %v1107_v1 = vmul.f32 0.6931472, %v1897_v56  ;;  %v1172_v16 = vsub.f32 %v3079_v25, %v1103_v19  ;;  %v1116_v48 = vsub.f32 %v4198_v3, %v3267_v14  ;;  %v1117_v11 = vsub.f32 %v4199_v37, %v3270_v59  ;;  %v4202_v19 = vld [vmem:[#allocation2_spill] sm:$0xff]  ;;  %v4204_v59 = vld [vmem:[#allocation3_spill] sm:$0xff]  ;;  %v4214_v37 = vld [vmem:[#allocation8_spill] sm:$0xff] }
  0xf0   : > { %4197 = vst [vmem:[#allocation39_spill] sm:$0xff] %v3286_v55  ;;  %v1901_v23 = vpop.eup %1900  ;;  %v1109_v30 = vmul.f32 0.6931472, %v1899_v54  ;;  %v1173_v10 = vsub.f32 %v3096_v52, %v1105_v28  ;;  %v1178_v50 = vmul.f32 %v1114_v40, %v4200_v51  ;;  %v1179_v56 = vmul.f32 %v1115_v46, %v4201_v20  ;;  %v4206_v40 = vld [vmem:[#allocation4_spill] sm:$0xff]  ;;  %v4212_v3 = vld [vmem:[#allocation7_spill] sm:$0xff] }
  0xf1   : > { %v1903_v63 = vpop.eup %1902  ;;  %v1111_v47 = vmul.f32 0.6931472, %v1901_v23  ;;  %v1174_v57 = vsub.f32 %v3104_v62, %v1107_v1  ;;  %v4203_v14 = vsub.f32 %v2979_v4, %v3160_v27  ;;  %v4205_v52 = vsub.f32 %v2985_v39, %v3165_v38  ;;  %v4210_v23 = vld [vmem:[#allocation6_spill] sm:$0xff] }
  0xf2   : > { %v1113_v55 = vmul.f32 0.6931472, %v1903_v63  ;;  %v1175_v25 = vsub.f32 %v3121_v9, %v1109_v30  ;;  %v4207_v46 = vsub.f32 %v2988_v26, %v3170_v12  ;;  %v4208_v9 = vld [vmem:[#allocation5_spill] sm:$0xff]  ;;  %v4209_v4 = vsub.f32 %v2993_v34, %v3175_v33  ;;  %v4215_v34 = vld [vmem:[#allocation35_spill] sm:$0xff] }
  0xf3   : > { %v3302_v54 = vmul.f32 %v4203_v14, %v4202_v19  ;;  %v3308_v28 = vmul.f32 %v4205_v52, %v4204_v59  ;;  %v1176_v62 = vsub.f32 %v3129_v0, %v1111_v47  ;;  %v4211_v39 = vsub.f32 %v2996_v42, %v3180_v22  ;;  %v1905_v30 = vpop.eup %1904  ;;  %v4217_v47 = vld [vmem:[#allocation9_spill] sm:$0xff]  ;;  %v4221_v52 = vld [vmem:[#allocation10_spill] sm:$0xff] }
  0xf4   : > { %v3315_v1 = vmul.f32 %v4207_v46, %v4206_v40  ;;  %v3321_v27 = vmul.f32 %v4209_v4, %v4208_v9  ;;  %v1177_v0 = vsub.f32 %v3143_v5, %v1113_v55  ;;  %v4213_v26 = vsub.f32 %v3001_v49, %v3185_v36  ;;  %v4218_v42 = vld [vmem:[#allocation97_spill] sm:$0xff]  ;;  %v4222_v5 = vld [vmem:[#allocation36_spill] sm:$0xff]  ;;  %v4224_v36 = vld [vmem:[#allocation11_spill] sm:$0xff] }
  0xf5   : > { %v3327_v38 = vmul.f32 %v4211_v39, %v4210_v23  ;;  %v4216_v33 = vsub.f32 %v3004_v45, %v4215_v34  ;;  %v4219_v22 = vsub.f32 %v3009_v18, %v4218_v42  ;;  %v4223_v55 = vsub.f32 %v3012_v44, %v4222_v5  ;;  %v4225_v49 = vld [vmem:[#allocation98_spill] sm:$0xff]  ;;  %v4227_v45 = vld [vmem:[#allocation12_spill] sm:$0xff]  ;;  %v4230_v18 = vld [vmem:[#allocation13_spill] sm:$0xff] }
  0xf6   : > { %v3334_v12 = vmul.f32 %v4213_v26, %v4212_v3  ;;  %v4226_v4 = vsub.f32 %v3016_v60, %v4225_v49  ;;  %v4228_v26 = vld [vmem:[#allocation37_spill] sm:$0xff]  ;;  %v4231_v42 = vld [vmem:[#allocation100_spill] sm:$0xff]  ;;  %v4233_v44 = vld [vmem:[#allocation14_spill] sm:$0xff]  ;;  %v4234_v5 = vsub.f32 %v3026_v41, %v3220_v17  ;;  %v4237_v49 = vsub.f32 %v3030_v35, %v3225_v24 }
  0xf7   : > { %v3340_v63 = vmul.f32 %v4216_v33, %v4214_v37  ;;  %v3346_v14 = vmul.f32 %v4219_v22, %v4217_v47  ;;  %v3352_v46 = vmul.f32 %v4223_v55, %v4221_v52  ;;  %v4229_v34 = vsub.f32 %v3019_v53, %v4228_v26  ;;  %v4236_v60 = vld [vmem:[#allocation15_spill] sm:$0xff]  ;;  %v4239_v53 = vld [vmem:[#allocation16_spill] sm:$0xff]  ;;  %v4245_v41 = vld [vmem:[#allocation18_spill] sm:$0xff] }
  0xf8   : > { %v3358_v39 = vmul.f32 %v4226_v4, %v4224_v36  ;;  %v4232_v22 = vsub.f32 %v3023_v31, %v4231_v42  ;;  %v3376_v55 = vmul.f32 %v4234_v5, %v4233_v44  ;;  %v3382_v4 = vmul.f32 %v4237_v49, %v4236_v60  ;;  %v4242_v31 = vld [vmem:[#allocation17_spill] sm:$0xff]  ;;  %v4247_v5 = vld [vmem:[#allocation19_spill] sm:$0xff]  ;;  %v4249_v35 = vld [vmem:[#allocation20_spill] sm:$0xff] }
  0xf9   : > { %4220 = vst [vmem:[#allocation104_spill] sm:$0xff] %v3346_v14  ;;  %v3364_v33 = vmul.f32 %v4229_v34, %v4227_v45  ;;  %v4240_v26 = vsub.f32 %v3032_v6, %v3230_v15  ;;  %v4243_v42 = vsub.f32 %v3035_v2, %v3235_v21  ;;  %v3397_v17 = vmul.f32 %v1166_v7, %v4245_v41  ;;  %v4251_v49 = vld [vmem:[#allocation21_spill] sm:$0xff]  ;;  %v4253_v6 = vld [vmem:[#allocation22_spill] sm:$0xff]  ;;  %v4257_v21 = vld [vmem:[#allocation24_spill] sm:$0xff] }
  0xfa   : > { %v3370_v14 = vmul.f32 %v4232_v22, %v4230_v18  ;;  %4235 = vst [vmem:[#allocation40_spill] sm:$0xff] %v3376_v55  ;;  %v3400_v55 = vmul.f32 %v1167_v43, %v4247_v5  ;;  %v3403_v24 = vmul.f32 %v1168_v61, %v4249_v35  ;;  %v3409_v15 = vmul.f32 %v1170_v32, %v4253_v6  ;;  %v4259_v7 = vld [vmem:[#allocation25_spill] sm:$0xff]  ;;  %v4261_v43 = vld [vmem:[#allocation26_spill] sm:$0xff]  ;;  %v4263_v61 = vld [vmem:[#allocation27_spill] sm:$0xff] }
  0xfb   : > { %4238 = vst [vmem:[#allocation105_spill] sm:$0xff] %v3382_v4  ;;  %v3388_v34 = vmul.f32 %v4240_v26, %v4239_v53  ;;  %v3394_v22 = vmul.f32 %v4243_v42, %v4242_v31  ;;  %v3406_v4 = vmul.f32 %v1169_v58, %v4251_v49  ;;  %v4255_v26 = vld [vmem:[#allocation23_spill] sm:$0xff]  ;;  %v3415_v2 = vmul.f32 %v1172_v16, %v4257_v21  ;;  %v4265_v58 = vld [vmem:[#allocation28_spill] sm:$0xff]  ;;  %v4267_v32 = vld [vmem:[#allocation29_spill] sm:$0xff] }
  0xfc   : > { %4246 = vst [vmem:[#allocation42_spill] sm:$0xff] %v3397_v17  ;;  %v3418_v42 = vmul.f32 %v1173_v10, %v4259_v7  ;;  %v4270_v16 = vld [vmem:[#allocation55_spill] sm:$0xff]  ;;  %v1243_v10 = vadd.f32 %v4201_v20, %v4200_v51  ;;  %v4280_v7 = vld [vmem:[#allocation110_spill] sm:$0xff] }
  0xfd   : > { %4241 = vst [vmem:[#allocation41_spill] sm:$0xff] %v3388_v34  ;;  %v3412_v34 = vmul.f32 %v1171_v29, %v4255_v26  ;;  %v4269_v29 = vld [vmem:[#allocation51_spill] sm:$0xff] }
  0xfe   : > { %4244 = vst [vmem:[#allocation106_spill] sm:$0xff] %v3394_v22  ;;  %v4277_v20 = vld [vmem:[#allocation131_spill] sm:$0xff] }
  0xff   : > { %4248 = vst [vmem:[#allocation108_spill] sm:$0xff] %v3400_v55  ;;  %v3421_v55 = vmul.f32 %v1174_v57, %v4261_v43  ;;  %v4271_v57 = vld [vmem:[#allocation137_spill] sm:$0xff]  ;;  %v1003_v51 = vmul.f32 0.6931472, %v4277_v20  ;;  %v1376_v43 = vmul.f32 %v1179_v56, %v1179_v56  ;;  %v4285_v20 = vld [vmem:[#allocation111_spill] sm:$0xff] }
 0x100   : > { %4250 = vst [vmem:[#allocation43_spill] sm:$0xff] %v3403_v24  ;;  %v3424_v24 = vmul.f32 %v1175_v25, %v4263_v61  ;;  %v4272_v25 = vld [vmem:[#allocation139_spill] sm:$0xff]  ;;  %v4278_v61 = vld [vmem:[#allocation142_spill] sm:$0xff] }
 0x101   : > { %4252 = vst [vmem:[#allocation90_spill] sm:$0xff] %v3406_v4  ;;  %v3427_v4 = vmul.f32 %v1176_v62, %v4265_v58  ;;  %v4273_v62 = vld [vmem:[#allocation130_spill] sm:$0xff]  ;;  %v4274_v58 = vld [vmem:[#allocation141_spill] sm:$0xff] }
 0x102   : > { %4254 = vst [vmem:[#allocation47_spill] sm:$0xff] %v3409_v15  ;;  %v3430_v15 = vmul.f32 %v1177_v0, %v4267_v32  ;;  %1906 = vlog2.f32 %v4274_v58  ;;  %v4275_v0 = vld [vmem:[#allocation52_spill] sm:$0xff] }
 0x103   : > { %4256 = vst [vmem:[#allocation48_spill] sm:$0xff] %v3412_v34  ;;  %v1118_v34 = vsub.f32 %v4269_v29, %v3278_v13  ;;  %v4276_v13 = vld [vmem:[#allocation56_spill] sm:$0xff]  ;;  %1908 = vlog2.f32 %v4278_v61 }
 0x104   : > { %4258 = vst [vmem:[#allocation49_spill] sm:$0xff] %v3415_v2  ;;  %v1180_v2 = vmul.f32 %v1116_v48, %v4270_v16  ;;  %v1181_v29 = vmul.f32 %v1117_v11, %v4276_v13  ;;  %v1244_v48 = vadd.f32 %v1243_v10, %v4270_v16  ;;  %v4283_v11 = vld [vmem:[#allocation133_spill] sm:$0xff] }
 0x105   : > { %4260 = vst [vmem:[#allocation50_spill] sm:$0xff] %v3418_v42  ;;  %v1309_v42 = vadd.f32 %v1179_v56, %v1178_v50  ;;  %v1005_v16 = vmul.f32 0.6931472, %v4283_v11  ;;  %v4290_v11 = vld [vmem:[#allocation59_spill] sm:$0xff] }
 0x106   : > { %4262 = vst [vmem:[#allocation53_spill] sm:$0xff] %v3421_v55  ;;  %v3438_v55 = vadd.f32 1e-06, %v4271_v57  ;;  %v1375_v57 = vmul.f32 %v1178_v50, %v1178_v50  ;;  %v1245_v58 = vadd.f32 %v1244_v48, %v4276_v13  ;;  %v1377_v10 = vmul.f32 %v1180_v2, %v1180_v2  ;;  %v4286_v50 = vld [vmem:[#allocation58_spill] sm:$0xff]  ;;  %v4288_v13 = vld [vmem:[#allocation144_spill] sm:$0xff] }
 0x107   : > { %4264 = vst [vmem:[#allocation54_spill] sm:$0xff] %v3424_v24  ;;  %v3441_v24 = vadd.f32 1e-06, %v4272_v25  ;;  %v1310_v32 = vadd.f32 %v1309_v42, %v1180_v2  ;;  %v4279_v25 = vld [vmem:[#allocation39_spill] sm:$0xff] }
 0x108   : > { %4266 = vst [vmem:[#allocation2_spill] sm:$0xff] %v3427_v4  ;;  %v1001_v4 = vmul.f32 0.6931472, %v4273_v62  ;;  %v1120_v21 = vsub.f32 %v4280_v7, %v4279_v25  ;;  %v4281_v62 = vld [vmem:[#allocation57_spill] sm:$0xff]  ;;  %v4284_v42 = vld [vmem:[#allocation143_spill] sm:$0xff]  ;;  %v1907_v25 = vpop.eup %1906  ;;  %v1439_v48 = vadd.f32 %v1376_v43, %v1375_v57 }
 0x109   : > { %4268 = vst [vmem:[#allocation3_spill] sm:$0xff] %v3430_v15  ;;  %v1119_v15 = vsub.f32 %v4275_v0, %v3283_v8  ;;  %v1182_v26 = vmul.f32 %v1118_v34, %v4281_v62  ;;  %v1311_v6 = vadd.f32 %v1310_v32, %v1181_v29  ;;  %v4282_v8 = vld [vmem:[#allocation140_spill] sm:$0xff]  ;;  %1910 = vlog2.f32 %v4284_v42  ;;  %v4287_v34 = vld [vmem:[#allocation134_spill] sm:$0xff] }
 0x10a   : > { %v3456_v0 = vadd.f32 1e-06, %v4282_v8  ;;  %v1121_v61 = vsub.f32 %v4285_v20, %v1001_v4  ;;  %v1246_v49 = vadd.f32 %v1245_v58, %v4281_v62  ;;  %v1007_v35 = vmul.f32 0.6931472, %v4287_v34  ;;  %v4289_v8 = vld [vmem:[#allocation112_spill] sm:$0xff]  ;;  %v1909_v4 = vpop.eup %1908  ;;  %v4292_v58 = vld [vmem:[#allocation113_spill] sm:$0xff] }
 0x10b   : > { %v1183_v56 = vmul.f32 %v1119_v15, %v4286_v50  ;;  %v1312_v7 = vadd.f32 %v1311_v6, %v1182_v26  ;;  %1912 = vlog2.f32 %v4288_v13  ;;  %v1378_v32 = vmul.f32 %v1181_v29, %v1181_v29  ;;  %v4291_v15 = vld [vmem:[#allocation145_spill] sm:$0xff]  ;;  %v4293_v34 = vld [vmem:[#allocation60_spill] sm:$0xff]  ;;  %v4294_v13 = vld [vmem:[#allocation91_spill] sm:$0xff] }
 0x10c   : > { %v1122_v5 = vsub.f32 %v4289_v8, %v1003_v51  ;;  %v1184_v17 = vmul.f32 %v1120_v21, %v4290_v11  ;;  %v1247_v2 = vadd.f32 %v1246_v49, %v4286_v50  ;;  %v1009_v20 = vmul.f32 0.6931472, %v1905_v30  ;;  %v4295_v50 = vld [vmem:[#allocation114_spill] sm:$0xff]  ;;  %v4296_v30 = vld [vmem:[#allocation61_spill] sm:$0xff] }
 0x10d   : > { %v1313_v42 = vadd.f32 %v1312_v7, %v1183_v56  ;;  %1914 = vlog2.f32 %v4291_v15  ;;  %v1379_v62 = vmul.f32 %v1182_v26, %v1182_v26  ;;  %v1440_v6 = vadd.f32 %v1439_v48, %v1377_v10  ;;  %v4297_v15 = vld [vmem:[#allocation129_spill] sm:$0xff] }
 0x10e   : > { %v1123_v41 = vsub.f32 %v4292_v58, %v1005_v16  ;;  %v1185_v22 = vmul.f32 %v1121_v61, %v4293_v34  ;;  %v1248_v29 = vadd.f32 %v1247_v2, %v4290_v11  ;;  %v1011_v51 = vmul.f32 0.6931472, %v1907_v25  ;;  %v4298_v2 = vld [vmem:[#allocation115_spill] sm:$0xff]  ;;  %v4299_v25 = vld [vmem:[#allocation62_spill] sm:$0xff] }
 0x10f   : > { %v1314_v43 = vadd.f32 %v1313_v42, %v1184_v17  ;;  %v1911_v57 = vpop.eup %1910  ;;  %1916 = vlog2.f32 %v4294_v13  ;;  %v1380_v21 = vmul.f32 %v1183_v56, %v1183_v56  ;;  %v1441_v49 = vadd.f32 %v1440_v6, %v1378_v32  ;;  %v4300_v13 = vld [vmem:[#allocation30_spill] sm:$0xff] }
 0x110   : > { %v1124_v7 = vsub.f32 %v4295_v50, %v1007_v35  ;;  %v1186_v8 = vmul.f32 %v1122_v5, %v4296_v30  ;;  %v1249_v26 = vadd.f32 %v1248_v29, %v4293_v34  ;;  %v1013_v16 = vmul.f32 0.6931472, %v1909_v4  ;;  %v4301_v29 = vld [vmem:[#allocation116_spill] sm:$0xff]  ;;  %v4302_v4 = vld [vmem:[#allocation63_spill] sm:$0xff] }
 0x111   : > { %v1315_v10 = vadd.f32 %v1314_v43, %v1185_v22  ;;  %v1913_v48 = vpop.eup %1912  ;;  %1918 = vlog2.f32 %v4297_v15  ;;  %v1381_v61 = vmul.f32 %v1184_v17, %v1184_v17  ;;  %v1442_v11 = vadd.f32 %v1441_v49, %v1379_v62  ;;  %v4303_v15 = vld [vmem:[#allocation92_spill] sm:$0xff] }
 0x112   : > { %v1125_v42 = vsub.f32 %v4298_v2, %v1009_v20  ;;  %v1187_v58 = vmul.f32 %v1123_v41, %v4299_v25  ;;  %v1250_v56 = vadd.f32 %v1249_v26, %v4296_v30  ;;  %v1015_v35 = vmul.f32 0.6931472, %v1911_v57  ;;  %v4304_v26 = vld [vmem:[#allocation117_spill] sm:$0xff]  ;;  %v4305_v57 = vld [vmem:[#allocation64_spill] sm:$0xff] }
 0x113   : > { %v1316_v32 = vadd.f32 %v1315_v10, %v1186_v8  ;;  %v1915_v6 = vpop.eup %1914  ;;  %1920 = vlog2.f32 %v4300_v13  ;;  %v1382_v5 = vmul.f32 %v1185_v22, %v1185_v22  ;;  %v1443_v34 = vadd.f32 %v1442_v11, %v1380_v21  ;;  %v4306_v13 = vld [vmem:[#allocation31_spill] sm:$0xff] }
 0x114   : > { %v1126_v43 = vsub.f32 %v4301_v29, %v1011_v51  ;;  %v1188_v50 = vmul.f32 %v1124_v7, %v4302_v4  ;;  %v1251_v17 = vadd.f32 %v1250_v56, %v4299_v25  ;;  %v1017_v20 = vmul.f32 0.6931472, %v1913_v48  ;;  %v4307_v56 = vld [vmem:[#allocation118_spill] sm:$0xff]  ;;  %v4308_v48 = vld [vmem:[#allocation65_spill] sm:$0xff] }
 0x115   : > { %v1317_v62 = vadd.f32 %v1316_v32, %v1187_v58  ;;  %v1917_v49 = vpop.eup %1916  ;;  %1922 = vlog2.f32 %v4303_v15  ;;  %v1383_v41 = vmul.f32 %v1186_v8, %v1186_v8  ;;  %v1444_v30 = vadd.f32 %v1443_v34, %v1381_v61  ;;  %v4309_v15 = vld [vmem:[#allocation132_spill] sm:$0xff] }
 0x116   : > { %v1127_v10 = vsub.f32 %v4304_v26, %v1013_v16  ;;  %v1189_v2 = vmul.f32 %v1125_v42, %v4305_v57  ;;  %v1252_v22 = vadd.f32 %v1251_v17, %v4302_v4  ;;  %v1019_v51 = vmul.f32 0.6931472, %v1915_v6  ;;  %v4310_v17 = vld [vmem:[#allocation119_spill] sm:$0xff]  ;;  %v4311_v6 = vld [vmem:[#allocation66_spill] sm:$0xff] }
 0x117   : > { %v1318_v21 = vadd.f32 %v1317_v62, %v1188_v50  ;;  %v1919_v11 = vpop.eup %1918  ;;  %1924 = vlog2.f32 %v4306_v13  ;;  %v1384_v7 = vmul.f32 %v1187_v58, %v1187_v58  ;;  %v1445_v25 = vadd.f32 %v1444_v30, %v1382_v5  ;;  %v4312_v13 = vld [vmem:[#allocation93_spill] sm:$0xff] }
 0x118   : > { %v1128_v32 = vsub.f32 %v4307_v56, %v1015_v35  ;;  %v1190_v29 = vmul.f32 %v1126_v43, %v4308_v48  ;;  %v1253_v8 = vadd.f32 %v1252_v22, %v4305_v57  ;;  %v1021_v16 = vmul.f32 0.6931472, %v1917_v49  ;;  %v4313_v22 = vld [vmem:[#allocation120_spill] sm:$0xff]  ;;  %v4314_v49 = vld [vmem:[#allocation67_spill] sm:$0xff] }
 0x119   : > { %v1319_v61 = vadd.f32 %v1318_v21, %v1189_v2  ;;  %v1921_v34 = vpop.eup %1920  ;;  %1926 = vlog2.f32 %v4309_v15  ;;  %v1385_v42 = vmul.f32 %v1188_v50, %v1188_v50  ;;  %v1446_v4 = vadd.f32 %v1445_v25, %v1383_v41  ;;  %v4315_v15 = vld [vmem:[#allocation32_spill] sm:$0xff] }
 0x11a   : > { %v1129_v62 = vsub.f32 %v4310_v17, %v1017_v20  ;;  %v1191_v26 = vmul.f32 %v1127_v10, %v4311_v6  ;;  %v1254_v58 = vadd.f32 %v1253_v8, %v4308_v48  ;;  %v1023_v35 = vmul.f32 0.6931472, %v1919_v11  ;;  %v4316_v8 = vld [vmem:[#allocation121_spill] sm:$0xff]  ;;  %v4317_v11 = vld [vmem:[#allocation68_spill] sm:$0xff] }
 0x11b   : > { %v1320_v5 = vadd.f32 %v1319_v61, %v1190_v29  ;;  %v1923_v30 = vpop.eup %1922  ;;  %1928 = vlog2.f32 %v4312_v13  ;;  %v1386_v43 = vmul.f32 %v1189_v2, %v1189_v2  ;;  %v1447_v57 = vadd.f32 %v1446_v4, %v1384_v7  ;;  %v4318_v13 = vld [vmem:[#allocation135_spill] sm:$0xff] }
 0x11c   : > { %v1130_v21 = vsub.f32 %v4313_v22, %v1019_v51  ;;  %v1192_v56 = vmul.f32 %v1128_v32, %v4314_v49  ;;  %v1255_v50 = vadd.f32 %v1254_v58, %v4311_v6  ;;  %v1025_v20 = vmul.f32 0.6931472, %v1921_v34  ;;  %v4319_v58 = vld [vmem:[#allocation122_spill] sm:$0xff]  ;;  %v4320_v34 = vld [vmem:[#allocation69_spill] sm:$0xff] }
 0x11d   : > { %v1321_v41 = vadd.f32 %v1320_v5, %v1191_v26  ;;  %v1925_v25 = vpop.eup %1924  ;;  %1930 = vlog2.f32 %v4315_v15  ;;  %v1387_v10 = vmul.f32 %v1190_v29, %v1190_v29  ;;  %v1448_v48 = vadd.f32 %v1447_v57, %v1385_v42  ;;  %v4321_v15 = vld [vmem:[#allocation94_spill] sm:$0xff] }
 0x11e   : > { %v1131_v61 = vsub.f32 %v4316_v8, %v1021_v16  ;;  %v1193_v17 = vmul.f32 %v1129_v62, %v4317_v11  ;;  %v1256_v2 = vadd.f32 %v1255_v50, %v4314_v49  ;;  %v1027_v51 = vmul.f32 0.6931472, %v1923_v30  ;;  %v4322_v50 = vld [vmem:[#allocation123_spill] sm:$0xff]  ;;  %v4323_v30 = vld [vmem:[#allocation70_spill] sm:$0xff] }
 0x11f   : > { %v1322_v7 = vadd.f32 %v1321_v41, %v1192_v56  ;;  %v1927_v4 = vpop.eup %1926  ;;  %1932 = vlog2.f32 %v4318_v13  ;;  %v1388_v32 = vmul.f32 %v1191_v26, %v1191_v26  ;;  %v1449_v6 = vadd.f32 %v1448_v48, %v1386_v43  ;;  %v4324_v13 = vld [vmem:[#allocation95_spill] sm:$0xff] }
 0x120   : > { %v1132_v5 = vsub.f32 %v4319_v58, %v1023_v35  ;;  %v1194_v22 = vmul.f32 %v1130_v21, %v4320_v34  ;;  %v1257_v29 = vadd.f32 %v1256_v2, %v4317_v11  ;;  %v1029_v16 = vmul.f32 0.6931472, %v1925_v25  ;;  %v4325_v2 = vld [vmem:[#allocation124_spill] sm:$0xff]  ;;  %v4326_v25 = vld [vmem:[#allocation71_spill] sm:$0xff] }
 0x121   : > { %v1323_v42 = vadd.f32 %v1322_v7, %v1193_v17  ;;  %v1929_v57 = vpop.eup %1928  ;;  %1934 = vlog2.f32 %v4321_v15  ;;  %v1389_v62 = vmul.f32 %v1192_v56, %v1192_v56  ;;  %v1450_v49 = vadd.f32 %v1449_v6, %v1387_v10  ;;  %v4327_v15 = vld [vmem:[#allocation38_spill] sm:$0xff] }
 0x122   : > { %v1133_v41 = vsub.f32 %v4322_v50, %v1025_v20  ;;  %v1195_v8 = vmul.f32 %v1131_v61, %v4323_v30  ;;  %v1258_v26 = vadd.f32 %v1257_v29, %v4320_v34  ;;  %v1031_v35 = vmul.f32 0.6931472, %v1927_v4  ;;  %v4328_v29 = vld [vmem:[#allocation125_spill] sm:$0xff]  ;;  %v4329_v4 = vld [vmem:[#allocation72_spill] sm:$0xff] }
 0x123   : > { %v1324_v43 = vadd.f32 %v1323_v42, %v1194_v22  ;;  %v1931_v48 = vpop.eup %1930  ;;  %1936 = vlog2.f32 %v4324_v13  ;;  %v1390_v21 = vmul.f32 %v1193_v17, %v1193_v17  ;;  %v1451_v11 = vadd.f32 %v1450_v49, %v1388_v32  ;;  %v4330_v13 = vld [vmem:[#allocation102_spill] sm:$0xff] }
 0x124   : > { %v1134_v7 = vsub.f32 %v4325_v2, %v1027_v51  ;;  %v1196_v58 = vmul.f32 %v1132_v5, %v4326_v25  ;;  %v1259_v56 = vadd.f32 %v1258_v26, %v4323_v30  ;;  %v1033_v20 = vmul.f32 0.6931472, %v1929_v57  ;;  %v4331_v26 = vld [vmem:[#allocation126_spill] sm:$0xff]  ;;  %v4332_v57 = vld [vmem:[#allocation73_spill] sm:$0xff] }
 0x125   : > { %v1325_v10 = vadd.f32 %v1324_v43, %v1195_v8  ;;  %v1933_v6 = vpop.eup %1932  ;;  %1938 = vlog2.f32 %v4327_v15  ;;  %v1391_v61 = vmul.f32 %v1194_v22, %v1194_v22  ;;  %v1452_v34 = vadd.f32 %v1451_v11, %v1389_v62 }
 0x126   : > { %v1135_v42 = vsub.f32 %v4328_v29, %v1029_v16  ;;  %v1197_v50 = vmul.f32 %v1133_v41, %v4329_v4  ;;  %v1260_v17 = vadd.f32 %v1259_v56, %v4326_v25  ;;  %v1035_v51 = vmul.f32 0.6931472, %v1931_v48  ;;  %v4333_v56 = vld [vmem:[#allocation99_spill] sm:$0xff]  ;;  %v4334_v48 = vld [vmem:[#allocation74_spill] sm:$0xff] }
 0x127   : > { %v1326_v32 = vadd.f32 %v1325_v10, %v1196_v58  ;;  %v1935_v49 = vpop.eup %1934  ;;  %1940 = vlog2.f32 %v4330_v13  ;;  %v1392_v5 = vmul.f32 %v1195_v8, %v1195_v8  ;;  %v1453_v30 = vadd.f32 %v1452_v34, %v1390_v21 }
 0x128   : > { %v1136_v43 = vsub.f32 %v4331_v26, %v1031_v35  ;;  %v1198_v2 = vmul.f32 %v1134_v7, %v4332_v57  ;;  %v1261_v22 = vadd.f32 %v1260_v17, %v4329_v4  ;;  %v1037_v16 = vmul.f32 0.6931472, %v1933_v6  ;;  %v4335_v4 = vld [vmem:[#allocation101_spill] sm:$0xff]  ;;  %v4336_v6 = vld [vmem:[#allocation75_spill] sm:$0xff] }
 0x129   : > { %v1327_v62 = vadd.f32 %v1326_v32, %v1197_v50  ;;  %v1937_v11 = vpop.eup %1936  ;;  %1942 = vlog2.f32 %v3438_v55  ;;  %v1393_v41 = vmul.f32 %v1196_v58, %v1196_v58  ;;  %v1454_v25 = vadd.f32 %v1453_v30, %v1391_v61  ;;  %v4337_v30 = vld [vmem:[#allocation103_spill] sm:$0xff] }
 0x12a   : > { %v1137_v10 = vsub.f32 %v4333_v56, %v1033_v20  ;;  %v1199_v15 = vmul.f32 %v1135_v42, %v4334_v48  ;;  %v1262_v8 = vadd.f32 %v1261_v22, %v4332_v57  ;;  %v1039_v35 = vmul.f32 0.6931472, %v1935_v49  ;;  %v4338_v49 = vld [vmem:[#allocation76_spill] sm:$0xff]  ;;  %v4340_v56 = vld [vmem:[#allocation127_spill] sm:$0xff] }
 0x12b   : > { %v1328_v21 = vadd.f32 %v1327_v62, %v1198_v2  ;;  %v1939_v34 = vpop.eup %1938  ;;  %1944 = vlog2.f32 %v3441_v24  ;;  %v1394_v7 = vmul.f32 %v1197_v50, %v1197_v50  ;;  %v1455_v29 = vadd.f32 %v1454_v25, %v1392_v5 }
 0x12c   : > { %v1138_v17 = vsub.f32 %v4335_v4, %v1035_v51  ;;  %v1200_v32 = vmul.f32 %v1136_v43, %v4336_v6  ;;  %v1263_v55 = vadd.f32 %v1262_v8, %v4334_v48  ;;  %v1041_v20 = vmul.f32 0.6931472, %v1937_v11  ;;  %v4339_v51 = vld [vmem:[#allocation107_spill] sm:$0xff]  ;;  %v4341_v11 = vld [vmem:[#allocation77_spill] sm:$0xff] }
 0x12d   : > { %v1329_v58 = vadd.f32 %v1328_v21, %v1199_v15  ;;  %v1941_v61 = vpop.eup %1940  ;;  %1946 = vlog2.f32 %v3456_v0  ;;  %v1395_v42 = vmul.f32 %v1198_v2, %v1198_v2  ;;  %v1456_v13 = vadd.f32 %v1455_v29, %v1393_v41 }
 0x12e   : > { %v1139_v26 = vsub.f32 %v4337_v30, %v1037_v16  ;;  %v1201_v57 = vmul.f32 %v1137_v10, %v4338_v49  ;;  %v1264_v24 = vadd.f32 %v1263_v55, %v4336_v6  ;;  %v787_v22 = vmul.f32 0.6931472, %v4339_v51  ;;  %v4342_v16 = vld [vmem:[#allocation109_spill] sm:$0xff]  ;;  %v4343_v6 = vld [vmem:[#allocation128_spill] sm:$0xff] }
 0x12f   : > { %v1330_v50 = vadd.f32 %v1329_v58, %v1200_v32  ;;  %v1943_v5 = vpop.eup %1942  ;;  %v1043_v43 = vmul.f32 0.6931472, %v1939_v34  ;;  %v1396_v62 = vmul.f32 %v1199_v15, %v1199_v15  ;;  %v1457_v25 = vadd.f32 %v1456_v13, %v1394_v7  ;;  %v4344_v58 = vld [vmem:[#allocation78_spill] sm:$0xff] }
 0x130   : > { %v1140_v48 = vsub.f32 %v4340_v56, %v1039_v35  ;;  %v1202_v8 = vmul.f32 %v1138_v17, %v4341_v11  ;;  %v1265_v0 = vadd.f32 %v1264_v24, %v4338_v49  ;;  %v789_v21 = vmul.f32 0.6931472, %v4342_v16  ;;  %v4345_v35 = vld [vmem:[#allocation44_spill] sm:$0xff] }
 0x131   : > { %v1331_v2 = vadd.f32 %v1330_v50, %v1201_v57  ;;  %v1945_v41 = vpop.eup %1944  ;;  %v1045_v10 = vmul.f32 0.6931472, %v1941_v61  ;;  %v1397_v29 = vmul.f32 %v1200_v32, %v1200_v32  ;;  %v1458_v4 = vadd.f32 %v1457_v25, %v1395_v42  ;;  %v4346_v50 = vld [vmem:[#allocation79_spill] sm:$0xff]  ;;  %v4347_v42 = vld [vmem:[#allocation45_spill] sm:$0xff] }
 0x132   : > { %v1141_v55 = vsub.f32 %v4343_v6, %v1041_v20  ;;  %v1203_v30 = vmul.f32 %v1139_v26, %v4344_v58  ;;  %v1266_v15 = vadd.f32 %v1265_v0, %v4341_v11  ;;  %v791_v13 = vmul.f32 0.6931472, %v4345_v35  ;;  %v4348_v11 = vld [vmem:[#allocation80_spill] sm:$0xff] }
 0x133   : > { %v1332_v34 = vadd.f32 %v1331_v2, %v1202_v8  ;;  %v1947_v7 = vpop.eup %1946  ;;  %v1047_v17 = vmul.f32 0.6931472, %v1943_v5  ;;  %v1398_v51 = vmul.f32 %v1201_v57, %v1201_v57  ;;  %v1459_v49 = vadd.f32 %v1458_v4, %v1396_v62  ;;  %v4349_v5 = vld [vmem:[#allocation46_spill] sm:$0xff]  ;;  %v4350_v4 = vld [vmem:[#allocation81_spill] sm:$0xff] }
 0x134   : > { %v1142_v24 = vsub.f32 %v787_v22, %v1043_v43  ;;  %v1204_v56 = vmul.f32 %v1140_v48, %v4346_v50  ;;  %v1267_v61 = vadd.f32 %v1266_v15, %v4344_v58  ;;  %v793_v25 = vmul.f32 0.6931472, %v4347_v42  ;;  %v4353_v42 = vld [vmem:[#allocation84_spill] sm:$0xff] }
 0x135   : > { %v1333_v32 = vadd.f32 %v1332_v34, %v1203_v30  ;;  %v1049_v20 = vmul.f32 0.6931472, %v1945_v41  ;;  %v1399_v16 = vmul.f32 %v1202_v8, %v1202_v8  ;;  %v1460_v26 = vadd.f32 %v1459_v49, %v1397_v29 }
 0x136   : > { %v1143_v6 = vsub.f32 %v789_v21, %v1045_v10  ;;  %v1205_v0 = vmul.f32 %v1141_v55, %v4348_v11  ;;  %v1268_v2 = vadd.f32 %v1267_v61, %v4346_v50  ;;  %v795_v57 = vmul.f32 0.6931472, %v4349_v5  ;;  %v4351_v21 = vld [vmem:[#allocation82_spill] sm:$0xff] }
 0x137   : > { %v1334_v35 = vadd.f32 %v1333_v32, %v1204_v56  ;;  %v1051_v62 = vmul.f32 0.6931472, %v1947_v7  ;;  %v1400_v22 = vmul.f32 %v1203_v30, %v1203_v30  ;;  %v1461_v43 = vadd.f32 %v1460_v26, %v1398_v51  ;;  %v4352_v7 = vld [vmem:[#allocation83_spill] sm:$0xff] }
 0x138   : > { %v1144_v48 = vsub.f32 %v791_v13, %v1047_v17  ;;  %v1206_v58 = vmul.f32 %v1142_v24, %v4350_v4  ;;  %v1269_v15 = vadd.f32 %v1268_v2, %v4348_v11  ;;  %v1401_v41 = vmul.f32 %v1204_v56, %v1204_v56 }
 0x139   : > { %v1335_v34 = vadd.f32 %v1334_v35, %v1205_v0  ;;  %v1462_v8 = vadd.f32 %v1461_v43, %v1399_v16  ;;  %v1145_v29 = vsub.f32 %v793_v25, %v1049_v20  ;;  %v1207_v10 = vmul.f32 %v1143_v6, %v4351_v21  ;;  %v4354_v6 = vld [vmem:[#allocation85_spill] sm:$0xff] }
 0x13a   : > { %v1270_v55 = vadd.f32 %v1269_v15, %v4350_v4  ;;  %v1402_v50 = vmul.f32 %v1205_v0, %v1205_v0  ;;  %v1146_v32 = vsub.f32 %v795_v57, %v1051_v62  ;;  %v1208_v30 = vmul.f32 %v1144_v48, %v4352_v7  ;;  %v4355_v57 = vld [vmem:[#allocation86_spill] sm:$0xff]  ;;  %v4356_v62 = vld [vmem:[#allocation89_spill] sm:$0xff] }
 0x13b   : > { %v1336_v49 = vadd.f32 %v1335_v34, %v1206_v58  ;;  %v1463_v61 = vadd.f32 %v1462_v8, %v1400_v22  ;;  %v1403_v51 = vmul.f32 %v1206_v58, %v1206_v58  ;;  %v1209_v26 = vmul.f32 %v1145_v29, %v4353_v42  ;;  %v4357_v22 = vld [vmem:[#allocation33_spill] sm:$0xff]  ;;  %v4360_v8 = vld [vmem:[#allocation136_spill] sm:$0xff]  ;;  %v4361_v29 = vld [vmem:[#allocation34_spill] sm:$0xff] }
 0x13c   : > { %v1271_v13 = vadd.f32 %v1270_v55, %v4351_v21  ;;  %v1404_v20 = vmul.f32 %v1207_v10, %v1207_v10  ;;  %v1210_v11 = vmul.f32 %v1146_v32, %v4354_v6  ;;  %v1405_v35 = vmul.f32 %v1208_v30, %v1208_v30  ;;  %v4363_v32 = vld [vmem:[#allocation88_spill] sm:$0xff] }
 0x13d   : > { %v1337_v17 = vadd.f32 %v1336_v49, %v1207_v10  ;;  %v1464_v24 = vadd.f32 %v1463_v61, %v1401_v41  ;;  %v4358_v43 = vsub.f32 %v4356_v62, %v4357_v22  ;;  %v1406_v15 = vmul.f32 %v1209_v26, %v1209_v26  ;;  %v4359_v41 = vld [vmem:[#allocation87_spill] sm:$0xff] }
 0x13e   : > { %v1272_v56 = vadd.f32 %v1271_v13, %v4352_v7  ;;  %v4362_v21 = vsub.f32 %v4360_v8, %v4361_v29  ;;  %v4364_v7 = vld [vmem:[#allocation138_spill] sm:$0xff] }
 0x13f   : > { %v1338_v25 = vadd.f32 %v1337_v17, %v1208_v30  ;;  %v1465_v16 = vadd.f32 %v1464_v24, %v1402_v50  ;;  %v1211_v48 = vmul.f32 %v4358_v43, %v4355_v57  ;;  %v1407_v50 = vmul.f32 %v1210_v11, %v1210_v11  ;;  %v4365_v30 = vld [vmem:[#allocation96_spill] sm:$0xff] }
 0x140   : > { %v1273_v0 = vadd.f32 %v1272_v56, %v4353_v42  ;;  %v1212_v10 = vmul.f32 %v4362_v21, %v4359_v41  ;;  %v4366_v13 = vsub.f32 %v4364_v7, %v4365_v30 }
 0x141   : > { %v1339_v2 = vadd.f32 %v1338_v25, %v1209_v26  ;;  %v1466_v5 = vadd.f32 %v1465_v16, %v1403_v51  ;;  %v1408_v42 = vmul.f32 %v1211_v48, %v1211_v48 }
 0x142   : > { %v1274_v4 = vadd.f32 %v1273_v0, %v4354_v6  ;;  %v1213_v17 = vmul.f32 %v4366_v13, %v4363_v32 }
 0x143   : > { %v1340_v58 = vadd.f32 %v1339_v2, %v1210_v11  ;;  %v1467_v34 = vadd.f32 %v1466_v5, %v1404_v20  ;;  %v1409_v20 = vmul.f32 %v1212_v10, %v1212_v10 }
 0x144   : > { %v1275_v55 = vadd.f32 %v1274_v4, %v4355_v57  ;;  %v1410_v0 = vmul.f32 %v1213_v17, %v1213_v17  ;;  %v1411_v57 = vmul.f32 %v3302_v54, %v3302_v54 }
 0x145   : > { %v1341_v49 = vadd.f32 %v1340_v58, %v1211_v48  ;;  %v1468_v61 = vadd.f32 %v1467_v34, %v1405_v35  ;;  %v1412_v48 = vmul.f32 %v3308_v28, %v3308_v28 }
 0x146   : > { %v1276_v51 = vadd.f32 %v1275_v55, %v4359_v41 }
 0x147   : > { %v1342_v24 = vadd.f32 %v1341_v49, %v1212_v10  ;;  %v1469_v26 = vadd.f32 %v1468_v61, %v1406_v15 }
 0x148   : > { %v1277_v56 = vadd.f32 %v1276_v51, %v4363_v32 }
 0x149   : > { %v1343_v25 = vadd.f32 %v1342_v24, %v1213_v17  ;;  %v1470_v16 = vadd.f32 %v1469_v26, %v1407_v50 }
 0x14a   : > { %v1278_v6 = vadd.f32 %v1277_v56, %v4202_v19 }
 0x14b   : > { %v1344_v11 = vadd.f32 %v1343_v25, %v3302_v54  ;;  %v1471_v2 = vadd.f32 %v1470_v16, %v1408_v42 }
 0x14c   : > { %v1279_v35 = vadd.f32 %v1278_v6, %v4204_v59  ;;  %v1413_v59 = vmul.f32 %v3315_v1, %v3315_v1 }
 0x14d   : > { %v1345_v5 = vadd.f32 %v1344_v11, %v3308_v28  ;;  %v1472_v62 = vadd.f32 %v1471_v2, %v1409_v20 }
 0x14e   : > { %v1280_v22 = vadd.f32 %v1279_v35, %v4206_v40  ;;  %v1414_v40 = vmul.f32 %v3321_v27, %v3321_v27 }
 0x14f   : > { %v1346_v43 = vadd.f32 %v1345_v5, %v3315_v1  ;;  %v1473_v19 = vadd.f32 %v1472_v62, %v1410_v0  ;;  %v4372_v62 = vld [vmem:[#allocation18_spill] sm:$0xff] }
 0x150   : > { %v1281_v4 = vadd.f32 %v1280_v22, %v4208_v9  ;;  %v1415_v9 = vmul.f32 %v3327_v38, %v3327_v38 }
 0x151   : > { %v1347_v58 = vadd.f32 %v1346_v43, %v3321_v27  ;;  %v1474_v15 = vadd.f32 %v1473_v19, %v1411_v57  ;;  %v4367_v27 = vld [vmem:[#allocation104_spill] sm:$0xff]  ;;  %v4373_v43 = vld [vmem:[#allocation42_spill] sm:$0xff] }
 0x152   : > { %v1282_v34 = vadd.f32 %v1281_v4, %v4210_v23  ;;  %v1416_v23 = vmul.f32 %v3334_v12, %v3334_v12  ;;  %v4374_v4 = vld [vmem:[#allocation19_spill] sm:$0xff] }
 0x153   : > { %v1348_v54 = vadd.f32 %v1347_v58, %v3327_v38  ;;  %v1475_v41 = vadd.f32 %v1474_v15, %v1412_v48 }
 0x154   : > { %v1283_v8 = vadd.f32 %v1282_v34, %v4212_v3  ;;  %v1417_v3 = vmul.f32 %v3340_v63, %v3340_v63 }
 0x155   : > { %v1349_v28 = vadd.f32 %v1348_v54, %v3334_v12  ;;  %v1476_v29 = vadd.f32 %v1475_v41, %v1413_v59  ;;  %v4375_v59 = vld [vmem:[#allocation108_spill] sm:$0xff]  ;;  %v4377_v41 = vld [vmem:[#allocation43_spill] sm:$0xff] }
 0x156   : > { %v1284_v21 = vadd.f32 %v1283_v8, %v4214_v37  ;;  %v1418_v37 = vmul.f32 %v4367_v27, %v4367_v27  ;;  %v4376_v54 = vld [vmem:[#allocation20_spill] sm:$0xff] }
 0x157   : > { %v1350_v1 = vadd.f32 %v1349_v28, %v3340_v63  ;;  %v1477_v10 = vadd.f32 %v1476_v29, %v1414_v40  ;;  %v1428_v28 = vmul.f32 %v4375_v59, %v4375_v59  ;;  %v4378_v29 = vld [vmem:[#allocation21_spill] sm:$0xff] }
 0x158   : > { %v1285_v55 = vadd.f32 %v1284_v21, %v4217_v47  ;;  %v1419_v47 = vmul.f32 %v3352_v46, %v3352_v46 }
 0x159   : > { %v1351_v49 = vadd.f32 %v1350_v1, %v4367_v27  ;;  %v1478_v50 = vadd.f32 %v1477_v10, %v1415_v9  ;;  %v4379_v1 = vld [vmem:[#allocation90_spill] sm:$0xff]  ;;  %v1429_v10 = vmul.f32 %v4377_v41, %v4377_v41 }
 0x15a   : > { %v1286_v61 = vadd.f32 %v1285_v55, %v4221_v52  ;;  %v1420_v52 = vmul.f32 %v3358_v39, %v3358_v39  ;;  %v4380_v27 = vld [vmem:[#allocation22_spill] sm:$0xff] }
 0x15b   : > { %v1352_v38 = vadd.f32 %v1351_v49, %v3352_v46  ;;  %v1479_v32 = vadd.f32 %v1478_v50, %v1416_v23  ;;  %v4368_v46 = vld [vmem:[#allocation40_spill] sm:$0xff] }
 0x15c   : > { %v1287_v7 = vadd.f32 %v1286_v61, %v4224_v36  ;;  %v1421_v36 = vmul.f32 %v3364_v33, %v3364_v33  ;;  %v1430_v61 = vmul.f32 %v4379_v1, %v4379_v1 }
 0x15d   : > { %v1353_v12 = vadd.f32 %v1352_v38, %v3358_v39  ;;  %v1480_v30 = vadd.f32 %v1479_v32, %v1417_v3  ;;  %v4369_v39 = vld [vmem:[#allocation105_spill] sm:$0xff]  ;;  %v4381_v3 = vld [vmem:[#allocation47_spill] sm:$0xff] }
 0x15e   : > { %v1288_v13 = vadd.f32 %v1287_v7, %v4227_v45  ;;  %v1422_v45 = vmul.f32 %v3370_v14, %v3370_v14  ;;  %v4383_v7 = vld [vmem:[#allocation48_spill] sm:$0xff] }
 0x15f   : > { %v1354_v63 = vadd.f32 %v1353_v12, %v3364_v33  ;;  %v1481_v17 = vadd.f32 %v1480_v30, %v1418_v37  ;;  %v4370_v33 = vld [vmem:[#allocation41_spill] sm:$0xff]  ;;  %v4382_v37 = vld [vmem:[#allocation23_spill] sm:$0xff] }
 0x160   : > { %v1289_v51 = vadd.f32 %v1288_v13, %v4230_v18  ;;  %v1423_v18 = vmul.f32 %v4368_v46, %v4368_v46  ;;  %v4384_v13 = vld [vmem:[#allocation24_spill] sm:$0xff] }
 0x161   : > { %v1355_v24 = vadd.f32 %v1354_v63, %v3370_v14  ;;  %v1482_v42 = vadd.f32 %v1481_v17, %v1419_v47  ;;  %v4371_v14 = vld [vmem:[#allocation106_spill] sm:$0xff]  ;;  %v1431_v47 = vmul.f32 %v4381_v3, %v4381_v3 }
 0x162   : > { %v1290_v26 = vadd.f32 %v1289_v51, %v4233_v44  ;;  %v1424_v44 = vmul.f32 %v4369_v39, %v4369_v39  ;;  %v1432_v51 = vmul.f32 %v4383_v7, %v4383_v7 }
 0x163   : > { %v1356_v56 = vadd.f32 %v1355_v24, %v4368_v46  ;;  %v1483_v25 = vadd.f32 %v1482_v42, %v1420_v52  ;;  %v4385_v52 = vld [vmem:[#allocation49_spill] sm:$0xff] }
 0x164   : > { %v1291_v20 = vadd.f32 %v1290_v26, %v4236_v60  ;;  %v1425_v60 = vmul.f32 %v4370_v33, %v4370_v33  ;;  %v4387_v26 = vld [vmem:[#allocation50_spill] sm:$0xff] }
 0x165   : > { %v1357_v16 = vadd.f32 %v1356_v56, %v4369_v39  ;;  %v1484_v6 = vadd.f32 %v1483_v25, %v1421_v36  ;;  %v4386_v36 = vld [vmem:[#allocation25_spill] sm:$0xff]  ;;  %v1433_v56 = vmul.f32 %v4385_v52, %v4385_v52  ;;  %v4388_v25 = vld [vmem:[#allocation26_spill] sm:$0xff] }
 0x166   : > { %v1292_v11 = vadd.f32 %v1291_v20, %v4239_v53  ;;  %v1426_v53 = vmul.f32 %v4371_v14, %v4371_v14  ;;  %v4389_v39 = vld [vmem:[#allocation53_spill] sm:$0xff] }
 0x167   : > { %v1358_v0 = vadd.f32 %v1357_v16, %v4370_v33  ;;  %v1485_v2 = vadd.f32 %v1484_v6, %v1422_v45 }
 0x168   : > { %v1293_v35 = vadd.f32 %v1292_v11, %v4242_v31  ;;  %v1427_v31 = vmul.f32 %v4373_v43, %v4373_v43  ;;  %v4390_v11 = vld [vmem:[#allocation27_spill] sm:$0xff] }
 0x169   : > { %v1359_v5 = vadd.f32 %v1358_v0, %v4371_v14  ;;  %v1486_v57 = vadd.f32 %v1485_v2, %v1423_v18  ;;  %v1434_v18 = vmul.f32 %v4387_v26, %v4387_v26  ;;  %v4391_v0 = vld [vmem:[#allocation54_spill] sm:$0xff]  ;;  %v1435_v2 = vmul.f32 %v4389_v39, %v4389_v39  ;;  %v4392_v14 = vld [vmem:[#allocation28_spill] sm:$0xff] }
 0x16a   : > { %v1294_v22 = vadd.f32 %v1293_v35, %v4372_v62  ;;  %v1436_v62 = vmul.f32 %v4391_v0, %v4391_v0 }
 0x16b   : > { %v1360_v48 = vadd.f32 %v1359_v5, %v4373_v43  ;;  %v1487_v19 = vadd.f32 %v1486_v57, %v1424_v44  ;;  %v4394_v43 = vld [vmem:[#allocation29_spill] sm:$0xff] }
 0x16c   : > { %v1295_v58 = vadd.f32 %v1294_v22, %v4374_v4 }
 0x16d   : > { %v1361_v15 = vadd.f32 %v1360_v48, %v4375_v59  ;;  %v1488_v34 = vadd.f32 %v1487_v19, %v1425_v60  ;;  %v4393_v60 = vld [vmem:[#allocation2_spill] sm:$0xff] }
 0x16e   : > { %v1296_v40 = vadd.f32 %v1295_v58, %v4376_v54  ;;  %v1437_v4 = vmul.f32 %v4393_v60, %v4393_v60 }
 0x16f   : > { %v1362_v8 = vadd.f32 %v1361_v15, %v4377_v41  ;;  %v1489_v9 = vadd.f32 %v1488_v34, %v1426_v53  ;;  %v4395_v53 = vld [vmem:[#allocation3_spill] sm:$0xff] }
 0x170   : > { %v1297_v21 = vadd.f32 %v1296_v40, %v4378_v29  ;;  %v1438_v59 = vmul.f32 %v4395_v53, %v4395_v53 }
 0x171   : > { %v1363_v23 = vadd.f32 %v1362_v8, %v4379_v1  ;;  %v1490_v55 = vadd.f32 %v1489_v9, %v1427_v31 }
 0x172   : > { %v1298_v49 = vadd.f32 %v1297_v21, %v4380_v27 }
 0x173   : > { %v1364_v50 = vadd.f32 %v1363_v23, %v4381_v3  ;;  %v1491_v38 = vadd.f32 %v1490_v55, %v1428_v28 }
 0x174   : > { %v1299_v32 = vadd.f32 %v1298_v49, %v4382_v37 }
 0x175   : > { %v1365_v12 = vadd.f32 %v1364_v50, %v4383_v7  ;;  %v1492_v30 = vadd.f32 %v1491_v38, %v1429_v10 }
 0x176   : > { %v1300_v63 = vadd.f32 %v1299_v32, %v4384_v13 }
 0x177   : > { %v1366_v17 = vadd.f32 %v1365_v12, %v4385_v52  ;;  %v1493_v24 = vadd.f32 %v1492_v30, %v1430_v61 }
 0x178   : > { %v1301_v42 = vadd.f32 %v1300_v63, %v4386_v36 }
 0x179   : > { %v1367_v46 = vadd.f32 %v1366_v17, %v4387_v26  ;;  %v1494_v45 = vadd.f32 %v1493_v24, %v1431_v47 }
 0x17a   : > { %v1302_v20 = vadd.f32 %v1301_v42, %v4388_v25 }
 0x17b   : > { %v1368_v16 = vadd.f32 %v1367_v46, %v4389_v39  ;;  %v1495_v6 = vadd.f32 %v1494_v45, %v1432_v51 }
 0x17c   : > { %v1303_v33 = vadd.f32 %v1302_v20, %v4390_v11 }
 0x17d   : > { %v1369_v44 = vadd.f32 %v1368_v16, %v4391_v0  ;;  %v1496_v35 = vadd.f32 %v1495_v6, %v1433_v56 }
 0x17e   : > { %v1304_v5 = vadd.f32 %v1303_v33, %v4392_v14 }
 0x17f   : > { %v1370_v57 = vadd.f32 %v1369_v44, %v4393_v60  ;;  %v1497_v22 = vadd.f32 %v1496_v35, %v1434_v18 }
 0x180   : > { %v1305_v48 = vadd.f32 %v1304_v5, %v4394_v43 }
 0x181   : > { %v1371_v19 = vadd.f32 %v1370_v57, %v4395_v53  ;;  %v1498_v58 = vadd.f32 %v1497_v22, %v1435_v2 }
 0x182   : > { %1307 = vst [vmem:[%s314_s13] sm:$0xff] %v1305_v48 }
 0x183   : > { %v1499_v15 = vadd.f32 %v1498_v58, %v1436_v62  ;;  %1373 = vst [vmem:[%s318_s16] sm:$0xff] %v1371_v19 }
 0x185   : > { %v1500_v31 = vadd.f32 %v1499_v15, %v1437_v4 }
 0x187   : > { %v1501_v34 = vadd.f32 %v1500_v31, %v1438_v59 }
 0x189   : > { %1503 = vst [vmem:[%s322_s22] sm:$0xff] %v1501_v34 }
 0x18a PF: > { %s16_s20 = sadd.s32 1, %s1970_s20   ;;  %s4396_s18 = smov %s1966_s19 }
 0x18b   : > { %p13_p7 = scmp.ge.s32.totalorder %s16_s20, 4   ;;  %s4397_s19 = smov %s4399_s21 }
 0x18d   :  { %15 = sbr.rel (!%p13_p7) target bundleno = 2 (0x2), region = 96 }

// kernel: scale_shift_invariant_loss.3
= control target key start
LH: loop header
LB: loop body
LE: loop exit
PB: predicated region body
PF: predicated region fallthrough
CT: control target
= control target key end

     0   :  { %s3762_s15 = smov 0   ;;  %s3764_s16 = smov 0   ;;  %s7872_s0 = inlined_call_operand.vmem [shape: f32[4096,128], index: 0, kind: input, shape index: {}]   ;;  %s7873_s1 = inlined_call_operand.vmem [shape: f32[4096,128], index: 1, kind: input, shape index: {}]   ;;  %s7874_s2 = inlined_call_operand.vmem [shape: f32[2,8,128], index: 2, kind: output, shape index: {0}]   ;;  %s7875_s3 = inlined_call_operand.vmem [shape: f32[2,8,128], index: 3, kind: output, shape index: {1}]   ;;  %s7876_s4 = inlined_call_operand.vmem [shape: f32[2,8,128], index: 4, kind: output, shape index: {2}]  }
   0x1   :  { %s3766_s17 = smov 0   ;;  %s3768_s18 = smov 0  }
   0x2   :  { %s3770_s19 = smov 0  }
   0x3 LB: > { %s24_s20 = sadd.s32 1, %s3725_s17  ;;  %s27_s21 = sadd.s32 1, %s3729_s18  ;;  %s3733_s19 = sphi %s3770_s19, %s15_s19   ;;  %s3729_s18 = sphi %s3768_s18, %s9610_s18   ;;  %s3725_s17 = sphi %s3766_s17, %s9609_s17   ;;  %s3721_s16 = sphi %s3764_s16, %s9608_s16   ;;  %s3717_s15 = sphi %s3762_s15, %s9607_s15  }
   0x4   : > { %p25_p0 = scmp.ge.s32.totalorder %s24_s20, 2  ;;  %p2872_p1 = scmp.ge.s32.totalorder %s3733_s19, 1 }
   0x5   : > { %p207_p2 = scmp.lt.s32.totalorder %s3733_s19, 5 }
   0x6   : > { %s9612_s20 = smov (%p25_p0, %s24_s20), 0  ;;  %s9614_s21 = smov (!%p25_p0, %s27_s21), %s3729_s18 }
   0x7   : > { %p208_p3 = pnand %p2872_p1, %p207_p2  ;;  %p29_p4 = scmp.ge.s32.totalorder %s9614_s21, 2 }
   0x9   : > { %s9616_s21 = smov (%p29_p4, %s9614_s21), 0  ;;  %211 = sbr.rel (%p208_p3) target bundleno = 912 (0x390), region = 28 }
   0xe   : > { %s2873_s22 = sshll.u32 %s3721_s16, 1  ;;  %p269_p5 = scmp.lt.s32.totalorder %s3721_s16, 1 }
   0xf   : > { %s250_s23 = sadd.s32 %s3717_s15, %s2873_s22  ;;  %p2882_p7 = scmp.ne.s32.totalorder %s3717_s15, 0 }
  0x10   : > { %s2874_s24 = sshll.u32 %s250_s23, 7  ;;  %s9618_s16 = smov (!%p269_p5, %s3721_s16), 1 }
  0x11   : > { %p252_p6 = scmp.lt.s32.totalorder %s2874_s24, 511  ;;  %s2879_s25 = sshll.u32 %s9618_s16, 3 }
  0x12   : > { %s3798_s29 = scalar_lea.vmem %s7874_s2, %s2879_s25  ;;  %s3813_s12 = scalar_lea.vmem %s7875_s3, %s2879_s25 }
  0x13   : > { %s9620_s24 = smov (!%p252_p6, %s2874_s24), 511  ;;  %s3818_s16 = scalar_lea.vmem %s7876_s4, %s2879_s25 }
  0x14   : > { %s2875_s26 = sshll.u32 %s9620_s24, 3  ;;  %284 = sbr.rel (%p2882_p7) target bundleno = 29 (0x1d), region = 32 }
  0x15   : > { %s3803_s6 = scalar_lea.vmem %s7872_s0, %s2875_s26  ;;  %s3808_s9 = scalar_lea.vmem %s7873_s1, %s2875_s26 }
  0x19   : > { %v3735_v0 = vmov 0.0  }
  0x1a   : > { %285 = vst [vmem:[%s3798_s29] sm:$0xff] %v3735_v0 }
  0x1b   : > { %286 = vst [vmem:[%s3813_s12] sm:$0xff] %v3735_v0 }
  0x1c   : > { %287 = vst [vmem:[%s3818_s16] sm:$0xff] %v3735_v0 }
  0x1d PF: > { %v416_v1 = vld [vmem:[%s3808_s9] sm:$0xff]  ;;  %v417_v2 = vld [vmem:[%s3808_s9 + $0x8] sm:$0xff]  ;;  %v418_v3 = vld [vmem:[%s3808_s9 + $0x10] sm:$0xff]  ;;  %v7877_v40 = vmov 0.0  }
  0x1e   : > { %v3828_v4 = vld [vmem:[%s3808_s9 + $0x18] sm:$0xff]  ;;  %v3831_v5 = vld [vmem:[%s3808_s9 + $0x20] sm:$0xff]  ;;  %v3834_v6 = vld [vmem:[%s3808_s9 + $0x28] sm:$0xff]  ;;  %vm544_vm0 = vcmp.gt.f32.partialorder %v416_v1, 0.0  ;;  %vm545_vm1 = vcmp.gt.f32.partialorder %v417_v2, 0.0  ;;  %vm546_vm2 = vcmp.gt.f32.partialorder %v418_v3, 0.0 }
  0x1f   : > { %v3837_v7 = vld [vmem:[%s3808_s9 + $0x30] sm:$0xff]  ;;  %v3840_v8 = vld [vmem:[%s3808_s9 + $0x38] sm:$0xff]  ;;  %v3843_v9 = vld [vmem:[%s3808_s9 + $0x40] sm:$0xff]  ;;  %vm547_vm3 = vcmp.gt.f32.partialorder %v3828_v4, 0.0  ;;  %vm548_vm4 = vcmp.gt.f32.partialorder %v3831_v5, 0.0  ;;  %vm549_vm5 = vcmp.gt.f32.partialorder %v3834_v6, 0.0 }
  0x20   : > { %v3846_v10 = vld [vmem:[%s3808_s9 + $0x48] sm:$0xff]  ;;  %v3849_v11 = vld [vmem:[%s3808_s9 + $0x50] sm:$0xff]  ;;  %v3852_v12 = vld [vmem:[%s3808_s9 + $0x58] sm:$0xff]  ;;  %vm550_vm6 = vcmp.gt.f32.partialorder %v3837_v7, 0.0  ;;  %vm551_vm7 = vcmp.gt.f32.partialorder %v3840_v8, 0.0  ;;  %vm552_vm8 = vcmp.gt.f32.partialorder %v3843_v9, 0.0 }
  0x21   : > { %v3855_v13 = vld [vmem:[%s3808_s9 + $0x60] sm:$0xff]  ;;  %v3858_v14 = vld [vmem:[%s3808_s9 + $0x68] sm:$0xff]  ;;  %v3861_v15 = vld [vmem:[%s3808_s9 + $0x70] sm:$0xff]  ;;  %vm553_vm9 = vcmp.gt.f32.partialorder %v3846_v10, 0.0  ;;  %vm554_vm10 = vcmp.gt.f32.partialorder %v3849_v11, 0.0  ;;  %vm555_vm11 = vcmp.gt.f32.partialorder %v3852_v12, 0.0 }
  0x22   : > { %v3864_v16 = vld [vmem:[%s3808_s9 + $0x78] sm:$0xff]  ;;  %v3867_v17 = vld [vmem:[%s3808_s9 + $0x80] sm:$0xff]  ;;  %v3870_v18 = vld [vmem:[%s3808_s9 + $0x88] sm:$0xff]  ;;  %vm557_vm13 = vcmp.gt.f32.partialorder %v3858_v14, 0.0  ;;  %vm558_vm14 = vcmp.gt.f32.partialorder %v3861_v15, 0.0  ;;  %v3947_v41 = vsel %vm544_vm0, 1.0, %v7877_v40 }
  0x23   : > { %v3873_v19 = vld [vmem:[%s3808_s9 + $0x90] sm:$0xff]  ;;  %v3876_v20 = vld [vmem:[%s3808_s9 + $0x98] sm:$0xff]  ;;  %v3879_v21 = vld [vmem:[%s3808_s9 + $0xa0] sm:$0xff]  ;;  %vm559_vm15 = vcmp.gt.f32.partialorder %v3864_v16, 0.0  ;;  %8067 = vst [vmem:[#allocation6_spill] sm:$0xff] %v3947_v41  ;;  %v3951_v42 = vsel %vm545_vm1, 1.0, %v7877_v40 }
  0x24   : > { %v3882_v22 = vld [vmem:[%s3808_s9 + $0xa8] sm:$0xff]  ;;  %v3885_v23 = vld [vmem:[%s3808_s9 + $0xb0] sm:$0xff]  ;;  %v3888_v24 = vld [vmem:[%s3808_s9 + $0xb8] sm:$0xff]  ;;  %8068 = vst [vmem:[#allocation7_spill] sm:$0xff] %v3951_v42  ;;  %v3955_v43 = vsel %vm546_vm2, 1.0, %v7877_v40  ;;  %vm561_vm0 = vcmp.gt.f32.partialorder %v3870_v18, 0.0 }
  0x25   : > { %v3891_v25 = vld [vmem:[%s3808_s9 + $0xc0] sm:$0xff]  ;;  %v3897_v26 = vld [vmem:[%s3808_s9 + $0xc8] sm:$0xff]  ;;  %v3900_v27 = vld [vmem:[%s3808_s9 + $0xd0] sm:$0xff]  ;;  %8069 = vst [vmem:[#allocation8_spill] sm:$0xff] %v3955_v43  ;;  %vm562_vm1 = vcmp.gt.f32.partialorder %v3873_v19, 0.0  ;;  %vm563_vm2 = vcmp.gt.f32.partialorder %v3876_v20, 0.0 }
  0x26   : > { %v3903_v28 = vld [vmem:[%s3808_s9 + $0xd8] sm:$0xff]  ;;  %v3906_v29 = vld [vmem:[%s3808_s9 + $0xe0] sm:$0xff]  ;;  %v3913_v31 = vld [vmem:[%s3808_s9 + $0xe8] sm:$0xff]  ;;  %v3977_v49 = vsel %vm547_vm3, 1.0, %v7877_v40  ;;  %v3982_v50 = vsel %vm548_vm4, 1.0, %v7877_v40  ;;  %v3987_v51 = vsel %vm549_vm5, 1.0, %v7877_v40 }
  0x27   : > { %v288_v30 = vld [vmem:[%s3803_s6] sm:$0xff]  ;;  %v3916_v32 = vld [vmem:[%s3808_s9 + $0xf0] sm:$0xff]  ;;  %v3919_v33 = vld [vmem:[%s3808_s9 + $0xf8] sm:$0xff]  ;;  %8072 = vst [vmem:[#allocation11_spill] sm:$0xff] %v3977_v49  ;;  %vm8093_vm5 = vcmp.gt.f32.partialorder %v3855_v13, 0.0 }
  0x28   : > { %8063 = vst [vmem:[#allocation2_spill] sm:$0xff] %v3919_v33  ;;  %v3922_v34 = vld [vmem:[%s3808_s9 + $0x100] sm:$0xff]  ;;  %v289_v35 = vld [vmem:[%s3803_s6 + $0x8] sm:$0xff]  ;;  %v3933_v37 = vld [vmem:[%s3808_s9 + $0x110] sm:$0xff]  ;;  %v4041_v3 = vmul.f32 %v3947_v41, %v288_v30 }
  0x29   : > { %8064 = vst [vmem:[#allocation3_spill] sm:$0xff] %v3922_v34  ;;  %v3930_v36 = vld [vmem:[%s3808_s9 + $0x108] sm:$0xff]  ;;  %v3936_v38 = vld [vmem:[%s3808_s9 + $0x118] sm:$0xff]  ;;  %v3939_v39 = vld [vmem:[%s3808_s9 + $0x120] sm:$0xff]  ;;  %v4060_v30 = vmul.f32 %v3951_v42, %v289_v35 }
  0x2a   : > { %8065 = vst [vmem:[#allocation4_spill] sm:$0xff] %v3936_v38  ;;  %v290_v44 = vld [vmem:[%s3803_s6 + $0x10] sm:$0xff]  ;;  %v3959_v45 = vld [vmem:[%s3808_s9 + $0x128] sm:$0xff]  ;;  %v3965_v47 = vld [vmem:[%s3808_s9 + $0x138] sm:$0xff] }
  0x2b   : > { %8066 = vst [vmem:[#allocation5_spill] sm:$0xff] %v3939_v39  ;;  %v3962_v46 = vld [vmem:[%s3808_s9 + $0x130] sm:$0xff]  ;;  %v3968_v48 = vld [vmem:[%s3808_s9 + $0x140] sm:$0xff]  ;;  %v291_v52 = vld [vmem:[%s3803_s6 + $0x18] sm:$0xff]  ;;  %v4079_v35 = vmul.f32 %v3955_v43, %v290_v44 }
  0x2c   : > { %8070 = vst [vmem:[#allocation9_spill] sm:$0xff] %v3965_v47  ;;  %v3991_v53 = vld [vmem:[%s3808_s9 + $0x148] sm:$0xff]  ;;  %v3994_v54 = vld [vmem:[%s3808_s9 + $0x150] sm:$0xff]  ;;  %v3997_v55 = vld [vmem:[%s3808_s9 + $0x158] sm:$0xff]  ;;  %v4098_v44 = vmul.f32 %v3977_v49, %v291_v52 }
  0x2d   : > { %8071 = vst [vmem:[#allocation10_spill] sm:$0xff] %v3968_v48  ;;  %v4000_v56 = vld [vmem:[%s3808_s9 + $0x160] sm:$0xff]  ;;  %v4008_v58 = vld [vmem:[%s3808_s9 + $0x168] sm:$0xff]  ;;  %v4011_v59 = vld [vmem:[%s3808_s9 + $0x170] sm:$0xff] }
  0x2e   : > { %8073 = vst [vmem:[#allocation12_spill] sm:$0xff] %v3982_v50  ;;  %v292_v57 = vld [vmem:[%s3803_s6 + $0x20] sm:$0xff]  ;;  %v4014_v60 = vld [vmem:[%s3808_s9 + $0x178] sm:$0xff]  ;;  %v293_v62 = vld [vmem:[%s3803_s6 + $0x28] sm:$0xff] }
  0x2f   : > { %8074 = vst [vmem:[#allocation13_spill] sm:$0xff] %v3987_v51  ;;  %v4017_v61 = vld [vmem:[%s3808_s9 + $0x180] sm:$0xff]  ;;  %v4025_v63 = vld [vmem:[%s3808_s9 + $0x188] sm:$0xff]  ;;  %v4028_v0 = vld [vmem:[%s3808_s9 + $0x190] sm:$0xff]  ;;  %v4117_v52 = vmul.f32 %v3982_v50, %v292_v57 }
  0x30   : > { %8075 = vst [vmem:[#allocation14_spill] sm:$0xff] %v4000_v56  ;;  %v4031_v1 = vld [vmem:[%s3808_s9 + $0x198] sm:$0xff]  ;;  %v4034_v2 = vld [vmem:[%s3808_s9 + $0x1a0] sm:$0xff]  ;;  %v4044_v4 = vld [vmem:[%s3808_s9 + $0x1a8] sm:$0xff]  ;;  %vm593_vm3 = vcmp.gt.f32.partialorder %v4025_v63, 0.0  ;;  %vm594_vm4 = vcmp.gt.f32.partialorder %v4028_v0, 0.0 }
  0x31   : > { %8076 = vst [vmem:[#allocation15_spill] sm:$0xff] %v4008_v58  ;;  %v4047_v5 = vld [vmem:[%s3808_s9 + $0x1b0] sm:$0xff]  ;;  %v4050_v6 = vld [vmem:[%s3808_s9 + $0x1b8] sm:$0xff]  ;;  %v4053_v40 = vld [vmem:[%s3808_s9 + $0x1c0] sm:$0xff]  ;;  %vm595_vm12 = vcmp.gt.f32.partialorder %v4031_v1, 0.0 }
  0x32   : > { %8077 = vst [vmem:[#allocation16_spill] sm:$0xff] %v4017_v61  ;;  %v4063_v41 = vld [vmem:[%s3808_s9 + $0x1c8] sm:$0xff]  ;;  %v4069_v34 = vld [vmem:[%s3808_s9 + $0x1d8] sm:$0xff]  ;;  %v4072_v33 = vld [vmem:[%s3808_s9 + $0x1e0] sm:$0xff]  ;;  %v8085_v61 = vmov 0.0  }
  0x33   : > { %8078 = vst [vmem:[#allocation17_spill] sm:$0xff] %v4031_v1  ;;  %v4082_v42 = vld [vmem:[%s3808_s9 + $0x1e8] sm:$0xff]  ;;  %v4088_v39 = vld [vmem:[%s3808_s9 + $0x1f8] sm:$0xff]  ;;  %v4091_v38 = vld [vmem:[%s3808_s9 + $0x200] sm:$0xff]  ;;  %v4138_v57 = vsel %vm550_vm6, 1.0, %v8085_v61  ;;  %v4143_v50 = vsel %vm551_vm7, 1.0, %v8085_v61 }
  0x34   : > { %8079 = vst [vmem:[#allocation18_spill] sm:$0xff] %v4034_v2  ;;  %v4101_v43 = vld [vmem:[%s3808_s9 + $0x208] sm:$0xff]  ;;  %v4107_v48 = vld [vmem:[%s3808_s9 + $0x218] sm:$0xff]  ;;  %v4110_v47 = vld [vmem:[%s3808_s9 + $0x220] sm:$0xff]  ;;  %v4151_v2 = vmul.f32 %v3987_v51, %v293_v62  ;;  %vm597_vm6 = vcmp.gt.f32.partialorder %v4044_v4, 0.0  ;;  %vm598_vm7 = vcmp.gt.f32.partialorder %v4047_v5, 0.0 }
  0x35   : > { %8080 = vst [vmem:[#allocation19_spill] sm:$0xff] %v4041_v3  ;;  %v4066_v3 = vld [vmem:[%s3808_s9 + $0x1d0] sm:$0xff]  ;;  %v4120_v49 = vld [vmem:[%s3808_s9 + $0x228] sm:$0xff]  ;;  %v4126_v56 = vld [vmem:[%s3808_s9 + $0x238] sm:$0xff]  ;;  %v4172_v9 = vsel %vm553_vm9, 1.0, %v8085_v61  ;;  %v4177_v62 = vsel %vm554_vm10, 1.0, %v8085_v61 }
  0x36   : > { %8081 = vst [vmem:[#allocation20_spill] sm:$0xff] %v4060_v30  ;;  %v4085_v30 = vld [vmem:[%s3808_s9 + $0x1f0] sm:$0xff]  ;;  %v4129_v58 = vld [vmem:[%s3808_s9 + $0x240] sm:$0xff]  ;;  %v4154_v7 = vld [vmem:[%s3808_s9 + $0x248] sm:$0xff]  ;;  %v4182_v51 = vsel %vm555_vm11, 1.0, %v8085_v61  ;;  %vm601_vm9 = vcmp.gt.f32.partialorder %v4063_v41, 0.0 }
  0x37   : > { %8082 = vst [vmem:[#allocation21_spill] sm:$0xff] %v4079_v35  ;;  %v4104_v35 = vld [vmem:[%s3808_s9 + $0x210] sm:$0xff]  ;;  %v4160_v1 = vld [vmem:[%s3808_s9 + $0x258] sm:$0xff]  ;;  %v4163_v8 = vld [vmem:[%s3808_s9 + $0x260] sm:$0xff]  ;;  %vm602_vm10 = vcmp.gt.f32.partialorder %v4066_v3, 0.0  ;;  %vm603_vm11 = vcmp.gt.f32.partialorder %v4069_v34, 0.0 }
  0x38   : > { %8083 = vst [vmem:[#allocation22_spill] sm:$0xff] %v4098_v44  ;;  %v4123_v44 = vld [vmem:[%s3808_s9 + $0x230] sm:$0xff]  ;;  %v4190_v10 = vld [vmem:[%s3808_s9 + $0x268] sm:$0xff]  ;;  %v4196_v11 = vld [vmem:[%s3808_s9 + $0x278] sm:$0xff]  ;;  %v4208_v12 = vsel %vm557_vm13, 1.0, %v8085_v61  ;;  %v4213_v13 = vsel %vm558_vm14, 1.0, %v8085_v61 }
  0x39   : > { %8084 = vst [vmem:[#allocation23_spill] sm:$0xff] %v4117_v52  ;;  %v4148_v52 = vsel %vm552_vm8, 1.0, %v8085_v61  ;;  %v4226_v14 = vld [vmem:[%s3808_s9 + $0x288] sm:$0xff]  ;;  %v4232_v15 = vld [vmem:[%s3808_s9 + $0x298] sm:$0xff]  ;;  %vm605_vm13 = vcmp.gt.f32.partialorder %v4082_v42, 0.0  ;;  %vm606_vm14 = vcmp.gt.f32.partialorder %v4085_v30, 0.0 }
  0x3a   : > { %8086 = vst [vmem:[#allocation24_spill] sm:$0xff] %v4138_v57  ;;  %v4157_v57 = vld [vmem:[%s3808_s9 + $0x250] sm:$0xff]  ;;  %v4244_v16 = vsel %vm561_vm0, 1.0, %v8085_v61  ;;  %v4262_v18 = vld [vmem:[%s3808_s9 + $0x2a8] sm:$0xff]  ;;  %v4268_v19 = vld [vmem:[%s3808_s9 + $0x2b8] sm:$0xff]  ;;  %vm8114_vm0 = vcmp.gt.f32.partialorder %v3888_v24, 0.0 }
  0x3b   : > { %8087 = vst [vmem:[#allocation25_spill] sm:$0xff] %v4143_v50  ;;  %vm8116_vm8 = vcmp.gt.f32.partialorder %v3891_v25, 0.0  ;;  %v4550_v63 = vld [vmem:[%s3808_s9 + $0x3a8] sm:$0xff]  ;;  %v4565_v0 = vsel %vm597_vm6, 1.0, %v8085_v61  ;;  %v4600_v5 = vsel %vm602_vm10, 1.0, %v8085_v61  ;;  %v4616_v41 = vld [vmem:[%s3808_s9 + $0x3d8] sm:$0xff] }
  0x3c   : > { %8088 = vst [vmem:[#allocation26_spill] sm:$0xff] %v4148_v52  ;;  %v8138_v52 = vld [vmem:[#allocation3_spill] sm:$0xff]  ;;  %v4630_v34 = vsel %vm606_vm14, 1.0, %v8085_v61  ;;  %vm8210_vm14 = vcmp.gt.f32.partialorder %v4110_v47, 0.0  ;;  %vm8226_vm10 = vcmp.gt.f32.partialorder %v4163_v8, 0.0 }
  0x3d   : > { %8089 = vst [vmem:[#allocation27_spill] sm:$0xff] %v4151_v2  ;;  %v4187_v2 = vsel %vm8093_vm5, 1.0, %v8085_v61  ;;  %vm8100_vm5 = vcmp.gt.f32.partialorder %v3867_v17, 0.0  ;;  %v4249_v17 = vsel %vm562_vm1, 1.0, %v8085_v61  ;;  %vm8123_vm1 = vcmp.gt.f32.partialorder %v3900_v27, 0.0  ;;  %v4340_v27 = vld [vmem:[%s3808_s9 + $0x2f8] sm:$0xff] }
  0x3e   : > { %8090 = vst [vmem:[#allocation28_spill] sm:$0xff] %v4172_v9  ;;  %v4193_v9 = vld [vmem:[%s3808_s9 + $0x270] sm:$0xff]  ;;  %v4321_v25 = vsel %vm8123_vm1, 1.0, %v8085_v61  ;;  %v4586_v4 = vld [vmem:[%s3808_s9 + $0x3c8] sm:$0xff] }
  0x3f   : > { %8091 = vst [vmem:[#allocation29_spill] sm:$0xff] %v4177_v62  ;;  %v4199_v62 = vld [vmem:[%s3808_s9 + $0x280] sm:$0xff]  ;;  %v4646_v42 = vld [vmem:[%s3808_s9 + $0x3e8] sm:$0xff] }
  0x40   : > { %8092 = vst [vmem:[#allocation30_spill] sm:$0xff] %v4182_v51  ;;  %v4223_v51 = vsel %vm8100_vm5, 1.0, %v8085_v61  ;;  %vm8107_vm5 = vcmp.gt.f32.partialorder %v3879_v21, 0.0 }
  0x41   : > { %8094 = vst [vmem:[#allocation31_spill] sm:$0xff] %v4187_v2  ;;  %v4218_v2 = vsel %vm559_vm15, 1.0, %v8085_v61  ;;  %vm8112_vm15 = vcmp.gt.f32.partialorder %v3885_v23, 0.0  ;;  %v4304_v23 = vld [vmem:[%s3808_s9 + $0x2d8] sm:$0xff] }
  0x42   : > { %8095 = vst [vmem:[#allocation32_spill] sm:$0xff] %v4196_v11  ;;  %v4285_v21 = vsel %vm8112_vm15, 1.0, %v8085_v61  ;;  %vm8125_vm15 = vcmp.gt.f32.partialorder %v3903_v28, 0.0  ;;  %v8148_v11 = vld [vmem:[#allocation5_spill] sm:$0xff] }
  0x43   : > { %8096 = vst [vmem:[#allocation33_spill] sm:$0xff] %v4199_v62 }
  0x44   : > { %8097 = vst [vmem:[#allocation34_spill] sm:$0xff] %v4208_v12  ;;  %v4229_v12 = vld [vmem:[%s3808_s9 + $0x290] sm:$0xff] }
  0x45   : > { %8098 = vst [vmem:[#allocation35_spill] sm:$0xff] %v4213_v13  ;;  %v4235_v13 = vld [vmem:[%s3808_s9 + $0x2a0] sm:$0xff] }
  0x46   : > { %8099 = vst [vmem:[#allocation36_spill] sm:$0xff] %v4218_v2  ;;  %v4259_v2 = vsel %vm8107_vm5, 1.0, %v8085_v61  ;;  %vm8110_vm5 = vcmp.gt.f32.partialorder %v3882_v22, 0.0  ;;  %v4298_v22 = vld [vmem:[%s3808_s9 + $0x2c8] sm:$0xff] }
  0x47   : > { %8101 = vst [vmem:[#allocation37_spill] sm:$0xff] %v4223_v51  ;;  %v4254_v51 = vsel %vm563_vm2, 1.0, %v8085_v61  ;;  %v4280_v20 = vsel %vm8110_vm5, 1.0, %v8085_v61  ;;  %vm8127_vm2 = vcmp.gt.f32.partialorder %v3906_v29, 0.0  ;;  %vm8139_vm5 = vcmp.gt.f32.partialorder %v8138_v52, 0.0 }
  0x48   : > { %8102 = vst [vmem:[#allocation38_spill] sm:$0xff] %v4232_v15  ;;  %v4367_v50 = vsel %vm8139_vm5, 1.0, %v8085_v61  ;;  %vm8141_vm5 = vcmp.gt.f32.partialorder %v3930_v36, 0.0  ;;  %v4406_v36 = vld [vmem:[%s3808_s9 + $0x328] sm:$0xff]  ;;  %v8158_v15 = vld [vmem:[#allocation10_spill] sm:$0xff] }
  0x49   : > { %8103 = vst [vmem:[#allocation39_spill] sm:$0xff] %v4235_v13  ;;  %vm645_vm6 = vcmp.gt.f32.partialorder %v4406_v36, 0.0  ;;  %v294_v36 = vld [vmem:[%s3803_s6 + $0x30] sm:$0xff] }
  0x4a   : > { %8104 = vst [vmem:[#allocation40_spill] sm:$0xff] %v4244_v16  ;;  %v4265_v16 = vld [vmem:[%s3808_s9 + $0x2b0] sm:$0xff] }
  0x4b   : > { %8105 = vst [vmem:[#allocation41_spill] sm:$0xff] %v4249_v17  ;;  %v4271_v17 = vld [vmem:[%s3808_s9 + $0x2c0] sm:$0xff] }
  0x4c   : > { %8106 = vst [vmem:[#allocation42_spill] sm:$0xff] %v4254_v51  ;;  %v4295_v51 = vsel %vm8116_vm8, 1.0, %v8085_v61  ;;  %vm8121_vm8 = vcmp.gt.f32.partialorder %v3897_v26, 0.0  ;;  %v4334_v26 = vld [vmem:[%s3808_s9 + $0x2e8] sm:$0xff] }
  0x4d   : > { %8108 = vst [vmem:[#allocation43_spill] sm:$0xff] %v4259_v2  ;;  %v4290_v2 = vsel %vm8114_vm0, 1.0, %v8085_v61  ;;  %v4316_v24 = vsel %vm8121_vm8, 1.0, %v8085_v61  ;;  %vm8133_vm0 = vcmp.gt.f32.partialorder %v3916_v32, 0.0  ;;  %v4376_v32 = vld [vmem:[%s3808_s9 + $0x318] sm:$0xff]  ;;  %vm8149_vm8 = vcmp.gt.f32.partialorder %v8148_v11, 0.0 }
  0x4e   : > { %8109 = vst [vmem:[#allocation44_spill] sm:$0xff] %v4271_v17  ;;  %v4357_v29 = vsel %vm8133_vm0, 1.0, %v8085_v61  ;;  %v4403_v62 = vsel %vm8149_vm8, 1.0, %v8085_v61  ;;  %vm8151_vm8 = vcmp.gt.f32.partialorder %v3959_v45, 0.0  ;;  %v4442_v45 = vld [vmem:[%s3808_s9 + $0x348] sm:$0xff] }
  0x4f   : > { %8111 = vst [vmem:[#allocation45_spill] sm:$0xff] %v4280_v20  ;;  %v4301_v20 = vld [vmem:[%s3808_s9 + $0x2d0] sm:$0xff] }
  0x50   : > { %8113 = vst [vmem:[#allocation46_spill] sm:$0xff] %v4285_v21  ;;  %v4307_v21 = vld [vmem:[%s3808_s9 + $0x2e0] sm:$0xff] }
  0x51   : > { %8115 = vst [vmem:[#allocation47_spill] sm:$0xff] %v4290_v2  ;;  %v4331_v2 = vsel %vm8127_vm2, 1.0, %v8085_v61  ;;  %vm8131_vm2 = vcmp.gt.f32.partialorder %v3913_v31, 0.0  ;;  %v4370_v31 = vld [vmem:[%s3808_s9 + $0x308] sm:$0xff] }
  0x52   : > { %8117 = vst [vmem:[#allocation48_spill] sm:$0xff] %v4295_v51  ;;  %v4326_v51 = vsel %vm8125_vm15, 1.0, %v8085_v61  ;;  %v4352_v28 = vsel %vm8131_vm2, 1.0, %v8085_v61  ;;  %vm8143_vm15 = vcmp.gt.f32.partialorder %v3933_v37, 0.0  ;;  %v4412_v37 = vld [vmem:[%s3808_s9 + $0x338] sm:$0xff]  ;;  %vm8159_vm2 = vcmp.gt.f32.partialorder %v8158_v15, 0.0 }
  0x53   : > { %8118 = vst [vmem:[#allocation49_spill] sm:$0xff] %v4301_v20  ;;  %v4393_v52 = vsel %vm8143_vm15, 1.0, %v8085_v61  ;;  %v4439_v13 = vsel %vm8159_vm2, 1.0, %v8085_v61  ;;  %vm8161_vm2 = vcmp.gt.f32.partialorder %v3991_v53, 0.0  ;;  %v4478_v53 = vld [vmem:[%s3808_s9 + $0x368] sm:$0xff] }
  0x54   : > { %8119 = vst [vmem:[#allocation50_spill] sm:$0xff] %v4304_v23  ;;  %v8177_v23 = vld [vmem:[#allocation16_spill] sm:$0xff] }
  0x55   : > { %8120 = vst [vmem:[#allocation51_spill] sm:$0xff] %v4307_v21 }
  0x56   : > { %8122 = vst [vmem:[#allocation52_spill] sm:$0xff] %v4316_v24  ;;  %v4337_v24 = vld [vmem:[%s3808_s9 + $0x2f0] sm:$0xff] }
  0x57   : > { %8124 = vst [vmem:[#allocation53_spill] sm:$0xff] %v4321_v25  ;;  %v4343_v25 = vld [vmem:[%s3808_s9 + $0x300] sm:$0xff] }
  0x58   : > { %8126 = vst [vmem:[#allocation54_spill] sm:$0xff] %v4326_v51 }
  0x59   : > { %8128 = vst [vmem:[#allocation55_spill] sm:$0xff] %v4331_v2  ;;  %v8135_v2 = vld [vmem:[#allocation2_spill] sm:$0xff] }
  0x5a   : > { %8129 = vst [vmem:[#allocation56_spill] sm:$0xff] %v4340_v27  ;;  %vm8136_vm1 = vcmp.gt.f32.partialorder %v8135_v2, 0.0  ;;  %v4388_v2 = vsel %vm8141_vm5, 1.0, %v8085_v61 }
  0x5b   : > { %8130 = vst [vmem:[#allocation57_spill] sm:$0xff] %v4343_v25  ;;  %v4362_v51 = vsel %vm8136_vm1, 1.0, %v8085_v61  ;;  %vm8153_vm1 = vcmp.gt.f32.partialorder %v3962_v46, 0.0  ;;  %v4448_v46 = vld [vmem:[%s3808_s9 + $0x358] sm:$0xff] }
  0x5c   : > { %8132 = vst [vmem:[#allocation58_spill] sm:$0xff] %v4352_v28  ;;  %v4373_v28 = vld [vmem:[%s3808_s9 + $0x310] sm:$0xff]  ;;  %v4429_v11 = vsel %vm8153_vm1, 1.0, %v8085_v61  ;;  %vm8165_vm1 = vcmp.gt.f32.partialorder %v3997_v55, 0.0 }
  0x5d   : > { %8134 = vst [vmem:[#allocation59_spill] sm:$0xff] %v4357_v29  ;;  %v4379_v29 = vld [vmem:[%s3808_s9 + $0x320] sm:$0xff] }
  0x5e   : > { %8137 = vst [vmem:[#allocation2_spill] sm:$0xff] %v4362_v51 }
  0x5f   : > { %8140 = vst [vmem:[#allocation3_spill] sm:$0xff] %v4367_v50  ;;  %v8145_v50 = vld [vmem:[#allocation4_spill] sm:$0xff] }
  0x60   : > { %8142 = vst [vmem:[#allocation60_spill] sm:$0xff] %v4388_v2  ;;  %vm8146_vm0 = vcmp.gt.f32.partialorder %v8145_v50, 0.0  ;;  %v4409_v2 = vld [vmem:[%s3808_s9 + $0x330] sm:$0xff]  ;;  %v4424_v50 = vsel %vm8151_vm8, 1.0, %v8085_v61  ;;  %vm8178_vm8 = vcmp.gt.f32.partialorder %v8177_v23, 0.0  ;;  %v4537_v23 = vsel %vm594_vm4, 1.0, %v8085_v61 }
  0x61   : > { %8144 = vst [vmem:[#allocation61_spill] sm:$0xff] %v4393_v52  ;;  %v4398_v51 = vsel %vm8146_vm0, 1.0, %v8085_v61  ;;  %v4415_v52 = vld [vmem:[%s3808_s9 + $0x340] sm:$0xff]  ;;  %vm8163_vm0 = vcmp.gt.f32.partialorder %v3994_v54, 0.0  ;;  %v4484_v54 = vld [vmem:[%s3808_s9 + $0x378] sm:$0xff]  ;;  %v4511_v21 = vsel %vm8178_vm8, 1.0, %v8085_v61 }
  0x62   : > { %8147 = vst [vmem:[#allocation4_spill] sm:$0xff] %v4398_v51  ;;  %v4465_v15 = vsel %vm8163_vm0, 1.0, %v8085_v61  ;;  %vm8175_vm0 = vcmp.gt.f32.partialorder %v4014_v60, 0.0  ;;  %v4532_v60 = vsel %vm593_vm3, 1.0, %v8085_v61  ;;  %vm641_vm3 = vcmp.gt.f32.partialorder %v4370_v31, 0.0 }
  0x63   : > { %8150 = vst [vmem:[#allocation5_spill] sm:$0xff] %v4403_v62  ;;  %v8155_v62 = vld [vmem:[#allocation9_spill] sm:$0xff]  ;;  %vm669_vm4 = vcmp.gt.f32.partialorder %v4646_v42, 0.0  ;;  %v4856_v31 = vsel %vm645_vm6, 1.0, %v8085_v61  ;;  %vm8289_vm6 = vcmp.gt.f32.partialorder %v4448_v46, 0.0  ;;  %v317_v42 = vld [vmem:[%s3803_s6 + $0xe8] sm:$0xff] }
  0x64   : > { %8152 = vst [vmem:[#allocation62_spill] sm:$0xff] %v4424_v50  ;;  %vm8156_vm15 = vcmp.gt.f32.partialorder %v8155_v62, 0.0  ;;  %v4445_v50 = vld [vmem:[%s3808_s9 + $0x350] sm:$0xff]  ;;  %v4460_v62 = vsel %vm8161_vm2, 1.0, %v8085_v61  ;;  %vm8191_vm2 = vcmp.gt.f32.partialorder %v4053_v40, 0.0  ;;  %v4595_v40 = vsel %vm601_vm9, 1.0, %v8085_v61 }
  0x65   : > { %8154 = vst [vmem:[#allocation63_spill] sm:$0xff] %v4429_v11  ;;  %v4434_v51 = vsel %vm8156_vm15, 1.0, %v8085_v61  ;;  %v4451_v11 = vld [vmem:[%s3808_s9 + $0x360] sm:$0xff]  ;;  %vm8173_vm15 = vcmp.gt.f32.partialorder %v4011_v59, 0.0  ;;  %v4520_v59 = vld [vmem:[%s3808_s9 + $0x398] sm:$0xff]  ;;  %vm649_vm9 = vcmp.gt.f32.partialorder %v4442_v45, 0.0 }
  0x66   : > { %8157 = vst [vmem:[#allocation9_spill] sm:$0xff] %v4434_v51  ;;  %v8167_v51 = vld [vmem:[#allocation14_spill] sm:$0xff] }
  0x67   : > { %8160 = vst [vmem:[#allocation10_spill] sm:$0xff] %v4439_v13  ;;  %v4470_v13 = vsel %vm8165_vm1, 1.0, %v8085_v61  ;;  %vm8168_vm5 = vcmp.gt.f32.partialorder %v8167_v51, 0.0  ;;  %vm634_vm1 = vcmp.gt.f32.partialorder %v4301_v20, 0.0  ;;  %v8170_v51 = vld [vmem:[#allocation15_spill] sm:$0xff]  ;;  %v4523_v20 = vld [vmem:[%s3808_s9 + $0x3a0] sm:$0xff] }
  0x68   : > { %8162 = vst [vmem:[#allocation64_spill] sm:$0xff] %v4460_v62  ;;  %v4475_v17 = vsel %vm8168_vm5, 1.0, %v8085_v61  ;;  %v4481_v62 = vld [vmem:[%s3808_s9 + $0x370] sm:$0xff]  ;;  %vm8171_vm5 = vcmp.gt.f32.partialorder %v8170_v51, 0.0  ;;  %v4514_v51 = vld [vmem:[%s3808_s9 + $0x388] sm:$0xff]  ;;  %v296_v45 = vld [vmem:[%s3803_s6 + $0x40] sm:$0xff] }
  0x69   : > { %8164 = vst [vmem:[#allocation65_spill] sm:$0xff] %v4465_v15  ;;  %v4487_v15 = vld [vmem:[%s3808_s9 + $0x380] sm:$0xff]  ;;  %v4496_v55 = vsel %vm8171_vm5, 1.0, %v8085_v61  ;;  %vm638_vm5 = vcmp.gt.f32.partialorder %v4337_v24, 0.0 }
  0x6a   : > { %8166 = vst [vmem:[#allocation66_spill] sm:$0xff] %v4470_v13  ;;  %v4506_v13 = vsel %vm8175_vm0, 1.0, %v8085_v61  ;;  %vm639_vm0 = vcmp.gt.f32.partialorder %v4340_v27, 0.0  ;;  %v4553_v27 = vld [vmem:[%s3808_s9 + $0x3b0] sm:$0xff] }
  0x6b   : > { %8169 = vst [vmem:[#allocation14_spill] sm:$0xff] %v4475_v17  ;;  %v4501_v17 = vsel %vm8173_vm15, 1.0, %v8085_v61  ;;  %vm637_vm15 = vcmp.gt.f32.partialorder %v4334_v26, 0.0  ;;  %v4836_v26 = vsel %vm641_vm3, 1.0, %v8085_v61  ;;  %vm8284_vm3 = vcmp.gt.f32.partialorder %v4415_v52, 0.0 }
  0x6c   : > { %8172 = vst [vmem:[#allocation15_spill] sm:$0xff] %v4496_v55  ;;  %v4517_v55 = vld [vmem:[%s3808_s9 + $0x390] sm:$0xff]  ;;  %v4887_v52 = vsel %vm8289_vm6, 1.0, %v8085_v61 }
  0x6d   : > { %8174 = vst [vmem:[#allocation67_spill] sm:$0xff] %v4501_v17  ;;  %v8184_v17 = vld [vmem:[#allocation18_spill] sm:$0xff] }
  0x6e   : > { %8176 = vst [vmem:[#allocation68_spill] sm:$0xff] %v4506_v13  ;;  %v4542_v13 = vsel %vm595_vm12, 1.0, %v8085_v61  ;;  %vm8185_vm8 = vcmp.gt.f32.partialorder %v8184_v17, 0.0  ;;  %v4570_v17 = vsel %vm598_vm7, 1.0, %v8085_v61  ;;  %vm646_vm12 = vcmp.gt.f32.partialorder %v4409_v2, 0.0 }
  0x6f   : > { %8179 = vst [vmem:[#allocation16_spill] sm:$0xff] %v4511_v21  ;;  %v4547_v25 = vsel %vm8185_vm8, 1.0, %v8085_v61  ;;  %vm8189_vm8 = vcmp.gt.f32.partialorder %v4050_v6, 0.0  ;;  %vm647_vm7 = vcmp.gt.f32.partialorder %v4412_v37, 0.0  ;;  %v4605_v6 = vsel %vm603_vm11, 1.0, %v8085_v61 }
  0x70   : > { %8180 = vst [vmem:[#allocation69_spill] sm:$0xff] %v4532_v60  ;;  %v4556_v60 = vld [vmem:[%s3808_s9 + $0x3b8] sm:$0xff]  ;;  %v4575_v21 = vsel %vm8189_vm8, 1.0, %v8085_v61  ;;  %vm8200_vm11 = vcmp.gt.f32.partialorder %v4088_v39, 0.0  ;;  %vm8208_vm8 = vcmp.gt.f32.partialorder %v4107_v48, 0.0  ;;  %v4877_v2 = vsel %vm649_vm9, 1.0, %v8085_v61 }
  0x71   : > { %8181 = vst [vmem:[#allocation70_spill] sm:$0xff] %v4537_v23  ;;  %v4635_v3 = vsel %vm8200_vm11, 1.0, %v8085_v61  ;;  %vm8204_vm11 = vcmp.gt.f32.partialorder %v4101_v43, 0.0  ;;  %v4665_v30 = vsel %vm8208_vm8, 1.0, %v8085_v61  ;;  %v4676_v43 = vld [vmem:[%s3808_s9 + $0x3f8] sm:$0xff]  ;;  %vm8212_vm8 = vcmp.gt.f32.partialorder %v4120_v49, 0.0 }
  0x72   : > { %8183 = vst [vmem:[#allocation17_spill] sm:$0xff] %v4542_v13  ;;  %v4583_v13 = vld [vmem:[%s3808_s9 + $0x3c0] sm:$0xff]  ;;  %v4655_v39 = vsel %vm8204_vm11, 1.0, %v8085_v61  ;;  %v4685_v48 = vsel %vm8212_vm8, 1.0, %v8085_v61  ;;  %vm665_vm11 = vcmp.gt.f32.partialorder %v4586_v4, 0.0  ;;  %vm8293_vm9 = vcmp.gt.f32.partialorder %v4478_v53, 0.0 }
  0x73   : > { %8186 = vst [vmem:[#allocation18_spill] sm:$0xff] %v4547_v25  ;;  %v4580_v25 = vsel %vm8191_vm2, 1.0, %v8085_v61  ;;  %vm8196_vm2 = vcmp.gt.f32.partialorder %v4072_v33, 0.0  ;;  %v4625_v33 = vsel %vm605_vm13, 1.0, %v8085_v61  ;;  %vm8216_vm13 = vcmp.gt.f32.partialorder %v4126_v56, 0.0  ;;  %v300_v53 = vld [vmem:[%s3803_s6 + $0x60] sm:$0xff] }
  0x74   : > { %8187 = vst [vmem:[#allocation71_spill] sm:$0xff] %v4565_v0  ;;  %v312_v4 = vld [vmem:[%s3803_s6 + $0xc0] sm:$0xff] }
  0x75   : > { %8188 = vst [vmem:[#allocation72_spill] sm:$0xff] %v4570_v17 }
  0x76   : > { %8190 = vst [vmem:[#allocation73_spill] sm:$0xff] %v4575_v21  ;;  %v4613_v21 = vld [vmem:[%s3808_s9 + $0x3d0] sm:$0xff] }
  0x77   : > { %8192 = vst [vmem:[#allocation74_spill] sm:$0xff] %v4580_v25  ;;  %v4610_v25 = vsel %vm8196_vm2, 1.0, %v8085_v61  ;;  %vm8202_vm2 = vcmp.gt.f32.partialorder %v4091_v38, 0.0  ;;  %vm8318_vm6 = vcmp.gt.f32.partialorder %v4613_v21, 0.0  ;;  %v4997_v21 = vsel %vm669_vm4, 1.0, %v8085_v61 }
  0x78   : > { %8193 = vst [vmem:[#allocation75_spill] sm:$0xff] %v4595_v40 }
  0x79   : > { %8194 = vst [vmem:[#allocation76_spill] sm:$0xff] %v4600_v5 }
  0x7a   : > { %8195 = vst [vmem:[#allocation77_spill] sm:$0xff] %v4605_v6  ;;  %v4643_v6 = vld [vmem:[%s3808_s9 + $0x3e0] sm:$0xff] }
  0x7b   : > { %8197 = vst [vmem:[#allocation78_spill] sm:$0xff] %v4610_v25  ;;  %v4640_v25 = vsel %vm8202_vm2, 1.0, %v8085_v61  ;;  %vm8206_vm2 = vcmp.gt.f32.partialorder %v4104_v35, 0.0  ;;  %v4695_v35 = vsel %vm8216_vm13, 1.0, %v8085_v61  ;;  %vm8222_vm13 = vcmp.gt.f32.partialorder %v4157_v57, 0.0 }
  0x7c   : > { %8198 = vst [vmem:[#allocation79_spill] sm:$0xff] %v4625_v33  ;;  %v4660_v38 = vsel %vm8206_vm2, 1.0, %v8085_v61  ;;  %vm8218_vm2 = vcmp.gt.f32.partialorder %v4129_v58, 0.0  ;;  %v4714_v56 = vsel %vm8222_vm13, 1.0, %v8085_v61  ;;  %vm8228_vm13 = vcmp.gt.f32.partialorder %v4190_v10, 0.0 }
  0x7d   : > { %8199 = vst [vmem:[#allocation80_spill] sm:$0xff] %v4630_v34  ;;  %v4733_v57 = vsel %vm8228_vm13, 1.0, %v8085_v61 }
  0x7e   : > { %8201 = vst [vmem:[#allocation81_spill] sm:$0xff] %v4635_v3  ;;  %v4673_v3 = vld [vmem:[%s3808_s9 + $0x3f0] sm:$0xff] }
  0x7f   : > { %8203 = vst [vmem:[#allocation82_spill] sm:$0xff] %v4640_v25  ;;  %v4670_v25 = vsel %vm8210_vm14, 1.0, %v8085_v61  ;;  %vm8214_vm14 = vcmp.gt.f32.partialorder %v4123_v44, 0.0  ;;  %v4724_v44 = vsel %vm8226_vm10, 1.0, %v8085_v61 }
  0x80   : > { %8205 = vst [vmem:[#allocation83_spill] sm:$0xff] %v4655_v39  ;;  %v4690_v47 = vsel %vm8214_vm14, 1.0, %v8085_v61  ;;  %vm8220_vm14 = vcmp.gt.f32.partialorder %v4154_v7, 0.0  ;;  %v8232_v7 = vld [vmem:[#allocation32_spill] sm:$0xff] }
  0x81   : > { %8207 = vst [vmem:[#allocation84_spill] sm:$0xff] %v4660_v38  ;;  %v4709_v49 = vsel %vm8220_vm14, 1.0, %v8085_v61  ;;  %vm8233_vm10 = vcmp.gt.f32.partialorder %v8232_v7, 0.0  ;;  %vm8248_vm14 = vcmp.gt.f32.partialorder %v4262_v18, 0.0 }
  0x82   : > { %8209 = vst [vmem:[#allocation85_spill] sm:$0xff] %v4665_v30  ;;  %v4743_v8 = vsel %vm8233_vm10, 1.0, %v8085_v61  ;;  %vm8240_vm10 = vcmp.gt.f32.partialorder %v4229_v12, 0.0 }
  0x83   : > { %8211 = vst [vmem:[#allocation86_spill] sm:$0xff] %v4670_v25  ;;  %v4700_v25 = vsel %vm8218_vm2, 1.0, %v8085_v61  ;;  %vm8224_vm2 = vcmp.gt.f32.partialorder %v4160_v1, 0.0  ;;  %v4761_v10 = vsel %vm8240_vm10, 1.0, %v8085_v61  ;;  %vm8252_vm10 = vcmp.gt.f32.partialorder %v4268_v19, 0.0  ;;  %v8261_v19 = vld [vmem:[#allocation50_spill] sm:$0xff] }
  0x84   : > { %8213 = vst [vmem:[#allocation87_spill] sm:$0xff] %v4685_v48  ;;  %v4719_v58 = vsel %vm8224_vm2, 1.0, %v8085_v61  ;;  %vm8230_vm2 = vcmp.gt.f32.partialorder %v4193_v9, 0.0 }
  0x85   : > { %8215 = vst [vmem:[#allocation88_spill] sm:$0xff] %v4690_v47  ;;  %v4738_v1 = vsel %vm8230_vm2, 1.0, %v8085_v61  ;;  %vm8238_vm2 = vcmp.gt.f32.partialorder %v4226_v14, 0.0  ;;  %v4776_v14 = vsel %vm8248_vm14, 1.0, %v8085_v61  ;;  %vm8262_vm14 = vcmp.gt.f32.partialorder %v8261_v19, 0.0 }
  0x86   : > { %8217 = vst [vmem:[#allocation89_spill] sm:$0xff] %v4695_v35  ;;  %v4756_v9 = vsel %vm8238_vm2, 1.0, %v8085_v61  ;;  %vm8250_vm2 = vcmp.gt.f32.partialorder %v4265_v16, 0.0  ;;  %v4801_v16 = vsel %vm634_vm1, 1.0, %v8085_v61  ;;  %v4826_v19 = vsel %vm639_vm0, 1.0, %v8085_v61 }
  0x87   : > { %8219 = vst [vmem:[#allocation90_spill] sm:$0xff] %v4700_v25  ;;  %v4781_v12 = vsel %vm8250_vm2, 1.0, %v8085_v61  ;;  %vm8279_vm0 = vcmp.gt.f32.partialorder %v4379_v29, 0.0  ;;  %v4871_v29 = vsel %vm8284_vm3, 1.0, %v8085_v61  ;;  %vm8313_vm3 = vcmp.gt.f32.partialorder %v4556_v60, 0.0 }
  0x88   : > { %8221 = vst [vmem:[#allocation91_spill] sm:$0xff] %v4709_v49  ;;  %v4978_v60 = vsel %vm8318_vm6, 1.0, %v8085_v61 }
  0x89   : > { %8223 = vst [vmem:[#allocation92_spill] sm:$0xff] %v4714_v56 }
  0x8a   : > { %8225 = vst [vmem:[#allocation93_spill] sm:$0xff] %v4719_v58 }
  0x8b   : > { %8227 = vst [vmem:[#allocation94_spill] sm:$0xff] %v4724_v44  ;;  %v8235_v44 = vld [vmem:[#allocation33_spill] sm:$0xff] }
  0x8c   : > { %8229 = vst [vmem:[#allocation95_spill] sm:$0xff] %v4733_v57  ;;  %vm8236_vm8 = vcmp.gt.f32.partialorder %v8235_v44, 0.0  ;;  %v8242_v44 = vld [vmem:[#allocation38_spill] sm:$0xff] }
  0x8d   : > { %8231 = vst [vmem:[#allocation96_spill] sm:$0xff] %v4738_v1  ;;  %v4748_v58 = vsel %vm8236_vm8, 1.0, %v8085_v61  ;;  %vm8243_vm8 = vcmp.gt.f32.partialorder %v8242_v44, 0.0  ;;  %v4786_v44 = vsel %vm8252_vm10, 1.0, %v8085_v61  ;;  %vm8295_vm10 = vcmp.gt.f32.partialorder %v4481_v62, 0.0 }
  0x8e   : > { %8234 = vst [vmem:[#allocation32_spill] sm:$0xff] %v4743_v8  ;;  %v4766_v7 = vsel %vm8243_vm8, 1.0, %v8085_v61  ;;  %v4906_v46 = vsel %vm8295_vm10, 1.0, %v8085_v61  ;;  %vm8327_vm10 = vcmp.gt.f32.partialorder %v4676_v43, 0.0  ;;  %v8335_v43 = vld [vmem:[#allocation28_spill] sm:$0xff] }
  0x8f   : > { %8237 = vst [vmem:[#allocation33_spill] sm:$0xff] %v4748_v58  ;;  %v8245_v58 = vld [vmem:[#allocation39_spill] sm:$0xff] }
  0x90   : > { %8239 = vst [vmem:[#allocation97_spill] sm:$0xff] %v4756_v9  ;;  %vm8246_vm13 = vcmp.gt.f32.partialorder %v8245_v58, 0.0 }
  0x91   : > { %8241 = vst [vmem:[#allocation98_spill] sm:$0xff] %v4761_v10  ;;  %v4771_v8 = vsel %vm8246_vm13, 1.0, %v8085_v61  ;;  %vm8257_vm13 = vcmp.gt.f32.partialorder %v4298_v22, 0.0  ;;  %v4816_v22 = vsel %vm637_vm15, 1.0, %v8085_v61  ;;  %vm8275_vm15 = vcmp.gt.f32.partialorder %v4373_v28, 0.0 }
  0x92   : > { %8244 = vst [vmem:[#allocation38_spill] sm:$0xff] %v4766_v7  ;;  %v8254_v7 = vld [vmem:[#allocation44_spill] sm:$0xff]  ;;  %v4796_v18 = vsel %vm8257_vm13, 1.0, %v8085_v61  ;;  %v4841_v24 = vsel %vm8275_vm15, 1.0, %v8085_v61  ;;  %v4861_v28 = vsel %vm646_vm12, 1.0, %v8085_v61  ;;  %vm8287_vm12 = vcmp.gt.f32.partialorder %v4445_v50, 0.0 }
  0x93   : > { %8247 = vst [vmem:[#allocation39_spill] sm:$0xff] %v4771_v8  ;;  %vm8255_vm8 = vcmp.gt.f32.partialorder %v8254_v7, 0.0  ;;  %v8264_v7 = vld [vmem:[#allocation51_spill] sm:$0xff]  ;;  %v4882_v37 = vsel %vm8287_vm12, 1.0, %v8085_v61  ;;  %v4901_v50 = vsel %vm8293_vm9, 1.0, %v8085_v61  ;;  %vm8299_vm13 = vcmp.gt.f32.partialorder %v4487_v15, 0.0 }
  0x94   : > { %8249 = vst [vmem:[#allocation99_spill] sm:$0xff] %v4776_v14  ;;  %v4791_v58 = vsel %vm8255_vm8, 1.0, %v8085_v61  ;;  %vm8265_vm2 = vcmp.gt.f32.partialorder %v8264_v7, 0.0  ;;  %v4821_v14 = vsel %vm638_vm5, 1.0, %v8085_v61  ;;  %v8271_v7 = vld [vmem:[#allocation57_spill] sm:$0xff]  ;;  %vm8277_vm5 = vcmp.gt.f32.partialorder %v4376_v32, 0.0 }
  0x95   : > { %8251 = vst [vmem:[#allocation100_spill] sm:$0xff] %v4781_v12  ;;  %vm8272_vm1 = vcmp.gt.f32.partialorder %v8271_v7, 0.0  ;;  %v4851_v7 = vsel %vm8279_vm0, 1.0, %v8085_v61  ;;  %v4866_v32 = vsel %vm647_vm7, 1.0, %v8085_v61  ;;  %vm8291_vm7 = vcmp.gt.f32.partialorder %v4451_v11, 0.0 }
  0x96   : > { %8253 = vst [vmem:[#allocation101_spill] sm:$0xff] %v4786_v44  ;;  %v4806_v44 = vsel %vm8262_vm14, 1.0, %v8085_v61  ;;  %vm8297_vm8 = vcmp.gt.f32.partialorder %v4484_v54, 0.0  ;;  %vm8301_vm14 = vcmp.gt.f32.partialorder %v4514_v51, 0.0  ;;  %vm8307_vm15 = vcmp.gt.f32.partialorder %v4523_v20, 0.0  ;;  %v304_v51 = vld [vmem:[%s3803_s6 + $0x80] sm:$0xff] }
  0x97   : > { %8256 = vst [vmem:[#allocation44_spill] sm:$0xff] %v4791_v58  ;;  %v4811_v58 = vsel %vm8265_vm2, 1.0, %v8085_v61  ;;  %v4911_v11 = vsel %vm8297_vm8, 1.0, %v8085_v61  ;;  %v4925_v62 = vsel %vm8301_vm14, 1.0, %v8085_v61  ;;  %vm8303_vm2 = vcmp.gt.f32.partialorder %v4517_v55, 0.0 }
  0x98   : > { %8258 = vst [vmem:[#allocation102_spill] sm:$0xff] %v4796_v18  ;;  %v4930_v54 = vsel %vm8303_vm2, 1.0, %v8085_v61  ;;  %vm8311_vm0 = vcmp.gt.f32.partialorder %v4553_v27, 0.0  ;;  %v4959_v20 = vsel %vm8313_vm3, 1.0, %v8085_v61  ;;  %vm8315_vm12 = vcmp.gt.f32.partialorder %v4583_v13, 0.0 }
  0x99   : > { %8260 = vst [vmem:[#allocation49_spill] sm:$0xff] %v4801_v16  ;;  %v4846_v16 = vsel %vm8277_vm5, 1.0, %v8085_v61  ;;  %vm8309_vm5 = vcmp.gt.f32.partialorder %v4550_v63, 0.0  ;;  %v308_v63 = vld [vmem:[%s3803_s6 + $0xa0] sm:$0xff]  ;;  %v4973_v27 = vsel %vm665_vm11, 1.0, %v8085_v61  ;;  %vm8322_vm9 = vcmp.gt.f32.partialorder %v4643_v6, 0.0 }
  0x9a   : > { %8263 = vst [vmem:[#allocation50_spill] sm:$0xff] %v4806_v44  ;;  %v4949_v55 = vsel %vm8309_vm5, 1.0, %v8085_v61  ;;  %vm8325_vm11 = vcmp.gt.f32.partialorder %v4673_v3, 0.0  ;;  %v5007_v6 = vsel %vm8327_vm10, 1.0, %v8085_v61 }
  0x9b   : > { %8266 = vst [vmem:[#allocation51_spill] sm:$0xff] %v4811_v58  ;;  %v4831_v58 = vsel %vm8272_vm1, 1.0, %v8085_v61  ;;  %vm8305_vm1 = vcmp.gt.f32.partialorder %v4520_v59, 0.0  ;;  %v4954_v59 = vsel %vm8311_vm0, 1.0, %v8085_v61 }
  0x9c   : > { %8267 = vst [vmem:[#allocation103_spill] sm:$0xff] %v4816_v22  ;;  %v4935_v15 = vsel %vm8305_vm1, 1.0, %v8085_v61 }
  0x9d   : > { %8268 = vst [vmem:[#allocation104_spill] sm:$0xff] %v4821_v14 }
  0x9e   : > { %8270 = vst [vmem:[#allocation56_spill] sm:$0xff] %v4826_v19 }
  0x9f   : > { %8273 = vst [vmem:[#allocation57_spill] sm:$0xff] %v4831_v58  ;;  %v8339_v58 = vld [vmem:[#allocation30_spill] sm:$0xff] }
  0xa0   : > { %8274 = vst [vmem:[#allocation105_spill] sm:$0xff] %v4836_v26  ;;  %v322_v26 = vld [vmem:[%s3803_s6 + $0x110] sm:$0xff] }
  0xa1   : > { %8276 = vst [vmem:[#allocation106_spill] sm:$0xff] %v4841_v24  ;;  %v321_v24 = vld [vmem:[%s3803_s6 + $0x108] sm:$0xff] }
  0xa2   : > { %8278 = vst [vmem:[#allocation107_spill] sm:$0xff] %v4846_v16 }
  0xa3   : > { %8280 = vst [vmem:[#allocation108_spill] sm:$0xff] %v4851_v7  ;;  %v8331_v7 = vld [vmem:[#allocation25_spill] sm:$0xff] }
  0xa4   : > { %8281 = vst [vmem:[#allocation109_spill] sm:$0xff] %v4856_v31  ;;  %v316_v31 = vld [vmem:[%s3803_s6 + $0xe0] sm:$0xff] }
  0xa5   : > { %8282 = vst [vmem:[#allocation110_spill] sm:$0xff] %v4861_v28  ;;  %v298_v28 = vld [vmem:[%s3803_s6 + $0x50] sm:$0xff] }
  0xa6   : > { %8283 = vst [vmem:[#allocation111_spill] sm:$0xff] %v4866_v32  ;;  %v295_v32 = vld [vmem:[%s3803_s6 + $0x38] sm:$0xff] }
  0xa7   : > { %8285 = vst [vmem:[#allocation112_spill] sm:$0xff] %v4871_v29  ;;  %v4892_v29 = vsel %vm8291_vm7, 1.0, %v8085_v61  ;;  %vm8320_vm7 = vcmp.gt.f32.partialorder %v4616_v41, 0.0  ;;  %v5002_v41 = vsel %vm8325_vm11, 1.0, %v8085_v61  ;;  %v5017_v3 = vmul.f32 %v8331_v7, %v295_v32  ;;  %v8341_v7 = vld [vmem:[#allocation31_spill] sm:$0xff] }
  0xa8   : > { %8286 = vst [vmem:[#allocation113_spill] sm:$0xff] %v4877_v2  ;;  %v297_v2 = vld [vmem:[%s3803_s6 + $0x48] sm:$0xff]  ;;  %v4983_v13 = vsel %vm8320_vm7, 1.0, %v8085_v61 }
  0xa9   : > { %8288 = vst [vmem:[#allocation114_spill] sm:$0xff] %v4882_v37  ;;  %v302_v37 = vld [vmem:[%s3803_s6 + $0x70] sm:$0xff] }
  0xaa   : > { %8290 = vst [vmem:[#allocation115_spill] sm:$0xff] %v4887_v52  ;;  %v299_v52 = vld [vmem:[%s3803_s6 + $0x58] sm:$0xff] }
  0xab   : > { %8292 = vst [vmem:[#allocation116_spill] sm:$0xff] %v4892_v29  ;;  %v4916_v29 = vsel %vm8299_vm13, 1.0, %v8085_v61  ;;  %v5033_v32 = vmul.f32 %v8339_v58, %v299_v52  ;;  %v8349_v58 = vld [vmem:[#allocation37_spill] sm:$0xff] }
  0xac   : > { %8294 = vst [vmem:[#allocation117_spill] sm:$0xff] %v4901_v50  ;;  %v301_v50 = vld [vmem:[%s3803_s6 + $0x68] sm:$0xff] }
  0xad   : > { %8296 = vst [vmem:[#allocation118_spill] sm:$0xff] %v4906_v46  ;;  %v306_v46 = vld [vmem:[%s3803_s6 + $0x90] sm:$0xff] }
  0xae   : > { %8298 = vst [vmem:[#allocation119_spill] sm:$0xff] %v4911_v11  ;;  %v303_v11 = vld [vmem:[%s3803_s6 + $0x78] sm:$0xff] }
  0xaf   : > { %8300 = vst [vmem:[#allocation120_spill] sm:$0xff] %v4916_v29  ;;  %v4940_v29 = vsel %vm8307_vm15, 1.0, %v8085_v61 }
  0xb0   : > { %8302 = vst [vmem:[#allocation121_spill] sm:$0xff] %v4925_v62  ;;  %v305_v62 = vld [vmem:[%s3803_s6 + $0x88] sm:$0xff] }
  0xb1   : > { %8304 = vst [vmem:[#allocation122_spill] sm:$0xff] %v4930_v54  ;;  %v310_v54 = vld [vmem:[%s3803_s6 + $0xb0] sm:$0xff] }
  0xb2   : > { %8306 = vst [vmem:[#allocation123_spill] sm:$0xff] %v4935_v15  ;;  %v307_v15 = vld [vmem:[%s3803_s6 + $0x98] sm:$0xff] }
  0xb3   : > { %8308 = vst [vmem:[#allocation124_spill] sm:$0xff] %v4940_v29  ;;  %v4964_v29 = vsel %vm8315_vm12, 1.0, %v8085_v61 }
  0xb4   : > { %8310 = vst [vmem:[#allocation125_spill] sm:$0xff] %v4949_v55  ;;  %v309_v55 = vld [vmem:[%s3803_s6 + $0xa8] sm:$0xff] }
  0xb5   : > { %8312 = vst [vmem:[#allocation126_spill] sm:$0xff] %v4954_v59  ;;  %v314_v59 = vld [vmem:[%s3803_s6 + $0xd0] sm:$0xff] }
  0xb6   : > { %8314 = vst [vmem:[#allocation127_spill] sm:$0xff] %v4959_v20  ;;  %v311_v20 = vld [vmem:[%s3803_s6 + $0xb8] sm:$0xff] }
  0xb7   : > { %8316 = vst [vmem:[#allocation128_spill] sm:$0xff] %v4964_v29  ;;  %v4988_v29 = vsel %vm8322_vm9, 1.0, %v8085_v61  ;;  %v5023_v61 = vmul.f32 %v8335_v43, %v297_v2  ;;  %v8345_v43 = vld [vmem:[#allocation35_spill] sm:$0xff] }
  0xb8   : > { %8317 = vst [vmem:[#allocation129_spill] sm:$0xff] %v4973_v27  ;;  %v313_v27 = vld [vmem:[%s3803_s6 + $0xc8] sm:$0xff] }
  0xb9   : > { %8319 = vst [vmem:[#allocation130_spill] sm:$0xff] %v4978_v60  ;;  %v315_v60 = vld [vmem:[%s3803_s6 + $0xd8] sm:$0xff] }
  0xba   : > { %8321 = vst [vmem:[#allocation131_spill] sm:$0xff] %v4983_v13 }
  0xbb   : > { %8323 = vst [vmem:[#allocation132_spill] sm:$0xff] %v4988_v29  ;;  %v8329_v29 = vld [vmem:[#allocation24_spill] sm:$0xff] }
  0xbc   : > { %8324 = vst [vmem:[#allocation133_spill] sm:$0xff] %v4997_v21  ;;  %v5010_v13 = vmul.f32 %v8329_v29, %v294_v36  ;;  %v318_v21 = vld [vmem:[%s3803_s6 + $0xf0] sm:$0xff]  ;;  %v319_v29 = vld [vmem:[%s3803_s6 + $0xf8] sm:$0xff] }
  0xbd   : > { %8326 = vst [vmem:[#allocation134_spill] sm:$0xff] %v5002_v41  ;;  %v8333_v41 = vld [vmem:[#allocation26_spill] sm:$0xff] }
  0xbe   : > { %8328 = vst [vmem:[#allocation135_spill] sm:$0xff] %v5007_v6  ;;  %v5020_v16 = vmul.f32 %v8333_v41, %v296_v45  ;;  %v8337_v6 = vld [vmem:[#allocation29_spill] sm:$0xff]  ;;  %v5036_v45 = vmul.f32 %v8341_v7, %v300_v53  ;;  %v8343_v41 = vld [vmem:[#allocation34_spill] sm:$0xff]  ;;  %v5052_v53 = vmul.f32 %v8349_v58, %v304_v51  ;;  %v8351_v7 = vld [vmem:[#allocation40_spill] sm:$0xff] }
  0xbf   : > { %8330 = vst [vmem:[#allocation136_spill] sm:$0xff] %v5010_v13  ;;  %v5026_v36 = vmul.f32 %v8337_v6, %v298_v28  ;;  %v320_v13 = vld [vmem:[%s3803_s6 + $0x100] sm:$0xff]  ;;  %v5039_v2 = vmul.f32 %v8343_v41, %v301_v50  ;;  %v5042_v28 = vmul.f32 %v8345_v43, %v302_v37  ;;  %v323_v6 = vld [vmem:[%s3803_s6 + $0x118] sm:$0xff]  ;;  %v5055_v50 = vmul.f32 %v8351_v7, %v305_v62 }
  0xc0   : > { %8332 = vst [vmem:[#allocation137_spill] sm:$0xff] %v5017_v3  ;;  %v8347_v3 = vld [vmem:[#allocation36_spill] sm:$0xff]  ;;  %v8353_v41 = vld [vmem:[#allocation41_spill] sm:$0xff]  ;;  %v8361_v7 = vld [vmem:[#allocation46_spill] sm:$0xff] }
  0xc1   : > { %8334 = vst [vmem:[#allocation138_spill] sm:$0xff] %v5020_v16  ;;  %v326_v16 = vld [vmem:[%s3803_s6 + $0x130] sm:$0xff]  ;;  %v5049_v52 = vmul.f32 %v8347_v3, %v303_v11  ;;  %v5058_v37 = vmul.f32 %v8353_v41, %v306_v46  ;;  %v327_v43 = vld [vmem:[%s3803_s6 + $0x138] sm:$0xff]  ;;  %v8357_v3 = vld [vmem:[#allocation43_spill] sm:$0xff]  ;;  %v5074_v46 = vmul.f32 %v8361_v7, %v310_v54 }
  0xc2   : > { %8336 = vst [vmem:[#allocation139_spill] sm:$0xff] %v5023_v61  ;;  %v325_v61 = vld [vmem:[%s3803_s6 + $0x128] sm:$0xff]  ;;  %v5068_v51 = vmul.f32 %v8357_v3, %v308_v63  ;;  %v8359_v58 = vld [vmem:[#allocation45_spill] sm:$0xff]  ;;  %v8367_v3 = vld [vmem:[#allocation52_spill] sm:$0xff] }
  0xc3   : > { %8338 = vst [vmem:[#allocation140_spill] sm:$0xff] %v5026_v36  ;;  %v324_v36 = vld [vmem:[%s3803_s6 + $0x120] sm:$0xff]  ;;  %v5071_v62 = vmul.f32 %v8359_v58, %v309_v55  ;;  %v331_v41 = vld [vmem:[%s3803_s6 + $0x158] sm:$0xff]  ;;  %v5087_v55 = vmul.f32 %v8367_v3, %v313_v27  ;;  %v8377_v3 = vld [vmem:[#allocation59_spill] sm:$0xff] }
  0xc4   : > { %8340 = vst [vmem:[#allocation141_spill] sm:$0xff] %v5033_v32  ;;  %v8355_v32 = vld [vmem:[#allocation42_spill] sm:$0xff]  ;;  %v8369_v58 = vld [vmem:[#allocation53_spill] sm:$0xff] }
  0xc5   : > { %8342 = vst [vmem:[#allocation142_spill] sm:$0xff] %v5036_v45  ;;  %v330_v45 = vld [vmem:[%s3803_s6 + $0x150] sm:$0xff]  ;;  %v5065_v11 = vmul.f32 %v8355_v32, %v307_v15  ;;  %v5090_v54 = vmul.f32 %v8369_v58, %v314_v59  ;;  %v335_v7 = vld [vmem:[%s3803_s6 + $0x178] sm:$0xff]  ;;  %v5106_v59 = vmul.f32 %v8377_v3, %v318_v21 }
  0xc6   : > { %8344 = vst [vmem:[#allocation143_spill] sm:$0xff] %v5039_v2  ;;  %v329_v2 = vld [vmem:[%s3803_s6 + $0x148] sm:$0xff]  ;;  %v8365_v32 = vld [vmem:[#allocation48_spill] sm:$0xff]  ;;  %v339_v58 = vld [vmem:[%s3803_s6 + $0x198] sm:$0xff] }
  0xc7   : > { %8346 = vst [vmem:[#allocation144_spill] sm:$0xff] %v5042_v28  ;;  %v328_v28 = vld [vmem:[%s3803_s6 + $0x140] sm:$0xff]  ;;  %v5084_v63 = vmul.f32 %v8365_v32, %v312_v4  ;;  %v343_v3 = vld [vmem:[%s3803_s6 + $0x1b8] sm:$0xff] }
  0xc8   : > { %8348 = vst [vmem:[#allocation145_spill] sm:$0xff] %v5049_v52  ;;  %v8363_v52 = vld [vmem:[#allocation47_spill] sm:$0xff]  ;;  %v8375_v32 = vld [vmem:[#allocation58_spill] sm:$0xff] }
  0xc9   : > { %8350 = vst [vmem:[#allocation146_spill] sm:$0xff] %v5052_v53  ;;  %v334_v53 = vld [vmem:[%s3803_s6 + $0x170] sm:$0xff]  ;;  %v5081_v15 = vmul.f32 %v8363_v52, %v311_v20  ;;  %v8373_v52 = vld [vmem:[#allocation55_spill] sm:$0xff]  ;;  %v5103_v27 = vmul.f32 %v8375_v32, %v317_v42  ;;  %v8385_v32 = vld [vmem:[#allocation61_spill] sm:$0xff] }
  0xca   : > { %8352 = vst [vmem:[#allocation147_spill] sm:$0xff] %v5055_v50  ;;  %v333_v50 = vld [vmem:[%s3803_s6 + $0x168] sm:$0xff]  ;;  %v5100_v4 = vmul.f32 %v8373_v52, %v316_v31  ;;  %v8383_v52 = vld [vmem:[#allocation60_spill] sm:$0xff]  ;;  %v5122_v21 = vmul.f32 %v8385_v32, %v322_v26  ;;  %v347_v32 = vld [vmem:[%s3803_s6 + $0x1d8] sm:$0xff] }
  0xcb   : > { %8354 = vst [vmem:[#allocation148_spill] sm:$0xff] %v5058_v37  ;;  %v332_v37 = vld [vmem:[%s3803_s6 + $0x160] sm:$0xff]  ;;  %v5119_v42 = vmul.f32 %v8383_v52, %v321_v24  ;;  %v8393_v52 = vld [vmem:[#allocation63_spill] sm:$0xff] }
  0xcc   : > { %8356 = vst [vmem:[#allocation149_spill] sm:$0xff] %v5065_v11  ;;  %v8371_v11 = vld [vmem:[#allocation54_spill] sm:$0xff]  ;;  %v5138_v26 = vmul.f32 %v8393_v52, %v326_v16  ;;  %v351_v52 = vld [vmem:[%s3803_s6 + $0x1f8] sm:$0xff] }
  0xcd   : > { %8358 = vst [vmem:[#allocation150_spill] sm:$0xff] %v5068_v51  ;;  %v338_v51 = vld [vmem:[%s3803_s6 + $0x190] sm:$0xff]  ;;  %v5097_v20 = vmul.f32 %v8371_v11, %v315_v60  ;;  %v8381_v11 = vld [vmem:[#allocation3_spill] sm:$0xff] }
  0xce   : > { %8360 = vst [vmem:[#allocation151_spill] sm:$0xff] %v5071_v62  ;;  %v337_v62 = vld [vmem:[%s3803_s6 + $0x188] sm:$0xff]  ;;  %v5116_v31 = vmul.f32 %v8381_v11, %v320_v13  ;;  %v8391_v11 = vld [vmem:[#allocation62_spill] sm:$0xff] }
  0xcf   : > { %8362 = vst [vmem:[#allocation152_spill] sm:$0xff] %v5074_v46  ;;  %v336_v46 = vld [vmem:[%s3803_s6 + $0x180] sm:$0xff]  ;;  %v5135_v24 = vmul.f32 %v8391_v11, %v325_v61  ;;  %v8401_v11 = vld [vmem:[#allocation65_spill] sm:$0xff] }
  0xd0   : > { %8364 = vst [vmem:[#allocation153_spill] sm:$0xff] %v5081_v15  ;;  %v8379_v15 = vld [vmem:[#allocation2_spill] sm:$0xff]  ;;  %v5154_v16 = vmul.f32 %v8401_v11, %v330_v45  ;;  %v355_v11 = vld [vmem:[%s3803_s6 + $0x218] sm:$0xff] }
  0xd1   : > { %8366 = vst [vmem:[#allocation154_spill] sm:$0xff] %v5084_v63  ;;  %v342_v63 = vld [vmem:[%s3803_s6 + $0x1b0] sm:$0xff]  ;;  %v5113_v60 = vmul.f32 %v8379_v15, %v319_v29  ;;  %v8389_v15 = vld [vmem:[#allocation5_spill] sm:$0xff] }
  0xd2   : > { %8368 = vst [vmem:[#allocation155_spill] sm:$0xff] %v5087_v55  ;;  %v341_v55 = vld [vmem:[%s3803_s6 + $0x1a8] sm:$0xff]  ;;  %v5132_v13 = vmul.f32 %v8389_v15, %v324_v36  ;;  %v8399_v15 = vld [vmem:[#allocation64_spill] sm:$0xff] }
  0xd3   : > { %8370 = vst [vmem:[#allocation156_spill] sm:$0xff] %v5090_v54  ;;  %v340_v54 = vld [vmem:[%s3803_s6 + $0x1a0] sm:$0xff]  ;;  %v5151_v61 = vmul.f32 %v8399_v15, %v329_v2  ;;  %v8408_v15 = vld [vmem:[#allocation67_spill] sm:$0xff] }
  0xd4   : > { %8372 = vst [vmem:[#allocation157_spill] sm:$0xff] %v5097_v20  ;;  %v8387_v20 = vld [vmem:[#allocation4_spill] sm:$0xff]  ;;  %v5170_v45 = vmul.f32 %v8408_v15, %v334_v53  ;;  %v5186_v53 = vmul.f32 %v4537_v23, %v338_v51  ;;  %v359_v15 = vld [vmem:[%s3803_s6 + $0x238] sm:$0xff]  ;;  %v5202_v51 = vmul.f32 %v4570_v17, %v342_v63  ;;  %v368_v17 = vld [vmem:[%s3803_s6 + $0x280] sm:$0xff] }
  0xd5   : > { %8374 = vst [vmem:[#allocation158_spill] sm:$0xff] %v5100_v4  ;;  %v346_v4 = vld [vmem:[%s3803_s6 + $0x1d0] sm:$0xff]  ;;  %v5129_v29 = vmul.f32 %v8387_v20, %v323_v6  ;;  %v8397_v20 = vld [vmem:[#allocation10_spill] sm:$0xff]  ;;  %v363_v23 = vld [vmem:[%s3803_s6 + $0x258] sm:$0xff] }
  0xd6   : > { %8376 = vst [vmem:[#allocation159_spill] sm:$0xff] %v5103_v27  ;;  %v345_v27 = vld [vmem:[%s3803_s6 + $0x1c8] sm:$0xff]  ;;  %v5148_v36 = vmul.f32 %v8397_v20, %v328_v28  ;;  %v367_v63 = vld [vmem:[%s3803_s6 + $0x278] sm:$0xff] }
  0xd7   : > { %8378 = vst [vmem:[#allocation160_spill] sm:$0xff] %v5106_v59  ;;  %v344_v59 = vld [vmem:[%s3803_s6 + $0x1c0] sm:$0xff]  ;;  %v8406_v20 = vld [vmem:[#allocation15_spill] sm:$0xff] }
  0xd8   : > { %8380 = vst [vmem:[#allocation161_spill] sm:$0xff] %v5113_v60  ;;  %v8395_v60 = vld [vmem:[#allocation9_spill] sm:$0xff]  ;;  %v5167_v2 = vmul.f32 %v8406_v20, %v333_v50  ;;  %v360_v20 = vld [vmem:[%s3803_s6 + $0x240] sm:$0xff] }
  0xd9   : > { %8382 = vst [vmem:[#allocation162_spill] sm:$0xff] %v5116_v31  ;;  %v350_v31 = vld [vmem:[%s3803_s6 + $0x1f0] sm:$0xff]  ;;  %v5145_v6 = vmul.f32 %v8395_v60, %v327_v43  ;;  %v8404_v60 = vld [vmem:[#allocation14_spill] sm:$0xff] }
  0xda   : > { %8384 = vst [vmem:[#allocation163_spill] sm:$0xff] %v5119_v42  ;;  %v349_v42 = vld [vmem:[%s3803_s6 + $0x1e8] sm:$0xff]  ;;  %v5164_v28 = vmul.f32 %v8404_v60, %v332_v37  ;;  %v8413_v60 = vld [vmem:[#allocation69_spill] sm:$0xff] }
  0xdb   : > { %8386 = vst [vmem:[#allocation164_spill] sm:$0xff] %v5122_v21  ;;  %v348_v21 = vld [vmem:[%s3803_s6 + $0x1e0] sm:$0xff]  ;;  %v5183_v50 = vmul.f32 %v8413_v60, %v337_v62  ;;  %v5199_v62 = vmul.f32 %v4565_v0, %v341_v55  ;;  %v5218_v55 = vmul.f32 %v4600_v5, %v346_v4  ;;  %v369_v0 = vld [vmem:[%s3803_s6 + $0x288] sm:$0xff]  ;;  %v5234_v4 = vmul.f32 %v4630_v34, %v350_v31  ;;  %v374_v31 = vld [vmem:[%s3803_s6 + $0x2b0] sm:$0xff] }
  0xdc   : > { %8388 = vst [vmem:[#allocation165_spill] sm:$0xff] %v5129_v29  ;;  %v8403_v29 = vld [vmem:[#allocation66_spill] sm:$0xff]  ;;  %v375_v34 = vld [vmem:[%s3803_s6 + $0x2b8] sm:$0xff] }
  0xdd   : > { %8390 = vst [vmem:[#allocation166_spill] sm:$0xff] %v5132_v13  ;;  %v354_v13 = vld [vmem:[%s3803_s6 + $0x210] sm:$0xff]  ;;  %v5161_v43 = vmul.f32 %v8403_v29, %v331_v41  ;;  %v364_v60 = vld [vmem:[%s3803_s6 + $0x260] sm:$0xff] }
  0xde   : > { %8392 = vst [vmem:[#allocation167_spill] sm:$0xff] %v5135_v24  ;;  %v353_v24 = vld [vmem:[%s3803_s6 + $0x208] sm:$0xff]  ;;  %v8411_v29 = vld [vmem:[#allocation16_spill] sm:$0xff]  ;;  %v372_v5 = vld [vmem:[%s3803_s6 + $0x2a0] sm:$0xff] }
  0xdf   : > { %8394 = vst [vmem:[#allocation168_spill] sm:$0xff] %v5138_v26  ;;  %v352_v26 = vld [vmem:[%s3803_s6 + $0x200] sm:$0xff]  ;;  %v5180_v37 = vmul.f32 %v8411_v29, %v336_v46  ;;  %v365_v29 = vld [vmem:[%s3803_s6 + $0x268] sm:$0xff] }
  0xe0   : > { %8396 = vst [vmem:[#allocation169_spill] sm:$0xff] %v5145_v6  ;;  %v8410_v6 = vld [vmem:[#allocation68_spill] sm:$0xff] }
  0xe1   : > { %8398 = vst [vmem:[#allocation170_spill] sm:$0xff] %v5148_v36  ;;  %v358_v36 = vld [vmem:[%s3803_s6 + $0x230] sm:$0xff]  ;;  %v5177_v41 = vmul.f32 %v8410_v6, %v335_v7  ;;  %v8417_v6 = vld [vmem:[#allocation18_spill] sm:$0xff] }
  0xe2   : > { %8400 = vst [vmem:[#allocation171_spill] sm:$0xff] %v5151_v61  ;;  %v357_v61 = vld [vmem:[%s3803_s6 + $0x228] sm:$0xff]  ;;  %v5196_v46 = vmul.f32 %v8417_v6, %v340_v54  ;;  %v5215_v54 = vmul.f32 %v4595_v40, %v345_v27  ;;  %v370_v6 = vld [vmem:[%s3803_s6 + $0x290] sm:$0xff]  ;;  %v371_v27 = vld [vmem:[%s3803_s6 + $0x298] sm:$0xff] }
  0xe3   : > { %8402 = vst [vmem:[#allocation172_spill] sm:$0xff] %v5154_v16  ;;  %v356_v16 = vld [vmem:[%s3803_s6 + $0x220] sm:$0xff]  ;;  %v373_v40 = vld [vmem:[%s3803_s6 + $0x2a8] sm:$0xff] }
  0xe4   : > { %8405 = vst [vmem:[#allocation173_spill] sm:$0xff] %v5164_v28  ;;  %v8416_v28 = vld [vmem:[#allocation17_spill] sm:$0xff] }
  0xe5   : > { %8407 = vst [vmem:[#allocation174_spill] sm:$0xff] %v5167_v2  ;;  %v362_v2 = vld [vmem:[%s3803_s6 + $0x250] sm:$0xff]  ;;  %v5193_v7 = vmul.f32 %v8416_v28, %v339_v58  ;;  %v8421_v58 = vld [vmem:[#allocation74_spill] sm:$0xff] }
  0xe6   : > { %8409 = vst [vmem:[#allocation175_spill] sm:$0xff] %v5170_v45  ;;  %v361_v45 = vld [vmem:[%s3803_s6 + $0x248] sm:$0xff]  ;;  %v5212_v28 = vmul.f32 %v8421_v58, %v344_v59  ;;  %v5231_v59 = vmul.f32 %v4625_v33, %v349_v42  ;;  %v8425_v58 = vld [vmem:[#allocation81_spill] sm:$0xff]  ;;  %v5249_v42 = vmul.f32 %v4660_v38, %v354_v13  ;;  %v376_v33 = vld [vmem:[%s3803_s6 + $0x2c0] sm:$0xff] }
  0xe7   : > { %8412 = vst [vmem:[#allocation176_spill] sm:$0xff] %v5180_v37  ;;  %v377_v13 = vld [vmem:[%s3803_s6 + $0x2c8] sm:$0xff]  ;;  %v378_v38 = vld [vmem:[%s3803_s6 + $0x2d0] sm:$0xff] }
  0xe8   : > { %8414 = vst [vmem:[#allocation177_spill] sm:$0xff] %v5183_v50  ;;  %v8420_v50 = vld [vmem:[#allocation73_spill] sm:$0xff] }
  0xe9   : > { %8415 = vst [vmem:[#allocation178_spill] sm:$0xff] %v5186_v53  ;;  %v366_v53 = vld [vmem:[%s3803_s6 + $0x270] sm:$0xff]  ;;  %v5209_v37 = vmul.f32 %v8420_v50, %v343_v3  ;;  %v8424_v3 = vld [vmem:[#allocation78_spill] sm:$0xff] }
  0xea   : > { %8418 = vst [vmem:[#allocation179_spill] sm:$0xff] %v5199_v62  ;;  %v5228_v50 = vmul.f32 %v8424_v3, %v348_v21  ;;  %v5246_v21 = vmul.f32 %v4655_v39, %v353_v24  ;;  %v5255_v3 = vmul.f32 %v4665_v30, %v355_v11  ;;  %v5264_v24 = vmul.f32 %v4690_v47, %v358_v36  ;;  %v379_v39 = vld [vmem:[%s3803_s6 + $0x2d8] sm:$0xff]  ;;  %v380_v36 = vld [vmem:[%s3803_s6 + $0x2e0] sm:$0xff]  ;;  %v381_v47 = vld [vmem:[%s3803_s6 + $0x2e8] sm:$0xff] }
  0xeb   : > { %8419 = vst [vmem:[#allocation180_spill] sm:$0xff] %v5202_v51  ;;  %v8423_v51 = vld [vmem:[#allocation77_spill] sm:$0xff]  ;;  %v5273_v11 = vmul.f32 %v4700_v25, %v360_v20  ;;  %v5291_v20 = vmul.f32 %v4733_v57, %v365_v29  ;;  %v8432_v25 = vld [vmem:[#allocation32_spill] sm:$0xff]  ;;  %v5309_v29 = vmul.f32 %v4761_v10, %v370_v6  ;;  %v388_v57 = vld [vmem:[%s3803_s6 + $0x320] sm:$0xff] }
  0xec   : > { %8422 = vst [vmem:[#allocation181_spill] sm:$0xff] %v5218_v55  ;;  %v5225_v62 = vmul.f32 %v8423_v51, %v347_v32  ;;  %v5240_v55 = vmul.f32 %v8425_v58, %v351_v52  ;;  %v8426_v32 = vld [vmem:[#allocation82_spill] sm:$0xff]  ;;  %v389_v6 = vld [vmem:[%s3803_s6 + $0x328] sm:$0xff]  ;;  %v390_v10 = vld [vmem:[%s3803_s6 + $0x330] sm:$0xff] }
  0xed   : > { %v5243_v51 = vmul.f32 %v8426_v32, %v352_v26  ;;  %v8427_v52 = vld [vmem:[#allocation86_spill] sm:$0xff]  ;;  %v5261_v26 = vmul.f32 %v4685_v48, %v357_v61  ;;  %v5270_v32 = vmul.f32 %v4695_v35, %v359_v15  ;;  %v5279_v61 = vmul.f32 %v4714_v56, %v362_v2  ;;  %v382_v48 = vld [vmem:[%s3803_s6 + $0x2f0] sm:$0xff]  ;;  %v383_v2 = vld [vmem:[%s3803_s6 + $0x2f8] sm:$0xff]  ;;  %8434 = vst [vmem:[#allocation184_spill] sm:$0xff] %v5309_v29 }
  0xee   : > { %v5258_v58 = vmul.f32 %v8427_v52, %v356_v16  ;;  %v5276_v16 = vmul.f32 %v4709_v49, %v361_v45  ;;  %v8429_v52 = vld [vmem:[#allocation93_spill] sm:$0xff]  ;;  %v8430_v15 = vld [vmem:[#allocation94_spill] sm:$0xff]  ;;  %v5294_v45 = vmul.f32 %v4738_v1, %v366_v53  ;;  %v385_v49 = vld [vmem:[%s3803_s6 + $0x308] sm:$0xff] }
  0xef   : > { %8428 = vst [vmem:[#allocation182_spill] sm:$0xff] %v5279_v61  ;;  %v5285_v30 = vmul.f32 %v8429_v52, %v363_v23  ;;  %v5288_v35 = vmul.f32 %v8430_v15, %v364_v60  ;;  %v384_v56 = vld [vmem:[%s3803_s6 + $0x300] sm:$0xff]  ;;  %v5300_v61 = vmul.f32 %v8432_v25, %v367_v63  ;;  %v8433_v23 = vld [vmem:[#allocation33_spill] sm:$0xff]  ;;  %v5306_v60 = vmul.f32 %v4756_v9, %v369_v0  ;;  %v386_v53 = vld [vmem:[%s3803_s6 + $0x310] sm:$0xff] }
  0xf0   : > { %8431 = vst [vmem:[#allocation183_spill] sm:$0xff] %v5294_v45  ;;  %v5303_v52 = vmul.f32 %v8433_v23, %v368_v17  ;;  %v387_v1 = vld [vmem:[%s3803_s6 + $0x318] sm:$0xff]  ;;  %v8435_v15 = vld [vmem:[#allocation38_spill] sm:$0xff]  ;;  %v5318_v63 = vmul.f32 %v4771_v8, %v372_v5  ;;  %v8436_v17 = vld [vmem:[#allocation99_spill] sm:$0xff]  ;;  %v5324_v0 = vmul.f32 %v4781_v12, %v374_v31  ;;  %v5336_v5 = vmul.f32 %v4796_v18, %v377_v13 }
  0xf1   : > { %v5315_v45 = vmul.f32 %v8435_v15, %v371_v27  ;;  %v5321_v23 = vmul.f32 %v8436_v17, %v373_v40  ;;  %v391_v9 = vld [vmem:[%s3803_s6 + $0x338] sm:$0xff]  ;;  %v8439_v27 = vld [vmem:[#allocation44_spill] sm:$0xff]  ;;  %v392_v31 = vld [vmem:[%s3803_s6 + $0x340] sm:$0xff]  ;;  %v5354_v13 = vmul.f32 %v4821_v14, %v382_v48 }
  0xf2   : > { %8437 = vst [vmem:[#allocation185_spill] sm:$0xff] %v5324_v0  ;;  %v8438_v25 = vld [vmem:[#allocation101_spill] sm:$0xff]  ;;  %v5333_v15 = vmul.f32 %v8439_v27, %v376_v33  ;;  %v393_v12 = vld [vmem:[%s3803_s6 + $0x348] sm:$0xff]  ;;  %v394_v8 = vld [vmem:[%s3803_s6 + $0x350] sm:$0xff]  ;;  %v5345_v0 = vmul.f32 %v4806_v44, %v379_v39  ;;  %v5351_v33 = vmul.f32 %v4816_v22, %v381_v47  ;;  %v5360_v27 = vmul.f32 %v4826_v19, %v383_v2 }
  0xf3   : > { %v5330_v29 = vmul.f32 %v8438_v25, %v375_v34  ;;  %8441 = vst [vmem:[#allocation187_spill] sm:$0xff] %v5336_v5  ;;  %v8442_v40 = vld [vmem:[#allocation49_spill] sm:$0xff]  ;;  %v8445_v34 = vld [vmem:[#allocation51_spill] sm:$0xff]  ;;  %v8454_v47 = vld [vmem:[#allocation106_spill] sm:$0xff] }
  0xf4   : > { %8440 = vst [vmem:[#allocation186_spill] sm:$0xff] %v5333_v15  ;;  %v5339_v17 = vmul.f32 %v8442_v40, %v378_v38  ;;  %v5348_v25 = vmul.f32 %v8445_v34, %v380_v36  ;;  %v395_v38 = vld [vmem:[%s3803_s6 + $0x358] sm:$0xff]  ;;  %v396_v40 = vld [vmem:[%s3803_s6 + $0x360] sm:$0xff]  ;;  %v397_v18 = vld [vmem:[%s3803_s6 + $0x368] sm:$0xff]  ;;  %v5369_v22 = vmul.f32 %v8454_v47, %v386_v53 }
  0xf5   : > { %8444 = vst [vmem:[#allocation189_spill] sm:$0xff] %v5345_v0  ;;  %v8450_v39 = vld [vmem:[#allocation57_spill] sm:$0xff]  ;;  %v398_v48 = vld [vmem:[%s3803_s6 + $0x370] sm:$0xff]  ;;  %v401_v53 = vld [vmem:[%s3803_s6 + $0x388] sm:$0xff] }
  0xf6   : > { %8443 = vst [vmem:[#allocation188_spill] sm:$0xff] %v5339_v17  ;;  %v5363_v44 = vmul.f32 %v8450_v39, %v384_v56  ;;  %v8452_v36 = vld [vmem:[#allocation105_spill] sm:$0xff]  ;;  %v8458_v2 = vld [vmem:[#allocation108_spill] sm:$0xff]  ;;  %v8566_v17 = vld [vmem:[#allocation163_spill] sm:$0xff] }
  0xf7   : > { %8446 = vst [vmem:[#allocation190_spill] sm:$0xff] %v5348_v25  ;;  %v5366_v34 = vmul.f32 %v8452_v36, %v385_v49  ;;  %v399_v14 = vld [vmem:[%s3803_s6 + $0x378] sm:$0xff]  ;;  %v5378_v19 = vmul.f32 %v8458_v2, %v388_v57  ;;  %v8462_v49 = vld [vmem:[#allocation110_spill] sm:$0xff]  ;;  %v402_v47 = vld [vmem:[%s3803_s6 + $0x390] sm:$0xff] }
  0xf8   : > { %8447 = vst [vmem:[#allocation191_spill] sm:$0xff] %v5351_v33  ;;  %v8456_v33 = vld [vmem:[#allocation107_spill] sm:$0xff]  ;;  %v8460_v56 = vld [vmem:[#allocation109_spill] sm:$0xff]  ;;  %v5384_v36 = vmul.f32 %v8462_v49, %v390_v10  ;;  %v404_v10 = vld [vmem:[%s3803_s6 + $0x3a0] sm:$0xff] }
  0xf9   : > { %8448 = vst [vmem:[#allocation192_spill] sm:$0xff] %v5354_v13  ;;  %v400_v13 = vld [vmem:[%s3803_s6 + $0x380] sm:$0xff]  ;;  %v5375_v25 = vmul.f32 %v8456_v33, %v387_v1  ;;  %v5381_v39 = vmul.f32 %v8460_v56, %v389_v6  ;;  %v8468_v33 = vld [vmem:[#allocation113_spill] sm:$0xff]  ;;  %v405_v49 = vld [vmem:[%s3803_s6 + $0x3a8] sm:$0xff] }
  0xfa   : > { %8449 = vst [vmem:[#allocation193_spill] sm:$0xff] %v5360_v27  ;;  %v8466_v27 = vld [vmem:[#allocation112_spill] sm:$0xff]  ;;  %v5396_v57 = vmul.f32 %v8468_v33, %v393_v12  ;;  %v8470_v6 = vld [vmem:[#allocation114_spill] sm:$0xff]  ;;  %v8478_v12 = vld [vmem:[#allocation19_spill] sm:$0xff] }
  0xfb   : > { %8451 = vst [vmem:[#allocation194_spill] sm:$0xff] %v5363_v44  ;;  %v5393_v1 = vmul.f32 %v8466_v27, %v392_v31  ;;  %v5399_v56 = vmul.f32 %v8470_v6, %v394_v8  ;;  %v406_v2 = vld [vmem:[%s3803_s6 + $0x3b0] sm:$0xff]  ;;  %v8476_v31 = vld [vmem:[#allocation117_spill] sm:$0xff]  ;;  %v1056_v33 = vadd.f32 1e-06, %v8478_v12  ;;  %v8479_v8 = vld [vmem:[#allocation118_spill] sm:$0xff] }
  0xfc   : > { %8453 = vst [vmem:[#allocation195_spill] sm:$0xff] %v5366_v34  ;;  %v8464_v34 = vld [vmem:[#allocation111_spill] sm:$0xff]  ;;  %v5411_v27 = vmul.f32 %v8476_v31, %v397_v18  ;;  %v5417_v6 = vmul.f32 %v8479_v8, %v398_v48  ;;  %v410_v18 = vld [vmem:[%s3803_s6 + $0x3d0] sm:$0xff]  ;;  %v8486_v31 = vld [vmem:[#allocation121_spill] sm:$0xff] }
  0xfd   : > { %8455 = vst [vmem:[#allocation196_spill] sm:$0xff] %v5369_v22  ;;  %v403_v22 = vld [vmem:[%s3803_s6 + $0x398] sm:$0xff]  ;;  %v5390_v44 = vmul.f32 %v8464_v34, %v391_v9  ;;  %v8488_v12 = vld [vmem:[#allocation122_spill] sm:$0xff]  ;;  %v8490_v48 = vld [vmem:[#allocation123_spill] sm:$0xff]  ;;  %3055 = vlog2.f32 %v1056_v33 }
  0xfe   : > { %8457 = vst [vmem:[#allocation197_spill] sm:$0xff] %v5375_v25  ;;  %v407_v34 = vld [vmem:[%s3803_s6 + $0x3b8] sm:$0xff]  ;;  %v5435_v8 = vmul.f32 %v8490_v48, %v403_v22  ;;  %v8502_v48 = vld [vmem:[#allocation128_spill] sm:$0xff] }
  0xff   : > { %8459 = vst [vmem:[#allocation198_spill] sm:$0xff] %v5378_v19  ;;  %v8474_v19 = vld [vmem:[#allocation116_spill] sm:$0xff] }
 0x100   : > { %8461 = vst [vmem:[#allocation199_spill] sm:$0xff] %v5381_v39  ;;  %v5408_v9 = vmul.f32 %v8474_v19, %v396_v40  ;;  %v8485_v40 = vld [vmem:[#allocation20_spill] sm:$0xff] }
 0x101   : > { %8463 = vst [vmem:[#allocation200_spill] sm:$0xff] %v5384_v36  ;;  %v8472_v36 = vld [vmem:[#allocation115_spill] sm:$0xff]  ;;  %v1057_v19 = vadd.f32 1e-06, %v8485_v40  ;;  %v8495_v40 = vld [vmem:[#allocation125_spill] sm:$0xff] }
 0x102   : > { %8465 = vst [vmem:[#allocation201_spill] sm:$0xff] %v5390_v44  ;;  %v5405_v39 = vmul.f32 %v8472_v36, %v395_v38  ;;  %v8483_v38 = vld [vmem:[#allocation120_spill] sm:$0xff]  ;;  %v8497_v44 = vld [vmem:[#allocation126_spill] sm:$0xff] }
 0x103   : > { %8467 = vst [vmem:[#allocation202_spill] sm:$0xff] %v5393_v1  ;;  %v5423_v36 = vmul.f32 %v8483_v38, %v400_v13  ;;  %v8493_v13 = vld [vmem:[#allocation124_spill] sm:$0xff]  ;;  %3057 = vlog2.f32 %v1057_v19  ;;  %v8520_v19 = vld [vmem:[#allocation135_spill] sm:$0xff] }
 0x104   : > { %8469 = vst [vmem:[#allocation203_spill] sm:$0xff] %v5396_v57  ;;  %v408_v57 = vld [vmem:[%s3803_s6 + $0x3c0] sm:$0xff]  ;;  %v5441_v38 = vmul.f32 %v8493_v13, %v404_v10  ;;  %v415_v10 = vld [vmem:[%s3803_s6 + $0x3f8] sm:$0xff] }
 0x105   : > { %8471 = vst [vmem:[#allocation204_spill] sm:$0xff] %v5399_v56  ;;  %v8481_v56 = vld [vmem:[#allocation119_spill] sm:$0xff]  ;;  %v8505_v13 = vld [vmem:[#allocation129_spill] sm:$0xff] }
 0x106   : > { %8473 = vst [vmem:[#allocation205_spill] sm:$0xff] %v5405_v39  ;;  %v5420_v1 = vmul.f32 %v8481_v56, %v399_v14  ;;  %v5432_v39 = vmul.f32 %v8488_v12, %v402_v47  ;;  %v8492_v14 = vld [vmem:[#allocation21_spill] sm:$0xff]  ;;  %v413_v47 = vld [vmem:[%s3803_s6 + $0x3e8] sm:$0xff]  ;;  %v414_v12 = vld [vmem:[%s3803_s6 + $0x3f0] sm:$0xff] }
 0x107   : > { %8475 = vst [vmem:[#allocation206_spill] sm:$0xff] %v5408_v9  ;;  %v409_v9 = vld [vmem:[%s3803_s6 + $0x3c8] sm:$0xff]  ;;  %v1058_v56 = vadd.f32 1e-06, %v8492_v14  ;;  %v5456_v14 = vmul.f32 %v8502_v48, %v408_v57  ;;  %v8515_v48 = vld [vmem:[#allocation133_spill] sm:$0xff] }
 0x108   : > { %8477 = vst [vmem:[#allocation207_spill] sm:$0xff] %v5411_v27  ;;  %v5429_v27 = vmul.f32 %v8486_v31, %v401_v53  ;;  %v5447_v53 = vmul.f32 %v8497_v44, %v406_v2  ;;  %v8499_v31 = vld [vmem:[#allocation22_spill] sm:$0xff] }
 0x109   : > { %8480 = vst [vmem:[#allocation19_spill] sm:$0xff] %v5417_v6  ;;  %v412_v6 = vld [vmem:[%s3803_s6 + $0x3e0] sm:$0xff]  ;;  %3059 = vlog2.f32 %v1058_v56  ;;  %v8525_v56 = vld [vmem:[#allocation139_spill] sm:$0xff] }
 0x10a   : > { %8482 = vst [vmem:[#allocation208_spill] sm:$0xff] %v5420_v1  ;;  %v411_v1 = vld [vmem:[%s3803_s6 + $0x3d8] sm:$0xff]  ;;  %v8507_v2 = vld [vmem:[#allocation130_spill] sm:$0xff] }
 0x10b   : > { %8484 = vst [vmem:[#allocation209_spill] sm:$0xff] %v5423_v36  ;;  %v5444_v36 = vmul.f32 %v8495_v40, %v405_v49  ;;  %v5461_v49 = vmul.f32 %v8505_v13, %v409_v9  ;;  %v5464_v44 = vmul.f32 %v8507_v2, %v410_v18  ;;  %v8517_v9 = vld [vmem:[#allocation134_spill] sm:$0xff]  ;;  %v8519_v18 = vld [vmem:[#allocation137_spill] sm:$0xff] }
 0x10c   : > { %8487 = vst [vmem:[#allocation20_spill] sm:$0xff] %v5429_v27  ;;  %v1059_v27 = vadd.f32 1e-06, %v8499_v31  ;;  %v8509_v31 = vld [vmem:[#allocation27_spill] sm:$0xff]  ;;  %v5478_v13 = vmul.f32 %v8517_v9, %v414_v12  ;;  %v1063_v2 = vadd.f32 1e-06, %v8519_v18 }
 0x10d   : > { %8489 = vst [vmem:[#allocation210_spill] sm:$0xff] %v5432_v39  ;;  %v8500_v39 = vld [vmem:[#allocation127_spill] sm:$0xff]  ;;  %v1061_v40 = vadd.f32 1e-06, %v8509_v31  ;;  %v5482_v31 = vmul.f32 %v8520_v19, %v415_v10  ;;  %v8530_v10 = vld [vmem:[#allocation141_spill] sm:$0xff] }
 0x10e   : > { %8491 = vst [vmem:[#allocation211_spill] sm:$0xff] %v5435_v8  ;;  %v5453_v22 = vmul.f32 %v8500_v39, %v407_v34  ;;  %v8504_v8 = vld [vmem:[#allocation23_spill] sm:$0xff]  ;;  %v8512_v39 = vld [vmem:[#allocation132_spill] sm:$0xff]  ;;  %3061 = vlog2.f32 %v1059_v27  ;;  %v5495_v27 = vpop.eup %3055  ;;  %v1067_v19 = vadd.f32 1e-06, %v8530_v10 }
 0x10f   : > { %8494 = vst [vmem:[#allocation21_spill] sm:$0xff] %v5441_v38  ;;  %v1060_v25 = vadd.f32 1e-06, %v8504_v8  ;;  %v5471_v57 = vmul.f32 %v8512_v39, %v412_v6  ;;  %v8514_v8 = vld [vmem:[#allocation136_spill] sm:$0xff]  ;;  %v3567_v6 = vld [vmem:[%s3808_s9] sm:$0xff]  ;;  %v3568_v12 = vld [vmem:[%s3808_s9 + $0x8] sm:$0xff] }
 0x110   : > { %8496 = vst [vmem:[#allocation212_spill] sm:$0xff] %v5444_v36  ;;  %v1062_v33 = vadd.f32 1e-06, %v8514_v8  ;;  %v8523_v39 = vld [vmem:[#allocation6_spill] sm:$0xff]  ;;  %v1065_v8 = vadd.f32 1e-06, %v8525_v56 }
 0x111   : > { %8498 = vst [vmem:[#allocation213_spill] sm:$0xff] %v5447_v53  ;;  %v8510_v53 = vld [vmem:[#allocation131_spill] sm:$0xff]  ;;  %3063 = vlog2.f32 %v1060_v25  ;;  %v8534_v56 = vld [vmem:[#allocation144_spill] sm:$0xff]  ;;  %v8557_v36 = vld [vmem:[#allocation158_spill] sm:$0xff] }
 0x112   : > { %8501 = vst [vmem:[#allocation22_spill] sm:$0xff] %v5453_v22  ;;  %v5468_v34 = vmul.f32 %v8510_v53, %v411_v1  ;;  %v8522_v1 = vld [vmem:[#allocation138_spill] sm:$0xff]  ;;  %3065 = vlog2.f32 %v1061_v40  ;;  %v8527_v9 = vld [vmem:[#allocation7_spill] sm:$0xff]  ;;  %v8539_v10 = vld [vmem:[#allocation148_spill] sm:$0xff] }
 0x113   : > { %8503 = vst [vmem:[#allocation214_spill] sm:$0xff] %v5456_v14  ;;  %v5475_v14 = vmul.f32 %v8515_v48, %v413_v47  ;;  %v1064_v53 = vadd.f32 1e-06, %v8522_v1  ;;  %v8526_v47 = vld [vmem:[#allocation140_spill] sm:$0xff]  ;;  %v5493_v18 = vmul.f32 %v3568_v12, %v8527_v9  ;;  %v8531_v1 = vld [vmem:[#allocation142_spill] sm:$0xff]  ;;  %3067 = vlog2.f32 %v1062_v33  ;;  %v8538_v9 = vld [vmem:[#allocation147_spill] sm:$0xff] }
 0x114   : > { %8506 = vst [vmem:[#allocation23_spill] sm:$0xff] %v5461_v49  ;;  %v1066_v48 = vadd.f32 1e-06, %v8526_v47  ;;  %v1068_v25 = vadd.f32 1e-06, %v8531_v1  ;;  %v8535_v47 = vld [vmem:[#allocation145_spill] sm:$0xff]  ;;  %3069 = vlog2.f32 %v1063_v2 }
 0x115   : > { %8508 = vst [vmem:[#allocation215_spill] sm:$0xff] %v5464_v44  ;;  %v1071_v40 = vadd.f32 1e-06, %v8535_v47  ;;  %3071 = vlog2.f32 %v1064_v53  ;;  %v3569_v1 = vld [vmem:[%s3808_s9 + $0x10] sm:$0xff]  ;;  %v8544_v47 = vld [vmem:[#allocation150_spill] sm:$0xff]  ;;  %v8548_v53 = vld [vmem:[#allocation153_spill] sm:$0xff] }
 0x116   : > { %8511 = vst [vmem:[#allocation27_spill] sm:$0xff] %v5468_v34  ;;  %v1076_v44 = vadd.f32 1e-06, %v8544_v47  ;;  %3073 = vlog2.f32 %v1065_v8  ;;  %v5526_v49 = vadd.f32 1e-06, %v8548_v53  ;;  %v8552_v47 = vld [vmem:[#allocation154_spill] sm:$0xff] }
 0x117   : > { %8513 = vst [vmem:[#allocation216_spill] sm:$0xff] %v5471_v57  ;;  %v5487_v57 = vmul.f32 %v3567_v6, %v8523_v39  ;;  %v5500_v6 = vpop.eup %3057  ;;  %v1070_v39 = vadd.f32 1e-06, %v8534_v56  ;;  %v8543_v56 = vld [vmem:[#allocation149_spill] sm:$0xff]  ;;  %3075 = vlog2.f32 %v1066_v48  ;;  %v8553_v8 = vld [vmem:[#allocation155_spill] sm:$0xff] }
 0x118   : > { %8516 = vst [vmem:[#allocation136_spill] sm:$0xff] %v5475_v14  ;;  %v5505_v12 = vpop.eup %3059  ;;  %v1075_v34 = vadd.f32 1e-06, %v8543_v56  ;;  %3077 = vlog2.f32 %v1067_v19  ;;  %v8556_v53 = vld [vmem:[#allocation157_spill] sm:$0xff]  ;;  %v8562_v19 = vld [vmem:[#allocation160_spill] sm:$0xff] }
 0x119   : > { %8518 = vst [vmem:[#allocation217_spill] sm:$0xff] %v5478_v13  ;;  %v5546_v48 = vadd.f32 1e-06, %v8556_v53  ;;  %3079 = vlog2.f32 %v1068_v25  ;;  %v5561_v38 = vadd.f32 1e-06, %v8562_v19  ;;  %v8565_v25 = vld [vmem:[#allocation162_spill] sm:$0xff] }
 0x11a   : > { %8521 = vst [vmem:[#allocation137_spill] sm:$0xff] %v5482_v31  ;;  %v8532_v31 = vld [vmem:[#allocation143_spill] sm:$0xff]  ;;  %v5569_v0 = vadd.f32 1e-06, %v8565_v25  ;;  %v8571_v19 = vld [vmem:[#allocation165_spill] sm:$0xff] }
 0x11b   : > { %8524 = vst [vmem:[#allocation138_spill] sm:$0xff] %v5487_v57  ;;  %v1069_v13 = vadd.f32 1e-06, %v8532_v31  ;;  %v8536_v57 = vld [vmem:[#allocation146_spill] sm:$0xff]  ;;  %v8540_v31 = vld [vmem:[#allocation8_spill] sm:$0xff] }
 0x11c   : > { %8528 = vst [vmem:[#allocation139_spill] sm:$0xff] %v5493_v18  ;;  %v1072_v14 = vadd.f32 1e-06, %v8536_v57  ;;  %v1073_v18 = vadd.f32 1e-06, %v8538_v9  ;;  %v5511_v33 = vmul.f32 %v3569_v1, %v8540_v31  ;;  %v8545_v57 = vld [vmem:[#allocation151_spill] sm:$0xff] }
 0x11d   : > { %8529 = vst [vmem:[#allocation140_spill] sm:$0xff] %v5495_v27  ;;  %v1074_v27 = vadd.f32 1e-06, %v8539_v10  ;;  %v5518_v2 = vadd.f32 1e-06, %v8545_v57  ;;  %v8547_v9 = vld [vmem:[#allocation152_spill] sm:$0xff]  ;;  %3081 = vlog2.f32 %v1069_v13 }
 0x11e   : > { %8533 = vst [vmem:[#allocation141_spill] sm:$0xff] %v5500_v6  ;;  %v5513_v6 = vpop.eup %3061  ;;  %v5523_v10 = vadd.f32 1e-06, %v8547_v9  ;;  %v3570_v1 = vld [vmem:[%s3808_s9 + $0x18] sm:$0xff]  ;;  %v8549_v31 = vld [vmem:[#allocation11_spill] sm:$0xff]  ;;  %3083 = vlog2.f32 %v1070_v39 }
 0x11f   : > { %8537 = vst [vmem:[#allocation142_spill] sm:$0xff] %v5505_v12  ;;  %v5520_v12 = vpop.eup %3063  ;;  %v5535_v57 = vadd.f32 1e-06, %v8552_v47  ;;  %3085 = vlog2.f32 %v1071_v40  ;;  %v3572_v13 = vld [vmem:[%s3808_s9 + $0x28] sm:$0xff] }
 0x120   : > { %8541 = vst [vmem:[#allocation143_spill] sm:$0xff] %v5511_v33  ;;  %v5530_v33 = vmul.f32 %v3570_v1, %v8549_v31  ;;  %v5532_v56 = vpop.eup %3065  ;;  %v5549_v1 = vadd.f32 1e-06, %v8557_v36  ;;  %v3571_v31 = vld [vmem:[%s3808_s9 + $0x20] sm:$0xff]  ;;  %3087 = vlog2.f32 %v1072_v14 }
 0x121   : > { %8542 = vst [vmem:[#allocation144_spill] sm:$0xff] %v5513_v6  ;;  %v5538_v6 = vadd.f32 1e-06, %v8553_v8  ;;  %v5543_v9 = vpop.eup %3067  ;;  %3089 = vlog2.f32 %v1073_v18  ;;  %v8588_v14 = vld [vmem:[#allocation174_spill] sm:$0xff]  ;;  %v8592_v18 = vld [vmem:[#allocation176_spill] sm:$0xff] }
 0x122   : > { %8546 = vst [vmem:[#allocation145_spill] sm:$0xff] %v5520_v12  ;;  %v8554_v12 = vld [vmem:[#allocation156_spill] sm:$0xff]  ;;  %v5555_v8 = vpop.eup %3069  ;;  %3091 = vlog2.f32 %v1074_v27  ;;  %v5642_v27 = vadd.f32 1e-06, %v5193_v7  ;;  %v5665_v7 = vadd.f32 1e-06, %v5215_v54 }
 0x123   : > { %8550 = vst [vmem:[#allocation146_spill] sm:$0xff] %v5530_v33  ;;  %v5541_v22 = vadd.f32 1e-06, %v8554_v12  ;;  %v8558_v33 = vld [vmem:[#allocation12_spill] sm:$0xff]  ;;  %v5566_v36 = vpop.eup %3071  ;;  %3093 = vlog2.f32 %v1075_v34  ;;  %v5686_v54 = vadd.f32 1e-06, %v5234_v4 }
 0x124   : > { %8551 = vst [vmem:[#allocation147_spill] sm:$0xff] %v5532_v56  ;;  %v5553_v47 = vmul.f32 %v3571_v31, %v8558_v33  ;;  %v8561_v56 = vld [vmem:[#allocation159_spill] sm:$0xff]  ;;  %v5572_v31 = vadd.f32 1e-06, %v8566_v17  ;;  %v8568_v33 = vld [vmem:[#allocation164_spill] sm:$0xff]  ;;  %3095 = vlog2.f32 %v1076_v44 }
 0x125   : > { %8555 = vst [vmem:[#allocation148_spill] sm:$0xff] %v5543_v9  ;;  %v5558_v12 = vadd.f32 1e-06, %v8561_v56  ;;  %v8563_v9 = vld [vmem:[#allocation161_spill] sm:$0xff]  ;;  %v5577_v56 = vpop.eup %3073  ;;  %v8577_v17 = vld [vmem:[#allocation167_spill] sm:$0xff]  ;;  %v8597_v34 = vld [vmem:[#allocation180_spill] sm:$0xff]  ;;  %3097 = vlog2.f32 %v5518_v2 }
 0x126   : > { %8559 = vst [vmem:[#allocation149_spill] sm:$0xff] %v5553_v47  ;;  %v5564_v53 = vadd.f32 1e-06, %v8563_v9  ;;  %v5575_v47 = vadd.f32 1e-06, %v8568_v33  ;;  %v8572_v9 = vld [vmem:[#allocation166_spill] sm:$0xff]  ;;  %v5589_v15 = vpop.eup %3075  ;;  %3099 = vlog2.f32 %v5523_v10 }
 0x127   : > { %8560 = vst [vmem:[#allocation150_spill] sm:$0xff] %v5555_v8  ;;  %v5580_v8 = vadd.f32 1e-06, %v8571_v19  ;;  %v5583_v5 = vadd.f32 1e-06, %v8572_v9  ;;  %v8578_v33 = vld [vmem:[#allocation168_spill] sm:$0xff]  ;;  %v5600_v19 = vpop.eup %3077  ;;  %3101 = vlog2.f32 %v5526_v49 }
 0x128   : > { %8564 = vst [vmem:[#allocation151_spill] sm:$0xff] %v5566_v36  ;;  %v8574_v36 = vld [vmem:[#allocation13_spill] sm:$0xff]  ;;  %v5595_v39 = vadd.f32 1e-06, %v8578_v33  ;;  %v8581_v9 = vld [vmem:[#allocation170_spill] sm:$0xff]  ;;  %3103 = vlog2.f32 %v5535_v57 }
 0x129   : > { %8567 = vst [vmem:[#allocation152_spill] sm:$0xff] %v5572_v31  ;;  %v5587_v25 = vmul.f32 %v3572_v13, %v8574_v36  ;;  %v5592_v31 = vadd.f32 1e-06, %v8577_v17  ;;  %v5603_v40 = vadd.f32 1e-06, %v8581_v9  ;;  %v8584_v36 = vld [vmem:[#allocation172_spill] sm:$0xff]  ;;  %v5611_v17 = vpop.eup %3079  ;;  %3105 = vlog2.f32 %v5538_v6 }
 0x12a   : > { %8569 = vst [vmem:[#allocation153_spill] sm:$0xff] %v5575_v47  ;;  %v5614_v33 = vadd.f32 1e-06, %v5161_v43  ;;  %v5622_v9 = vpop.eup %3081  ;;  %v5662_v44 = vadd.f32 1e-06, %v5212_v28  ;;  %3107 = vlog2.f32 %v5541_v22 }
 0x12b   : > { %8570 = vst [vmem:[#allocation154_spill] sm:$0xff] %v5577_v56  ;;  %v8579_v56 = vld [vmem:[#allocation169_spill] sm:$0xff]  ;;  %v5633_v43 = vpop.eup %3083  ;;  %v5674_v2 = vadd.f32 1e-06, %v5225_v62  ;;  %v5689_v10 = vadd.f32 1e-06, %v5240_v55  ;;  %3109 = vlog2.f32 %v5546_v48 }
 0x12c   : > { %8573 = vst [vmem:[#allocation155_spill] sm:$0xff] %v5583_v5  ;;  %v5598_v47 = vadd.f32 1e-06, %v8579_v56  ;;  %v8582_v5 = vld [vmem:[#allocation171_spill] sm:$0xff]  ;;  %v8586_v56 = vld [vmem:[#allocation173_spill] sm:$0xff]  ;;  %3111 = vlog2.f32 %v5549_v1 }
 0x12d   : > { %8575 = vst [vmem:[#allocation156_spill] sm:$0xff] %v5587_v25  ;;  %v5606_v13 = vadd.f32 1e-06, %v8582_v5  ;;  %v5609_v25 = vadd.f32 1e-06, %v8584_v36  ;;  %v8591_v5 = vld [vmem:[#allocation175_spill] sm:$0xff]  ;;  %3113 = vlog2.f32 %v5558_v12 }
 0x12e   : > { %8576 = vst [vmem:[#allocation157_spill] sm:$0xff] %v5589_v15  ;;  %v5617_v15 = vadd.f32 1e-06, %v8586_v56  ;;  %v5628_v36 = vadd.f32 1e-06, %v5177_v41  ;;  %v8594_v56 = vld [vmem:[#allocation177_spill] sm:$0xff]  ;;  %3115 = vlog2.f32 %v5561_v38 }
 0x12f   : > { %8580 = vst [vmem:[#allocation158_spill] sm:$0xff] %v5600_v19  ;;  %v5620_v19 = vadd.f32 1e-06, %v8588_v14  ;;  %v8595_v14 = vld [vmem:[#allocation178_spill] sm:$0xff]  ;;  %v5647_v41 = vadd.f32 1e-06, %v5196_v46 }
 0x130   : > { %8583 = vst [vmem:[#allocation159_spill] sm:$0xff] %v5606_v13  ;;  %v5625_v13 = vadd.f32 1e-06, %v8591_v5  ;;  %v5644_v5 = vpop.eup %3085  ;;  %v5698_v49 = vadd.f32 1e-06, %v5246_v21  ;;  %v8607_v48 = vld [vmem:[#allocation183_spill] sm:$0xff]  ;;  %3117 = vlog2.f32 %v5564_v53 }
 0x131   : > { %8585 = vst [vmem:[#allocation160_spill] sm:$0xff] %v5611_v17  ;;  %v5631_v17 = vadd.f32 1e-06, %v8592_v18  ;;  %v8596_v18 = vld [vmem:[#allocation179_spill] sm:$0xff]  ;;  %v5707_v55 = vadd.f32 1e-06, %v5255_v3 }
 0x132   : > { %8587 = vst [vmem:[#allocation161_spill] sm:$0xff] %v5617_v15  ;;  %v5636_v15 = vadd.f32 1e-06, %v8594_v56  ;;  %v5656_v56 = vpop.eup %3087  ;;  %v5710_v4 = vadd.f32 1e-06, %v5258_v58  ;;  %3119 = vlog2.f32 %v5569_v0 }
 0x133   : > { %8589 = vst [vmem:[#allocation162_spill] sm:$0xff] %v5620_v19  ;;  %v5639_v19 = vadd.f32 1e-06, %v8595_v14  ;;  %v5659_v14 = vadd.f32 1e-06, %v5209_v37  ;;  %v5668_v46 = vpop.eup %3089 }
 0x134   : > { %8590 = vst [vmem:[#allocation163_spill] sm:$0xff] %v5622_v9  ;;  %v5650_v9 = vadd.f32 1e-06, %v8596_v18  ;;  %v8599_v18 = vld [vmem:[#allocation181_spill] sm:$0xff]  ;;  %v5680_v28 = vpop.eup %3091  ;;  %v5683_v37 = vadd.f32 1e-06, %v5231_v59 }
 0x135   : > { %8593 = vst [vmem:[#allocation164_spill] sm:$0xff] %v5633_v43  ;;  %v5653_v43 = vadd.f32 1e-06, %v8597_v34  ;;  %v5671_v34 = vadd.f32 1e-06, %v8599_v18  ;;  %v5692_v62 = vpop.eup %3093 }
 0x136   : > { %v5701_v18 = vadd.f32 1e-06, %v5249_v42  ;;  %v5704_v59 = vpop.eup %3095  ;;  %v5713_v57 = vadd.f32 1e-06, %v5261_v26  ;;  %v5719_v21 = vadd.f32 1e-06, %v5264_v24 }
 0x137   : > { %8598 = vst [vmem:[#allocation165_spill] sm:$0xff] %v5653_v43  ;;  %v5677_v43 = vadd.f32 1e-06, %v5228_v50  ;;  %v5695_v50 = vadd.f32 1e-06, %v5243_v51  ;;  %v5716_v51 = vpop.eup %3097  ;;  %v8602_v26 = vld [vmem:[#allocation182_spill] sm:$0xff] }
 0x138   : > { %8600 = vst [vmem:[#allocation166_spill] sm:$0xff] %v5713_v57  ;;  %v5722_v42 = vadd.f32 1e-06, %v5270_v32  ;;  %v5725_v6 = vadd.f32 1e-06, %v5273_v11  ;;  %v5728_v58 = vpop.eup %3099 }
 0x139   : > { %v5731_v3 = vadd.f32 1e-06, %v5276_v16  ;;  %v5734_v22 = vadd.f32 1e-06, %v8602_v26  ;;  %v5737_v57 = vadd.f32 1e-06, %v5285_v30  ;;  %v5740_v32 = vpop.eup %3101 }
 0x13a   : > { %8601 = vst [vmem:[#allocation167_spill] sm:$0xff] %v5725_v6  ;;  %v5743_v24 = vadd.f32 1e-06, %v5288_v35  ;;  %v5746_v11 = vadd.f32 1e-06, %v5291_v20  ;;  %v5752_v16 = vpop.eup %3103  ;;  %v8612_v20 = vld [vmem:[#allocation184_spill] sm:$0xff] }
 0x13b   : > { %8603 = vst [vmem:[#allocation168_spill] sm:$0xff] %v5734_v22  ;;  %v5749_v6 = vadd.f32 1e-06, %v8607_v48  ;;  %v5755_v30 = vadd.f32 1e-06, %v5300_v61  ;;  %v5764_v35 = vpop.eup %3105 }
 0x13c   : > { %8604 = vst [vmem:[#allocation169_spill] sm:$0xff] %v5737_v57  ;;  %v5758_v1 = vadd.f32 1e-06, %v5303_v52  ;;  %v5761_v26 = vadd.f32 1e-06, %v5306_v60  ;;  %v5776_v52 = vpop.eup %3107  ;;  %v8617_v60 = vld [vmem:[#allocation185_spill] sm:$0xff] }
 0x13d   : > { %8605 = vst [vmem:[#allocation170_spill] sm:$0xff] %v5743_v24  ;;  %v5767_v48 = vadd.f32 1e-06, %v8612_v20  ;;  %v5770_v12 = vadd.f32 1e-06, %v5315_v45  ;;  %v5788_v45 = vpop.eup %3109  ;;  %v8620_v20 = vld [vmem:[#allocation186_spill] sm:$0xff] }
 0x13e   : > { %8606 = vst [vmem:[#allocation171_spill] sm:$0xff] %v5746_v11  ;;  %v5779_v61 = vadd.f32 1e-06, %v5321_v23  ;;  %v5782_v38 = vadd.f32 1e-06, %v8617_v60  ;;  %v8626_v23 = vld [vmem:[#allocation152_spill] sm:$0xff]  ;;  %v5800_v60 = vpop.eup %3111 }
 0x13f   : > { %8608 = vst [vmem:[#allocation172_spill] sm:$0xff] %v5749_v6  ;;  %v5773_v6 = vadd.f32 1e-06, %v5318_v63  ;;  %v5791_v63 = vadd.f32 1e-06, %v8620_v20  ;;  %3121 = vlog2.f32 %v8626_v23  ;;  %v8633_v20 = vld [vmem:[#allocation153_spill] sm:$0xff] }
 0x140   : > { %8609 = vst [vmem:[#allocation173_spill] sm:$0xff] %v5755_v30  ;;  %3123 = vlog2.f32 %v8633_v20 }
 0x141   : > { %8610 = vst [vmem:[#allocation174_spill] sm:$0xff] %v5758_v1  ;;  %3125 = vlog2.f32 %v5580_v8 }
 0x142   : > { %8611 = vst [vmem:[#allocation175_spill] sm:$0xff] %v5761_v26  ;;  %v5785_v26 = vadd.f32 1e-06, %v5330_v29 }
 0x143   : > { %8613 = vst [vmem:[#allocation176_spill] sm:$0xff] %v5767_v48 }
 0x144   : > { %8614 = vst [vmem:[#allocation177_spill] sm:$0xff] %v5770_v12  ;;  %v8624_v12 = vld [vmem:[#allocation188_spill] sm:$0xff] }
 0x145   : > { %8615 = vst [vmem:[#allocation178_spill] sm:$0xff] %v5773_v6  ;;  %v8622_v6 = vld [vmem:[#allocation187_spill] sm:$0xff]  ;;  %v5797_v48 = vadd.f32 1e-06, %v8624_v12 }
 0x146   : > { %8616 = vst [vmem:[#allocation179_spill] sm:$0xff] %v5779_v61  ;;  %v5794_v53 = vadd.f32 1e-06, %v8622_v6  ;;  %v8631_v61 = vld [vmem:[#allocation191_spill] sm:$0xff]  ;;  %v5812_v6 = vpop.eup %3113 }
 0x147   : > { %8618 = vst [vmem:[#allocation180_spill] sm:$0xff] %v5782_v38  ;;  %v8627_v38 = vld [vmem:[#allocation189_spill] sm:$0xff]  ;;  %v5809_v1 = vadd.f32 1e-06, %v8631_v61 }
 0x148   : > { %8619 = vst [vmem:[#allocation181_spill] sm:$0xff] %v5785_v26  ;;  %v5803_v29 = vadd.f32 1e-06, %v8627_v38  ;;  %v8629_v26 = vld [vmem:[#allocation190_spill] sm:$0xff]  ;;  %v8640_v38 = vld [vmem:[#allocation195_spill] sm:$0xff] }
 0x149   : > { %8621 = vst [vmem:[#allocation182_spill] sm:$0xff] %v5791_v63  ;;  %v5806_v0 = vadd.f32 1e-06, %v8629_v26  ;;  %v8638_v63 = vld [vmem:[#allocation194_spill] sm:$0xff]  ;;  %v5824_v26 = vpop.eup %3115  ;;  %v5827_v61 = vadd.f32 1e-06, %v8640_v38 }
 0x14a   : > { %8623 = vst [vmem:[#allocation183_spill] sm:$0xff] %v5794_v53  ;;  %v8634_v53 = vld [vmem:[#allocation192_spill] sm:$0xff]  ;;  %v5821_v30 = vadd.f32 1e-06, %v8638_v63  ;;  %v8653_v38 = vld [vmem:[#allocation201_spill] sm:$0xff] }
 0x14b   : > { %8625 = vst [vmem:[#allocation184_spill] sm:$0xff] %v5797_v48  ;;  %v5815_v12 = vadd.f32 1e-06, %v8634_v53  ;;  %v8636_v48 = vld [vmem:[#allocation193_spill] sm:$0xff]  ;;  %v8646_v53 = vld [vmem:[#allocation155_spill] sm:$0xff] }
 0x14c   : > { %8628 = vst [vmem:[#allocation185_spill] sm:$0xff] %v5803_v29  ;;  %v5818_v23 = vadd.f32 1e-06, %v8636_v48  ;;  %3127 = vlog2.f32 %v8646_v53  ;;  %v5836_v48 = vpop.eup %3117 }
 0x14d   : > { %8630 = vst [vmem:[#allocation186_spill] sm:$0xff] %v5806_v0  ;;  %v8644_v0 = vld [vmem:[#allocation197_spill] sm:$0xff]  ;;  %3129 = vlog2.f32 %v5592_v31 }
 0x14e   : > { %8632 = vst [vmem:[#allocation187_spill] sm:$0xff] %v5809_v1  ;;  %v8642_v1 = vld [vmem:[#allocation196_spill] sm:$0xff]  ;;  %v5833_v29 = vadd.f32 1e-06, %v8644_v0  ;;  %v5851_v0 = vadd.f32 1e-06, %v8653_v38  ;;  %3131 = vlog2.f32 %v5595_v39 }
 0x14f   : > { %8635 = vst [vmem:[#allocation188_spill] sm:$0xff] %v5815_v12  ;;  %v5830_v20 = vadd.f32 1e-06, %v8642_v1  ;;  %v8651_v12 = vld [vmem:[#allocation200_spill] sm:$0xff]  ;;  %v5848_v1 = vpop.eup %3119  ;;  %3133 = vlog2.f32 %v5598_v47  ;;  %v8665_v38 = vld [vmem:[#allocation207_spill] sm:$0xff] }
 0x150   : > { %8637 = vst [vmem:[#allocation152_spill] sm:$0xff] %v5818_v23  ;;  %v8647_v23 = vld [vmem:[#allocation198_spill] sm:$0xff]  ;;  %v5845_v11 = vadd.f32 1e-06, %v8651_v12  ;;  %3135 = vlog2.f32 %v5603_v40 }
 0x151   : > { %8639 = vst [vmem:[#allocation189_spill] sm:$0xff] %v5821_v30  ;;  %v5839_v63 = vadd.f32 1e-06, %v8647_v23  ;;  %v8649_v30 = vld [vmem:[#allocation199_spill] sm:$0xff]  ;;  %v8659_v23 = vld [vmem:[#allocation204_spill] sm:$0xff] }
 0x152   : > { %8641 = vst [vmem:[#allocation190_spill] sm:$0xff] %v5827_v61  ;;  %v5842_v8 = vadd.f32 1e-06, %v8649_v30  ;;  %v5860_v30 = vpop.eup %3121  ;;  %v5863_v12 = vadd.f32 1e-06, %v8659_v23  ;;  %v8671_v23 = vld [vmem:[#allocation209_spill] sm:$0xff] }
 0x153   : > { %8643 = vst [vmem:[#allocation191_spill] sm:$0xff] %v5830_v20  ;;  %v8657_v20 = vld [vmem:[#allocation203_spill] sm:$0xff] }
 0x154   : > { %8645 = vst [vmem:[#allocation153_spill] sm:$0xff] %v5833_v29  ;;  %v8655_v29 = vld [vmem:[#allocation202_spill] sm:$0xff]  ;;  %v5857_v61 = vadd.f32 1e-06, %v8657_v20  ;;  %v5875_v20 = vadd.f32 1e-06, %v8665_v38 }
 0x155   : > { %8648 = vst [vmem:[#allocation192_spill] sm:$0xff] %v5839_v63  ;;  %v5854_v53 = vadd.f32 1e-06, %v8655_v29  ;;  %v5872_v29 = vpop.eup %3123  ;;  %v8677_v38 = vld [vmem:[#allocation159_spill] sm:$0xff] }
 0x156   : > { %8650 = vst [vmem:[#allocation193_spill] sm:$0xff] %v5842_v8  ;;  %v8663_v8 = vld [vmem:[#allocation206_spill] sm:$0xff]  ;;  %3137 = vlog2.f32 %v8677_v38 }
 0x157   : > { %8652 = vst [vmem:[#allocation194_spill] sm:$0xff] %v5845_v11  ;;  %v8661_v11 = vld [vmem:[#allocation205_spill] sm:$0xff]  ;;  %v5869_v63 = vadd.f32 1e-06, %v8663_v8  ;;  %v5887_v8 = vadd.f32 1e-06, %v8671_v23  ;;  %3139 = vlog2.f32 %v5609_v25 }
 0x158   : > { %8654 = vst [vmem:[#allocation195_spill] sm:$0xff] %v5851_v0  ;;  %v5866_v31 = vadd.f32 1e-06, %v8661_v11  ;;  %v5884_v11 = vpop.eup %3125  ;;  %v8684_v23 = vld [vmem:[#allocation213_spill] sm:$0xff]  ;;  %3141 = vlog2.f32 %v5614_v33 }
 0x159   : > { %8656 = vst [vmem:[#allocation196_spill] sm:$0xff] %v5854_v53  ;;  %v8669_v53 = vld [vmem:[#allocation208_spill] sm:$0xff] }
 0x15a   : > { %8658 = vst [vmem:[#allocation197_spill] sm:$0xff] %v5857_v61  ;;  %v8667_v61 = vld [vmem:[#allocation19_spill] sm:$0xff]  ;;  %v5881_v0 = vadd.f32 1e-06, %v8669_v53 }
 0x15b   : > { %8660 = vst [vmem:[#allocation155_spill] sm:$0xff] %v5863_v12  ;;  %v5878_v39 = vadd.f32 1e-06, %v8667_v61  ;;  %v5896_v61 = vpop.eup %3127 }
 0x15c   : > { %8662 = vst [vmem:[#allocation198_spill] sm:$0xff] %v5866_v31  ;;  %v8675_v31 = vld [vmem:[#allocation210_spill] sm:$0xff] }
 0x15d   : > { %8664 = vst [vmem:[#allocation199_spill] sm:$0xff] %v5869_v63  ;;  %v8673_v63 = vld [vmem:[#allocation20_spill] sm:$0xff]  ;;  %v5893_v12 = vadd.f32 1e-06, %v8675_v31  ;;  %v5911_v31 = vadd.f32 1e-06, %v8684_v23 }
 0x15e   : > { %8666 = vst [vmem:[#allocation200_spill] sm:$0xff] %v5875_v20  ;;  %v5890_v47 = vadd.f32 1e-06, %v8673_v63  ;;  %v8682_v20 = vld [vmem:[#allocation212_spill] sm:$0xff]  ;;  %v5908_v63 = vpop.eup %3129  ;;  %v8696_v23 = vld [vmem:[#allocation161_spill] sm:$0xff] }
 0x15f   : > { %8668 = vst [vmem:[#allocation201_spill] sm:$0xff] %v5878_v39  ;;  %v8678_v39 = vld [vmem:[#allocation211_spill] sm:$0xff]  ;;  %v5905_v24 = vadd.f32 1e-06, %v8682_v20  ;;  %3143 = vlog2.f32 %v8696_v23 }
 0x160   : > { %8670 = vst [vmem:[#allocation202_spill] sm:$0xff] %v5881_v0  ;;  %v5899_v53 = vadd.f32 1e-06, %v8678_v39  ;;  %v8680_v0 = vld [vmem:[#allocation21_spill] sm:$0xff]  ;;  %v8690_v39 = vld [vmem:[#allocation23_spill] sm:$0xff] }
 0x161   : > { %8672 = vst [vmem:[#allocation203_spill] sm:$0xff] %v5887_v8  ;;  %v5902_v40 = vadd.f32 1e-06, %v8680_v0  ;;  %v5920_v0 = vpop.eup %3131  ;;  %v5923_v20 = vadd.f32 1e-06, %v8690_v39  ;;  %v8703_v39 = vld [vmem:[#allocation162_spill] sm:$0xff] }
 0x162   : > { %8674 = vst [vmem:[#allocation204_spill] sm:$0xff] %v5890_v47  ;;  %v8688_v47 = vld [vmem:[#allocation214_spill] sm:$0xff]  ;;  %3145 = vlog2.f32 %v8703_v39 }
 0x163   : > { %8676 = vst [vmem:[#allocation205_spill] sm:$0xff] %v5893_v12  ;;  %v8686_v12 = vld [vmem:[#allocation22_spill] sm:$0xff]  ;;  %v5917_v8 = vadd.f32 1e-06, %v8688_v47  ;;  %3147 = vlog2.f32 %v5625_v13 }
 0x164   : > { %8679 = vst [vmem:[#allocation206_spill] sm:$0xff] %v5899_v53  ;;  %v5914_v38 = vadd.f32 1e-06, %v8686_v12  ;;  %v5932_v12 = vpop.eup %3133  ;;  %3149 = vlog2.f32 %v5628_v36  ;;  %v8720_v13 = vld [vmem:[#allocation150_spill] sm:$0xff]  ;;  %v8726_v36 = vld [vmem:[#allocation157_spill] sm:$0xff] }
 0x165   : > { %8681 = vst [vmem:[#allocation207_spill] sm:$0xff] %v5902_v40  ;;  %v8694_v40 = vld [vmem:[#allocation27_spill] sm:$0xff]  ;;  %3151 = vlog2.f32 %v5631_v17 }
 0x166   : > { %8683 = vst [vmem:[#allocation19_spill] sm:$0xff] %v5905_v24  ;;  %v8692_v24 = vld [vmem:[#allocation215_spill] sm:$0xff]  ;;  %v5929_v53 = vadd.f32 1e-06, %v8694_v40  ;;  %3153 = vlog2.f32 %v5636_v15  ;;  %v6005_v15 = vmul.f32 0.6931472, %v5656_v56 }
 0x167   : > { %8685 = vst [vmem:[#allocation208_spill] sm:$0xff] %v5911_v31  ;;  %v5926_v25 = vadd.f32 1e-06, %v8692_v24  ;;  %v8701_v31 = vld [vmem:[#allocation217_spill] sm:$0xff]  ;;  %v5944_v24 = vpop.eup %3135  ;;  %v8732_v17 = vld [vmem:[#allocation163_spill] sm:$0xff]  ;;  %3155 = vlog2.f32 %v5639_v19 }
 0x168   : > { %8687 = vst [vmem:[#allocation209_spill] sm:$0xff] %v5914_v38  ;;  %v8697_v38 = vld [vmem:[#allocation216_spill] sm:$0xff]  ;;  %v5941_v57 = vadd.f32 1e-06, %v8701_v31  ;;  %3157 = vlog2.f32 %v5642_v27  ;;  %v6015_v19 = vmul.f32 0.6931472, %v5692_v62 }
 0x169   : > { %8689 = vst [vmem:[#allocation20_spill] sm:$0xff] %v5917_v8  ;;  %v5935_v47 = vadd.f32 1e-06, %v8697_v38  ;;  %v8699_v8 = vld [vmem:[#allocation136_spill] sm:$0xff]  ;;  %v8710_v38 = vld [vmem:[#allocation142_spill] sm:$0xff]  ;;  %3159 = vlog2.f32 %v5647_v41 }
 0x16a   : > { %8691 = vst [vmem:[#allocation210_spill] sm:$0xff] %v5923_v20  ;;  %v5938_v33 = vadd.f32 1e-06, %v8699_v8  ;;  %v8708_v20 = vld [vmem:[#allocation141_spill] sm:$0xff]  ;;  %v5956_v8 = vpop.eup %3137  ;;  %v5959_v31 = vmul.f32 0.6931472, %v8710_v38  ;;  %3161 = vlog2.f32 %v5650_v9 }
 0x16b   : > { %8693 = vst [vmem:[#allocation159_spill] sm:$0xff] %v5926_v25  ;;  %v8704_v25 = vld [vmem:[#allocation137_spill] sm:$0xff]  ;;  %v5953_v22 = vmul.f32 0.6931472, %v8708_v20  ;;  %v8718_v20 = vld [vmem:[#allocation148_spill] sm:$0xff] }
 0x16c   : > { %8695 = vst [vmem:[#allocation211_spill] sm:$0xff] %v5929_v53  ;;  %v5947_v40 = vadd.f32 1e-06, %v8704_v25  ;;  %v8706_v53 = vld [vmem:[#allocation140_spill] sm:$0xff]  ;;  %v8716_v25 = vld [vmem:[#allocation147_spill] sm:$0xff] }
 0x16d   : > { %8698 = vst [vmem:[#allocation21_spill] sm:$0xff] %v5935_v47  ;;  %v5950_v23 = vmul.f32 0.6931472, %v8706_v53  ;;  %v3140_v53 = vpop.eup %3139  ;;  %v6022_v56 = vmul.f32 0.6931472, %v5716_v51 }
 0x16e   : > { %8700 = vst [vmem:[#allocation212_spill] sm:$0xff] %v5938_v33  ;;  %v8714_v33 = vld [vmem:[#allocation145_spill] sm:$0xff]  ;;  %v3142_v38 = vpop.eup %3141  ;;  %v6025_v27 = vmul.f32 0.6931472, %v5728_v58  ;;  %v6034_v62 = vmul.f32 0.6931472, %v5752_v16 }
 0x16f   : > { %8702 = vst [vmem:[#allocation213_spill] sm:$0xff] %v5941_v57  ;;  %v8712_v57 = vld [vmem:[#allocation144_spill] sm:$0xff]  ;;  %v5965_v47 = vmul.f32 0.6931472, %v8714_v33  ;;  %v8724_v33 = vld [vmem:[#allocation154_spill] sm:$0xff] }
 0x170   : > { %8705 = vst [vmem:[#allocation22_spill] sm:$0xff] %v5947_v40  ;;  %v5962_v39 = vmul.f32 0.6931472, %v8712_v57  ;;  %v5975_v40 = vmul.f32 0.6931472, %v8720_v13  ;;  %v8722_v57 = vld [vmem:[#allocation151_spill] sm:$0xff] }
 0x171   : > { %8707 = vst [vmem:[#allocation214_spill] sm:$0xff] %v5950_v23  ;;  %v5969_v23 = vmul.f32 0.6931472, %v8716_v25  ;;  %v3144_v25 = vpop.eup %3143  ;;  %v8730_v13 = vld [vmem:[#allocation160_spill] sm:$0xff]  ;;  %v6037_v41 = vmul.f32 0.6931472, %v5764_v35 }
 0x172   : > { %8709 = vst [vmem:[#allocation23_spill] sm:$0xff] %v5953_v22  ;;  %v5972_v22 = vmul.f32 0.6931472, %v8718_v20  ;;  %v8728_v20 = vld [vmem:[#allocation158_spill] sm:$0xff]  ;;  %v6043_v58 = vmul.f32 0.6931472, %v5776_v52 }
 0x173   : > { %8711 = vst [vmem:[#allocation215_spill] sm:$0xff] %v5959_v31  ;;  %v5985_v31 = vmul.f32 0.6931472, %v8726_v36  ;;  %v6002_v36 = vmul.f32 0.6931472, %v5644_v5 }
 0x174   : > { %8713 = vst [vmem:[#allocation27_spill] sm:$0xff] %v5962_v39  ;;  %v5979_v39 = vmul.f32 0.6931472, %v8722_v57  ;;  %v3146_v57 = vpop.eup %3145  ;;  %v6019_v5 = vmul.f32 0.6931472, %v5704_v59  ;;  %v8747_v59 = vld [vmem:[#allocation165_spill] sm:$0xff] }
 0x175   : > { %8715 = vst [vmem:[#allocation161_spill] sm:$0xff] %v5965_v47  ;;  %v5982_v47 = vmul.f32 0.6931472, %v8724_v33  ;;  %v8734_v33 = vld [vmem:[#allocation164_spill] sm:$0xff]  ;;  %3163 = vlog2.f32 %v8747_v59  ;;  %v6046_v9 = vmul.f32 0.6931472, %v5788_v45 }
 0x176   : > { %8717 = vst [vmem:[#allocation216_spill] sm:$0xff] %v5969_v23  ;;  %v5995_v23 = vmul.f32 0.6931472, %v8732_v17  ;;  %v6012_v17 = vmul.f32 0.6931472, %v5680_v28  ;;  %3165 = vlog2.f32 %v5659_v14 }
 0x177   : > { %8719 = vst [vmem:[#allocation136_spill] sm:$0xff] %v5972_v22  ;;  %v5989_v22 = vmul.f32 0.6931472, %v8728_v20  ;;  %v3148_v20 = vpop.eup %3147  ;;  %v6031_v28 = vmul.f32 0.6931472, %v5740_v32  ;;  %3167 = vlog2.f32 %v5662_v44 }
 0x178   : > { %8721 = vst [vmem:[#allocation217_spill] sm:$0xff] %v5975_v40  ;;  %v5992_v40 = vmul.f32 0.6931472, %v8730_v13  ;;  %v6009_v13 = vmul.f32 0.6931472, %v5668_v46  ;;  %3169 = vlog2.f32 %v5665_v7 }
 0x179   : > { %8723 = vst [vmem:[#allocation162_spill] sm:$0xff] %v5979_v39  ;;  %v6055_v16 = vmul.f32 0.6931472, %v5812_v6  ;;  %v6058_v35 = vmul.f32 0.6931472, %v5824_v26  ;;  %3171 = vlog2.f32 %v5671_v34 }
 0x17a   : > { %8725 = vst [vmem:[#allocation137_spill] sm:$0xff] %v5982_v47  ;;  %v5999_v47 = vmul.f32 0.6931472, %v8734_v33  ;;  %v3150_v33 = vpop.eup %3149  ;;  %v6061_v59 = vmul.f32 0.6931472, %v5836_v48  ;;  %3173 = vlog2.f32 %v5674_v2  ;;  %v3573_v2 = vld [vmem:[%s3808_s9 + $0x30] sm:$0xff] }
 0x17b   : > { %8727 = vst [vmem:[#allocation140_spill] sm:$0xff] %v5985_v31  ;;  %v6028_v46 = vpop.eup %3151  ;;  %v6067_v45 = vmul.f32 0.6931472, %v5848_v1  ;;  %v6070_v14 = vmul.f32 0.6931472, %v5860_v30  ;;  %3175 = vlog2.f32 %v5677_v43  ;;  %v3575_v43 = vld [vmem:[%s3808_s9 + $0x40] sm:$0xff] }
 0x17c   : > { %8729 = vst [vmem:[#allocation141_spill] sm:$0xff] %v5989_v22  ;;  %v6040_v51 = vpop.eup %3153  ;;  %v6079_v26 = vmul.f32 0.6931472, %v5884_v11  ;;  %v6082_v44 = vmul.f32 0.6931472, %v5896_v61  ;;  %3177 = vlog2.f32 %v5683_v37 }
 0x17d   : > { %8731 = vst [vmem:[#allocation142_spill] sm:$0xff] %v5992_v40  ;;  %v6052_v32 = vpop.eup %3155  ;;  %v6085_v48 = vmul.f32 0.6931472, %v5908_v63  ;;  %v6091_v30 = vmul.f32 0.6931472, %v5920_v0  ;;  %3179 = vlog2.f32 %v5686_v54 }
 0x17e   : > { %8733 = vst [vmem:[#allocation144_spill] sm:$0xff] %v5995_v23  ;;  %v6064_v52 = vpop.eup %3157  ;;  %v6094_v7 = vmul.f32 0.6931472, %v5932_v12  ;;  %v6103_v61 = vmul.f32 0.6931472, %v5956_v8  ;;  %v3574_v8 = vld [vmem:[%s3808_s9 + $0x38] sm:$0xff]  ;;  %3181 = vlog2.f32 %v5689_v10 }
 0x17f   : > { %8735 = vst [vmem:[#allocation145_spill] sm:$0xff] %v5999_v47  ;;  %v6076_v6 = vpop.eup %3159  ;;  %v6105_v34 = vmul.f32 0.6931472, %v3140_v53  ;;  %v6107_v63 = vmul.f32 0.6931472, %v3142_v38  ;;  %3183 = vlog2.f32 %v5695_v50  ;;  %v8796_v47 = vld [vmem:[#allocation52_spill] sm:$0xff] }
 0x180   : > { %8736 = vst [vmem:[#allocation147_spill] sm:$0xff] %v6002_v36  ;;  %v6088_v1 = vpop.eup %3161  ;;  %v6112_v12 = vmul.f32 0.6931472, %v3144_v25  ;;  %v8770_v25 = vld [vmem:[#allocation26_spill] sm:$0xff]  ;;  %3185 = vlog2.f32 %v5698_v49  ;;  %v3592_v36 = vld [vmem:[%s3808_s9 + $0xc8] sm:$0xff]  ;;  %v3594_v23 = vld [vmem:[%s3808_s9 + $0xd8] sm:$0xff] }
 0x181   : > { %8737 = vst [vmem:[#allocation148_spill] sm:$0xff] %v6005_v15  ;;  %v6100_v11 = vpop.eup %3163  ;;  %v6130_v37 = vmul.f32 %v3575_v43, %v8770_v25  ;;  %3187 = vlog2.f32 %v5701_v18 }
 0x182   : > { %8738 = vst [vmem:[#allocation150_spill] sm:$0xff] %v6009_v13  ;;  %v6110_v0 = vpop.eup %3165  ;;  %3189 = vlog2.f32 %v5707_v55 }
 0x183   : > { %8739 = vst [vmem:[#allocation151_spill] sm:$0xff] %v6012_v17  ;;  %v6123_v38 = vpop.eup %3167  ;;  %3191 = vlog2.f32 %v5710_v4  ;;  %v3590_v17 = vld [vmem:[%s3808_s9 + $0xb8] sm:$0xff] }
 0x184   : > { %8740 = vst [vmem:[#allocation154_spill] sm:$0xff] %v6015_v19  ;;  %v8791_v19 = vld [vmem:[#allocation166_spill] sm:$0xff] }
 0x185   : > { %8741 = vst [vmem:[#allocation157_spill] sm:$0xff] %v6019_v5  ;;  %3193 = vlog2.f32 %v8791_v19 }
 0x186   : > { %8742 = vst [vmem:[#allocation158_spill] sm:$0xff] %v6022_v56  ;;  %3195 = vlog2.f32 %v5719_v21  ;;  %v8799_v21 = vld [vmem:[#allocation54_spill] sm:$0xff] }
 0x187   : > { %8743 = vst [vmem:[#allocation160_spill] sm:$0xff] %v6025_v27  ;;  %v6049_v27 = vmul.f32 0.6931472, %v5800_v60  ;;  %v6073_v60 = vmul.f32 0.6931472, %v5872_v29  ;;  %3197 = vlog2.f32 %v5722_v42  ;;  %v8803_v42 = vld [vmem:[#allocation138_spill] sm:$0xff] }
 0x188   : > { %8744 = vst [vmem:[#allocation163_spill] sm:$0xff] %v6031_v28  ;;  %v6097_v29 = vmul.f32 0.6931472, %v5944_v24  ;;  %v8767_v24 = vld [vmem:[#allocation24_spill] sm:$0xff]  ;;  %v3588_v28 = vld [vmem:[%s3808_s9 + $0xa8] sm:$0xff] }
 0x189   : > { %8745 = vst [vmem:[#allocation164_spill] sm:$0xff] %v6034_v62  ;;  %v6267_v40 = vadd.f32 1e-06, %v8803_v42  ;;  %v3596_v42 = vld [vmem:[%s3808_s9 + $0xe8] sm:$0xff] }
 0x18a   : > { %8746 = vst [vmem:[#allocation218_spill] sm:$0xff] %v6037_v41 }
 0x18b   : > { %8748 = vst [vmem:[#allocation165_spill] sm:$0xff] %v6043_v58  ;;  %v3586_v58 = vld [vmem:[%s3808_s9 + $0x98] sm:$0xff] }
 0x18c   : > { %8749 = vst [vmem:[#allocation219_spill] sm:$0xff] %v6046_v9 }
 0x18d   : > { %8750 = vst [vmem:[#allocation220_spill] sm:$0xff] %v6049_v27 }
 0x18e   : > { %8751 = vst [vmem:[#allocation221_spill] sm:$0xff] %v6055_v16  ;;  %v3584_v16 = vld [vmem:[%s3808_s9 + $0x88] sm:$0xff] }
 0x18f   : > { %8752 = vst [vmem:[#allocation222_spill] sm:$0xff] %v6058_v35 }
 0x190   : > { %8753 = vst [vmem:[#allocation223_spill] sm:$0xff] %v6061_v59 }
 0x191   : > { %8754 = vst [vmem:[#allocation224_spill] sm:$0xff] %v6067_v45  ;;  %v3582_v45 = vld [vmem:[%s3808_s9 + $0x78] sm:$0xff] }
 0x192   : > { %8755 = vst [vmem:[#allocation225_spill] sm:$0xff] %v6070_v14 }
 0x193   : > { %8756 = vst [vmem:[#allocation226_spill] sm:$0xff] %v6073_v60  ;;  %v8777_v60 = vld [vmem:[#allocation34_spill] sm:$0xff] }
 0x194   : > { %8757 = vst [vmem:[#allocation227_spill] sm:$0xff] %v6079_v26  ;;  %v3580_v26 = vld [vmem:[%s3808_s9 + $0x68] sm:$0xff] }
 0x195   : > { %8758 = vst [vmem:[#allocation228_spill] sm:$0xff] %v6082_v44 }
 0x196   : > { %8759 = vst [vmem:[#allocation229_spill] sm:$0xff] %v6085_v48  ;;  %v8774_v48 = vld [vmem:[#allocation30_spill] sm:$0xff] }
 0x197   : > { %8760 = vst [vmem:[#allocation230_spill] sm:$0xff] %v6091_v30  ;;  %v3578_v30 = vld [vmem:[%s3808_s9 + $0x58] sm:$0xff] }
 0x198   : > { %8761 = vst [vmem:[#allocation231_spill] sm:$0xff] %v6094_v7  ;;  %v6136_v7 = vpop.eup %3169  ;;  %v6147_v43 = vmul.f32 %v3578_v30, %v8774_v48  ;;  %v6165_v30 = vmul.f32 0.6931472, %v6028_v46  ;;  %v3583_v46 = vld [vmem:[%s3808_s9 + $0x80] sm:$0xff] }
 0x199   : > { %8762 = vst [vmem:[#allocation232_spill] sm:$0xff] %v6097_v29  ;;  %v6117_v29 = vmul.f32 %v3573_v2, %v8767_v24  ;;  %v6149_v44 = vpop.eup %3171 }
 0x19a   : > { %8763 = vst [vmem:[#allocation233_spill] sm:$0xff] %v6103_v61  ;;  %v8768_v61 = vld [vmem:[#allocation25_spill] sm:$0xff]  ;;  %v6162_v14 = vpop.eup %3173 }
 0x19b   : > { %8764 = vst [vmem:[#allocation234_spill] sm:$0xff] %v6105_v34  ;;  %v6121_v53 = vmul.f32 %v3574_v8, %v8768_v61  ;;  %v8771_v34 = vld [vmem:[#allocation28_spill] sm:$0xff]  ;;  %v6138_v8 = vmul.f32 0.6931472, %v3148_v20  ;;  %v3579_v20 = vld [vmem:[%s3808_s9 + $0x60] sm:$0xff]  ;;  %v6176_v35 = vpop.eup %3175 }
 0x19c   : > { %8765 = vst [vmem:[#allocation235_spill] sm:$0xff] %v6107_v63  ;;  %v6125_v63 = vmul.f32 0.6931472, %v3146_v57  ;;  %v3577_v57 = vld [vmem:[%s3808_s9 + $0x50] sm:$0xff]  ;;  %v6190_v9 = vpop.eup %3177 }
 0x19d   : > { %8766 = vst [vmem:[#allocation236_spill] sm:$0xff] %v6112_v12  ;;  %v3576_v12 = vld [vmem:[%s3808_s9 + $0x48] sm:$0xff]  ;;  %v6204_v62 = vpop.eup %3179 }
 0x19e   : > { %8769 = vst [vmem:[#allocation237_spill] sm:$0xff] %v6125_v63  ;;  %v6134_v2 = vmul.f32 %v3576_v12, %v8771_v34  ;;  %v8773_v63 = vld [vmem:[#allocation29_spill] sm:$0xff]  ;;  %v6151_v12 = vmul.f32 0.6931472, %v3150_v33  ;;  %v3581_v33 = vld [vmem:[%s3808_s9 + $0x70] sm:$0xff]  ;;  %v6218_v5 = vpop.eup %3181 }
 0x19f   : > { %8772 = vst [vmem:[#allocation26_spill] sm:$0xff] %v6138_v8  ;;  %v6143_v54 = vmul.f32 %v3577_v57, %v8773_v63  ;;  %v8776_v8 = vld [vmem:[#allocation31_spill] sm:$0xff]  ;;  %v6160_v57 = vmul.f32 %v3580_v26, %v8777_v60  ;;  %v6179_v26 = vmul.f32 0.6931472, %v6040_v51  ;;  %v3585_v51 = vld [vmem:[%s3808_s9 + $0x90] sm:$0xff]  ;;  %v6232_v15 = vpop.eup %3183 }
 0x1a0   : > { %8775 = vst [vmem:[#allocation28_spill] sm:$0xff] %v6151_v12  ;;  %v6156_v10 = vmul.f32 %v3579_v20, %v8776_v8  ;;  %v8779_v12 = vld [vmem:[#allocation35_spill] sm:$0xff]  ;;  %v8780_v20 = vld [vmem:[#allocation36_spill] sm:$0xff] }
 0x1a1   : > { %8778 = vst [vmem:[#allocation29_spill] sm:$0xff] %v6165_v30  ;;  %v6170_v50 = vmul.f32 %v3581_v33, %v8779_v12  ;;  %v6174_v59 = vmul.f32 %v3582_v45, %v8780_v20  ;;  %v8782_v30 = vld [vmem:[#allocation37_spill] sm:$0xff]  ;;  %v8783_v33 = vld [vmem:[#allocation40_spill] sm:$0xff]  ;;  %v6193_v45 = vmul.f32 0.6931472, %v6052_v32  ;;  %v3587_v32 = vld [vmem:[%s3808_s9 + $0xa0] sm:$0xff] }
 0x1a2   : > { %8781 = vst [vmem:[#allocation238_spill] sm:$0xff] %v6179_v26  ;;  %v6184_v49 = vmul.f32 %v3583_v46, %v8782_v30  ;;  %v6188_v27 = vmul.f32 %v3584_v16, %v8783_v33  ;;  %v8785_v26 = vld [vmem:[#allocation41_spill] sm:$0xff]  ;;  %v8786_v46 = vld [vmem:[#allocation42_spill] sm:$0xff]  ;;  %v6207_v16 = vmul.f32 0.6931472, %v6064_v52  ;;  %v3589_v52 = vld [vmem:[%s3808_s9 + $0xb0] sm:$0xff] }
 0x1a3   : > { %8784 = vst [vmem:[#allocation239_spill] sm:$0xff] %v6193_v45  ;;  %v6198_v18 = vmul.f32 %v3585_v51, %v8785_v26  ;;  %v6202_v41 = vmul.f32 %v3586_v58, %v8786_v46  ;;  %v8788_v45 = vld [vmem:[#allocation43_spill] sm:$0xff]  ;;  %v8789_v51 = vld [vmem:[#allocation45_spill] sm:$0xff]  ;;  %v6221_v58 = vmul.f32 0.6931472, %v6076_v6  ;;  %v3591_v6 = vld [vmem:[%s3808_s9 + $0xc0] sm:$0xff] }
 0x1a4   : > { %8787 = vst [vmem:[#allocation240_spill] sm:$0xff] %v6207_v16  ;;  %v6212_v55 = vmul.f32 %v3587_v32, %v8788_v45  ;;  %v6216_v56 = vmul.f32 %v3588_v28, %v8789_v51  ;;  %v8792_v16 = vld [vmem:[#allocation46_spill] sm:$0xff]  ;;  %v8793_v32 = vld [vmem:[#allocation47_spill] sm:$0xff]  ;;  %v6235_v28 = vmul.f32 0.6931472, %v6088_v1  ;;  %v8798_v1 = vld [vmem:[#allocation53_spill] sm:$0xff]  ;;  %v6256_v51 = vmul.f32 %v3594_v23, %v8799_v21 }
 0x1a5   : > { %8790 = vst [vmem:[#allocation241_spill] sm:$0xff] %v6221_v58  ;;  %v6226_v4 = vmul.f32 %v3589_v52, %v8792_v16  ;;  %v6230_v13 = vmul.f32 %v3590_v17, %v8793_v32  ;;  %v8795_v58 = vld [vmem:[#allocation48_spill] sm:$0xff]  ;;  %v6244_v52 = vmul.f32 %v3592_v36, %v8796_v47  ;;  %v3186_v16 = vpop.eup %3185  ;;  %v6247_v17 = vmul.f32 0.6931472, %v6100_v11  ;;  %v8801_v36 = vld [vmem:[#allocation167_spill] sm:$0xff]  ;;  %v3595_v47 = vld [vmem:[%s3808_s9 + $0xe0] sm:$0xff] }
 0x1a6   : > { %8794 = vst [vmem:[#allocation166_spill] sm:$0xff] %v6235_v28  ;;  %v6240_v19 = vmul.f32 %v3591_v6, %v8795_v58  ;;  %v3593_v32 = vld [vmem:[%s3808_s9 + $0xd0] sm:$0xff]  ;;  %v3188_v6 = vpop.eup %3187  ;;  %v6259_v58 = vmul.f32 0.6931472, %v6110_v0  ;;  %3199 = vlog2.f32 %v8801_v36  ;;  %v8802_v11 = vld [vmem:[#allocation55_spill] sm:$0xff]  ;;  %v8809_v45 = vld [vmem:[#allocation58_spill] sm:$0xff] }
 0x1a7   : > { %8797 = vst [vmem:[#allocation242_spill] sm:$0xff] %v6247_v17  ;;  %v6252_v28 = vmul.f32 %v3593_v32, %v8798_v1  ;;  %v6264_v17 = vmul.f32 %v3595_v47, %v8802_v11  ;;  %v3190_v32 = vpop.eup %3189  ;;  %v6270_v1 = vmul.f32 0.6931472, %v6123_v38  ;;  %3201 = vlog2.f32 %v5731_v3  ;;  %v8805_v23 = vld [vmem:[#allocation139_spill] sm:$0xff]  ;;  %v8808_v11 = vld [vmem:[#allocation168_spill] sm:$0xff]  ;;  %v8810_v38 = vld [vmem:[#allocation146_spill] sm:$0xff] }
 0x1a8   : > { %8800 = vst [vmem:[#allocation243_spill] sm:$0xff] %v6259_v58  ;;  %v6274_v21 = vadd.f32 1e-06, %v8805_v23  ;;  %v8806_v0 = vld [vmem:[#allocation143_spill] sm:$0xff]  ;;  %v3192_v36 = vpop.eup %3191  ;;  %v6280_v47 = vmul.f32 0.6931472, %v6136_v7  ;;  %3203 = vlog2.f32 %v8808_v11  ;;  %v6285_v22 = vmul.f32 %v3596_v42, %v8809_v45 }
 0x1a9   : > { %8804 = vst [vmem:[#allocation167_spill] sm:$0xff] %v6270_v1  ;;  %v6277_v58 = vadd.f32 1e-06, %v8806_v0  ;;  %v6288_v1 = vadd.f32 1e-06, %v8810_v38  ;;  %v3194_v3 = vpop.eup %3193  ;;  %v8812_v46 = vld [vmem:[#allocation169_spill] sm:$0xff] }
 0x1aa   : > { %8807 = vst [vmem:[#allocation138_spill] sm:$0xff] %v6280_v47  ;;  %v6291_v23 = vmul.f32 0.6931472, %v6149_v44  ;;  %3205 = vlog2.f32 %v8812_v46  ;;  %v8813_v0 = vld [vmem:[#allocation149_spill] sm:$0xff]  ;;  %v8814_v7 = vld [vmem:[#allocation156_spill] sm:$0xff]  ;;  %v3196_v11 = vpop.eup %3195  ;;  %v8816_v45 = vld [vmem:[#allocation170_spill] sm:$0xff] }
 0x1ab   : > { %v6295_v31 = vadd.f32 1e-06, %v8813_v0  ;;  %v6298_v47 = vadd.f32 1e-06, %v8814_v7  ;;  %v6301_v42 = vmul.f32 0.6931472, %v6162_v14  ;;  %3207 = vlog2.f32 %v8816_v45  ;;  %v3198_v46 = vpop.eup %3197 }
 0x1ac   : > { %8811 = vst [vmem:[#allocation139_spill] sm:$0xff] %v6291_v23  ;;  %v3597_v38 = vld [vmem:[%s3808_s9 + $0xf0] sm:$0xff]  ;;  %v8817_v26 = vld [vmem:[#allocation59_spill] sm:$0xff]  ;;  %v6309_v44 = vadd.f32 1e-06, %v6117_v29  ;;  %v3200_v45 = vpop.eup %3199  ;;  %v3598_v29 = vld [vmem:[%s3808_s9 + $0xf8] sm:$0xff] }
 0x1ad   : > { %8815 = vst [vmem:[#allocation143_spill] sm:$0xff] %v6301_v42  ;;  %v6306_v33 = vmul.f32 %v3597_v38, %v8817_v26  ;;  %v6312_v0 = vmul.f32 0.6931472, %v6176_v35  ;;  %v8819_v23 = vld [vmem:[#allocation171_spill] sm:$0xff]  ;;  %v6316_v7 = vadd.f32 1e-06, %v6121_v53 }
 0x1ae   : > { %3209 = vlog2.f32 %v8819_v23  ;;  %v6319_v14 = vadd.f32 1e-06, %v6130_v37  ;;  %v6322_v38 = vmul.f32 0.6931472, %v6190_v9  ;;  %v8822_v42 = vld [vmem:[#allocation172_spill] sm:$0xff]  ;;  %v8823_v26 = vld [vmem:[#allocation2_spill] sm:$0xff]  ;;  %v3202_v23 = vpop.eup %3201 }
 0x1af   : > { %8818 = vst [vmem:[#allocation168_spill] sm:$0xff] %v6312_v0  ;;  %3211 = vlog2.f32 %v8822_v42  ;;  %v6327_v39 = vmul.f32 %v3598_v29, %v8823_v26  ;;  %v6330_v35 = vadd.f32 1e-06, %v6134_v2  ;;  %v6333_v53 = vmul.f32 0.6931472, %v6204_v62  ;;  %v8826_v0 = vld [vmem:[#allocation173_spill] sm:$0xff]  ;;  %v3204_v42 = vpop.eup %3203 }
 0x1b0   : > { %8820 = vst [vmem:[#allocation146_spill] sm:$0xff] %v6319_v14  ;;  %3213 = vlog2.f32 %v8826_v0  ;;  %v6337_v37 = vadd.f32 1e-06, %v6143_v54  ;;  %v6340_v9 = vadd.f32 1e-06, %v6147_v43  ;;  %v3599_v2 = vld [vmem:[%s3808_s9 + $0x100] sm:$0xff]  ;;  %v3206_v0 = vpop.eup %3205 }
 0x1b1   : > { %8821 = vst [vmem:[#allocation169_spill] sm:$0xff] %v6322_v38  ;;  %v6343_v29 = vmul.f32 0.6931472, %v6218_v5  ;;  %v8830_v38 = vld [vmem:[#allocation174_spill] sm:$0xff]  ;;  %v8831_v26 = vld [vmem:[#allocation3_spill] sm:$0xff] }
 0x1b2   : > { %8824 = vst [vmem:[#allocation149_spill] sm:$0xff] %v6330_v35  ;;  %3215 = vlog2.f32 %v8830_v38  ;;  %v6348_v30 = vmul.f32 %v3599_v2, %v8831_v26  ;;  %v6351_v62 = vadd.f32 1e-06, %v6156_v10  ;;  %v6354_v54 = vmul.f32 0.6931472, %v6232_v15  ;;  %v3208_v38 = vpop.eup %3207  ;;  %v8838_v2 = vld [vmem:[#allocation176_spill] sm:$0xff] }
 0x1b3   : > { %8825 = vst [vmem:[#allocation156_spill] sm:$0xff] %v6333_v53  ;;  %v8834_v53 = vld [vmem:[#allocation175_spill] sm:$0xff]  ;;  %v6358_v43 = vadd.f32 1e-06, %v6160_v57  ;;  %v6361_v5 = vadd.f32 1e-06, %v6170_v50 }
 0x1b4   : > { %8827 = vst [vmem:[#allocation170_spill] sm:$0xff] %v6337_v37  ;;  %3217 = vlog2.f32 %v8834_v53  ;;  %v3600_v10 = vld [vmem:[%s3808_s9 + $0x108] sm:$0xff]  ;;  %v8839_v26 = vld [vmem:[#allocation60_spill] sm:$0xff]  ;;  %v6371_v15 = vadd.f32 1e-06, %v6174_v59  ;;  %v3210_v53 = vpop.eup %3209  ;;  %v8842_v57 = vld [vmem:[#allocation177_spill] sm:$0xff] }
 0x1b5   : > { %8828 = vst [vmem:[#allocation171_spill] sm:$0xff] %v6340_v9  ;;  %3219 = vlog2.f32 %v8838_v2  ;;  %v6368_v20 = vmul.f32 %v3600_v10, %v8839_v26  ;;  %v6377_v50 = vadd.f32 1e-06, %v6184_v49  ;;  %v3212_v2 = vpop.eup %3211  ;;  %v8846_v10 = vld [vmem:[#allocation178_spill] sm:$0xff]  ;;  %v3601_v26 = vld [vmem:[%s3808_s9 + $0x110] sm:$0xff]  ;;  %v8847_v59 = vld [vmem:[#allocation61_spill] sm:$0xff] }
 0x1b6   : > { %8829 = vst [vmem:[#allocation172_spill] sm:$0xff] %v6343_v29  ;;  %v6363_v29 = vmul.f32 0.6931472, %v3186_v16  ;;  %3221 = vlog2.f32 %v8842_v57  ;;  %v6380_v16 = vadd.f32 1e-06, %v6188_v27  ;;  %v6387_v12 = vmul.f32 %v3601_v26, %v8847_v59  ;;  %v3214_v57 = vpop.eup %3213  ;;  %v8850_v49 = vld [vmem:[#allocation179_spill] sm:$0xff] }
 0x1b7   : > { %8832 = vst [vmem:[#allocation173_spill] sm:$0xff] %v6351_v62  ;;  %3223 = vlog2.f32 %v8846_v10  ;;  %v6396_v27 = vadd.f32 1e-06, %v6202_v41  ;;  %v8854_v26 = vld [vmem:[#allocation180_spill] sm:$0xff]  ;;  %v3602_v59 = vld [vmem:[%s3808_s9 + $0x118] sm:$0xff]  ;;  %v8959_v60 = vld [vmem:[#allocation203_spill] sm:$0xff] }
 0x1b8   : > { %8833 = vst [vmem:[#allocation174_spill] sm:$0xff] %v6354_v54  ;;  %v6373_v54 = vmul.f32 0.6931472, %v3188_v6  ;;  %v6390_v6 = vadd.f32 1e-06, %v6198_v18  ;;  %3225 = vlog2.f32 %v8850_v49  ;;  %v3216_v10 = vpop.eup %3215  ;;  %v8855_v18 = vld [vmem:[#allocation4_spill] sm:$0xff] }
 0x1b9   : > { %8835 = vst [vmem:[#allocation175_spill] sm:$0xff] %v6358_v43  ;;  %3227 = vlog2.f32 %v8854_v26  ;;  %v8858_v41 = vld [vmem:[#allocation181_spill] sm:$0xff]  ;;  %v8969_v62 = vld [vmem:[#allocation8_spill] sm:$0xff] }
 0x1ba   : > { %8836 = vst [vmem:[#allocation244_spill] sm:$0xff] %v6361_v5  ;;  %v3218_v49 = vpop.eup %3217  ;;  %3229 = vlog2.f32 %v8858_v41  ;;  %v8961_v5 = vld [vmem:[#allocation81_spill] sm:$0xff] }
 0x1bb   : > { %8837 = vst [vmem:[#allocation245_spill] sm:$0xff] %v6363_v29  ;;  %v6382_v29 = vmul.f32 0.6931472, %v3190_v32  ;;  %v6399_v32 = vadd.f32 1e-06, %v6212_v55  ;;  %v3220_v26 = vpop.eup %3219 }
 0x1bc   : > { %8840 = vst [vmem:[#allocation176_spill] sm:$0xff] %v6371_v15  ;;  %v6415_v55 = vadd.f32 1e-06, %v6226_v4  ;;  %v3222_v41 = vpop.eup %3221  ;;  %v6430_v4 = vmul.f32 0.6931472, %v3200_v45 }
 0x1bd   : > { %8841 = vst [vmem:[#allocation246_spill] sm:$0xff] %v6373_v54  ;;  %v6392_v54 = vmul.f32 0.6931472, %v3192_v36  ;;  %v6409_v36 = vadd.f32 1e-06, %v6216_v56  ;;  %v8863_v56 = vld [vmem:[#allocation5_spill] sm:$0xff] }
 0x1be   : > { %8843 = vst [vmem:[#allocation177_spill] sm:$0xff] %v6377_v50  ;;  %v6446_v45 = vadd.f32 1e-06, %v6252_v28  ;;  %v8879_v28 = vld [vmem:[#allocation186_spill] sm:$0xff] }
 0x1bf   : > { %8844 = vst [vmem:[#allocation247_spill] sm:$0xff] %v6380_v16  ;;  %v8955_v16 = vld [vmem:[#allocation202_spill] sm:$0xff] }
 0x1c0   : > { %8845 = vst [vmem:[#allocation248_spill] sm:$0xff] %v6382_v29  ;;  %v6401_v29 = vmul.f32 0.6931472, %v3194_v3  ;;  %v6418_v3 = vadd.f32 1e-06, %v6230_v13  ;;  %v8867_v13 = vld [vmem:[#allocation183_spill] sm:$0xff] }
 0x1c1   : > { %8848 = vst [vmem:[#allocation178_spill] sm:$0xff] %v6390_v6  ;;  %v6406_v6 = vmul.f32 %v3602_v59, %v8855_v18  ;;  %v8862_v59 = vld [vmem:[#allocation182_spill] sm:$0xff] }
 0x1c2   : > { %8849 = vst [vmem:[#allocation249_spill] sm:$0xff] %v6392_v54  ;;  %v6411_v54 = vmul.f32 0.6931472, %v3196_v11  ;;  %3231 = vlog2.f32 %v8862_v59  ;;  %v3603_v18 = vld [vmem:[%s3808_s9 + $0x120] sm:$0xff]  ;;  %v6428_v11 = vadd.f32 1e-06, %v6240_v19 }
 0x1c3   : > { %8851 = vst [vmem:[#allocation179_spill] sm:$0xff] %v6396_v27  ;;  %3233 = vlog2.f32 %v8867_v13  ;;  %v6438_v59 = vmul.f32 0.6931472, %v3204_v42  ;;  %v8874_v13 = vld [vmem:[#allocation185_spill] sm:$0xff]  ;;  %v6456_v42 = vadd.f32 1e-06, %v6256_v51 }
 0x1c4   : > { %8852 = vst [vmem:[#allocation250_spill] sm:$0xff] %v6399_v32  ;;  %v6473_v51 = vadd.f32 1e-06, %v6264_v17  ;;  %v3608_v17 = vld [vmem:[%s3808_s9 + $0x148] sm:$0xff] }
 0x1c5   : > { %8853 = vst [vmem:[#allocation251_spill] sm:$0xff] %v6401_v29  ;;  %v6420_v29 = vmul.f32 0.6931472, %v3198_v46  ;;  %v6436_v46 = vadd.f32 1e-06, %v6244_v52  ;;  %v3605_v52 = vld [vmem:[%s3808_s9 + $0x130] sm:$0xff] }
 0x1c6   : > { %8856 = vst [vmem:[#allocation180_spill] sm:$0xff] %v6409_v36  ;;  %v6425_v36 = vmul.f32 %v3603_v18, %v8863_v56  ;;  %v8870_v18 = vld [vmem:[#allocation184_spill] sm:$0xff]  ;;  %v3604_v56 = vld [vmem:[%s3808_s9 + $0x128] sm:$0xff] }
 0x1c7   : > { %8857 = vst [vmem:[#allocation252_spill] sm:$0xff] %v6411_v54  ;;  %v6432_v54 = vmul.f32 0.6931472, %v3202_v23  ;;  %3235 = vlog2.f32 %v8870_v18  ;;  %v8953_v32 = vld [vmem:[#allocation7_spill] sm:$0xff] }
 0x1c8   : > { %8859 = vst [vmem:[#allocation181_spill] sm:$0xff] %v6415_v55  ;;  %3237 = vlog2.f32 %v8874_v13 }
 0x1c9   : > { %8860 = vst [vmem:[#allocation253_spill] sm:$0xff] %v6418_v3  ;;  %v8871_v3 = vld [vmem:[#allocation62_spill] sm:$0xff]  ;;  %3239 = vlog2.f32 %v8879_v28  ;;  %v8886_v28 = vld [vmem:[#allocation188_spill] sm:$0xff] }
 0x1ca   : > { %8861 = vst [vmem:[#allocation254_spill] sm:$0xff] %v6420_v29  ;;  %v3224_v29 = vpop.eup %3223  ;;  %v6443_v19 = vmul.f32 %v3604_v56, %v8871_v3  ;;  %v6460_v56 = vmul.f32 0.6931472, %v3210_v53  ;;  %v3606_v3 = vld [vmem:[%s3808_s9 + $0x138] sm:$0xff]  ;;  %v6475_v53 = vmul.f32 0.6931472, %v3216_v10 }
 0x1cb   : > { %8864 = vst [vmem:[#allocation182_spill] sm:$0xff] %v6428_v11  ;;  %v3226_v23 = vpop.eup %3225  ;;  %v6493_v10 = vadd.f32 1e-06, %v6306_v33  ;;  %v6510_v33 = vadd.f32 1e-06, %v6327_v39  ;;  %v3611_v39 = vld [vmem:[%s3808_s9 + $0x160] sm:$0xff] }
 0x1cc   : > { %8865 = vst [vmem:[#allocation255_spill] sm:$0xff] %v6430_v4  ;;  %v8875_v4 = vld [vmem:[#allocation63_spill] sm:$0xff]  ;;  %v3228_v18 = vpop.eup %3227  ;;  %v8948_v11 = vld [vmem:[#allocation76_spill] sm:$0xff] }
 0x1cd   : > { %8866 = vst [vmem:[#allocation256_spill] sm:$0xff] %v6432_v54  ;;  %v6448_v54 = vmul.f32 0.6931472, %v3206_v0  ;;  %v8880_v0 = vld [vmem:[#allocation9_spill] sm:$0xff]  ;;  %v3230_v13 = vpop.eup %3229 }
 0x1ce   : > { %8868 = vst [vmem:[#allocation183_spill] sm:$0xff] %v6436_v46  ;;  %v6453_v46 = vmul.f32 %v3605_v52, %v8875_v4  ;;  %v6469_v52 = vmul.f32 0.6931472, %v3214_v57  ;;  %v8883_v4 = vld [vmem:[#allocation187_spill] sm:$0xff] }
 0x1cf   : > { %8869 = vst [vmem:[#allocation257_spill] sm:$0xff] %v6438_v59  ;;  %v6458_v59 = vmul.f32 0.6931472, %v3208_v38  ;;  %3241 = vlog2.f32 %v8883_v4  ;;  %v3232_v38 = vpop.eup %3231  ;;  %v8890_v4 = vld [vmem:[#allocation152_spill] sm:$0xff] }
 0x1d0   : > { %8872 = vst [vmem:[#allocation184_spill] sm:$0xff] %v6446_v45  ;;  %v6467_v45 = vmul.f32 0.6931472, %v3212_v2  ;;  %3243 = vlog2.f32 %v8886_v28  ;;  %v6483_v2 = vadd.f32 1e-06, %v6285_v22  ;;  %v3234_v57 = vpop.eup %3233  ;;  %v8895_v22 = vld [vmem:[#allocation189_spill] sm:$0xff] }
 0x1d1   : > { %8873 = vst [vmem:[#allocation258_spill] sm:$0xff] %v6448_v54  ;;  %v6465_v54 = vmul.f32 %v3606_v3, %v8880_v0  ;;  %3245 = vlog2.f32 %v8890_v4  ;;  %v3236_v28 = vpop.eup %3235 }
 0x1d2   : > { %8876 = vst [vmem:[#allocation185_spill] sm:$0xff] %v6456_v42  ;;  %3247 = vlog2.f32 %v8895_v22  ;;  %v3238_v4 = vpop.eup %3237  ;;  %v8902_v22 = vld [vmem:[#allocation191_spill] sm:$0xff] }
 0x1d3   : > { %8877 = vst [vmem:[#allocation259_spill] sm:$0xff] %v6458_v59  ;;  %v8887_v59 = vld [vmem:[#allocation10_spill] sm:$0xff] }
 0x1d4   : > { %8878 = vst [vmem:[#allocation260_spill] sm:$0xff] %v6460_v56  ;;  %v3607_v56 = vld [vmem:[%s3808_s9 + $0x140] sm:$0xff] }
 0x1d5   : > { %8881 = vst [vmem:[#allocation186_spill] sm:$0xff] %v6467_v45  ;;  %v6480_v3 = vmul.f32 %v3607_v56, %v8887_v59  ;;  %v8891_v45 = vld [vmem:[#allocation64_spill] sm:$0xff]  ;;  %v6497_v56 = vmul.f32 0.6931472, %v3222_v41  ;;  %v6512_v41 = vmul.f32 0.6931472, %v3228_v18 }
 0x1d6   : > { %8882 = vst [vmem:[#allocation261_spill] sm:$0xff] %v6469_v52  ;;  %v6485_v52 = vmul.f32 0.6931472, %v3218_v49  ;;  %v6490_v0 = vmul.f32 %v3608_v17, %v8891_v45  ;;  %v3609_v59 = vld [vmem:[%s3808_s9 + $0x150] sm:$0xff]  ;;  %v8896_v49 = vld [vmem:[#allocation65_spill] sm:$0xff]  ;;  %v8899_v45 = vld [vmem:[#allocation190_spill] sm:$0xff] }
 0x1d7   : > { %8884 = vst [vmem:[#allocation187_spill] sm:$0xff] %v6473_v51  ;;  %v6506_v17 = vmul.f32 0.6931472, %v3226_v23  ;;  %3249 = vlog2.f32 %v8899_v45  ;;  %v8906_v45 = vld [vmem:[#allocation153_spill] sm:$0xff]  ;;  %v6530_v18 = vadd.f32 1e-06, %v6368_v20 }
 0x1d8   : > { %8885 = vst [vmem:[#allocation262_spill] sm:$0xff] %v6475_v53  ;;  %v6495_v53 = vmul.f32 0.6931472, %v3220_v26  ;;  %v3240_v26 = vpop.eup %3239  ;;  %3251 = vlog2.f32 %v8902_v22  ;;  %v6547_v20 = vadd.f32 1e-06, %v6387_v12  ;;  %v3614_v12 = vld [vmem:[%s3808_s9 + $0x178] sm:$0xff] }
 0x1d9   : > { %8888 = vst [vmem:[#allocation188_spill] sm:$0xff] %v6483_v2  ;;  %v6504_v2 = vmul.f32 0.6931472, %v3224_v29  ;;  %v6520_v29 = vadd.f32 1e-06, %v6348_v30  ;;  %v3242_v23 = vpop.eup %3241  ;;  %3253 = vlog2.f32 %v8906_v45  ;;  %v8911_v30 = vld [vmem:[#allocation192_spill] sm:$0xff] }
 0x1da   : > { %8889 = vst [vmem:[#allocation263_spill] sm:$0xff] %v6485_v52  ;;  %v6502_v52 = vmul.f32 %v3609_v59, %v8896_v49  ;;  %v3244_v22 = vpop.eup %3243  ;;  %3255 = vlog2.f32 %v8911_v30  ;;  %v8918_v30 = vld [vmem:[#allocation194_spill] sm:$0xff] }
 0x1db   : > { %8892 = vst [vmem:[#allocation152_spill] sm:$0xff] %v6493_v10  ;;  %v3246_v45 = vpop.eup %3245  ;;  %v8944_v51 = vld [vmem:[#allocation74_spill] sm:$0xff] }
 0x1dc   : > { %8893 = vst [vmem:[#allocation264_spill] sm:$0xff] %v6495_v53  ;;  %v8903_v53 = vld [vmem:[#allocation66_spill] sm:$0xff] }
 0x1dd   : > { %8894 = vst [vmem:[#allocation265_spill] sm:$0xff] %v6497_v56  ;;  %v3610_v56 = vld [vmem:[%s3808_s9 + $0x158] sm:$0xff] }
 0x1de   : > { %8897 = vst [vmem:[#allocation189_spill] sm:$0xff] %v6504_v2  ;;  %v6517_v59 = vmul.f32 %v3610_v56, %v8903_v53  ;;  %v8907_v2 = vld [vmem:[#allocation14_spill] sm:$0xff]  ;;  %v6534_v56 = vmul.f32 0.6931472, %v3234_v57  ;;  %v3612_v53 = vld [vmem:[%s3808_s9 + $0x168] sm:$0xff] }
 0x1df   : > { %8898 = vst [vmem:[#allocation266_spill] sm:$0xff] %v6506_v17  ;;  %v6522_v17 = vmul.f32 0.6931472, %v3230_v13  ;;  %v6527_v49 = vmul.f32 %v3611_v39, %v8907_v2  ;;  %v8912_v13 = vld [vmem:[#allocation15_spill] sm:$0xff]  ;;  %v6543_v39 = vmul.f32 0.6931472, %v3238_v4 }
 0x1e0   : > { %8900 = vst [vmem:[#allocation190_spill] sm:$0xff] %v6510_v33  ;;  %v8915_v2 = vld [vmem:[#allocation193_spill] sm:$0xff]  ;;  %v6549_v57 = vmul.f32 0.6931472, %v3240_v26  ;;  %v8940_v33 = vld [vmem:[#allocation72_spill] sm:$0xff] }
 0x1e1   : > { %8901 = vst [vmem:[#allocation267_spill] sm:$0xff] %v6512_v41  ;;  %v6532_v41 = vmul.f32 0.6931472, %v3232_v38  ;;  %3257 = vlog2.f32 %v8915_v2  ;;  %v3248_v38 = vpop.eup %3247  ;;  %v8922_v2 = vld [vmem:[#allocation195_spill] sm:$0xff] }
 0x1e2   : > { %8904 = vst [vmem:[#allocation191_spill] sm:$0xff] %v6520_v29  ;;  %v6541_v29 = vmul.f32 0.6931472, %v3236_v28  ;;  %3259 = vlog2.f32 %v8918_v30  ;;  %v6557_v28 = vadd.f32 1e-06, %v6406_v6  ;;  %v3250_v4 = vpop.eup %3249 }
 0x1e3   : > { %8905 = vst [vmem:[#allocation268_spill] sm:$0xff] %v6522_v17  ;;  %v6539_v17 = vmul.f32 %v3612_v53, %v8912_v13  ;;  %3261 = vlog2.f32 %v8922_v2  ;;  %v6567_v30 = vadd.f32 1e-06, %v6425_v36  ;;  %v6571_v6 = vmul.f32 0.6931472, %v3246_v45  ;;  %v3616_v36 = vld [vmem:[%s3808_s9 + $0x188] sm:$0xff] }
 0x1e4   : > { %8908 = vst [vmem:[#allocation153_spill] sm:$0xff] %v6530_v18  ;;  %v3617_v45 = vld [vmem:[%s3808_s9 + $0x190] sm:$0xff] }
 0x1e5   : > { %8909 = vst [vmem:[#allocation269_spill] sm:$0xff] %v6532_v41  ;;  %v8919_v41 = vld [vmem:[#allocation67_spill] sm:$0xff] }
 0x1e6   : > { %8910 = vst [vmem:[#allocation270_spill] sm:$0xff] %v6534_v56  ;;  %v3613_v56 = vld [vmem:[%s3808_s9 + $0x170] sm:$0xff] }
 0x1e7   : > { %8913 = vst [vmem:[#allocation192_spill] sm:$0xff] %v6541_v29  ;;  %v6554_v53 = vmul.f32 %v3613_v56, %v8919_v41  ;;  %v8923_v29 = vld [vmem:[#allocation68_spill] sm:$0xff]  ;;  %v6569_v56 = vmul.f32 0.6931472, %v3244_v22 }
 0x1e8   : > { %8914 = vst [vmem:[#allocation271_spill] sm:$0xff] %v6543_v39  ;;  %v6559_v39 = vmul.f32 0.6931472, %v3242_v23  ;;  %v6564_v26 = vmul.f32 %v3614_v12, %v8923_v29  ;;  %v8927_v41 = vld [vmem:[#allocation196_spill] sm:$0xff]  ;;  %v3615_v23 = vld [vmem:[%s3808_s9 + $0x180] sm:$0xff]  ;;  %v8930_v12 = vld [vmem:[#allocation197_spill] sm:$0xff] }
 0x1e9   : > { %8916 = vst [vmem:[#allocation193_spill] sm:$0xff] %v6547_v20  ;;  %3263 = vlog2.f32 %v8927_v41  ;;  %v8931_v29 = vld [vmem:[#allocation69_spill] sm:$0xff]  ;;  %v8936_v20 = vld [vmem:[#allocation18_spill] sm:$0xff] }
 0x1ea   : > { %8917 = vst [vmem:[#allocation272_spill] sm:$0xff] %v6549_v57  ;;  %v3252_v57 = vpop.eup %3251  ;;  %3265 = vlog2.f32 %v8930_v12  ;;  %v6583_v22 = vmul.f32 %v3616_v36, %v8931_v29  ;;  %v3619_v12 = vld [vmem:[%s3808_s9 + $0x1a0] sm:$0xff] }
 0x1eb   : > { %8920 = vst [vmem:[#allocation194_spill] sm:$0xff] %v6557_v28  ;;  %v3254_v2 = vpop.eup %3253  ;;  %v6578_v28 = vmul.f32 0.6931472, %v3248_v38  ;;  %v3618_v38 = vld [vmem:[%s3808_s9 + $0x198] sm:$0xff]  ;;  %v6598_v18 = vmul.f32 %v3619_v12, %v8936_v20  ;;  %v6600_v29 = vmul.f32 0.6931472, %v3252_v57 }
 0x1ec   : > { %8921 = vst [vmem:[#allocation273_spill] sm:$0xff] %v6559_v39  ;;  %v8928_v39 = vld [vmem:[#allocation16_spill] sm:$0xff]  ;;  %v3256_v41 = vpop.eup %3255  ;;  %v8942_v12 = vld [vmem:[#allocation199_spill] sm:$0xff]  ;;  %v3622_v57 = vld [vmem:[%s3808_s9 + $0x1b8] sm:$0xff] }
 0x1ed   : > { %8924 = vst [vmem:[#allocation195_spill] sm:$0xff] %v6567_v30  ;;  %v6576_v13 = vmul.f32 %v3615_v23, %v8928_v39  ;;  %v6589_v30 = vmul.f32 0.6931472, %v3250_v4  ;;  %v8934_v23 = vld [vmem:[#allocation155_spill] sm:$0xff]  ;;  %v3258_v36 = vpop.eup %3257 }
 0x1ee   : > { %8925 = vst [vmem:[#allocation274_spill] sm:$0xff] %v6569_v56  ;;  %3267 = vlog2.f32 %v8934_v23  ;;  %v3620_v4 = vld [vmem:[%s3808_s9 + $0x1a8] sm:$0xff]  ;;  %v3621_v23 = vld [vmem:[%s3808_s9 + $0x1b0] sm:$0xff] }
 0x1ef   : > { %8926 = vst [vmem:[#allocation275_spill] sm:$0xff] %v6571_v6  ;;  %v8932_v6 = vld [vmem:[#allocation70_spill] sm:$0xff]  ;;  %v6609_v10 = vmul.f32 %v3621_v23, %v8940_v33  ;;  %v8946_v23 = vld [vmem:[#allocation200_spill] sm:$0xff] }
 0x1f0   : > { %8929 = vst [vmem:[#allocation196_spill] sm:$0xff] %v6578_v28  ;;  %v6587_v56 = vmul.f32 %v3617_v45, %v8932_v6  ;;  %v8935_v28 = vld [vmem:[#allocation17_spill] sm:$0xff]  ;;  %v8938_v45 = vld [vmem:[#allocation198_spill] sm:$0xff] }
 0x1f1   : > { %8933 = vst [vmem:[#allocation197_spill] sm:$0xff] %v6589_v30  ;;  %v6594_v39 = vmul.f32 %v3618_v38, %v8935_v28  ;;  %3269 = vlog2.f32 %v8938_v45  ;;  %v8939_v30 = vld [vmem:[#allocation71_spill] sm:$0xff]  ;;  %v3260_v38 = vpop.eup %3259  ;;  %v6611_v28 = vmul.f32 0.6931472, %v3254_v2  ;;  %v3623_v45 = vld [vmem:[%s3808_s9 + $0x1c0] sm:$0xff] }
 0x1f2   : > { %8937 = vst [vmem:[#allocation155_spill] sm:$0xff] %v6600_v29  ;;  %v6605_v6 = vmul.f32 %v3620_v4, %v8939_v30  ;;  %3271 = vlog2.f32 %v8942_v12  ;;  %v8943_v29 = vld [vmem:[#allocation73_spill] sm:$0xff]  ;;  %v6620_v42 = vmul.f32 %v3623_v45, %v8944_v51  ;;  %v3262_v4 = vpop.eup %3261  ;;  %v6622_v30 = vmul.f32 0.6931472, %v3256_v41  ;;  %v3624_v2 = vld [vmem:[%s3808_s9 + $0x1c8] sm:$0xff]  ;;  %v3625_v12 = vld [vmem:[%s3808_s9 + $0x1d0] sm:$0xff] }
 0x1f3   : > { %8941 = vst [vmem:[#allocation198_spill] sm:$0xff] %v6611_v28  ;;  %v6616_v20 = vmul.f32 %v3622_v57, %v8943_v29  ;;  %3273 = vlog2.f32 %v8946_v23  ;;  %v8947_v28 = vld [vmem:[#allocation75_spill] sm:$0xff]  ;;  %v6631_v55 = vmul.f32 %v3625_v12, %v8948_v11  ;;  %v3264_v57 = vpop.eup %3263  ;;  %v6633_v29 = vmul.f32 0.6931472, %v3258_v36  ;;  %v8950_v45 = vld [vmem:[#allocation201_spill] sm:$0xff]  ;;  %v8952_v23 = vld [vmem:[#allocation6_spill] sm:$0xff] }
 0x1f4   : > { %8945 = vst [vmem:[#allocation199_spill] sm:$0xff] %v6622_v30  ;;  %v6627_v33 = vmul.f32 %v3624_v2, %v8947_v28  ;;  %3275 = vlog2.f32 %v8950_v45  ;;  %v3626_v41 = vld [vmem:[%s3808_s9 + $0x1d8] sm:$0xff]  ;;  %v2209_v27 = vadd.f32 %v8953_v32, %v8952_v23  ;;  %v3266_v2 = vpop.eup %3265  ;;  %v6642_v28 = vmul.f32 0.6931472, %v3260_v38  ;;  %v3627_v12 = vld [vmem:[%s3808_s9 + $0x1e0] sm:$0xff]  ;;  %v3628_v45 = vld [vmem:[%s3808_s9 + $0x1e8] sm:$0xff] }
 0x1f5   : > { %8949 = vst [vmem:[#allocation200_spill] sm:$0xff] %v6633_v29  ;;  %v8951_v30 = vld [vmem:[#allocation77_spill] sm:$0xff]  ;;  %3277 = vlog2.f32 %v8955_v16  ;;  %v8956_v11 = vld [vmem:[#allocation78_spill] sm:$0xff]  ;;  %v8957_v29 = vld [vmem:[#allocation79_spill] sm:$0xff]  ;;  %v6685_v9 = vmul.f32 0.6931472, %v3266_v2 }
 0x1f6   : > { %v6638_v51 = vmul.f32 %v3626_v41, %v8951_v30  ;;  %8954 = vst [vmem:[#allocation201_spill] sm:$0xff] %v6642_v28  ;;  %v6647_v36 = vmul.f32 %v3627_v12, %v8956_v11  ;;  %v6651_v50 = vmul.f32 %v3628_v45, %v8957_v29  ;;  %v3268_v41 = vpop.eup %3267  ;;  %v6653_v30 = vmul.f32 0.6931472, %v3262_v4  ;;  %v3629_v38 = vld [vmem:[%s3808_s9 + $0x1f0] sm:$0xff]  ;;  %v3630_v16 = vld [vmem:[%s3808_s9 + $0x1f8] sm:$0xff]  ;;  %v3631_v29 = vld [vmem:[%s3808_s9 + $0x200] sm:$0xff] }
 0x1f7   : > { %3279 = vlog2.f32 %v8959_v60  ;;  %v8960_v28 = vld [vmem:[#allocation80_spill] sm:$0xff]  ;;  %v6662_v32 = vmul.f32 %v3630_v16, %v8961_v5  ;;  %v3270_v12 = vpop.eup %3269  ;;  %v6664_v11 = vmul.f32 0.6931472, %v3264_v57  ;;  %v8964_v4 = vld [vmem:[#allocation82_spill] sm:$0xff]  ;;  %v3632_v60 = vld [vmem:[%s3808_s9 + $0x208] sm:$0xff] }
 0x1f8   : > { %8958 = vst [vmem:[#allocation202_spill] sm:$0xff] %v6653_v30  ;;  %v6658_v15 = vmul.f32 %v3629_v38, %v8960_v28  ;;  %v8963_v45 = vld [vmem:[#allocation204_spill] sm:$0xff]  ;;  %v6669_v30 = vmul.f32 %v3631_v29, %v8964_v4  ;;  %v8965_v23 = vld [vmem:[#allocation83_spill] sm:$0xff]  ;;  %v3272_v38 = vpop.eup %3271  ;;  %v8966_v28 = vld [vmem:[#allocation205_spill] sm:$0xff]  ;;  %v2210_v29 = vadd.f32 %v8969_v62, %v2209_v27 }
 0x1f9   : > { %8962 = vst [vmem:[#allocation203_spill] sm:$0xff] %v6664_v11  ;;  %3281 = vlog2.f32 %v8963_v45  ;;  %v6673_v43 = vmul.f32 %v3632_v60, %v8965_v23  ;;  %v3633_v16 = vld [vmem:[%s3808_s9 + $0x210] sm:$0xff]  ;;  %v3634_v11 = vld [vmem:[%s3808_s9 + $0x218] sm:$0xff]  ;;  %v3274_v4 = vpop.eup %3273  ;;  %v8971_v60 = vld [vmem:[#allocation206_spill] sm:$0xff] }
 0x1fa   : > { %3283 = vlog2.f32 %v8966_v28  ;;  %v8967_v5 = vld [vmem:[#allocation84_spill] sm:$0xff]  ;;  %v8968_v45 = vld [vmem:[#allocation85_spill] sm:$0xff]  ;;  %8970 = vst [vmem:[#allocation204_spill] sm:$0xff] %v6685_v9  ;;  %v3635_v23 = vld [vmem:[%s3808_s9 + $0x220] sm:$0xff]  ;;  %v3276_v35 = vpop.eup %3275 }
 0x1fb   : > { %v6678_v57 = vmul.f32 %v3633_v16, %v8967_v5  ;;  %v6682_v8 = vmul.f32 %v3634_v11, %v8968_v45  ;;  %3285 = vlog2.f32 %v8971_v60  ;;  %v8972_v28 = vld [vmem:[#allocation86_spill] sm:$0xff]  ;;  %v3636_v16 = vld [vmem:[%s3808_s9 + $0x228] sm:$0xff]  ;;  %v6696_v11 = vmul.f32 0.6931472, %v3268_v41  ;;  %v3637_v2 = vld [vmem:[%s3808_s9 + $0x230] sm:$0xff] }
 0x1fc   : > { %v6690_v37 = vmul.f32 %v3635_v23, %v8972_v28  ;;  %v8974_v5 = vld [vmem:[#allocation87_spill] sm:$0xff]  ;;  %v8978_v9 = vld [vmem:[#allocation88_spill] sm:$0xff]  ;;  %v3638_v60 = vld [vmem:[%s3808_s9 + $0x238] sm:$0xff]  ;;  %v3278_v23 = vpop.eup %3277  ;;  %v6707_v28 = vmul.f32 0.6931472, %v3270_v12 }
 0x1fd   : > { %v6694_v48 = vmul.f32 %v3636_v16, %v8974_v5  ;;  %8976 = vst [vmem:[#allocation276_spill] sm:$0xff] %v6696_v11  ;;  %v8977_v27 = vld [vmem:[#allocation207_spill] sm:$0xff]  ;;  %v6701_v45 = vmul.f32 %v3637_v2, %v8978_v9  ;;  %v8980_v62 = vld [vmem:[#allocation89_spill] sm:$0xff]  ;;  %v6709_v16 = vmul.f32 0.6931472, %v3272_v38  ;;  %v3639_v5 = vld [vmem:[%s3808_s9 + $0x240] sm:$0xff]  ;;  %v3280_v2 = vpop.eup %3279 }
 0x1fe   : > { %8973 = vst [vmem:[#allocation205_spill] sm:$0xff] %v6690_v37  ;;  %3287 = vlog2.f32 %v8977_v27  ;;  %v6705_v14 = vmul.f32 %v3638_v60, %v8980_v62  ;;  %v8984_v41 = vld [vmem:[#allocation90_spill] sm:$0xff]  ;;  %v3640_v27 = vld [vmem:[%s3808_s9 + $0x248] sm:$0xff]  ;;  %v3641_v60 = vld [vmem:[%s3808_s9 + $0x250] sm:$0xff] }
 0x1ff   : > { %8975 = vst [vmem:[#allocation206_spill] sm:$0xff] %v6694_v48  ;;  %v6713_v11 = vmul.f32 %v3639_v5, %v8984_v41  ;;  %v8986_v48 = vld [vmem:[#allocation91_spill] sm:$0xff]  ;;  %v8989_v62 = vld [vmem:[#allocation92_spill] sm:$0xff]  ;;  %v3642_v38 = vld [vmem:[%s3808_s9 + $0x258] sm:$0xff]  ;;  %v3282_v41 = vpop.eup %3281 }
 0x200   : > { %8979 = vst [vmem:[#allocation207_spill] sm:$0xff] %v6701_v45  ;;  %v6717_v37 = vmul.f32 %v3640_v27, %v8986_v48  ;;  %v8988_v9 = vld [vmem:[#allocation19_spill] sm:$0xff]  ;;  %v6722_v12 = vmul.f32 %v3641_v60, %v8989_v62  ;;  %v8995_v27 = vld [vmem:[#allocation208_spill] sm:$0xff]  ;;  %v3643_v48 = vld [vmem:[%s3808_s9 + $0x260] sm:$0xff]  ;;  %v3284_v45 = vpop.eup %3283 }
 0x201   : > { %8981 = vst [vmem:[#allocation277_spill] sm:$0xff] %v6705_v14  ;;  %3289 = vlog2.f32 %v8988_v9  ;;  %v8993_v14 = vld [vmem:[#allocation11_spill] sm:$0xff]  ;;  %v8996_v9 = vld [vmem:[#allocation94_spill] sm:$0xff] }
 0x202   : > { %8982 = vst [vmem:[#allocation278_spill] sm:$0xff] %v6707_v28  ;;  %v2211_v5 = vadd.f32 %v8993_v14, %v2210_v29  ;;  %3291 = vlog2.f32 %v8995_v27  ;;  %v3644_v60 = vld [vmem:[%s3808_s9 + $0x268] sm:$0xff]  ;;  %v9002_v29 = vld [vmem:[#allocation96_spill] sm:$0xff]  ;;  %v3646_v27 = vld [vmem:[%s3808_s9 + $0x278] sm:$0xff] }
 0x203   : > { %8983 = vst [vmem:[#allocation279_spill] sm:$0xff] %v6709_v16  ;;  %v8991_v16 = vld [vmem:[#allocation93_spill] sm:$0xff]  ;;  %v8998_v62 = vld [vmem:[#allocation95_spill] sm:$0xff]  ;;  %v9004_v14 = vld [vmem:[#allocation32_spill] sm:$0xff] }
 0x204   : > { %8985 = vst [vmem:[#allocation280_spill] sm:$0xff] %v6713_v11  ;;  %v6726_v28 = vmul.f32 %v3642_v38, %v8991_v16  ;;  %v6729_v11 = vmul.f32 0.6931472, %v3274_v4  ;;  %v6740_v38 = vmul.f32 0.6931472, %v3276_v35  ;;  %v9001_v16 = vld [vmem:[#allocation209_spill] sm:$0xff] }
 0x205   : > { %8987 = vst [vmem:[#allocation281_spill] sm:$0xff] %v6717_v37  ;;  %v6734_v37 = vmul.f32 %v3643_v48, %v8996_v9  ;;  %3293 = vlog2.f32 %v9001_v16  ;;  %v3645_v4 = vld [vmem:[%s3808_s9 + $0x270] sm:$0xff]  ;;  %v3286_v48 = vpop.eup %3285  ;;  %v6751_v9 = vmul.f32 0.6931472, %v3278_v23  ;;  %v3647_v35 = vld [vmem:[%s3808_s9 + $0x280] sm:$0xff]  ;;  %v3648_v16 = vld [vmem:[%s3808_s9 + $0x288] sm:$0xff] }
 0x206   : > { %8990 = vst [vmem:[#allocation19_spill] sm:$0xff] %v6722_v12  ;;  %v6738_v12 = vmul.f32 %v3644_v60, %v8998_v62  ;;  %v9007_v60 = vld [vmem:[#allocation20_spill] sm:$0xff] }
 0x207   : > { %8992 = vst [vmem:[#allocation282_spill] sm:$0xff] %v6726_v28  ;;  %v6749_v28 = vmul.f32 %v3646_v27, %v9004_v14  ;;  %3295 = vlog2.f32 %v9007_v60  ;;  %v9013_v27 = vld [vmem:[#allocation210_spill] sm:$0xff]  ;;  %v3649_v23 = vld [vmem:[%s3808_s9 + $0x290] sm:$0xff] }
 0x208   : > { %8994 = vst [vmem:[#allocation283_spill] sm:$0xff] %v6729_v11  ;;  %v6745_v11 = vmul.f32 %v3645_v4, %v9002_v29  ;;  %v3288_v29 = vpop.eup %3287  ;;  %3297 = vlog2.f32 %v9013_v27  ;;  %v9015_v60 = vld [vmem:[#allocation12_spill] sm:$0xff]  ;;  %v3652_v27 = vld [vmem:[%s3808_s9 + $0x2a8] sm:$0xff] }
 0x209   : > { %8997 = vst [vmem:[#allocation208_spill] sm:$0xff] %v6734_v37  ;;  %v6770_v37 = vmul.f32 0.6931472, %v3282_v41  ;;  %v6786_v41 = vmul.f32 0.6931472, %v3286_v48 }
 0x20a   : > { %8999 = vst [vmem:[#allocation284_spill] sm:$0xff] %v6738_v12  ;;  %v9010_v12 = vld [vmem:[#allocation97_spill] sm:$0xff] }
 0x20b   : > { %9000 = vst [vmem:[#allocation285_spill] sm:$0xff] %v6740_v38  ;;  %v9008_v38 = vld [vmem:[#allocation33_spill] sm:$0xff]  ;;  %v6760_v4 = vmul.f32 %v3648_v16, %v9010_v12  ;;  %v3651_v12 = vld [vmem:[%s3808_s9 + $0x2a0] sm:$0xff] }
 0x20c   : > { %9003 = vst [vmem:[#allocation209_spill] sm:$0xff] %v6745_v11  ;;  %v6756_v62 = vmul.f32 %v3647_v35, %v9008_v38  ;;  %v6762_v11 = vmul.f32 0.6931472, %v3280_v2  ;;  %v3650_v35 = vld [vmem:[%s3808_s9 + $0x298] sm:$0xff]  ;;  %v9017_v38 = vld [vmem:[#allocation38_spill] sm:$0xff] }
 0x20d   : > { %9005 = vst [vmem:[#allocation286_spill] sm:$0xff] %v6749_v28  ;;  %v2212_v28 = vadd.f32 %v9015_v60, %v2211_v5  ;;  %v6774_v16 = vmul.f32 %v3650_v35, %v9017_v38  ;;  %v3653_v5 = vld [vmem:[%s3808_s9 + $0x2b0] sm:$0xff]  ;;  %v3654_v38 = vld [vmem:[%s3808_s9 + $0x2b8] sm:$0xff] }
 0x20e   : > { %9006 = vst [vmem:[#allocation287_spill] sm:$0xff] %v6751_v9  ;;  %v9014_v9 = vld [vmem:[#allocation98_spill] sm:$0xff]  ;;  %v9027_v60 = vld [vmem:[#allocation101_spill] sm:$0xff] }
 0x20f   : > { %9009 = vst [vmem:[#allocation20_spill] sm:$0xff] %v6756_v62  ;;  %v6767_v14 = vmul.f32 %v3649_v23, %v9014_v9  ;;  %v3290_v23 = vpop.eup %3289  ;;  %v6784_v9 = vmul.f32 0.6931472, %v3284_v45  ;;  %v9031_v45 = vld [vmem:[#allocation44_spill] sm:$0xff] }
 0x210   : > { %9011 = vst [vmem:[#allocation288_spill] sm:$0xff] %v6760_v4  ;;  %v9019_v4 = vld [vmem:[#allocation39_spill] sm:$0xff] }
 0x211   : > { %9012 = vst [vmem:[#allocation289_spill] sm:$0xff] %v6762_v11  ;;  %v6778_v2 = vmul.f32 %v3651_v12, %v9019_v4  ;;  %v9021_v11 = vld [vmem:[#allocation99_spill] sm:$0xff]  ;;  %v3292_v12 = vpop.eup %3291  ;;  %v6796_v4 = vmul.f32 0.6931472, %v3288_v29 }
 0x212   : > { %9016 = vst [vmem:[#allocation210_spill] sm:$0xff] %v6770_v37  ;;  %v6782_v62 = vmul.f32 %v3652_v27, %v9021_v11  ;;  %v9025_v37 = vld [vmem:[#allocation100_spill] sm:$0xff]  ;;  %v9030_v27 = vld [vmem:[#allocation159_spill] sm:$0xff]  ;;  %v3655_v11 = vld [vmem:[%s3808_s9 + $0x2c0] sm:$0xff] }
 0x213   : > { %9018 = vst [vmem:[#allocation290_spill] sm:$0xff] %v6774_v16  ;;  %v6790_v35 = vmul.f32 %v3653_v5, %v9025_v37  ;;  %v6794_v16 = vmul.f32 %v3654_v38, %v9027_v60  ;;  %3299 = vlog2.f32 %v9030_v27  ;;  %v6801_v48 = vmul.f32 %v3655_v11, %v9031_v45  ;;  %v3294_v5 = vpop.eup %3293  ;;  %v9035_v37 = vld [vmem:[#allocation211_spill] sm:$0xff]  ;;  %v3657_v38 = vld [vmem:[%s3808_s9 + $0x2d0] sm:$0xff]  ;;  %v9036_v60 = vld [vmem:[#allocation49_spill] sm:$0xff] }
 0x214   : > { %9020 = vst [vmem:[#allocation291_spill] sm:$0xff] %v6778_v2  ;;  %3301 = vlog2.f32 %v9035_v37  ;;  %v6810_v29 = vmul.f32 %v3657_v38, %v9036_v60  ;;  %v9038_v27 = vld [vmem:[#allocation50_spill] sm:$0xff]  ;;  %v3296_v45 = vpop.eup %3295  ;;  %v3660_v38 = vld [vmem:[%s3808_s9 + $0x2e8] sm:$0xff] }
 0x215   : > { %9022 = vst [vmem:[#allocation292_spill] sm:$0xff] %v6782_v62  ;;  %v3659_v37 = vld [vmem:[%s3808_s9 + $0x2e0] sm:$0xff]  ;;  %v9044_v60 = vld [vmem:[#allocation103_spill] sm:$0xff] }
 0x216   : > { %9023 = vst [vmem:[#allocation293_spill] sm:$0xff] %v6784_v9  ;;  %v9033_v9 = vld [vmem:[#allocation102_spill] sm:$0xff] }
 0x217   : > { %9024 = vst [vmem:[#allocation294_spill] sm:$0xff] %v6786_v41  ;;  %v3656_v41 = vld [vmem:[%s3808_s9 + $0x2c8] sm:$0xff] }
 0x218   : > { %9026 = vst [vmem:[#allocation295_spill] sm:$0xff] %v6790_v35  ;;  %v6805_v62 = vmul.f32 %v3656_v41, %v9033_v9  ;;  %v9040_v35 = vld [vmem:[#allocation13_spill] sm:$0xff]  ;;  %v9043_v9 = vld [vmem:[#allocation51_spill] sm:$0xff] }
 0x219   : > { %9028 = vst [vmem:[#allocation296_spill] sm:$0xff] %v6794_v16  ;;  %v2213_v11 = vadd.f32 %v9040_v35, %v2212_v28  ;;  %v9042_v41 = vld [vmem:[#allocation21_spill] sm:$0xff]  ;;  %v9046_v28 = vld [vmem:[#allocation212_spill] sm:$0xff] }
 0x21a   : > { %9029 = vst [vmem:[#allocation297_spill] sm:$0xff] %v6796_v4  ;;  %v3658_v4 = vld [vmem:[%s3808_s9 + $0x2d8] sm:$0xff]  ;;  %3303 = vlog2.f32 %v9042_v41  ;;  %v3661_v35 = vld [vmem:[%s3808_s9 + $0x2f0] sm:$0xff] }
 0x21b   : > { %9032 = vst [vmem:[#allocation159_spill] sm:$0xff] %v6801_v48  ;;  %v6814_v16 = vmul.f32 %v3658_v4, %v9038_v27  ;;  %v6817_v48 = vmul.f32 0.6931472, %v3290_v23  ;;  %v3298_v4 = vpop.eup %3297  ;;  %v6828_v27 = vmul.f32 0.6931472, %v3292_v12  ;;  %3305 = vlog2.f32 %v9046_v28  ;;  %v9047_v23 = vld [vmem:[#allocation104_spill] sm:$0xff] }
 0x21c   : > { %9034 = vst [vmem:[#allocation298_spill] sm:$0xff] %v6805_v62  ;;  %v6822_v62 = vmul.f32 %v3659_v37, %v9043_v9  ;;  %v3662_v41 = vld [vmem:[%s3808_s9 + $0x2f8] sm:$0xff]  ;;  %v6839_v37 = vmul.f32 0.6931472, %v3294_v5  ;;  %v3664_v28 = vld [vmem:[%s3808_s9 + $0x308] sm:$0xff]  ;;  %v9057_v5 = vld [vmem:[#allocation106_spill] sm:$0xff] }
 0x21d   : > { %9037 = vst [vmem:[#allocation211_spill] sm:$0xff] %v6810_v29  ;;  %v6826_v29 = vmul.f32 %v3660_v38, %v9044_v60  ;;  %v9051_v38 = vld [vmem:[#allocation213_spill] sm:$0xff]  ;;  %v3663_v60 = vld [vmem:[%s3808_s9 + $0x300] sm:$0xff] }
 0x21e   : > { %9039 = vst [vmem:[#allocation299_spill] sm:$0xff] %v6814_v16  ;;  %v9049_v16 = vld [vmem:[#allocation56_spill] sm:$0xff]  ;;  %3307 = vlog2.f32 %v9051_v38  ;;  %v9052_v12 = vld [vmem:[#allocation57_spill] sm:$0xff]  ;;  %v2214_v38 = vadd.f32 %v8767_v24, %v2213_v11 }
 0x21f   : > { %9041 = vst [vmem:[#allocation300_spill] sm:$0xff] %v6817_v48  ;;  %v6833_v48 = vmul.f32 %v3661_v35, %v9047_v23  ;;  %v6837_v2 = vmul.f32 %v3662_v41, %v9049_v16  ;;  %v9053_v9 = vld [vmem:[#allocation105_spill] sm:$0xff]  ;;  %v6850_v23 = vmul.f32 0.6931472, %v3296_v45  ;;  %v3665_v41 = vld [vmem:[%s3808_s9 + $0x310] sm:$0xff] }
 0x220   : > { %9045 = vst [vmem:[#allocation21_spill] sm:$0xff] %v6828_v27  ;;  %v6844_v27 = vmul.f32 %v3663_v60, %v9052_v12  ;;  %v6848_v35 = vmul.f32 %v3664_v28, %v9053_v9  ;;  %v6858_v60 = vpop.eup %3299  ;;  %v6860_v12 = vmul.f32 0.6931472, %v3298_v4  ;;  %v3666_v16 = vld [vmem:[%s3808_s9 + $0x318] sm:$0xff]  ;;  %v9061_v28 = vld [vmem:[#allocation107_spill] sm:$0xff]  ;;  %v9063_v9 = vld [vmem:[#allocation108_spill] sm:$0xff] }
 0x221   : > { %9048 = vst [vmem:[#allocation212_spill] sm:$0xff] %v6833_v48  ;;  %v9056_v48 = vld [vmem:[#allocation22_spill] sm:$0xff]  ;;  %v6864_v45 = vmul.f32 %v3666_v16, %v9061_v28  ;;  %v6874_v11 = vpop.eup %3301  ;;  %v3669_v4 = vld [vmem:[%s3808_s9 + $0x330] sm:$0xff]  ;;  %v3670_v24 = vld [vmem:[%s3808_s9 + $0x338] sm:$0xff] }
 0x222   : > { %9050 = vst [vmem:[#allocation301_spill] sm:$0xff] %v6839_v37  ;;  %3309 = vlog2.f32 %v9056_v48  ;;  %v6855_v37 = vmul.f32 %v3665_v41, %v9057_v5  ;;  %v9065_v41 = vld [vmem:[#allocation109_spill] sm:$0xff]  ;;  %v9070_v16 = vld [vmem:[#allocation111_spill] sm:$0xff] }
 0x223   : > { %9054 = vst [vmem:[#allocation213_spill] sm:$0xff] %v6848_v35  ;;  %v3668_v35 = vld [vmem:[%s3808_s9 + $0x328] sm:$0xff]  ;;  %v6882_v28 = vmul.f32 %v3670_v24, %v9070_v16  ;;  %3311 = vlog2.f32 %v6267_v40  ;;  %v7004_v40 = vadd.f32 1e-06, %v6502_v52  ;;  %v7026_v52 = vadd.f32 1e-06, %v6576_v13 }
 0x224   : > { %9055 = vst [vmem:[#allocation302_spill] sm:$0xff] %v6850_v23  ;;  %v3667_v23 = vld [vmem:[%s3808_s9 + $0x320] sm:$0xff]  ;;  %v6872_v5 = vmul.f32 %v3668_v35, %v9065_v41  ;;  %v9074_v35 = vld [vmem:[#allocation113_spill] sm:$0xff]  ;;  %v9079_v24 = vld [vmem:[#allocation115_spill] sm:$0xff]  ;;  %3313 = vlog2.f32 %v6274_v21  ;;  %v7017_v21 = vadd.f32 1e-06, %v6539_v17 }
 0x225   : > { %9058 = vst [vmem:[#allocation22_spill] sm:$0xff] %v6855_v37  ;;  %v6868_v48 = vmul.f32 %v3667_v23, %v9063_v9  ;;  %v9072_v23 = vld [vmem:[#allocation112_spill] sm:$0xff]  ;;  %3315 = vlog2.f32 %v6277_v58  ;;  %v7037_v17 = vadd.f32 1e-06, %v6594_v39  ;;  %v7044_v13 = vadd.f32 1e-06, %v6605_v6 }
 0x226   : > { %9059 = vst [vmem:[#allocation303_spill] sm:$0xff] %v6858_v60  ;;  %v3689_v37 = vld [vmem:[%s3808_s9 + $0x3d0] sm:$0xff]  ;;  %3317 = vlog2.f32 %v6288_v1  ;;  %v7047_v58 = vadd.f32 1e-06, %v6609_v10  ;;  %v7054_v39 = vadd.f32 1e-06, %v6620_v42 }
 0x227   : > { %9060 = vst [vmem:[#allocation304_spill] sm:$0xff] %v6860_v12  ;;  %v9068_v12 = vld [vmem:[#allocation110_spill] sm:$0xff]  ;;  %3319 = vlog2.f32 %v6295_v31  ;;  %v7057_v1 = vadd.f32 1e-06, %v6627_v33  ;;  %v7064_v10 = vadd.f32 1e-06, %v6638_v51 }
 0x228   : > { %9062 = vst [vmem:[#allocation305_spill] sm:$0xff] %v6864_v45  ;;  %v6878_v60 = vmul.f32 %v3669_v4, %v9068_v12  ;;  %v3671_v45 = vld [vmem:[%s3808_s9 + $0x340] sm:$0xff]  ;;  %3321 = vlog2.f32 %v6298_v47  ;;  %v7067_v31 = vadd.f32 1e-06, %v6647_v36  ;;  %v7071_v6 = vadd.f32 1e-06, %v6651_v50 }
 0x229   : > { %9064 = vst [vmem:[#allocation306_spill] sm:$0xff] %v6868_v48  ;;  %v6886_v9 = vmul.f32 %v3671_v45, %v9072_v23  ;;  %v3672_v48 = vld [vmem:[%s3808_s9 + $0x348] sm:$0xff]  ;;  %v9077_v4 = vld [vmem:[#allocation114_spill] sm:$0xff]  ;;  %v9081_v45 = vld [vmem:[#allocation116_spill] sm:$0xff]  ;;  %v7074_v42 = vadd.f32 1e-06, %v6658_v15  ;;  %3323 = vlog2.f32 %v6309_v44 }
 0x22a   : > { %9066 = vst [vmem:[#allocation307_spill] sm:$0xff] %v6872_v5  ;;  %v6890_v41 = vmul.f32 %v3672_v48, %v9074_v35  ;;  %v3673_v5 = vld [vmem:[%s3808_s9 + $0x350] sm:$0xff]  ;;  %v9083_v48 = vld [vmem:[#allocation117_spill] sm:$0xff]  ;;  %v7077_v33 = vadd.f32 1e-06, %v6662_v32  ;;  %3325 = vlog2.f32 %v6316_v7 }
 0x22b   : > { %9067 = vst [vmem:[#allocation308_spill] sm:$0xff] %v6874_v11  ;;  %v6892_v11 = vpop.eup %3303  ;;  %v6896_v12 = vmul.f32 %v3673_v5, %v9077_v4  ;;  %v3677_v5 = vld [vmem:[%s3808_s9 + $0x370] sm:$0xff]  ;;  %v9086_v4 = vld [vmem:[#allocation118_spill] sm:$0xff]  ;;  %v7085_v50 = vadd.f32 1e-06, %v6673_v43  ;;  %v9149_v7 = vld [vmem:[#allocation149_spill] sm:$0xff] }
 0x22c   : > { %9069 = vst [vmem:[#allocation309_spill] sm:$0xff] %v6878_v60  ;;  %v3674_v60 = vld [vmem:[%s3808_s9 + $0x358] sm:$0xff]  ;;  %v7088_v15 = vadd.f32 1e-06, %v6678_v57  ;;  %v7091_v32 = vadd.f32 1e-06, %v6682_v8 }
 0x22d   : > { %9071 = vst [vmem:[#allocation310_spill] sm:$0xff] %v6882_v28  ;;  %v6900_v16 = vmul.f32 %v3674_v60, %v9079_v24  ;;  %v3675_v28 = vld [vmem:[%s3808_s9 + $0x360] sm:$0xff]  ;;  %v3678_v60 = vld [vmem:[%s3808_s9 + $0x378] sm:$0xff]  ;;  %v9088_v24 = vld [vmem:[#allocation119_spill] sm:$0xff] }
 0x22e   : > { %9073 = vst [vmem:[#allocation311_spill] sm:$0xff] %v6886_v9  ;;  %v6904_v23 = vmul.f32 %v3675_v28, %v9081_v45  ;;  %v3676_v9 = vld [vmem:[%s3808_s9 + $0x368] sm:$0xff]  ;;  %v3679_v28 = vld [vmem:[%s3808_s9 + $0x380] sm:$0xff]  ;;  %v9090_v45 = vld [vmem:[#allocation120_spill] sm:$0xff] }
 0x22f   : > { %9075 = vst [vmem:[#allocation312_spill] sm:$0xff] %v6890_v41  ;;  %v6908_v35 = vmul.f32 %v3676_v9, %v9083_v48  ;;  %v2215_v9 = vadd.f32 %v8768_v61, %v2214_v38  ;;  %v9099_v38 = vld [vmem:[#allocation124_spill] sm:$0xff] }
 0x230   : > { %9076 = vst [vmem:[#allocation313_spill] sm:$0xff] %v6892_v11  ;;  %v6910_v11 = vpop.eup %3305  ;;  %v9107_v41 = vld [vmem:[#allocation128_spill] sm:$0xff] }
 0x231   : > { %9078 = vst [vmem:[#allocation314_spill] sm:$0xff] %v6896_v12  ;;  %v6914_v12 = vmul.f32 %v3677_v5, %v9086_v4  ;;  %v6925_v48 = vpop.eup %3307  ;;  %v3681_v4 = vld [vmem:[%s3808_s9 + $0x390] sm:$0xff] }
 0x232   : > { %9080 = vst [vmem:[#allocation315_spill] sm:$0xff] %v6900_v16  ;;  %v6918_v16 = vmul.f32 %v3678_v60, %v9088_v24  ;;  %v3682_v24 = vld [vmem:[%s3808_s9 + $0x398] sm:$0xff] }
 0x233   : > { %9082 = vst [vmem:[#allocation316_spill] sm:$0xff] %v6904_v23  ;;  %v6922_v23 = vmul.f32 %v3679_v28, %v9090_v45  ;;  %v3683_v45 = vld [vmem:[%s3808_s9 + $0x3a0] sm:$0xff] }
 0x234   : > { %9084 = vst [vmem:[#allocation317_spill] sm:$0xff] %v6908_v35  ;;  %v9093_v35 = vld [vmem:[#allocation121_spill] sm:$0xff]  ;;  %v6941_v61 = vmul.f32 %v3683_v45, %v9099_v38  ;;  %v3688_v38 = vld [vmem:[%s3808_s9 + $0x3c8] sm:$0xff] }
 0x235   : > { %9085 = vst [vmem:[#allocation318_spill] sm:$0xff] %v6910_v11  ;;  %v3680_v11 = vld [vmem:[%s3808_s9 + $0x388] sm:$0xff] }
 0x236   : > { %9087 = vst [vmem:[#allocation319_spill] sm:$0xff] %v6914_v12  ;;  %v6929_v5 = vmul.f32 %v3680_v11, %v9093_v35  ;;  %v9095_v12 = vld [vmem:[#allocation122_spill] sm:$0xff]  ;;  %v3684_v11 = vld [vmem:[%s3808_s9 + $0x3a8] sm:$0xff]  ;;  %v9102_v35 = vld [vmem:[#allocation125_spill] sm:$0xff] }
 0x237   : > { %9089 = vst [vmem:[#allocation320_spill] sm:$0xff] %v6918_v16  ;;  %v6933_v60 = vmul.f32 %v3681_v4, %v9095_v12  ;;  %v9097_v16 = vld [vmem:[#allocation123_spill] sm:$0xff]  ;;  %v3685_v4 = vld [vmem:[%s3808_s9 + $0x3b0] sm:$0xff]  ;;  %v9104_v12 = vld [vmem:[#allocation126_spill] sm:$0xff] }
 0x238   : > { %9091 = vst [vmem:[#allocation321_spill] sm:$0xff] %v6922_v23  ;;  %v6937_v28 = vmul.f32 %v3682_v24, %v9097_v16  ;;  %v3686_v23 = vld [vmem:[%s3808_s9 + $0x3b8] sm:$0xff]  ;;  %v9106_v24 = vld [vmem:[#allocation127_spill] sm:$0xff] }
 0x239   : > { %9092 = vst [vmem:[#allocation322_spill] sm:$0xff] %v6925_v48  ;;  %v6943_v48 = vpop.eup %3309  ;;  %v6955_v16 = vmul.f32 %v3686_v23, %v9106_v24  ;;  %v9112_v23 = vld [vmem:[#allocation132_spill] sm:$0xff] }
 0x23a   : > { %9094 = vst [vmem:[#allocation323_spill] sm:$0xff] %v6929_v5  ;;  %v6947_v5 = vmul.f32 %v3684_v11, %v9102_v35  ;;  %v9110_v11 = vld [vmem:[#allocation130_spill] sm:$0xff] }
 0x23b   : > { %9096 = vst [vmem:[#allocation324_spill] sm:$0xff] %v6933_v60  ;;  %v6951_v60 = vmul.f32 %v3685_v4, %v9104_v12  ;;  %v6967_v35 = vmul.f32 %v3689_v37, %v9110_v11  ;;  %v9111_v4 = vld [vmem:[#allocation131_spill] sm:$0xff]  ;;  %v2216_v37 = vadd.f32 %v8770_v25, %v2215_v9  ;;  %v6987_v11 = vadd.f32 1e-06, %v6453_v46 }
 0x23c   : > { %9098 = vst [vmem:[#allocation325_spill] sm:$0xff] %v6937_v28  ;;  %v3687_v28 = vld [vmem:[%s3808_s9 + $0x3c0] sm:$0xff]  ;;  %v7007_v46 = vadd.f32 1e-06, %v6517_v59  ;;  %v9118_v9 = vld [vmem:[#allocation135_spill] sm:$0xff] }
 0x23d   : > { %9100 = vst [vmem:[#allocation326_spill] sm:$0xff] %v6941_v61  ;;  %v6959_v45 = vmul.f32 %v3687_v28, %v9107_v41  ;;  %v9109_v61 = vld [vmem:[#allocation129_spill] sm:$0xff]  ;;  %v3692_v28 = vld [vmem:[%s3808_s9 + $0x3e8] sm:$0xff]  ;;  %v2217_v59 = vadd.f32 %v8771_v34, %v2216_v37 }
 0x23e   : > { %9101 = vst [vmem:[#allocation327_spill] sm:$0xff] %v6943_v48  ;;  %v6963_v48 = vmul.f32 %v3688_v38, %v9109_v61  ;;  %v9113_v41 = vld [vmem:[#allocation133_spill] sm:$0xff]  ;;  %v6982_v38 = vadd.f32 1e-06, %v6443_v19  ;;  %v7001_v19 = vadd.f32 1e-06, %v6490_v0 }
 0x23f   : > { %9103 = vst [vmem:[#allocation328_spill] sm:$0xff] %v6947_v5  ;;  %v3690_v5 = vld [vmem:[%s3808_s9 + $0x3d8] sm:$0xff]  ;;  %v7023_v0 = vadd.f32 1e-06, %v6564_v26  ;;  %v7041_v26 = vadd.f32 1e-06, %v6598_v18 }
 0x240   : > { %9105 = vst [vmem:[#allocation329_spill] sm:$0xff] %v6951_v60  ;;  %v6971_v12 = vmul.f32 %v3690_v5, %v9111_v4  ;;  %v3691_v60 = vld [vmem:[%s3808_s9 + $0x3e0] sm:$0xff]  ;;  %v6990_v5 = vadd.f32 1e-06, %v6465_v54  ;;  %v3694_v54 = vld [vmem:[%s3808_s9 + $0x3f8] sm:$0xff]  ;;  %v9151_v61 = vld [vmem:[#allocation207_spill] sm:$0xff] }
 0x241   : > { %9108 = vst [vmem:[#allocation330_spill] sm:$0xff] %v6959_v45  ;;  %v6975_v24 = vmul.f32 %v3691_v60, %v9112_v23  ;;  %v6979_v45 = vmul.f32 %v3692_v28, %v9113_v41  ;;  %v6993_v60 = vadd.f32 1e-06, %v6480_v3  ;;  %v3693_v28 = vld [vmem:[%s3808_s9 + $0x3f0] sm:$0xff]  ;;  %v9114_v41 = vld [vmem:[#allocation134_spill] sm:$0xff]  ;;  %v7011_v4 = vmul.f32 %v3694_v54, %v9118_v9  ;;  %v9145_v9 = vld [vmem:[#allocation205_spill] sm:$0xff] }
 0x242   : > { %v6998_v23 = vmul.f32 %v3693_v28, %v9114_v41  ;;  %9115 = vst [vmem:[#allocation331_spill] sm:$0xff] %v7001_v19  ;;  %v7014_v3 = vadd.f32 1e-06, %v6527_v49  ;;  %v7020_v28 = vadd.f32 1e-06, %v6554_v53  ;;  %v3312_v53 = vpop.eup %3311  ;;  %v9150_v41 = vld [vmem:[#allocation30_spill] sm:$0xff] }
 0x243   : > { %9116 = vst [vmem:[#allocation332_spill] sm:$0xff] %v7004_v40  ;;  %v7031_v54 = vadd.f32 1e-06, %v6583_v22  ;;  %v7034_v49 = vadd.f32 1e-06, %v6587_v56  ;;  %v3314_v22 = vpop.eup %3313 }
 0x244   : > { %9117 = vst [vmem:[#allocation333_spill] sm:$0xff] %v7007_v46  ;;  %v7051_v56 = vadd.f32 1e-06, %v6616_v20  ;;  %v7061_v18 = vadd.f32 1e-06, %v6631_v55  ;;  %v2218_v20 = vadd.f32 %v8773_v63, %v2217_v59  ;;  %v3316_v47 = vpop.eup %3315  ;;  %v9144_v59 = vld [vmem:[#allocation146_spill] sm:$0xff] }
 0x245   : > { %9119 = vst [vmem:[#allocation334_spill] sm:$0xff] %v7011_v4  ;;  %v7081_v55 = vadd.f32 1e-06, %v6669_v30  ;;  %v1697_v51 = vmul.f32 0.6931472, %v3312_v53  ;;  %v3318_v37 = vpop.eup %3317  ;;  %3327 = vlog2.f32 %v9144_v59  ;;  %v9147_v53 = vld [vmem:[#allocation206_spill] sm:$0xff] }
 0x246   : > { %9120 = vst [vmem:[#allocation335_spill] sm:$0xff] %v7014_v3  ;;  %v1699_v36 = vmul.f32 0.6931472, %v3314_v22  ;;  %v3320_v44 = vpop.eup %3319  ;;  %v7095_v30 = vadd.f32 1e-06, %v9145_v9  ;;  %3329 = vlog2.f32 %v9149_v7  ;;  %v2219_v43 = vadd.f32 %v9150_v41, %v2218_v20  ;;  %v9158_v9 = vld [vmem:[#allocation281_spill] sm:$0xff] }
 0x247   : > { %9121 = vst [vmem:[#allocation336_spill] sm:$0xff] %v7017_v21  ;;  %v7098_v22 = vadd.f32 1e-06, %v9147_v53  ;;  %v3322_v4 = vpop.eup %3321  ;;  %v7103_v57 = vadd.f32 1e-06, %v9151_v61  ;;  %v9162_v61 = vld [vmem:[#allocation19_spill] sm:$0xff] }
 0x248   : > { %9122 = vst [vmem:[#allocation337_spill] sm:$0xff] %v7020_v28  ;;  %v1701_v53 = vmul.f32 0.6931472, %v3316_v47  ;;  %v9169_v47 = vld [vmem:[#allocation284_spill] sm:$0xff] }
 0x249   : > { %9123 = vst [vmem:[#allocation338_spill] sm:$0xff] %v7023_v0  ;;  %v9272_v28 = vld [vmem:[#allocation40_spill] sm:$0xff] }
 0x24a   : > { %9124 = vst [vmem:[#allocation339_spill] sm:$0xff] %v7026_v52  ;;  %v9281_v3 = vld [vmem:[#allocation328_spill] sm:$0xff] }
 0x24b   : > { %9125 = vst [vmem:[#allocation340_spill] sm:$0xff] %v7031_v54  ;;  %v7342_v46 = vadd.f32 1e-06, %v9281_v3 }
 0x24c   : > { %9126 = vst [vmem:[#allocation341_spill] sm:$0xff] %v7034_v49  ;;  %v9260_v49 = vld [vmem:[#allocation253_spill] sm:$0xff] }
 0x24d   : > { %9127 = vst [vmem:[#allocation342_spill] sm:$0xff] %v7037_v17 }
 0x24e   : > { %9128 = vst [vmem:[#allocation343_spill] sm:$0xff] %v7041_v26 }
 0x24f   : > { %9129 = vst [vmem:[#allocation344_spill] sm:$0xff] %v7044_v13  ;;  %v9244_v13 = vld [vmem:[#allocation12_spill] sm:$0xff] }
 0x250   : > { %9130 = vst [vmem:[#allocation345_spill] sm:$0xff] %v7047_v58 }
 0x251   : > { %9131 = vst [vmem:[#allocation346_spill] sm:$0xff] %v7051_v56 }
 0x252   : > { %9132 = vst [vmem:[#allocation347_spill] sm:$0xff] %v7054_v39  ;;  %v9205_v39 = vld [vmem:[#allocation8_spill] sm:$0xff] }
 0x253   : > { %9133 = vst [vmem:[#allocation348_spill] sm:$0xff] %v7057_v1 }
 0x254   : > { %9134 = vst [vmem:[#allocation349_spill] sm:$0xff] %v7061_v18  ;;  %v9204_v18 = vld [vmem:[#allocation27_spill] sm:$0xff] }
 0x255   : > { %9135 = vst [vmem:[#allocation350_spill] sm:$0xff] %v7064_v10 }
 0x256   : > { %9136 = vst [vmem:[#allocation351_spill] sm:$0xff] %v7067_v31  ;;  %v9184_v31 = vld [vmem:[#allocation7_spill] sm:$0xff] }
 0x257   : > { %9137 = vst [vmem:[#allocation352_spill] sm:$0xff] %v7071_v6  ;;  %v9183_v6 = vld [vmem:[#allocation6_spill] sm:$0xff] }
 0x258   : > { %9138 = vst [vmem:[#allocation353_spill] sm:$0xff] %v7074_v42 }
 0x259   : > { %9139 = vst [vmem:[#allocation354_spill] sm:$0xff] %v7077_v33  ;;  %v7117_v33 = vpop.eup %3323 }
 0x25a   : > { %9140 = vst [vmem:[#allocation355_spill] sm:$0xff] %v7081_v55  ;;  %v9161_v55 = vld [vmem:[#allocation23_spill] sm:$0xff] }
 0x25b   : > { %9141 = vst [vmem:[#allocation356_spill] sm:$0xff] %v7085_v50  ;;  %v9157_v50 = vld [vmem:[#allocation170_spill] sm:$0xff]  ;;  %v1953_v20 = vsub.f32 %v9161_v55, %v1699_v36  ;;  %v9173_v36 = vld [vmem:[#allocation173_spill] sm:$0xff] }
 0x25c   : > { %9142 = vst [vmem:[#allocation357_spill] sm:$0xff] %v7088_v15  ;;  %v9153_v15 = vld [vmem:[#allocation277_spill] sm:$0xff]  ;;  %3331 = vlog2.f32 %v9157_v50  ;;  %v9168_v50 = vld [vmem:[#allocation171_spill] sm:$0xff] }
 0x25d   : > { %9143 = vst [vmem:[#allocation358_spill] sm:$0xff] %v7091_v32  ;;  %v7106_v8 = vadd.f32 1e-06, %v9153_v15  ;;  %v9155_v32 = vld [vmem:[#allocation280_spill] sm:$0xff]  ;;  %v9164_v15 = vld [vmem:[#allocation282_spill] sm:$0xff]  ;;  %3333 = vlog2.f32 %v9168_v50  ;;  %v7158_v10 = vmul.f32 %v9184_v31, %v1953_v20 }
 0x25e   : > { %9146 = vst [vmem:[#allocation146_spill] sm:$0xff] %v7095_v30  ;;  %v7109_v59 = vadd.f32 1e-06, %v9155_v32  ;;  %v7113_v30 = vadd.f32 1e-06, %v9158_v9  ;;  %v9166_v32 = vld [vmem:[#allocation208_spill] sm:$0xff]  ;;  %v7129_v9 = vpop.eup %3325  ;;  %3335 = vlog2.f32 %v9173_v36 }
 0x25f   : > { %9148 = vst [vmem:[#allocation205_spill] sm:$0xff] %v7098_v22  ;;  %v9160_v22 = vld [vmem:[#allocation214_spill] sm:$0xff]  ;;  %v9179_v50 = vld [vmem:[#allocation288_spill] sm:$0xff] }
 0x260   : > { %9152 = vst [vmem:[#allocation206_spill] sm:$0xff] %v7103_v57  ;;  %v1952_v7 = vsub.f32 %v9160_v22, %v1697_v51  ;;  %v7120_v57 = vadd.f32 1e-06, %v9162_v61  ;;  %v9171_v51 = vld [vmem:[#allocation209_spill] sm:$0xff]  ;;  %v9174_v22 = vld [vmem:[#allocation31_spill] sm:$0xff]  ;;  %v9194_v31 = vld [vmem:[#allocation34_spill] sm:$0xff] }
 0x261   : > { %9154 = vst [vmem:[#allocation149_spill] sm:$0xff] %v7106_v8  ;;  %v7123_v8 = vadd.f32 1e-06, %v9164_v15  ;;  %v7135_v55 = vadd.f32 1e-06, %v9171_v51  ;;  %v2220_v61 = vadd.f32 %v9174_v22, %v2219_v43  ;;  %v9175_v15 = vld [vmem:[#allocation286_spill] sm:$0xff] }
 0x262   : > { %9156 = vst [vmem:[#allocation30_spill] sm:$0xff] %v7109_v59  ;;  %v7126_v59 = vadd.f32 1e-06, %v9166_v32  ;;  %v9177_v32 = vld [vmem:[#allocation20_spill] sm:$0xff]  ;;  %v7148_v42 = vadd.f32 1e-06, %v9179_v50  ;;  %v7155_v43 = vmul.f32 %v9183_v6, %v1952_v7 }
 0x263   : > { %9159 = vst [vmem:[#allocation207_spill] sm:$0xff] %v7113_v30  ;;  %v7132_v30 = vadd.f32 1e-06, %v9169_v47  ;;  %v9181_v47 = vld [vmem:[#allocation175_spill] sm:$0xff]  ;;  %v1703_v51 = vmul.f32 0.6931472, %v3318_v37  ;;  %v2221_v7 = vadd.f32 %v9194_v31, %v2220_v61 }
 0x264   : > { %9163 = vst [vmem:[#allocation277_spill] sm:$0xff] %v7120_v57  ;;  %v7139_v57 = vpop.eup %3327  ;;  %3337 = vlog2.f32 %v9181_v47  ;;  %v9186_v50 = vld [vmem:[#allocation290_spill] sm:$0xff]  ;;  %v9188_v47 = vld [vmem:[#allocation291_spill] sm:$0xff]  ;;  %v9190_v37 = vld [vmem:[#allocation244_spill] sm:$0xff]  ;;  %v2339_v20 = vadd.f32 %v7158_v10, %v7155_v43 }
 0x265   : > { %9165 = vst [vmem:[#allocation280_spill] sm:$0xff] %v7123_v8  ;;  %v7142_v8 = vadd.f32 1e-06, %v9175_v15  ;;  %3339 = vlog2.f32 %v9190_v37  ;;  %v9193_v6 = vld [vmem:[#allocation176_spill] sm:$0xff]  ;;  %v1955_v1 = vsub.f32 %v9204_v18, %v1703_v51 }
 0x266   : > { %9167 = vst [vmem:[#allocation170_spill] sm:$0xff] %v7126_v59  ;;  %v7145_v59 = vadd.f32 1e-06, %v9177_v32  ;;  %v7163_v32 = vadd.f32 1e-06, %v6767_v14  ;;  %3341 = vlog2.f32 %v9193_v6  ;;  %v9202_v6 = vld [vmem:[#allocation298_spill] sm:$0xff] }
 0x267   : > { %9170 = vst [vmem:[#allocation281_spill] sm:$0xff] %v7132_v30  ;;  %v7151_v30 = vpop.eup %3329  ;;  %v7194_v61 = vadd.f32 1e-06, %v9202_v6  ;;  %v9213_v18 = vld [vmem:[#allocation212_spill] sm:$0xff] }
 0x268   : > { %9172 = vst [vmem:[#allocation214_spill] sm:$0xff] %v7135_v55  ;;  %v9182_v55 = vld [vmem:[#allocation215_spill] sm:$0xff]  ;;  %v7160_v15 = vpop.eup %3331  ;;  %v7216_v51 = vadd.f32 1e-06, %v9213_v18  ;;  %v1707_v18 = vmul.f32 0.6931472, %v3322_v4 }
 0x269   : > { %9176 = vst [vmem:[#allocation23_spill] sm:$0xff] %v7142_v8  ;;  %v1954_v36 = vsub.f32 %v9182_v55, %v1701_v53  ;;  %v9191_v53 = vld [vmem:[#allocation292_spill] sm:$0xff]  ;;  %v7179_v14 = vpop.eup %3333  ;;  %v1705_v8 = vmul.f32 0.6931472, %v3320_v44  ;;  %v7213_v44 = vadd.f32 1e-06, %v6826_v29 }
 0x26a   : > { %9178 = vst [vmem:[#allocation19_spill] sm:$0xff] %v7145_v59  ;;  %v7169_v59 = vadd.f32 1e-06, %v9188_v47  ;;  %v7173_v55 = vadd.f32 1e-06, %v9191_v53  ;;  %v9201_v53 = vld [vmem:[#allocation177_spill] sm:$0xff] }
 0x26b   : > { %9180 = vst [vmem:[#allocation282_spill] sm:$0xff] %v7148_v42  ;;  %v7166_v42 = vadd.f32 1e-06, %v9186_v50  ;;  %3343 = vlog2.f32 %v9201_v53  ;;  %v7198_v56 = vmul.f32 %v9205_v39, %v1954_v36  ;;  %v7209_v53 = vadd.f32 1e-06, %v6822_v62  ;;  %v9215_v39 = vld [vmem:[#allocation35_spill] sm:$0xff] }
 0x26c   : > { %9185 = vst [vmem:[#allocation208_spill] sm:$0xff] %v7163_v32  ;;  %v9195_v32 = vld [vmem:[#allocation295_spill] sm:$0xff]  ;;  %v2222_v36 = vadd.f32 %v9215_v39, %v2221_v7  ;;  %v7226_v62 = vadd.f32 1e-06, %v6844_v27  ;;  %v9220_v29 = vld [vmem:[#allocation178_spill] sm:$0xff]  ;;  %v9222_v7 = vld [vmem:[#allocation161_spill] sm:$0xff] }
 0x26d   : > { %9187 = vst [vmem:[#allocation171_spill] sm:$0xff] %v7166_v42  ;;  %v7182_v50 = vadd.f32 1e-06, %v9195_v32  ;;  %v9197_v42 = vld [vmem:[#allocation296_spill] sm:$0xff]  ;;  %v2340_v6 = vadd.f32 %v2339_v20, %v7198_v56  ;;  %v1956_v20 = vsub.f32 %v9222_v7, %v1705_v8  ;;  %v9231_v4 = vld [vmem:[#allocation307_spill] sm:$0xff] }
 0x26e   : > { %9189 = vst [vmem:[#allocation284_spill] sm:$0xff] %v7169_v59  ;;  %v7185_v47 = vadd.f32 1e-06, %v9197_v42  ;;  %v9199_v59 = vld [vmem:[#allocation159_spill] sm:$0xff]  ;;  %v1709_v8 = vmul.f32 0.6931472, %v7117_v33 }
 0x26f   : > { %9192 = vst [vmem:[#allocation209_spill] sm:$0xff] %v7173_v55  ;;  %v7188_v37 = vadd.f32 1e-06, %v9199_v59  ;;  %v7191_v55 = vpop.eup %3335  ;;  %v9206_v42 = vld [vmem:[#allocation211_spill] sm:$0xff]  ;;  %v1711_v33 = vmul.f32 0.6931472, %v7129_v9  ;;  %v7275_v26 = vmul.f32 %v9244_v13, %v1956_v20 }
 0x270   : > { %9196 = vst [vmem:[#allocation173_spill] sm:$0xff] %v7182_v50  ;;  %v7200_v32 = vpop.eup %3337  ;;  %v9208_v59 = vld [vmem:[#allocation299_spill] sm:$0xff]  ;;  %v1713_v9 = vmul.f32 0.6931472, %v7139_v57  ;;  %v9253_v20 = vld [vmem:[#allocation37_spill] sm:$0xff] }
 0x271   : > { %9198 = vst [vmem:[#allocation31_spill] sm:$0xff] %v7185_v47  ;;  %v7203_v47 = vadd.f32 1e-06, %v9206_v42  ;;  %v9211_v50 = vld [vmem:[#allocation247_spill] sm:$0xff]  ;;  %v7220_v42 = vpop.eup %3339  ;;  %v9261_v57 = vld [vmem:[#allocation321_spill] sm:$0xff] }
 0x272   : > { %9200 = vst [vmem:[#allocation286_spill] sm:$0xff] %v7188_v37  ;;  %v7206_v37 = vadd.f32 1e-06, %v9208_v59  ;;  %3345 = vlog2.f32 %v9211_v50  ;;  %v7223_v59 = vadd.f32 1e-06, %v6837_v2 }
 0x273   : > { %9203 = vst [vmem:[#allocation20_spill] sm:$0xff] %v7194_v61  ;;  %3347 = vlog2.f32 %v9220_v29  ;;  %v9230_v61 = vld [vmem:[#allocation250_spill] sm:$0xff]  ;;  %v7308_v54 = vadd.f32 1e-06, %v9261_v57 }
 0x274   : > { %9207 = vst [vmem:[#allocation288_spill] sm:$0xff] %v7203_v47  ;;  %v9270_v57 = vld [vmem:[#allocation162_spill] sm:$0xff] }
 0x275   : > { %9209 = vst [vmem:[#allocation175_spill] sm:$0xff] %v7206_v37  ;;  %v9223_v37 = vld [vmem:[#allocation11_spill] sm:$0xff] }
 0x276   : > { %9210 = vst [vmem:[#allocation215_spill] sm:$0xff] %v7209_v53  ;;  %v9218_v53 = vld [vmem:[#allocation213_spill] sm:$0xff]  ;;  %v7237_v47 = vmul.f32 %v9223_v37, %v1955_v1  ;;  %v9233_v1 = vld [vmem:[#allocation36_spill] sm:$0xff] }
 0x277   : > { %9212 = vst [vmem:[#allocation6_spill] sm:$0xff] %v7213_v44  ;;  %v7229_v50 = vadd.f32 1e-06, %v9218_v53  ;;  %v7232_v44 = vpop.eup %3341  ;;  %v2223_v37 = vadd.f32 %v9233_v1, %v2222_v36  ;;  %v9243_v36 = vld [vmem:[#allocation216_spill] sm:$0xff] }
 0x278   : > { %9214 = vst [vmem:[#allocation7_spill] sm:$0xff] %v7216_v51  ;;  %v9221_v51 = vld [vmem:[#allocation179_spill] sm:$0xff]  ;;  %v7239_v2 = vpop.eup %3343  ;;  %v2341_v7 = vadd.f32 %v2340_v6, %v7237_v47  ;;  %v1957_v6 = vsub.f32 %v9243_v36, %v1707_v18  ;;  %v9252_v18 = vld [vmem:[#allocation136_spill] sm:$0xff]  ;;  %v1727_v40 = vmul.f32 0.6931472, %v7232_v44 }
 0x279   : > { %9216 = vst [vmem:[#allocation290_spill] sm:$0xff] %v7223_v59  ;;  %3349 = vlog2.f32 %v9221_v51  ;;  %v9224_v59 = vld [vmem:[#allocation22_spill] sm:$0xff]  ;;  %v7252_v51 = vadd.f32 1e-06, %v9231_v4  ;;  %v7257_v58 = vpop.eup %3345  ;;  %v9241_v4 = vld [vmem:[#allocation312_spill] sm:$0xff]  ;;  %v1958_v13 = vsub.f32 %v9252_v18, %v1709_v8  ;;  %v2224_v36 = vadd.f32 %v9253_v20, %v2223_v37  ;;  %v9263_v37 = vld [vmem:[#allocation217_spill] sm:$0xff] }
 0x27a   : > { %9217 = vst [vmem:[#allocation291_spill] sm:$0xff] %v7226_v62  ;;  %v7242_v27 = vadd.f32 1e-06, %v9224_v59  ;;  %v9226_v62 = vld [vmem:[#allocation305_spill] sm:$0xff]  ;;  %3351 = vlog2.f32 %v9230_v61  ;;  %v9240_v61 = vld [vmem:[#allocation180_spill] sm:$0xff]  ;;  %v2342_v17 = vadd.f32 %v2341_v7, %v7275_v26  ;;  %v1959_v7 = vsub.f32 %v9263_v37, %v1711_v33 }
 0x27b   : > { %9219 = vst [vmem:[#allocation244_spill] sm:$0xff] %v7229_v50  ;;  %v7245_v53 = vadd.f32 1e-06, %v9226_v62  ;;  %v9228_v50 = vld [vmem:[#allocation306_spill] sm:$0xff]  ;;  %v9234_v59 = vld [vmem:[#allocation309_spill] sm:$0xff]  ;;  %3353 = vlog2.f32 %v9240_v61  ;;  %v2225_v33 = vadd.f32 %v9272_v28, %v2224_v36 }
 0x27c   : > { %9225 = vst [vmem:[#allocation292_spill] sm:$0xff] %v7242_v27  ;;  %v7248_v29 = vadd.f32 1e-06, %v9228_v50  ;;  %v7260_v27 = vadd.f32 1e-06, %v9234_v59  ;;  %v9236_v62 = vld [vmem:[#allocation310_spill] sm:$0xff]  ;;  %v7277_v59 = vpop.eup %3347 }
 0x27d   : > { %9227 = vst [vmem:[#allocation176_spill] sm:$0xff] %v7245_v53  ;;  %v7263_v53 = vadd.f32 1e-06, %v9236_v62  ;;  %v9238_v50 = vld [vmem:[#allocation311_spill] sm:$0xff]  ;;  %v1715_v8 = vmul.f32 0.6931472, %v7151_v30 }
 0x27e   : > { %9229 = vst [vmem:[#allocation34_spill] sm:$0xff] %v7248_v29  ;;  %v7266_v29 = vadd.f32 1e-06, %v9238_v50  ;;  %v9264_v18 = vld [vmem:[#allocation13_spill] sm:$0xff] }
 0x27f   : > { %9232 = vst [vmem:[#allocation295_spill] sm:$0xff] %v7252_v51  ;;  %v7270_v51 = vadd.f32 1e-06, %v9241_v4  ;;  %v9251_v4 = vld [vmem:[#allocation181_spill] sm:$0xff]  ;;  %v2085_v52 = vmul.f32 %v9264_v18, %v1957_v6 }
 0x280   : > { %9235 = vst [vmem:[#allocation296_spill] sm:$0xff] %v7260_v27  ;;  %v9245_v27 = vld [vmem:[#allocation314_spill] sm:$0xff]  ;;  %3355 = vlog2.f32 %v9251_v4  ;;  %v9273_v18 = vld [vmem:[#allocation325_spill] sm:$0xff] }
 0x281   : > { %9237 = vst [vmem:[#allocation159_spill] sm:$0xff] %v7263_v53  ;;  %v7280_v62 = vadd.f32 1e-06, %v9245_v27  ;;  %v9247_v53 = vld [vmem:[#allocation315_spill] sm:$0xff]  ;;  %3357 = vlog2.f32 %v9260_v49  ;;  %v9269_v49 = vld [vmem:[#allocation182_spill] sm:$0xff]  ;;  %v2343_v37 = vadd.f32 %v2342_v17, %v2085_v52 }
 0x282   : > { %9239 = vst [vmem:[#allocation177_spill] sm:$0xff] %v7266_v29  ;;  %v7283_v50 = vadd.f32 1e-06, %v9247_v53  ;;  %v9249_v29 = vld [vmem:[#allocation316_spill] sm:$0xff]  ;;  %3359 = vlog2.f32 %v9269_v49  ;;  %v7329_v21 = vadd.f32 1e-06, %v9273_v18 }
 0x283   : > { %9242 = vst [vmem:[#allocation298_spill] sm:$0xff] %v7270_v51  ;;  %v7286_v61 = vadd.f32 1e-06, %v9249_v29  ;;  %v7289_v51 = vpop.eup %3349  ;;  %v9278_v49 = vld [vmem:[#allocation137_spill] sm:$0xff]  ;;  %v1721_v18 = vmul.f32 0.6931472, %v7191_v55 }
 0x284   : > { %9246 = vst [vmem:[#allocation27_spill] sm:$0xff] %v7280_v62  ;;  %v7295_v27 = vpop.eup %3351  ;;  %v9254_v62 = vld [vmem:[#allocation317_spill] sm:$0xff]  ;;  %v1723_v55 = vmul.f32 0.6931472, %v7200_v32 }
 0x285   : > { %9248 = vst [vmem:[#allocation8_spill] sm:$0xff] %v7283_v50  ;;  %v7298_v53 = vadd.f32 1e-06, %v9254_v62  ;;  %v9256_v50 = vld [vmem:[#allocation319_spill] sm:$0xff]  ;;  %v7313_v0 = vpop.eup %3353 }
 0x286   : > { %9250 = vst [vmem:[#allocation211_spill] sm:$0xff] %v7286_v61  ;;  %v7301_v29 = vadd.f32 1e-06, %v9256_v50  ;;  %v9258_v61 = vld [vmem:[#allocation320_spill] sm:$0xff]  ;;  %v9265_v62 = vld [vmem:[#allocation323_spill] sm:$0xff]  ;;  %v7326_v6 = vpop.eup %3355 }
 0x287   : > { %9255 = vst [vmem:[#allocation299_spill] sm:$0xff] %v7298_v53  ;;  %v7304_v4 = vadd.f32 1e-06, %v9258_v61  ;;  %v7316_v53 = vadd.f32 1e-06, %v9265_v62  ;;  %v9267_v50 = vld [vmem:[#allocation324_spill] sm:$0xff]  ;;  %v7339_v17 = vpop.eup %3357 }
 0x288   : > { %9257 = vst [vmem:[#allocation247_spill] sm:$0xff] %v7301_v29  ;;  %v7319_v29 = vadd.f32 1e-06, %v9267_v50  ;;  %v1717_v61 = vmul.f32 0.6931472, %v7160_v15  ;;  %v9275_v62 = vld [vmem:[#allocation326_spill] sm:$0xff] }
 0x289   : > { %9259 = vst [vmem:[#allocation212_spill] sm:$0xff] %v7304_v4  ;;  %v9271_v4 = vld [vmem:[#allocation24_spill] sm:$0xff]  ;;  %v1719_v50 = vmul.f32 0.6931472, %v7179_v14  ;;  %v9277_v15 = vld [vmem:[#allocation183_spill] sm:$0xff]  ;;  %v2470_v14 = vmul.f32 %v7158_v10, %v7158_v10  ;;  %v9288_v10 = vld [vmem:[#allocation141_spill] sm:$0xff] }
 0x28a   : > { %9262 = vst [vmem:[#allocation35_spill] sm:$0xff] %v7308_v54  ;;  %v1960_v54 = vsub.f32 %v9270_v57, %v1713_v9  ;;  %v2086_v30 = vmul.f32 %v9271_v4, %v1958_v13  ;;  %3361 = vlog2.f32 %v9277_v15  ;;  %v9279_v9 = vld [vmem:[#allocation25_spill] sm:$0xff]  ;;  %v9283_v15 = vld [vmem:[#allocation140_spill] sm:$0xff] }
 0x28b   : > { %9266 = vst [vmem:[#allocation213_spill] sm:$0xff] %v7316_v53  ;;  %v7332_v53 = vadd.f32 1e-06, %v9275_v62  ;;  %v2087_v57 = vmul.f32 %v9279_v9, %v1959_v7  ;;  %v9280_v13 = vld [vmem:[#allocation41_spill] sm:$0xff]  ;;  %v2469_v62 = vmul.f32 %v7155_v43, %v7155_v43  ;;  %v7352_v9 = vpop.eup %3359  ;;  %v2471_v43 = vmul.f32 %v7198_v56, %v7198_v56 }
 0x28c   : > { %9268 = vst [vmem:[#allocation178_spill] sm:$0xff] %v7319_v29  ;;  %v1961_v29 = vsub.f32 %v9278_v49, %v1715_v8  ;;  %v2226_v4 = vadd.f32 %v9280_v13, %v2225_v33  ;;  %v2344_v36 = vadd.f32 %v2343_v37, %v2086_v30  ;;  %v1962_v8 = vsub.f32 %v9283_v15, %v1717_v61  ;;  %v9284_v49 = vld [vmem:[#allocation42_spill] sm:$0xff] }
 0x28d   : > { %9274 = vst [vmem:[#allocation179_spill] sm:$0xff] %v7329_v21  ;;  %v2088_v7 = vmul.f32 %v8770_v25, %v1960_v54  ;;  %v1963_v21 = vsub.f32 %v9288_v10, %v1719_v50  ;;  %v9289_v25 = vld [vmem:[#allocation43_spill] sm:$0xff]  ;;  %v7367_v15 = vadd.f32 1e-06, %v6955_v16  ;;  %v2597_v32 = vadd.f32 %v2470_v14, %v2469_v62  ;;  %v9292_v10 = vld [vmem:[#allocation45_spill] sm:$0xff]  ;;  %v9295_v62 = vld [vmem:[#allocation46_spill] sm:$0xff] }
 0x28e   : > { %9276 = vst [vmem:[#allocation161_spill] sm:$0xff] %v7332_v53  ;;  %v2227_v33 = vadd.f32 %v9284_v49, %v2226_v4  ;;  %v2345_v37 = vadd.f32 %v2344_v36, %v2087_v57  ;;  %v9285_v53 = vld [vmem:[#allocation329_spill] sm:$0xff]  ;;  %v2089_v61 = vmul.f32 %v8771_v34, %v1961_v29  ;;  %v2090_v50 = vmul.f32 %v8773_v63, %v1962_v8 }
 0x28f   : > { %9282 = vst [vmem:[#allocation11_spill] sm:$0xff] %v7342_v46  ;;  %v7355_v3 = vadd.f32 1e-06, %v9285_v53  ;;  %v9287_v46 = vld [vmem:[#allocation184_spill] sm:$0xff]  ;;  %v1725_v53 = vmul.f32 0.6931472, %v7220_v42  ;;  %v2473_v16 = vmul.f32 %v7275_v26, %v7275_v26  ;;  %v2598_v42 = vadd.f32 %v2597_v32, %v2471_v43 }
 0x290   : > { %3363 = vlog2.f32 %v9287_v46  ;;  %v2228_v54 = vadd.f32 %v9289_v25, %v2227_v33  ;;  %v2346_v4 = vadd.f32 %v2345_v37, %v2088_v7  ;;  %v7364_v36 = vpop.eup %3361  ;;  %9290 = vst [vmem:[#allocation305_spill] sm:$0xff] %v7367_v15  ;;  %v2472_v46 = vmul.f32 %v7237_v47, %v7237_v47  ;;  %v9293_v33 = vld [vmem:[#allocation330_spill] sm:$0xff]  ;;  %v9294_v15 = vld [vmem:[#allocation144_spill] sm:$0xff]  ;;  %v9298_v43 = vld [vmem:[#allocation47_spill] sm:$0xff] }
 0x291   : > { %9286 = vst [vmem:[#allocation22_spill] sm:$0xff] %v7355_v3  ;;  %v9291_v3 = vld [vmem:[#allocation142_spill] sm:$0xff]  ;;  %v7376_v37 = vadd.f32 1e-06, %v9293_v33  ;;  %v1965_v19 = vsub.f32 %v9294_v15, %v1723_v55  ;;  %v2091_v47 = vmul.f32 %v9150_v41, %v1963_v21  ;;  %v7387_v8 = vadd.f32 1e-06, %v6963_v48 }
 0x292   : > { %v1964_v56 = vsub.f32 %v9291_v3, %v1721_v18  ;;  %v2229_v34 = vadd.f32 %v9292_v10, %v2228_v54  ;;  %v2347_v29 = vadd.f32 %v2346_v4, %v2089_v61  ;;  %v1729_v3 = vmul.f32 0.6931472, %v7239_v2  ;;  %v9297_v4 = vld [vmem:[#allocation145_spill] sm:$0xff]  ;;  %v9301_v2 = vld [vmem:[#allocation48_spill] sm:$0xff] }
 0x293   : > { %9296 = vst [vmem:[#allocation306_spill] sm:$0xff] %v7387_v8  ;;  %v2474_v54 = vmul.f32 %v2085_v52, %v2085_v52  ;;  %v2599_v44 = vadd.f32 %v2598_v42, %v2472_v46  ;;  %v1966_v33 = vsub.f32 %v9297_v4, %v1725_v53  ;;  %v1731_v41 = vmul.f32 0.6931472, %v7257_v58  ;;  %v9299_v21 = vld [vmem:[#allocation185_spill] sm:$0xff] }
 0x294   : > { %v2230_v18 = vadd.f32 %v9295_v62, %v2229_v34  ;;  %v2348_v14 = vadd.f32 %v2347_v29, %v2090_v50  ;;  %v2092_v26 = vmul.f32 %v9174_v22, %v1964_v56  ;;  %3365 = vlog2.f32 %v9299_v21  ;;  %v9300_v29 = vld [vmem:[#allocation147_spill] sm:$0xff] }
 0x295   : > { %v2475_v32 = vmul.f32 %v2086_v30, %v2086_v30  ;;  %v2600_v34 = vadd.f32 %v2599_v44, %v2473_v16  ;;  %v1967_v48 = vsub.f32 %v9300_v29, %v1727_v40  ;;  %v2093_v8 = vmul.f32 %v9194_v31, %v1965_v19  ;;  %v9303_v30 = vld [vmem:[#allocation52_spill] sm:$0xff] }
 0x296   : > { %v7384_v63 = vpop.eup %3363  ;;  %v2231_v55 = vadd.f32 %v9298_v43, %v2230_v18  ;;  %v2349_v15 = vadd.f32 %v2348_v14, %v2091_v47  ;;  %v7399_v53 = vadd.f32 1e-06, %v6967_v35  ;;  %v1733_v22 = vmul.f32 0.6931472, %v7277_v59  ;;  %v9302_v18 = vld [vmem:[#allocation148_spill] sm:$0xff]  ;;  %v9304_v35 = vld [vmem:[#allocation150_spill] sm:$0xff] }
 0x297   : > { %v2476_v56 = vmul.f32 %v2087_v57, %v2087_v57  ;;  %v2601_v42 = vadd.f32 %v2600_v34, %v2474_v54  ;;  %v1968_v58 = vsub.f32 %v9302_v18, %v1729_v3  ;;  %v2094_v14 = vmul.f32 %v9215_v39, %v1966_v33  ;;  %v9305_v57 = vld [vmem:[#allocation53_spill] sm:$0xff]  ;;  %v9306_v34 = vld [vmem:[#allocation151_spill] sm:$0xff] }
 0x298   : > { %v2232_v52 = vadd.f32 %v9301_v2, %v2231_v55  ;;  %v2350_v46 = vadd.f32 %v2349_v15, %v2092_v26  ;;  %v7406_v40 = vadd.f32 1e-06, %v6971_v12  ;;  %v1735_v19 = vmul.f32 0.6931472, %v7289_v51 }
 0x299   : > { %v2477_v31 = vmul.f32 %v2088_v7, %v2088_v7  ;;  %v2602_v4 = vadd.f32 %v2601_v42, %v2475_v32  ;;  %v1969_v55 = vsub.f32 %v9304_v35, %v1731_v41  ;;  %v2095_v59 = vmul.f32 %v9233_v1, %v1967_v48  ;;  %v9307_v7 = vld [vmem:[#allocation54_spill] sm:$0xff]  ;;  %v9308_v48 = vld [vmem:[#allocation187_spill] sm:$0xff] }
 0x29a   : > { %v2233_v16 = vadd.f32 %v9303_v30, %v2232_v52  ;;  %v2351_v44 = vadd.f32 %v2350_v46, %v2093_v8  ;;  %v3366_v3 = vpop.eup %3365  ;;  %v7413_v39 = vadd.f32 1e-06, %v6975_v24  ;;  %v1737_v33 = vmul.f32 0.6931472, %v7295_v27  ;;  %v9309_v42 = vld [vmem:[#allocation154_spill] sm:$0xff]  ;;  %v9310_v27 = vld [vmem:[#allocation55_spill] sm:$0xff] }
 0x29b   : > { %v2478_v21 = vmul.f32 %v2089_v61, %v2089_v61  ;;  %v2603_v12 = vadd.f32 %v2602_v4, %v2476_v56  ;;  %v1970_v29 = vsub.f32 %v9306_v34, %v1733_v22  ;;  %v2096_v51 = vmul.f32 %v9253_v20, %v1968_v58  ;;  %v9315_v34 = vld [vmem:[#allocation188_spill] sm:$0xff] }
 0x29c   : > { %v2234_v54 = vadd.f32 %v9305_v57, %v2233_v16  ;;  %v2352_v15 = vadd.f32 %v2351_v44, %v2094_v14  ;;  %v1739_v1 = vmul.f32 0.6931472, %v7313_v0  ;;  %3367 = vlog2.f32 %v9308_v48  ;;  %v9311_v44 = vld [vmem:[#allocation157_spill] sm:$0xff] }
 0x29d   : > { %v2479_v52 = vmul.f32 %v2090_v50, %v2090_v50  ;;  %v2604_v46 = vadd.f32 %v2603_v12, %v2477_v31  ;;  %v1971_v24 = vsub.f32 %v9309_v42, %v1735_v19  ;;  %v2097_v18 = vmul.f32 %v9272_v28, %v1969_v55  ;;  %v9312_v50 = vld [vmem:[#allocation58_spill] sm:$0xff] }
 0x29e   : > { %v2235_v32 = vadd.f32 %v9307_v7, %v2234_v54  ;;  %v2353_v41 = vadd.f32 %v2352_v15, %v2095_v59  ;;  %v7425_v22 = vadd.f32 1e-06, %v6979_v45  ;;  %v1741_v20 = vmul.f32 0.6931472, %v7326_v6  ;;  %v9313_v45 = vld [vmem:[#allocation158_spill] sm:$0xff] }
 0x29f   : > { %v2480_v58 = vmul.f32 %v2091_v47, %v2091_v47  ;;  %v2605_v16 = vadd.f32 %v2604_v46, %v2478_v21  ;;  %v1972_v0 = vsub.f32 %v9311_v44, %v1737_v33  ;;  %v2098_v4 = vmul.f32 %v9280_v13, %v1970_v29  ;;  %v9314_v47 = vld [vmem:[#allocation59_spill] sm:$0xff] }
 0x2a0   : > { %v2236_v61 = vadd.f32 %v9310_v27, %v2235_v32  ;;  %v2354_v56 = vadd.f32 %v2353_v41, %v2096_v51  ;;  %v7432_v19 = vadd.f32 1e-06, %v6998_v23  ;;  %v1743_v28 = vmul.f32 0.6931472, %v7339_v17  ;;  %v9316_v23 = vld [vmem:[#allocation160_spill] sm:$0xff] }
 0x2a1   : > { %v2481_v55 = vmul.f32 %v2092_v26, %v2092_v26  ;;  %v2606_v54 = vadd.f32 %v2605_v16, %v2479_v52  ;;  %v1973_v15 = vsub.f32 %v9313_v45, %v1739_v1  ;;  %v2099_v6 = vmul.f32 %v9284_v49, %v1971_v24  ;;  %v9317_v26 = vld [vmem:[#allocation2_spill] sm:$0xff]  ;;  %v9318_v49 = vld [vmem:[#allocation152_spill] sm:$0xff]  ;;  %v9319_v24 = vld [vmem:[#allocation163_spill] sm:$0xff] }
 0x2a2   : > { %v2237_v31 = vadd.f32 %v9312_v50, %v2236_v61  ;;  %v2355_v35 = vadd.f32 %v2354_v56, %v2097_v18  ;;  %v3368_v33 = vpop.eup %3367  ;;  %v1745_v13 = vmul.f32 0.6931472, %v7352_v9  ;;  %3369 = vlog2.f32 %v9315_v34  ;;  %v9320_v56 = vld [vmem:[#allocation3_spill] sm:$0xff]  ;;  %v9321_v16 = vld [vmem:[#allocation190_spill] sm:$0xff]  ;;  %v9326_v34 = vld [vmem:[#allocation61_spill] sm:$0xff] }
 0x2a3   : > { %v2482_v29 = vmul.f32 %v2093_v8, %v2093_v8  ;;  %v2607_v32 = vadd.f32 %v2606_v54, %v2480_v58  ;;  %v1974_v41 = vsub.f32 %v9316_v23, %v1741_v20  ;;  %v2100_v17 = vmul.f32 %v9289_v25, %v1972_v0  ;;  %v9322_v0 = vld [vmem:[#allocation164_spill] sm:$0xff]  ;;  %v9324_v45 = vld [vmem:[#allocation191_spill] sm:$0xff]  ;;  %v9327_v23 = vld [vmem:[#allocation153_spill] sm:$0xff] }
 0x2a4   : > { %v2238_v21 = vadd.f32 %v9314_v47, %v2237_v31  ;;  %v2356_v12 = vadd.f32 %v2355_v35, %v2098_v4  ;;  %v1747_v1 = vmul.f32 0.6931472, %v7364_v36  ;;  %3371 = vlog2.f32 %v9318_v49  ;;  %v9323_v35 = vld [vmem:[#allocation60_spill] sm:$0xff] }
 0x2a5   : > { %v2483_v46 = vmul.f32 %v2094_v14, %v2094_v14  ;;  %v2608_v42 = vadd.f32 %v2607_v32, %v2481_v55  ;;  %v1975_v61 = vsub.f32 %v9319_v24, %v1743_v28  ;;  %v2101_v9 = vmul.f32 %v9292_v10, %v1973_v15  ;;  %v9329_v49 = vld [vmem:[#allocation4_spill] sm:$0xff]  ;;  %v9330_v24 = vld [vmem:[#allocation193_spill] sm:$0xff] }
 0x2a6   : > { %v2239_v48 = vadd.f32 %v9317_v26, %v2238_v21  ;;  %v2357_v52 = vadd.f32 %v2356_v12, %v2099_v6  ;;  %v1749_v20 = vmul.f32 0.6931472, %v7384_v63  ;;  %3373 = vlog2.f32 %v9321_v16  ;;  %v9325_v21 = vld [vmem:[#allocation218_spill] sm:$0xff]  ;;  %v9332_v16 = vld [vmem:[#allocation5_spill] sm:$0xff] }
 0x2a7   : > { %v2484_v25 = vmul.f32 %v2095_v59, %v2095_v59  ;;  %v2609_v44 = vadd.f32 %v2608_v42, %v2482_v29  ;;  %v1976_v31 = vsub.f32 %v9322_v0, %v1745_v13  ;;  %v2102_v36 = vmul.f32 %v9295_v62, %v1974_v41  ;;  %v9333_v0 = vld [vmem:[#allocation194_spill] sm:$0xff] }
 0x2a8   : > { %v2240_v8 = vadd.f32 %v9320_v56, %v2239_v48  ;;  %v2358_v58 = vadd.f32 %v2357_v52, %v2100_v17  ;;  %v3370_v54 = vpop.eup %3369  ;;  %v1751_v28 = vmul.f32 0.6931472, %v3366_v3  ;;  %3375 = vlog2.f32 %v9324_v45  ;;  %v9328_v48 = vld [vmem:[#allocation165_spill] sm:$0xff]  ;;  %v9335_v45 = vld [vmem:[#allocation62_spill] sm:$0xff] }
 0x2a9   : > { %v2485_v10 = vmul.f32 %v2096_v51, %v2096_v51  ;;  %v2610_v15 = vadd.f32 %v2609_v44, %v2483_v46  ;;  %v1977_v12 = vsub.f32 %v9325_v21, %v1747_v1  ;;  %v2103_v63 = vmul.f32 %v9298_v43, %v1975_v61  ;;  %v9336_v21 = vld [vmem:[#allocation195_spill] sm:$0xff] }
 0x2aa   : > { %v2241_v14 = vadd.f32 %v9323_v35, %v2240_v8  ;;  %v2359_v55 = vadd.f32 %v2358_v58, %v2101_v9  ;;  %v3372_v32 = vpop.eup %3371  ;;  %v1753_v13 = vmul.f32 0.6931472, %v3368_v33  ;;  %3377 = vlog2.f32 %v9327_v23  ;;  %v9331_v8 = vld [vmem:[#allocation219_spill] sm:$0xff] }
 0x2ab   : > { %v2486_v62 = vmul.f32 %v2097_v18, %v2097_v18  ;;  %v2611_v41 = vadd.f32 %v2610_v15, %v2484_v25  ;;  %v1978_v52 = vsub.f32 %v9328_v48, %v1749_v20  ;;  %v2104_v3 = vmul.f32 %v9301_v2, %v1976_v31  ;;  %v9338_v23 = vld [vmem:[#allocation63_spill] sm:$0xff] }
 0x2ac   : > { %v2242_v59 = vadd.f32 %v9326_v34, %v2241_v14  ;;  %v2360_v29 = vadd.f32 %v2359_v55, %v2102_v36  ;;  %v3374_v42 = vpop.eup %3373  ;;  %v1755_v1 = vmul.f32 0.6931472, %v3370_v54  ;;  %3379 = vlog2.f32 %v9330_v24  ;;  %v9334_v14 = vld [vmem:[#allocation220_spill] sm:$0xff] }
 0x2ad   : > { %v2487_v43 = vmul.f32 %v2098_v4, %v2098_v4  ;;  %v2612_v61 = vadd.f32 %v2611_v41, %v2485_v10  ;;  %v1979_v58 = vsub.f32 %v9331_v8, %v1751_v28  ;;  %v2105_v33 = vmul.f32 %v9303_v30, %v1977_v12  ;;  %v9341_v8 = vld [vmem:[#allocation223_spill] sm:$0xff] }
 0x2ae   : > { %v2243_v51 = vadd.f32 %v9329_v49, %v2242_v59  ;;  %v2361_v46 = vadd.f32 %v2360_v29, %v2103_v63  ;;  %v3376_v44 = vpop.eup %3375  ;;  %v1757_v20 = vmul.f32 0.6931472, %v3372_v32  ;;  %3381 = vlog2.f32 %v9333_v0  ;;  %v9337_v59 = vld [vmem:[#allocation221_spill] sm:$0xff] }
 0x2af   : > { %v2488_v2 = vmul.f32 %v2099_v6, %v2099_v6  ;;  %v2613_v31 = vadd.f32 %v2612_v61, %v2486_v62  ;;  %v1980_v55 = vsub.f32 %v9334_v14, %v1753_v13  ;;  %v2106_v54 = vmul.f32 %v9305_v57, %v1978_v52  ;;  %v9339_v52 = vld [vmem:[#allocation222_spill] sm:$0xff] }
 0x2b0   : > { %v2244_v18 = vadd.f32 %v9332_v16, %v2243_v51  ;;  %v2362_v25 = vadd.f32 %v2361_v46, %v2104_v3  ;;  %v3378_v15 = vpop.eup %3377  ;;  %v1759_v28 = vmul.f32 0.6931472, %v3374_v42  ;;  %3383 = vlog2.f32 %v9336_v21  ;;  %v9340_v42 = vld [vmem:[#allocation9_spill] sm:$0xff] }
 0x2b1   : > { %v2489_v30 = vmul.f32 %v2100_v17, %v2100_v17  ;;  %v2614_v12 = vadd.f32 %v2613_v31, %v2487_v43  ;;  %v1981_v29 = vsub.f32 %v9337_v59, %v1755_v1  ;;  %v2107_v32 = vmul.f32 %v9307_v7, %v1979_v58 }
 0x2b2   : > { %v2245_v4 = vadd.f32 %v9335_v45, %v2244_v18  ;;  %v2363_v10 = vadd.f32 %v2362_v25, %v2105_v33  ;;  %v3380_v41 = vpop.eup %3379  ;;  %v1761_v13 = vmul.f32 0.6931472, %v3376_v44  ;;  %3385 = vlog2.f32 %v6982_v38  ;;  %v9342_v38 = vld [vmem:[#allocation10_spill] sm:$0xff] }
 0x2b3   : > { %v2490_v57 = vmul.f32 %v2101_v9, %v2101_v9  ;;  %v2615_v48 = vadd.f32 %v2614_v12, %v2488_v2  ;;  %v1982_v51 = vsub.f32 %v9339_v52, %v1757_v20  ;;  %v2108_v46 = vmul.f32 %v9310_v27, %v1980_v55  ;;  %v9343_v2 = vld [vmem:[#allocation224_spill] sm:$0xff] }
 0x2b4   : > { %v2246_v6 = vadd.f32 %v9338_v23, %v2245_v4  ;;  %v2364_v62 = vadd.f32 %v2363_v10, %v2106_v54  ;;  %v3382_v43 = vpop.eup %3381  ;;  %v1763_v1 = vmul.f32 0.6931472, %v3378_v15  ;;  %3387 = vlog2.f32 %v6987_v11  ;;  %v9344_v11 = vld [vmem:[#allocation64_spill] sm:$0xff] }
 0x2b5   : > { %v2491_v7 = vmul.f32 %v2102_v36, %v2102_v36  ;;  %v2616_v61 = vadd.f32 %v2615_v48, %v2489_v30  ;;  %v1983_v58 = vsub.f32 %v9341_v8, %v1759_v28  ;;  %v2109_v18 = vmul.f32 %v9312_v50, %v1981_v29  ;;  %v9345_v28 = vld [vmem:[#allocation225_spill] sm:$0xff] }
 0x2b6   : > { %v2247_v17 = vadd.f32 %v9340_v42, %v2246_v6  ;;  %v2365_v24 = vadd.f32 %v2364_v62, %v2107_v32  ;;  %v3384_v44 = vpop.eup %3383  ;;  %v1765_v20 = vmul.f32 0.6931472, %v3380_v41  ;;  %3389 = vlog2.f32 %v6990_v5  ;;  %v9346_v5 = vld [vmem:[#allocation65_spill] sm:$0xff]  ;;  %v9347_v6 = vld [vmem:[#allocation331_spill] sm:$0xff]  ;;  %v9348_v41 = vld [vmem:[#allocation226_spill] sm:$0xff] }
 0x2b7   : > { %v2492_v27 = vmul.f32 %v2103_v63, %v2103_v63  ;;  %v2617_v0 = vadd.f32 %v2616_v61, %v2490_v57  ;;  %v1984_v31 = vsub.f32 %v9343_v2, %v1761_v13  ;;  %v2110_v14 = vmul.f32 %v9314_v47, %v1982_v51  ;;  %v9352_v61 = vld [vmem:[#allocation14_spill] sm:$0xff]  ;;  %v9355_v2 = vld [vmem:[#allocation15_spill] sm:$0xff] }
 0x2b8   : > { %v2248_v9 = vadd.f32 %v9342_v38, %v2247_v17  ;;  %v2366_v25 = vadd.f32 %v2365_v24, %v2108_v46  ;;  %v3386_v4 = vpop.eup %3385  ;;  %v1767_v10 = vmul.f32 0.6931472, %v3382_v43  ;;  %3391 = vlog2.f32 %v6993_v60  ;;  %v9349_v60 = vld [vmem:[#allocation66_spill] sm:$0xff]  ;;  %v9350_v17 = vld [vmem:[#allocation332_spill] sm:$0xff]  ;;  %v9351_v43 = vld [vmem:[#allocation227_spill] sm:$0xff] }
 0x2b9   : > { %v2493_v50 = vmul.f32 %v2104_v3, %v2104_v3  ;;  %v2618_v15 = vadd.f32 %v2617_v0, %v2491_v7  ;;  %v1985_v21 = vsub.f32 %v9345_v28, %v1763_v1  ;;  %v2111_v30 = vmul.f32 %v9317_v26, %v1983_v58 }
 0x2ba   : > { %v2249_v36 = vadd.f32 %v9344_v11, %v2248_v9  ;;  %v2367_v55 = vadd.f32 %v2366_v25, %v2109_v18  ;;  %v3388_v59 = vpop.eup %3387  ;;  %v1769_v29 = vmul.f32 0.6931472, %v3384_v44  ;;  %3393 = vlog2.f32 %v9347_v6  ;;  %v9353_v25 = vld [vmem:[#allocation333_spill] sm:$0xff] }
 0x2bb   : > { %v2494_v47 = vmul.f32 %v2105_v33, %v2105_v33  ;;  %v2619_v62 = vadd.f32 %v2618_v15, %v2492_v27  ;;  %v1986_v13 = vsub.f32 %v9348_v41, %v1765_v20  ;;  %v2112_v57 = vmul.f32 %v9320_v56, %v1984_v31  ;;  %v9354_v20 = vld [vmem:[#allocation228_spill] sm:$0xff] }
 0x2bc   : > { %v2250_v63 = vadd.f32 %v9346_v5, %v2249_v36  ;;  %v2368_v12 = vadd.f32 %v2367_v55, %v2110_v14  ;;  %v3390_v52 = vpop.eup %3389  ;;  %v1771_v51 = vmul.f32 0.6931472, %v3386_v4  ;;  %3395 = vlog2.f32 %v9350_v17  ;;  %v9356_v4 = vld [vmem:[#allocation335_spill] sm:$0xff] }
 0x2bd   : > { %v2495_v26 = vmul.f32 %v2106_v54, %v2106_v54  ;;  %v2620_v24 = vadd.f32 %v2619_v62, %v2493_v50  ;;  %v1987_v1 = vsub.f32 %v9351_v43, %v1767_v10  ;;  %v2113_v7 = vmul.f32 %v9323_v35, %v1985_v21  ;;  %v9357_v50 = vld [vmem:[#allocation229_spill] sm:$0xff]  ;;  %v9358_v21 = vld [vmem:[#allocation67_spill] sm:$0xff] }
 0x2be   : > { %v2251_v3 = vadd.f32 %v9349_v60, %v2250_v63  ;;  %v2369_v48 = vadd.f32 %v2368_v12, %v2111_v30  ;;  %v3392_v58 = vpop.eup %3391  ;;  %v1773_v9 = vmul.f32 0.6931472, %v3388_v59  ;;  %3397 = vlog2.f32 %v9353_v25 }
 0x2bf   : > { %v2496_v56 = vmul.f32 %v2107_v32, %v2107_v32  ;;  %v2621_v44 = vadd.f32 %v2620_v24, %v2494_v47  ;;  %v1988_v27 = vsub.f32 %v9354_v20, %v1769_v29  ;;  %v2114_v0 = vmul.f32 %v9326_v34, %v1986_v13  ;;  %v9359_v29 = vld [vmem:[#allocation336_spill] sm:$0xff]  ;;  %v9360_v47 = vld [vmem:[#allocation230_spill] sm:$0xff] }
 0x2c0   : > { %v2252_v33 = vadd.f32 %v9352_v61, %v2251_v3  ;;  %v2370_v8 = vadd.f32 %v2369_v48, %v2112_v57  ;;  %v3394_v36 = vpop.eup %3393  ;;  %v1775_v55 = vmul.f32 0.6931472, %v3390_v52  ;;  %3399 = vlog2.f32 %v9356_v4  ;;  %v9361_v13 = vld [vmem:[#allocation68_spill] sm:$0xff] }
 0x2c1   : > { %v2497_v35 = vmul.f32 %v2108_v46, %v2108_v46  ;;  %v2622_v10 = vadd.f32 %v2621_v44, %v2495_v26  ;;  %v1989_v15 = vsub.f32 %v9357_v50, %v1771_v51  ;;  %v2115_v28 = vmul.f32 %v9329_v49, %v1987_v1  ;;  %v9362_v51 = vld [vmem:[#allocation337_spill] sm:$0xff]  ;;  %v9363_v26 = vld [vmem:[#allocation231_spill] sm:$0xff]  ;;  %v9364_v1 = vld [vmem:[#allocation16_spill] sm:$0xff] }
 0x2c2   : > { %v2253_v54 = vadd.f32 %v9355_v2, %v2252_v33  ;;  %v2371_v31 = vadd.f32 %v2370_v8, %v2113_v7  ;;  %v3396_v12 = vpop.eup %3395  ;;  %v1777_v59 = vmul.f32 0.6931472, %v3392_v58  ;;  %3401 = vlog2.f32 %v9359_v29 }
 0x2c3   : > { %v2498_v34 = vmul.f32 %v2109_v18, %v2109_v18  ;;  %v2623_v6 = vadd.f32 %v2622_v10, %v2496_v56  ;;  %v1990_v62 = vsub.f32 %v9360_v47, %v1773_v9  ;;  %v2116_v41 = vmul.f32 %v9332_v16, %v1988_v27  ;;  %v9365_v9 = vld [vmem:[#allocation338_spill] sm:$0xff]  ;;  %v9366_v56 = vld [vmem:[#allocation232_spill] sm:$0xff]  ;;  %v9367_v27 = vld [vmem:[#allocation69_spill] sm:$0xff] }
 0x2c4   : > { %v2254_v32 = vadd.f32 %v9358_v21, %v2253_v54  ;;  %v2372_v63 = vadd.f32 %v2371_v31, %v2114_v0  ;;  %v3398_v48 = vpop.eup %3397  ;;  %v1779_v52 = vmul.f32 0.6931472, %v3394_v36  ;;  %3403 = vlog2.f32 %v9362_v51 }
 0x2c5   : > { %v2499_v49 = vmul.f32 %v2110_v14, %v2110_v14  ;;  %v2624_v17 = vadd.f32 %v2623_v6, %v2497_v35  ;;  %v1991_v24 = vsub.f32 %v9363_v26, %v1775_v55  ;;  %v2117_v43 = vmul.f32 %v9335_v45, %v1989_v15  ;;  %v9368_v55 = vld [vmem:[#allocation339_spill] sm:$0xff]  ;;  %v9369_v35 = vld [vmem:[#allocation233_spill] sm:$0xff]  ;;  %v9370_v15 = vld [vmem:[#allocation70_spill] sm:$0xff] }
 0x2c6   : > { %v2255_v46 = vadd.f32 %v9361_v13, %v2254_v32  ;;  %v2373_v3 = vadd.f32 %v2372_v63, %v2115_v28  ;;  %v3400_v8 = vpop.eup %3399  ;;  %v1781_v58 = vmul.f32 0.6931472, %v3396_v12  ;;  %3405 = vlog2.f32 %v9365_v9 }
 0x2c7   : > { %v2500_v16 = vmul.f32 %v2111_v30, %v2111_v30  ;;  %v2625_v25 = vadd.f32 %v2624_v17, %v2498_v34  ;;  %v1992_v44 = vsub.f32 %v9366_v56, %v1777_v59  ;;  %v2118_v20 = vmul.f32 %v9338_v23, %v1990_v62  ;;  %v9371_v59 = vld [vmem:[#allocation340_spill] sm:$0xff]  ;;  %v9372_v34 = vld [vmem:[#allocation234_spill] sm:$0xff]  ;;  %v9373_v62 = vld [vmem:[#allocation17_spill] sm:$0xff] }
 0x2c8   : > { %v2256_v18 = vadd.f32 %v9364_v1, %v2255_v46  ;;  %v2374_v33 = vadd.f32 %v2373_v3, %v2116_v41  ;;  %v3402_v31 = vpop.eup %3401  ;;  %v1783_v36 = vmul.f32 0.6931472, %v3398_v48  ;;  %3407 = vlog2.f32 %v9368_v55 }
 0x2c9   : > { %v2501_v45 = vmul.f32 %v2112_v57, %v2112_v57  ;;  %v2626_v4 = vadd.f32 %v2625_v25, %v2499_v49  ;;  %v1993_v10 = vsub.f32 %v9369_v35, %v1779_v52  ;;  %v2119_v50 = vmul.f32 %v9340_v42, %v1991_v24  ;;  %v9374_v52 = vld [vmem:[#allocation341_spill] sm:$0xff]  ;;  %v9375_v49 = vld [vmem:[#allocation235_spill] sm:$0xff]  ;;  %v9376_v24 = vld [vmem:[#allocation18_spill] sm:$0xff] }
 0x2ca   : > { %v2257_v14 = vadd.f32 %v9367_v27, %v2256_v18  ;;  %v2375_v54 = vadd.f32 %v2374_v33, %v2117_v43  ;;  %v3404_v63 = vpop.eup %3403  ;;  %v1785_v12 = vmul.f32 0.6931472, %v3400_v8  ;;  %3409 = vlog2.f32 %v9371_v59 }
 0x2cb   : > { %v2502_v23 = vmul.f32 %v2113_v7, %v2113_v7  ;;  %v2627_v29 = vadd.f32 %v2626_v4, %v2500_v16  ;;  %v1994_v6 = vsub.f32 %v9372_v34, %v1781_v58  ;;  %v2120_v47 = vmul.f32 %v9342_v38, %v1992_v44  ;;  %v9377_v58 = vld [vmem:[#allocation342_spill] sm:$0xff]  ;;  %v9378_v16 = vld [vmem:[#allocation236_spill] sm:$0xff]  ;;  %v9379_v44 = vld [vmem:[#allocation71_spill] sm:$0xff] }
 0x2cc   : > { %v2258_v30 = vadd.f32 %v9370_v15, %v2257_v14  ;;  %v2376_v32 = vadd.f32 %v2375_v54, %v2118_v20  ;;  %v3406_v3 = vpop.eup %3405  ;;  %v1787_v48 = vmul.f32 0.6931472, %v3402_v31  ;;  %3411 = vlog2.f32 %v9374_v52 }
 0x2cd   : > { %v2503_v42 = vmul.f32 %v2114_v0, %v2114_v0  ;;  %v2628_v51 = vadd.f32 %v2627_v29, %v2501_v45  ;;  %v1995_v17 = vsub.f32 %v9375_v49, %v1783_v36  ;;  %v2121_v26 = vmul.f32 %v9344_v11, %v1993_v10  ;;  %v9380_v36 = vld [vmem:[#allocation343_spill] sm:$0xff]  ;;  %v9381_v45 = vld [vmem:[#allocation237_spill] sm:$0xff]  ;;  %v9382_v10 = vld [vmem:[#allocation72_spill] sm:$0xff] }
 0x2ce   : > { %v2259_v57 = vadd.f32 %v9373_v62, %v2258_v30  ;;  %v2377_v46 = vadd.f32 %v2376_v32, %v2119_v50  ;;  %v3408_v33 = vpop.eup %3407  ;;  %v1789_v8 = vmul.f32 0.6931472, %v3404_v63  ;;  %3413 = vlog2.f32 %v9377_v58 }
 0x2cf   : > { %v2504_v38 = vmul.f32 %v2115_v28, %v2115_v28  ;;  %v2629_v9 = vadd.f32 %v2628_v51, %v2502_v23  ;;  %v1996_v25 = vsub.f32 %v9378_v16, %v1785_v12  ;;  %v2122_v56 = vmul.f32 %v9346_v5, %v1994_v6  ;;  %v9383_v12 = vld [vmem:[#allocation344_spill] sm:$0xff]  ;;  %v9384_v23 = vld [vmem:[#allocation26_spill] sm:$0xff]  ;;  %v9385_v6 = vld [vmem:[#allocation73_spill] sm:$0xff] }
 0x2d0   : > { %v2260_v7 = vadd.f32 %v9376_v24, %v2259_v57  ;;  %v2378_v18 = vadd.f32 %v2377_v46, %v2120_v47  ;;  %v3410_v54 = vpop.eup %3409  ;;  %v1791_v31 = vmul.f32 0.6931472, %v3406_v3  ;;  %3415 = vlog2.f32 %v9380_v36 }
 0x2d1   : > { %v2505_v11 = vmul.f32 %v2116_v41, %v2116_v41  ;;  %v2630_v55 = vadd.f32 %v2629_v9, %v2503_v42  ;;  %v1997_v4 = vsub.f32 %v9381_v45, %v1787_v48  ;;  %v2123_v35 = vmul.f32 %v9349_v60, %v1995_v17  ;;  %v9386_v48 = vld [vmem:[#allocation345_spill] sm:$0xff]  ;;  %v9387_v42 = vld [vmem:[#allocation28_spill] sm:$0xff]  ;;  %v9388_v17 = vld [vmem:[#allocation74_spill] sm:$0xff] }
 0x2d2   : > { %v2261_v0 = vadd.f32 %v9379_v44, %v2260_v7  ;;  %v2379_v14 = vadd.f32 %v2378_v18, %v2121_v26  ;;  %v3412_v32 = vpop.eup %3411  ;;  %v1793_v63 = vmul.f32 0.6931472, %v3408_v33  ;;  %3417 = vlog2.f32 %v9383_v12 }
 0x2d3   : > { %v2506_v5 = vmul.f32 %v2117_v43, %v2117_v43  ;;  %v2631_v59 = vadd.f32 %v2630_v55, %v2504_v38  ;;  %v1998_v29 = vsub.f32 %v9384_v23, %v1789_v8  ;;  %v2124_v34 = vmul.f32 %v9352_v61, %v1996_v25  ;;  %v9389_v8 = vld [vmem:[#allocation346_spill] sm:$0xff]  ;;  %v9390_v38 = vld [vmem:[#allocation29_spill] sm:$0xff]  ;;  %v9391_v25 = vld [vmem:[#allocation75_spill] sm:$0xff] }
 0x2d4   : > { %v2262_v28 = vadd.f32 %v9382_v10, %v2261_v0  ;;  %v2380_v30 = vadd.f32 %v2379_v14, %v2122_v56  ;;  %v3414_v46 = vpop.eup %3413  ;;  %v1795_v3 = vmul.f32 0.6931472, %v3410_v54  ;;  %3419 = vlog2.f32 %v9386_v48 }
 0x2d5   : > { %v2507_v60 = vmul.f32 %v2118_v20, %v2118_v20  ;;  %v2632_v52 = vadd.f32 %v2631_v59, %v2505_v11  ;;  %v1999_v51 = vsub.f32 %v9387_v42, %v1791_v31  ;;  %v2125_v49 = vmul.f32 %v9355_v2, %v1997_v4  ;;  %v9392_v31 = vld [vmem:[#allocation347_spill] sm:$0xff]  ;;  %v9393_v11 = vld [vmem:[#allocation238_spill] sm:$0xff]  ;;  %v9394_v4 = vld [vmem:[#allocation76_spill] sm:$0xff] }
 0x2d6   : > { %v2263_v41 = vadd.f32 %v9385_v6, %v2262_v28  ;;  %v2381_v57 = vadd.f32 %v2380_v30, %v2123_v35  ;;  %v3416_v18 = vpop.eup %3415  ;;  %v1797_v33 = vmul.f32 0.6931472, %v3412_v32  ;;  %3421 = vlog2.f32 %v9389_v8 }
 0x2d7   : > { %v2508_v61 = vmul.f32 %v2119_v50, %v2119_v50  ;;  %v2633_v58 = vadd.f32 %v2632_v52, %v2506_v5  ;;  %v2000_v9 = vsub.f32 %v9390_v38, %v1793_v63  ;;  %v2126_v16 = vmul.f32 %v9358_v21, %v1998_v29  ;;  %v9395_v63 = vld [vmem:[#allocation348_spill] sm:$0xff]  ;;  %v9396_v5 = vld [vmem:[#allocation239_spill] sm:$0xff]  ;;  %v9397_v29 = vld [vmem:[#allocation77_spill] sm:$0xff] }
 0x2d8   : > { %v2264_v43 = vadd.f32 %v9388_v17, %v2263_v41  ;;  %v2382_v7 = vadd.f32 %v2381_v57, %v2124_v34  ;;  %v3418_v14 = vpop.eup %3417  ;;  %v1799_v54 = vmul.f32 0.6931472, %v3414_v46  ;;  %3423 = vlog2.f32 %v9392_v31 }
 0x2d9   : > { %v2509_v2 = vmul.f32 %v2120_v47, %v2120_v47  ;;  %v2634_v36 = vadd.f32 %v2633_v58, %v2507_v60  ;;  %v2001_v55 = vsub.f32 %v9393_v11, %v1795_v3  ;;  %v2127_v45 = vmul.f32 %v9361_v13, %v1999_v51  ;;  %v9398_v3 = vld [vmem:[#allocation349_spill] sm:$0xff]  ;;  %v9399_v60 = vld [vmem:[#allocation240_spill] sm:$0xff]  ;;  %v9400_v51 = vld [vmem:[#allocation78_spill] sm:$0xff] }
 0x2da   : > { %v2265_v20 = vadd.f32 %v9391_v25, %v2264_v43  ;;  %v2383_v0 = vadd.f32 %v2382_v7, %v2125_v49  ;;  %v3420_v30 = vpop.eup %3419  ;;  %v1801_v32 = vmul.f32 0.6931472, %v3416_v18  ;;  %3425 = vlog2.f32 %v9395_v63 }
 0x2db   : > { %v2510_v21 = vmul.f32 %v2121_v26, %v2121_v26  ;;  %v2635_v12 = vadd.f32 %v2634_v36, %v2508_v61  ;;  %v2002_v59 = vsub.f32 %v9396_v5, %v1797_v33  ;;  %v2128_v23 = vmul.f32 %v9364_v1, %v2000_v9  ;;  %v9401_v33 = vld [vmem:[#allocation350_spill] sm:$0xff]  ;;  %v9402_v61 = vld [vmem:[#allocation241_spill] sm:$0xff]  ;;  %v9403_v9 = vld [vmem:[#allocation79_spill] sm:$0xff] }
 0x2dc   : > { %v2266_v50 = vadd.f32 %v9394_v4, %v2265_v20  ;;  %v2384_v28 = vadd.f32 %v2383_v0, %v2126_v16  ;;  %v3422_v57 = vpop.eup %3421  ;;  %v1803_v46 = vmul.f32 0.6931472, %v3418_v14  ;;  %3427 = vlog2.f32 %v9398_v3 }
 0x2dd   : > { %v2511_v13 = vmul.f32 %v2122_v56, %v2122_v56  ;;  %v2636_v48 = vadd.f32 %v2635_v12, %v2509_v2  ;;  %v2003_v52 = vsub.f32 %v9399_v60, %v1799_v54  ;;  %v2129_v42 = vmul.f32 %v9367_v27, %v2001_v55  ;;  %v9404_v54 = vld [vmem:[#allocation351_spill] sm:$0xff]  ;;  %v9405_v2 = vld [vmem:[#allocation166_spill] sm:$0xff]  ;;  %v9406_v55 = vld [vmem:[#allocation80_spill] sm:$0xff] }
 0x2de   : > { %v2267_v47 = vadd.f32 %v9397_v29, %v2266_v50  ;;  %v2385_v41 = vadd.f32 %v2384_v28, %v2127_v45  ;;  %v3424_v7 = vpop.eup %3423  ;;  %v1805_v18 = vmul.f32 0.6931472, %v3420_v30  ;;  %3429 = vlog2.f32 %v9401_v33 }
 0x2df   : > { %v2512_v1 = vmul.f32 %v2123_v35, %v2123_v35  ;;  %v2637_v8 = vadd.f32 %v2636_v48, %v2510_v21  ;;  %v2004_v58 = vsub.f32 %v9402_v61, %v1801_v32  ;;  %v2130_v38 = vmul.f32 %v9370_v15, %v2002_v59  ;;  %v9407_v32 = vld [vmem:[#allocation352_spill] sm:$0xff]  ;;  %v9408_v21 = vld [vmem:[#allocation242_spill] sm:$0xff]  ;;  %v9409_v59 = vld [vmem:[#allocation81_spill] sm:$0xff] }
 0x2e0   : > { %v2268_v26 = vadd.f32 %v9400_v51, %v2267_v47  ;;  %v2386_v43 = vadd.f32 %v2385_v41, %v2128_v23  ;;  %v3426_v0 = vpop.eup %3425  ;;  %v1807_v14 = vmul.f32 0.6931472, %v3422_v57  ;;  %3431 = vlog2.f32 %v9404_v54 }
 0x2e1   : > { %v2513_v27 = vmul.f32 %v2124_v34, %v2124_v34  ;;  %v2638_v31 = vadd.f32 %v2637_v8, %v2511_v13  ;;  %v2005_v36 = vsub.f32 %v9405_v2, %v1803_v46  ;;  %v2131_v11 = vmul.f32 %v9373_v62, %v2003_v52  ;;  %v9410_v46 = vld [vmem:[#allocation353_spill] sm:$0xff]  ;;  %v9411_v13 = vld [vmem:[#allocation243_spill] sm:$0xff]  ;;  %v9412_v52 = vld [vmem:[#allocation82_spill] sm:$0xff] }
 0x2e2   : > { %v2269_v56 = vadd.f32 %v9403_v9, %v2268_v26  ;;  %v2387_v20 = vadd.f32 %v2386_v43, %v2129_v42  ;;  %v3428_v28 = vpop.eup %3427  ;;  %v1809_v30 = vmul.f32 0.6931472, %v3424_v7  ;;  %3433 = vlog2.f32 %v9407_v32 }
 0x2e3   : > { %v2514_v15 = vmul.f32 %v2125_v49, %v2125_v49  ;;  %v2639_v63 = vadd.f32 %v2638_v31, %v2512_v1  ;;  %v2006_v12 = vsub.f32 %v9408_v21, %v1805_v18  ;;  %v2132_v5 = vmul.f32 %v9376_v24, %v2004_v58  ;;  %v9413_v18 = vld [vmem:[#allocation354_spill] sm:$0xff]  ;;  %v9414_v1 = vld [vmem:[#allocation167_spill] sm:$0xff] }
 0x2e4   : > { %v2270_v35 = vadd.f32 %v9406_v55, %v2269_v56  ;;  %v2388_v50 = vadd.f32 %v2387_v20, %v2130_v38  ;;  %v3430_v41 = vpop.eup %3429  ;;  %v1811_v57 = vmul.f32 0.6931472, %v3426_v0  ;;  %3435 = vlog2.f32 %v9410_v46  ;;  %v9415_v58 = vld [vmem:[#allocation83_spill] sm:$0xff] }
 0x2e5   : > { %v2515_v62 = vmul.f32 %v2126_v16, %v2126_v16  ;;  %v2640_v3 = vadd.f32 %v2639_v63, %v2513_v27  ;;  %v2007_v48 = vsub.f32 %v9411_v13, %v1807_v14  ;;  %v2133_v60 = vmul.f32 %v9379_v44, %v2005_v36  ;;  %v9416_v14 = vld [vmem:[#allocation355_spill] sm:$0xff]  ;;  %v9417_v27 = vld [vmem:[#allocation138_spill] sm:$0xff]  ;;  %v9418_v36 = vld [vmem:[#allocation84_spill] sm:$0xff] }
 0x2e6   : > { %v2271_v34 = vadd.f32 %v9409_v59, %v2270_v35  ;;  %v2389_v47 = vadd.f32 %v2388_v50, %v2131_v11  ;;  %v3432_v43 = vpop.eup %3431  ;;  %v1813_v7 = vmul.f32 0.6931472, %v3428_v28  ;;  %3437 = vlog2.f32 %v9413_v18 }
 0x2e7   : > { %v2516_v24 = vmul.f32 %v2127_v45, %v2127_v45  ;;  %v2641_v33 = vadd.f32 %v2640_v3, %v2514_v15  ;;  %v2008_v8 = vsub.f32 %v9414_v1, %v1809_v30  ;;  %v2134_v61 = vmul.f32 %v9382_v10, %v2006_v12  ;;  %v9419_v30 = vld [vmem:[#allocation356_spill] sm:$0xff]  ;;  %v9420_v15 = vld [vmem:[#allocation139_spill] sm:$0xff]  ;;  %v9421_v12 = vld [vmem:[#allocation85_spill] sm:$0xff] }
 0x2e8   : > { %v2272_v49 = vadd.f32 %v9412_v52, %v2271_v34  ;;  %v2390_v26 = vadd.f32 %v2389_v47, %v2132_v5  ;;  %v3434_v20 = vpop.eup %3433  ;;  %v1815_v0 = vmul.f32 0.6931472, %v3430_v41  ;;  %3439 = vlog2.f32 %v9416_v14 }
 0x2e9   : > { %v2517_v44 = vmul.f32 %v2128_v23, %v2128_v23  ;;  %v2642_v54 = vadd.f32 %v2641_v33, %v2515_v62  ;;  %v2009_v31 = vsub.f32 %v9417_v27, %v1811_v57  ;;  %v2135_v2 = vmul.f32 %v9385_v6, %v2007_v48  ;;  %v9422_v57 = vld [vmem:[#allocation357_spill] sm:$0xff]  ;;  %v9423_v62 = vld [vmem:[#allocation143_spill] sm:$0xff]  ;;  %v9424_v48 = vld [vmem:[#allocation86_spill] sm:$0xff] }
 0x2ea   : > { %v2273_v16 = vadd.f32 %v9415_v58, %v2272_v49  ;;  %v2391_v56 = vadd.f32 %v2390_v26, %v2133_v60  ;;  %v3436_v50 = vpop.eup %3435  ;;  %v1817_v28 = vmul.f32 0.6931472, %v3432_v43  ;;  %3441 = vlog2.f32 %v9419_v30 }
 0x2eb   : > { %v2518_v10 = vmul.f32 %v2129_v42, %v2129_v42  ;;  %v2643_v32 = vadd.f32 %v2642_v54, %v2516_v24  ;;  %v2010_v63 = vsub.f32 %v9420_v15, %v1813_v7  ;;  %v2136_v21 = vmul.f32 %v9388_v17, %v2008_v8  ;;  %v9425_v7 = vld [vmem:[#allocation358_spill] sm:$0xff]  ;;  %v9426_v24 = vld [vmem:[#allocation168_spill] sm:$0xff]  ;;  %v9427_v8 = vld [vmem:[#allocation87_spill] sm:$0xff] }
 0x2ec   : > { %v2274_v45 = vadd.f32 %v9418_v36, %v2273_v16  ;;  %v2392_v35 = vadd.f32 %v2391_v56, %v2134_v61  ;;  %v3438_v47 = vpop.eup %3437  ;;  %v1819_v41 = vmul.f32 0.6931472, %v3434_v20  ;;  %3443 = vlog2.f32 %v9422_v57 }
 0x2ed   : > { %v2519_v6 = vmul.f32 %v2130_v38, %v2130_v38  ;;  %v2644_v46 = vadd.f32 %v2643_v32, %v2517_v44  ;;  %v2011_v3 = vsub.f32 %v9423_v62, %v1815_v0  ;;  %v2137_v13 = vmul.f32 %v9391_v25, %v2009_v31  ;;  %v9428_v0 = vld [vmem:[#allocation146_spill] sm:$0xff]  ;;  %v9429_v44 = vld [vmem:[#allocation169_spill] sm:$0xff]  ;;  %v9430_v31 = vld [vmem:[#allocation88_spill] sm:$0xff] }
 0x2ee   : > { %v2275_v23 = vadd.f32 %v9421_v12, %v2274_v45  ;;  %v2393_v34 = vadd.f32 %v2392_v35, %v2135_v2  ;;  %v3440_v26 = vpop.eup %3439  ;;  %v1821_v43 = vmul.f32 0.6931472, %v3436_v50  ;;  %3445 = vlog2.f32 %v9425_v7 }
 0x2ef   : > { %v2520_v17 = vmul.f32 %v2131_v11, %v2131_v11  ;;  %v2645_v18 = vadd.f32 %v2644_v46, %v2518_v10  ;;  %v2012_v33 = vsub.f32 %v9426_v24, %v1817_v28  ;;  %v2138_v1 = vmul.f32 %v9394_v4, %v2010_v63  ;;  %v9431_v28 = vld [vmem:[#allocation205_spill] sm:$0xff]  ;;  %v9432_v10 = vld [vmem:[#allocation156_spill] sm:$0xff] }
 0x2f0   : > { %v2276_v42 = vadd.f32 %v9424_v48, %v2275_v23  ;;  %v2394_v49 = vadd.f32 %v2393_v34, %v2136_v21  ;;  %v3442_v56 = vpop.eup %3441  ;;  %v1823_v20 = vmul.f32 0.6931472, %v3438_v47  ;;  %3447 = vlog2.f32 %v9428_v0  ;;  %v9433_v63 = vld [vmem:[#allocation89_spill] sm:$0xff] }
 0x2f1   : > { %v2521_v25 = vmul.f32 %v2132_v5, %v2132_v5  ;;  %v2646_v14 = vadd.f32 %v2645_v18, %v2519_v6  ;;  %v2013_v54 = vsub.f32 %v9429_v44, %v1819_v41  ;;  %v2139_v27 = vmul.f32 %v9397_v29, %v2011_v3  ;;  %v9434_v41 = vld [vmem:[#allocation206_spill] sm:$0xff]  ;;  %v9435_v6 = vld [vmem:[#allocation172_spill] sm:$0xff] }
 0x2f2   : > { %v2277_v38 = vadd.f32 %v9427_v8, %v2276_v42  ;;  %v2395_v16 = vadd.f32 %v2394_v49, %v2137_v13  ;;  %v3444_v35 = vpop.eup %3443  ;;  %v1825_v50 = vmul.f32 0.6931472, %v3440_v26  ;;  %3449 = vlog2.f32 %v9431_v28  ;;  %v9436_v3 = vld [vmem:[#allocation90_spill] sm:$0xff] }
 0x2f3   : > { %v2522_v4 = vmul.f32 %v2133_v60, %v2133_v60  ;;  %v2647_v30 = vadd.f32 %v2646_v14, %v2520_v17  ;;  %v2014_v32 = vsub.f32 %v9432_v10, %v1821_v43  ;;  %v2140_v15 = vmul.f32 %v9400_v51, %v2012_v33  ;;  %v9437_v43 = vld [vmem:[#allocation149_spill] sm:$0xff]  ;;  %v9438_v17 = vld [vmem:[#allocation174_spill] sm:$0xff]  ;;  %v9439_v33 = vld [vmem:[#allocation91_spill] sm:$0xff] }
 0x2f4   : > { %v2278_v11 = vadd.f32 %v9430_v31, %v2277_v38  ;;  %v2396_v45 = vadd.f32 %v2395_v16, %v2138_v1  ;;  %v3446_v34 = vpop.eup %3445  ;;  %v1827_v47 = vmul.f32 0.6931472, %v3442_v56  ;;  %3451 = vlog2.f32 %v9434_v41 }
 0x2f5   : > { %v2523_v29 = vmul.f32 %v2134_v61, %v2134_v61  ;;  %v2648_v57 = vadd.f32 %v2647_v30, %v2521_v25  ;;  %v2015_v46 = vsub.f32 %v9435_v6, %v1823_v20  ;;  %v2141_v62 = vmul.f32 %v9403_v9, %v2013_v54  ;;  %v9440_v20 = vld [vmem:[#allocation30_spill] sm:$0xff]  ;;  %v9441_v25 = vld [vmem:[#allocation245_spill] sm:$0xff]  ;;  %v9442_v54 = vld [vmem:[#allocation92_spill] sm:$0xff] }
 0x2f6   : > { %v2279_v5 = vadd.f32 %v9433_v63, %v2278_v11  ;;  %v2397_v23 = vadd.f32 %v2396_v45, %v2139_v27  ;;  %v3448_v49 = vpop.eup %3447  ;;  %v1829_v26 = vmul.f32 0.6931472, %v3444_v35  ;;  %3453 = vlog2.f32 %v9437_v43 }
 0x2f7   : > { %v2524_v51 = vmul.f32 %v2135_v2, %v2135_v2  ;;  %v2649_v7 = vadd.f32 %v2648_v57, %v2522_v4  ;;  %v2016_v18 = vsub.f32 %v9438_v17, %v1825_v50  ;;  %v2142_v24 = vmul.f32 %v9406_v55, %v2014_v32  ;;  %v9443_v50 = vld [vmem:[#allocation207_spill] sm:$0xff]  ;;  %v9444_v4 = vld [vmem:[#allocation246_spill] sm:$0xff]  ;;  %v9445_v32 = vld [vmem:[#allocation93_spill] sm:$0xff] }
 0x2f8   : > { %v2280_v60 = vadd.f32 %v9436_v3, %v2279_v5  ;;  %v2398_v42 = vadd.f32 %v2397_v23, %v2140_v15  ;;  %v3450_v16 = vpop.eup %3449  ;;  %v1831_v56 = vmul.f32 0.6931472, %v3446_v34  ;;  %3455 = vlog2.f32 %v9440_v20 }
 0x2f9   : > { %v2525_v9 = vmul.f32 %v2136_v21, %v2136_v21  ;;  %v2650_v0 = vadd.f32 %v2649_v7, %v2523_v29  ;;  %v2017_v14 = vsub.f32 %v9441_v25, %v1827_v47  ;;  %v2143_v44 = vmul.f32 %v9409_v59, %v2015_v46  ;;  %v9446_v47 = vld [vmem:[#allocation277_spill] sm:$0xff]  ;;  %v9447_v29 = vld [vmem:[#allocation248_spill] sm:$0xff]  ;;  %v9448_v46 = vld [vmem:[#allocation94_spill] sm:$0xff] }
 0x2fa   : > { %v2281_v61 = vadd.f32 %v9439_v33, %v2280_v60  ;;  %v2399_v38 = vadd.f32 %v2398_v42, %v2141_v62  ;;  %v3452_v45 = vpop.eup %3451  ;;  %v1833_v35 = vmul.f32 0.6931472, %v3448_v49  ;;  %3457 = vlog2.f32 %v9443_v50 }
 0x2fb   : > { %v2526_v55 = vmul.f32 %v2137_v13, %v2137_v13  ;;  %v2651_v28 = vadd.f32 %v2650_v0, %v2524_v51  ;;  %v2018_v30 = vsub.f32 %v9444_v4, %v1829_v26  ;;  %v2144_v10 = vmul.f32 %v9412_v52, %v2016_v18  ;;  %v9449_v26 = vld [vmem:[#allocation280_spill] sm:$0xff]  ;;  %v9450_v51 = vld [vmem:[#allocation249_spill] sm:$0xff]  ;;  %v9451_v18 = vld [vmem:[#allocation95_spill] sm:$0xff] }
 0x2fc   : > { %v2282_v2 = vadd.f32 %v9442_v54, %v2281_v61  ;;  %v2400_v11 = vadd.f32 %v2399_v38, %v2142_v24  ;;  %v3454_v23 = vpop.eup %3453  ;;  %v1835_v34 = vmul.f32 0.6931472, %v3450_v16  ;;  %3459 = vlog2.f32 %v9446_v47 }
 0x2fd   : > { %v2527_v59 = vmul.f32 %v2138_v1, %v2138_v1  ;;  %v2652_v41 = vadd.f32 %v2651_v28, %v2525_v9  ;;  %v2019_v57 = vsub.f32 %v9447_v29, %v1831_v56  ;;  %v2145_v6 = vmul.f32 %v9415_v58, %v2017_v14  ;;  %v9452_v56 = vld [vmem:[#allocation170_spill] sm:$0xff]  ;;  %v9453_v9 = vld [vmem:[#allocation251_spill] sm:$0xff]  ;;  %v9454_v14 = vld [vmem:[#allocation96_spill] sm:$0xff] }
 0x2fe   : > { %v2283_v21 = vadd.f32 %v9445_v32, %v2282_v2  ;;  %v2401_v5 = vadd.f32 %v2400_v11, %v2143_v44  ;;  %v3456_v42 = vpop.eup %3455  ;;  %v1837_v49 = vmul.f32 0.6931472, %v3452_v45  ;;  %3461 = vlog2.f32 %v9449_v26 }
 0x2ff   : > { %v2528_v52 = vmul.f32 %v2139_v27, %v2139_v27  ;;  %v2653_v43 = vadd.f32 %v2652_v41, %v2526_v55  ;;  %v2020_v7 = vsub.f32 %v9450_v51, %v1833_v35  ;;  %v2146_v17 = vmul.f32 %v9418_v36, %v2018_v30  ;;  %v9455_v35 = vld [vmem:[#allocation281_spill] sm:$0xff]  ;;  %v9456_v55 = vld [vmem:[#allocation252_spill] sm:$0xff] }
 0x300   : > { %v2284_v13 = vadd.f32 %v9448_v46, %v2283_v21  ;;  %v2402_v60 = vadd.f32 %v2401_v5, %v2144_v10  ;;  %v3458_v38 = vpop.eup %3457  ;;  %v1839_v16 = vmul.f32 0.6931472, %v3454_v23  ;;  %3463 = vlog2.f32 %v9452_v56  ;;  %v9457_v30 = vld [vmem:[#allocation32_spill] sm:$0xff] }
 0x301   : > { %v2529_v58 = vmul.f32 %v2140_v15, %v2140_v15  ;;  %v2654_v20 = vadd.f32 %v2653_v43, %v2527_v59  ;;  %v2021_v0 = vsub.f32 %v9453_v9, %v1835_v34  ;;  %v2147_v25 = vmul.f32 %v9421_v12, %v2019_v57  ;;  %v9458_v34 = vld [vmem:[#allocation214_spill] sm:$0xff]  ;;  %v9460_v57 = vld [vmem:[#allocation33_spill] sm:$0xff] }
 0x302   : > { %v2285_v1 = vadd.f32 %v9451_v18, %v2284_v13  ;;  %v2403_v61 = vadd.f32 %v2402_v60, %v2145_v6  ;;  %v3460_v11 = vpop.eup %3459  ;;  %v1841_v45 = vmul.f32 0.6931472, %v3456_v42  ;;  %3465 = vlog2.f32 %v9455_v35  ;;  %v9459_v59 = vld [vmem:[#allocation254_spill] sm:$0xff] }
 0x303   : > { %v2530_v36 = vmul.f32 %v2141_v62, %v2141_v62  ;;  %v2655_v50 = vadd.f32 %v2654_v20, %v2528_v52  ;;  %v2022_v28 = vsub.f32 %v9456_v55, %v1837_v49  ;;  %v2148_v4 = vmul.f32 %v9424_v48, %v2020_v7  ;;  %v9461_v49 = vld [vmem:[#allocation23_spill] sm:$0xff]  ;;  %v9463_v7 = vld [vmem:[#allocation97_spill] sm:$0xff] }
 0x304   : > { %v2286_v27 = vadd.f32 %v9454_v14, %v2285_v1  ;;  %v2404_v2 = vadd.f32 %v2403_v61, %v2146_v17  ;;  %v3462_v5 = vpop.eup %3461  ;;  %v1843_v23 = vmul.f32 0.6931472, %v3458_v38  ;;  %3467 = vlog2.f32 %v9458_v34  ;;  %v9462_v52 = vld [vmem:[#allocation255_spill] sm:$0xff] }
 0x305   : > { %v2531_v12 = vmul.f32 %v2142_v24, %v2142_v24  ;;  %v2656_v47 = vadd.f32 %v2655_v50, %v2529_v58  ;;  %v2023_v41 = vsub.f32 %v9459_v59, %v1839_v16  ;;  %v2149_v29 = vmul.f32 %v9427_v8, %v2021_v0  ;;  %v9464_v16 = vld [vmem:[#allocation19_spill] sm:$0xff]  ;;  %v9465_v58 = vld [vmem:[#allocation256_spill] sm:$0xff]  ;;  %v9466_v0 = vld [vmem:[#allocation98_spill] sm:$0xff] }
 0x306   : > { %v2287_v15 = vadd.f32 %v9457_v30, %v2286_v27  ;;  %v2405_v21 = vadd.f32 %v2404_v2, %v2147_v25  ;;  %v3464_v60 = vpop.eup %3463  ;;  %v1845_v42 = vmul.f32 0.6931472, %v3460_v11  ;;  %3469 = vlog2.f32 %v9461_v49 }
 0x307   : > { %v2532_v48 = vmul.f32 %v2143_v44, %v2143_v44  ;;  %v2657_v26 = vadd.f32 %v2656_v47, %v2530_v36  ;;  %v2024_v43 = vsub.f32 %v9462_v52, %v1841_v45  ;;  %v2150_v51 = vmul.f32 %v9430_v31, %v2022_v28  ;;  %v9467_v45 = vld [vmem:[#allocation282_spill] sm:$0xff]  ;;  %v9468_v36 = vld [vmem:[#allocation257_spill] sm:$0xff] }
 0x308   : > { %v2288_v62 = vadd.f32 %v9460_v57, %v2287_v15  ;;  %v2406_v13 = vadd.f32 %v2405_v21, %v2148_v4  ;;  %v3466_v61 = vpop.eup %3465  ;;  %v1847_v38 = vmul.f32 0.6931472, %v3462_v5  ;;  %3471 = vlog2.f32 %v9464_v16  ;;  %v9469_v28 = vld [vmem:[#allocation38_spill] sm:$0xff] }
 0x309   : > { %v2533_v8 = vmul.f32 %v2144_v10, %v2144_v10  ;;  %v2658_v56 = vadd.f32 %v2657_v26, %v2531_v12  ;;  %v2025_v20 = vsub.f32 %v9465_v58, %v1843_v23  ;;  %v2151_v9 = vmul.f32 %v9433_v63, %v2023_v41  ;;  %v9470_v23 = vld [vmem:[#allocation208_spill] sm:$0xff]  ;;  %v9471_v12 = vld [vmem:[#allocation258_spill] sm:$0xff]  ;;  %v9472_v41 = vld [vmem:[#allocation39_spill] sm:$0xff] }
 0x30a   : > { %v2289_v24 = vadd.f32 %v9463_v7, %v2288_v62  ;;  %v2407_v1 = vadd.f32 %v2406_v13, %v2149_v29  ;;  %v3468_v2 = vpop.eup %3467  ;;  %v1849_v11 = vmul.f32 0.6931472, %v3464_v60  ;;  %3473 = vlog2.f32 %v9467_v45 }
 0x30b   : > { %v2534_v31 = vmul.f32 %v2145_v6, %v2145_v6  ;;  %v2659_v35 = vadd.f32 %v2658_v56, %v2532_v48  ;;  %v2026_v50 = vsub.f32 %v9468_v36, %v1845_v42  ;;  %v2152_v55 = vmul.f32 %v9436_v3, %v2024_v43  ;;  %v9473_v42 = vld [vmem:[#allocation171_spill] sm:$0xff] }
 0x30c   : > { %v2290_v44 = vadd.f32 %v9466_v0, %v2289_v24  ;;  %v2408_v27 = vadd.f32 %v2407_v1, %v2150_v51  ;;  %v3470_v21 = vpop.eup %3469  ;;  %v1851_v5 = vmul.f32 0.6931472, %v3466_v61  ;;  %3475 = vlog2.f32 %v9470_v23  ;;  %v9474_v48 = vld [vmem:[#allocation259_spill] sm:$0xff] }
 0x30d   : > { %v2535_v63 = vmul.f32 %v2146_v17, %v2146_v17  ;;  %v2660_v34 = vadd.f32 %v2659_v35, %v2533_v8  ;;  %v2027_v47 = vsub.f32 %v9471_v12, %v1847_v38  ;;  %v2153_v59 = vmul.f32 %v9439_v33, %v2025_v20  ;;  %v9475_v43 = vld [vmem:[#allocation99_spill] sm:$0xff]  ;;  %v9476_v38 = vld [vmem:[#allocation284_spill] sm:$0xff] }
 0x30e   : > { %v2291_v10 = vadd.f32 %v9469_v28, %v2290_v44  ;;  %v2409_v15 = vadd.f32 %v2408_v27, %v2151_v9  ;;  %v3472_v13 = vpop.eup %3471  ;;  %v1853_v60 = vmul.f32 0.6931472, %v3468_v2  ;;  %3477 = vlog2.f32 %v9473_v42  ;;  %v9477_v8 = vld [vmem:[#allocation260_spill] sm:$0xff] }
 0x30f   : > { %v2536_v3 = vmul.f32 %v2147_v25, %v2147_v25  ;;  %v2661_v49 = vadd.f32 %v2660_v34, %v2534_v31  ;;  %v2028_v26 = vsub.f32 %v9474_v48, %v1849_v11  ;;  %v2154_v52 = vmul.f32 %v9442_v54, %v2026_v50  ;;  %v9478_v20 = vld [vmem:[#allocation100_spill] sm:$0xff]  ;;  %v9479_v11 = vld [vmem:[#allocation209_spill] sm:$0xff]  ;;  %v9480_v31 = vld [vmem:[#allocation186_spill] sm:$0xff] }
 0x310   : > { %v2292_v6 = vadd.f32 %v9472_v41, %v2291_v10  ;;  %v2410_v62 = vadd.f32 %v2409_v15, %v2152_v55  ;;  %v3474_v1 = vpop.eup %3473  ;;  %v1855_v61 = vmul.f32 0.6931472, %v3470_v21  ;;  %3479 = vlog2.f32 %v9476_v38  ;;  %v9481_v50 = vld [vmem:[#allocation101_spill] sm:$0xff] }
 0x311   : > { %v2537_v33 = vmul.f32 %v2148_v4, %v2148_v4  ;;  %v2662_v16 = vadd.f32 %v2661_v49, %v2535_v63  ;;  %v2029_v56 = vsub.f32 %v9477_v8, %v1851_v5  ;;  %v2155_v58 = vmul.f32 %v9445_v32, %v2027_v47  ;;  %v9482_v5 = vld [vmem:[#allocation173_spill] sm:$0xff]  ;;  %v9484_v47 = vld [vmem:[#allocation44_spill] sm:$0xff] }
 0x312   : > { %v2293_v17 = vadd.f32 %v9475_v43, %v2292_v6  ;;  %v2411_v24 = vadd.f32 %v2410_v62, %v2153_v59  ;;  %v3476_v27 = vpop.eup %3475  ;;  %v1857_v2 = vmul.f32 0.6931472, %v3472_v13  ;;  %3481 = vlog2.f32 %v9479_v11  ;;  %v9483_v63 = vld [vmem:[#allocation261_spill] sm:$0xff] }
 0x313   : > { %v2538_v54 = vmul.f32 %v2149_v29, %v2149_v29  ;;  %v2663_v45 = vadd.f32 %v2662_v16, %v2536_v3  ;;  %v2030_v35 = vsub.f32 %v9480_v31, %v1853_v60  ;;  %v2156_v36 = vmul.f32 %v9448_v46, %v2028_v26  ;;  %v9485_v60 = vld [vmem:[#allocation31_spill] sm:$0xff]  ;;  %v9486_v3 = vld [vmem:[#allocation262_spill] sm:$0xff] }
 0x314   : > { %v2294_v25 = vadd.f32 %v9478_v20, %v2293_v17  ;;  %v2412_v44 = vadd.f32 %v2411_v24, %v2154_v52  ;;  %v3478_v15 = vpop.eup %3477  ;;  %v1859_v21 = vmul.f32 0.6931472, %v3474_v1  ;;  %3483 = vlog2.f32 %v9482_v5  ;;  %v9487_v26 = vld [vmem:[#allocation102_spill] sm:$0xff] }
 0x315   : > { %v2539_v32 = vmul.f32 %v2150_v51, %v2150_v51  ;;  %v2664_v23 = vadd.f32 %v2663_v45, %v2537_v33  ;;  %v2031_v34 = vsub.f32 %v9483_v63, %v1855_v61  ;;  %v2157_v12 = vmul.f32 %v9451_v18, %v2029_v56  ;;  %v9488_v61 = vld [vmem:[#allocation286_spill] sm:$0xff]  ;;  %v9489_v33 = vld [vmem:[#allocation263_spill] sm:$0xff]  ;;  %v9490_v56 = vld [vmem:[#allocation49_spill] sm:$0xff] }
 0x316   : > { %v2295_v4 = vadd.f32 %v9481_v50, %v2294_v25  ;;  %v2413_v10 = vadd.f32 %v2412_v44, %v2155_v58  ;;  %v3480_v62 = vpop.eup %3479  ;;  %v1861_v13 = vmul.f32 0.6931472, %v3476_v27  ;;  %3485 = vlog2.f32 %v9485_v60 }
 0x317   : > { %v2540_v46 = vmul.f32 %v2151_v9, %v2151_v9  ;;  %v2665_v42 = vadd.f32 %v2664_v23, %v2538_v54  ;;  %v2032_v49 = vsub.f32 %v9486_v3, %v1857_v2  ;;  %v2158_v48 = vmul.f32 %v9454_v14, %v2030_v35  ;;  %v9491_v2 = vld [vmem:[#allocation20_spill] sm:$0xff]  ;;  %v9493_v35 = vld [vmem:[#allocation50_spill] sm:$0xff] }
 0x318   : > { %v2296_v29 = vadd.f32 %v9484_v47, %v2295_v4  ;;  %v2414_v6 = vadd.f32 %v2413_v10, %v2156_v36  ;;  %v3482_v24 = vpop.eup %3481  ;;  %v1863_v1 = vmul.f32 0.6931472, %v3478_v15  ;;  %3487 = vlog2.f32 %v9488_v61  ;;  %v9492_v54 = vld [vmem:[#allocation264_spill] sm:$0xff] }
 0x319   : > { %v2541_v18 = vmul.f32 %v2152_v55, %v2152_v55  ;;  %v2666_v38 = vadd.f32 %v2665_v42, %v2539_v32  ;;  %v2033_v16 = vsub.f32 %v9489_v33, %v1859_v21  ;;  %v2159_v8 = vmul.f32 %v9457_v30, %v2031_v34  ;;  %v9494_v21 = vld [vmem:[#allocation288_spill] sm:$0xff]  ;;  %v9495_v32 = vld [vmem:[#allocation265_spill] sm:$0xff]  ;;  %v9496_v34 = vld [vmem:[#allocation51_spill] sm:$0xff] }
 0x31a   : > { %v2297_v51 = vadd.f32 %v9487_v26, %v2296_v29  ;;  %v2415_v17 = vadd.f32 %v2414_v6, %v2157_v12  ;;  %v3484_v44 = vpop.eup %3483  ;;  %v1865_v27 = vmul.f32 0.6931472, %v3480_v62  ;;  %3489 = vlog2.f32 %v9491_v2 }
 0x31b   : > { %v2542_v14 = vmul.f32 %v2153_v59, %v2153_v59  ;;  %v2667_v11 = vadd.f32 %v2666_v38, %v2540_v46  ;;  %v2034_v45 = vsub.f32 %v9492_v54, %v1861_v13  ;;  %v2160_v31 = vmul.f32 %v9460_v57, %v2032_v49  ;;  %v9497_v13 = vld [vmem:[#allocation175_spill] sm:$0xff]  ;;  %v9498_v46 = vld [vmem:[#allocation189_spill] sm:$0xff] }
 0x31c   : > { %v2298_v9 = vadd.f32 %v9490_v56, %v2297_v51  ;;  %v2416_v25 = vadd.f32 %v2415_v17, %v2158_v48  ;;  %v3486_v10 = vpop.eup %3485  ;;  %v1867_v15 = vmul.f32 0.6931472, %v3482_v24  ;;  %3491 = vlog2.f32 %v9494_v21  ;;  %v9499_v49 = vld [vmem:[#allocation103_spill] sm:$0xff] }
 0x31d   : > { %v2543_v30 = vmul.f32 %v2154_v52, %v2154_v52  ;;  %v2668_v5 = vadd.f32 %v2667_v11, %v2541_v18  ;;  %v2035_v23 = vsub.f32 %v9495_v32, %v1863_v1  ;;  %v2161_v63 = vmul.f32 %v9463_v7, %v2033_v16  ;;  %v9500_v1 = vld [vmem:[#allocation215_spill] sm:$0xff]  ;;  %v9501_v18 = vld [vmem:[#allocation266_spill] sm:$0xff]  ;;  %v9502_v16 = vld [vmem:[#allocation104_spill] sm:$0xff] }
 0x31e   : > { %v2299_v55 = vadd.f32 %v9493_v35, %v2298_v9  ;;  %v2417_v4 = vadd.f32 %v2416_v25, %v2159_v8  ;;  %v3488_v6 = vpop.eup %3487  ;;  %v1869_v62 = vmul.f32 0.6931472, %v3484_v44  ;;  %3493 = vlog2.f32 %v9497_v13 }
 0x31f   : > { %v2544_v57 = vmul.f32 %v2155_v58, %v2155_v58  ;;  %v2669_v60 = vadd.f32 %v2668_v5, %v2542_v14  ;;  %v2036_v42 = vsub.f32 %v9498_v46, %v1865_v27  ;;  %v2162_v3 = vmul.f32 %v9466_v0, %v2034_v45  ;;  %v9503_v27 = vld [vmem:[#allocation6_spill] sm:$0xff]  ;;  %v9504_v14 = vld [vmem:[#allocation267_spill] sm:$0xff]  ;;  %v9505_v45 = vld [vmem:[#allocation56_spill] sm:$0xff] }
 0x320   : > { %v2300_v59 = vadd.f32 %v9496_v34, %v2299_v55  ;;  %v2418_v29 = vadd.f32 %v2417_v4, %v2160_v31  ;;  %v3490_v17 = vpop.eup %3489  ;;  %v1871_v24 = vmul.f32 0.6931472, %v3486_v10  ;;  %3495 = vlog2.f32 %v9500_v1 }
 0x321   : > { %v2545_v7 = vmul.f32 %v2156_v36, %v2156_v36  ;;  %v2670_v61 = vadd.f32 %v2669_v60, %v2543_v30  ;;  %v2037_v38 = vsub.f32 %v9501_v18, %v1867_v15  ;;  %v2163_v33 = vmul.f32 %v9469_v28, %v2035_v23  ;;  %v9506_v15 = vld [vmem:[#allocation7_spill] sm:$0xff]  ;;  %v9507_v30 = vld [vmem:[#allocation268_spill] sm:$0xff]  ;;  %v9508_v23 = vld [vmem:[#allocation57_spill] sm:$0xff] }
 0x322   : > { %v2301_v52 = vadd.f32 %v9499_v49, %v2300_v59  ;;  %v2419_v51 = vadd.f32 %v2418_v29, %v2161_v63  ;;  %v3492_v25 = vpop.eup %3491  ;;  %v1873_v44 = vmul.f32 0.6931472, %v3488_v6  ;;  %3497 = vlog2.f32 %v9503_v27 }
 0x323   : > { %v2546_v0 = vmul.f32 %v2157_v12, %v2157_v12  ;;  %v2671_v2 = vadd.f32 %v2670_v61, %v2544_v57  ;;  %v2038_v11 = vsub.f32 %v9504_v14, %v1869_v62  ;;  %v2164_v54 = vmul.f32 %v9472_v41, %v2036_v42  ;;  %v9509_v62 = vld [vmem:[#allocation290_spill] sm:$0xff]  ;;  %v9510_v57 = vld [vmem:[#allocation269_spill] sm:$0xff] }
 0x324   : > { %v2302_v58 = vadd.f32 %v9502_v16, %v2301_v52  ;;  %v2420_v9 = vadd.f32 %v2419_v51, %v2162_v3  ;;  %v3494_v4 = vpop.eup %3493  ;;  %v1875_v10 = vmul.f32 0.6931472, %v3490_v17  ;;  %3499 = vlog2.f32 %v9506_v15  ;;  %v9511_v42 = vld [vmem:[#allocation105_spill] sm:$0xff] }
 0x325   : > { %v2547_v28 = vmul.f32 %v2158_v48, %v2158_v48  ;;  %v2672_v21 = vadd.f32 %v2671_v2, %v2545_v7  ;;  %v2039_v5 = vsub.f32 %v9507_v30, %v1871_v24  ;;  %v2165_v32 = vmul.f32 %v9475_v43, %v2037_v38  ;;  %v9512_v24 = vld [vmem:[#allocation291_spill] sm:$0xff]  ;;  %v9513_v7 = vld [vmem:[#allocation270_spill] sm:$0xff] }
 0x326   : > { %v2303_v36 = vadd.f32 %v9505_v45, %v2302_v58  ;;  %v2421_v55 = vadd.f32 %v2420_v9, %v2163_v33  ;;  %v3496_v29 = vpop.eup %3495  ;;  %v1877_v6 = vmul.f32 0.6931472, %v3492_v25  ;;  %3501 = vlog2.f32 %v9509_v62  ;;  %v9514_v38 = vld [vmem:[#allocation106_spill] sm:$0xff] }
 0x327   : > { %v2548_v41 = vmul.f32 %v2159_v8, %v2159_v8  ;;  %v2673_v13 = vadd.f32 %v2672_v21, %v2546_v0  ;;  %v2040_v60 = vsub.f32 %v9510_v57, %v1873_v44  ;;  %v2166_v46 = vmul.f32 %v9478_v20, %v2038_v11  ;;  %v9515_v44 = vld [vmem:[#allocation244_spill] sm:$0xff]  ;;  %v9517_v11 = vld [vmem:[#allocation107_spill] sm:$0xff] }
 0x328   : > { %v2304_v12 = vadd.f32 %v9508_v23, %v2303_v36  ;;  %v2422_v59 = vadd.f32 %v2421_v55, %v2164_v54  ;;  %v3498_v51 = vpop.eup %3497  ;;  %v1879_v17 = vmul.f32 0.6931472, %v3494_v4  ;;  %3503 = vlog2.f32 %v9512_v24  ;;  %v9516_v0 = vld [vmem:[#allocation192_spill] sm:$0xff] }
 0x329   : > { %v2549_v43 = vmul.f32 %v2160_v31, %v2160_v31  ;;  %v2674_v1 = vadd.f32 %v2673_v13, %v2547_v28  ;;  %v2041_v61 = vsub.f32 %v9513_v7, %v1875_v10  ;;  %v2167_v18 = vmul.f32 %v9481_v50, %v2039_v5  ;;  %v9518_v10 = vld [vmem:[#allocation292_spill] sm:$0xff]  ;;  %v9519_v28 = vld [vmem:[#allocation271_spill] sm:$0xff] }
 0x32a   : > { %v2305_v48 = vadd.f32 %v9511_v42, %v2304_v12  ;;  %v2423_v52 = vadd.f32 %v2422_v59, %v2165_v32  ;;  %v3500_v9 = vpop.eup %3499  ;;  %v1881_v25 = vmul.f32 0.6931472, %v3496_v29  ;;  %3505 = vlog2.f32 %v9515_v44  ;;  %v9520_v5 = vld [vmem:[#allocation108_spill] sm:$0xff] }
 0x32b   : > { %v2550_v20 = vmul.f32 %v2161_v63, %v2161_v63  ;;  %v2675_v27 = vadd.f32 %v2674_v1, %v2548_v41  ;;  %v2042_v2 = vsub.f32 %v9516_v0, %v1877_v6  ;;  %v2168_v14 = vmul.f32 %v9484_v47, %v2040_v60  ;;  %v9521_v6 = vld [vmem:[#allocation176_spill] sm:$0xff]  ;;  %v9523_v60 = vld [vmem:[#allocation109_spill] sm:$0xff] }
 0x32c   : > { %v2306_v8 = vadd.f32 %v9514_v38, %v2305_v48  ;;  %v2424_v58 = vadd.f32 %v2423_v52, %v2166_v46  ;;  %v3502_v55 = vpop.eup %3501  ;;  %v1883_v4 = vmul.f32 0.6931472, %v3498_v51  ;;  %3507 = vlog2.f32 %v9518_v10  ;;  %v9522_v41 = vld [vmem:[#allocation272_spill] sm:$0xff] }
 0x32d   : > { %v2551_v50 = vmul.f32 %v2162_v3, %v2162_v3  ;;  %v2676_v15 = vadd.f32 %v2675_v27, %v2549_v43  ;;  %v2043_v21 = vsub.f32 %v9519_v28, %v1879_v17  ;;  %v2169_v30 = vmul.f32 %v9487_v26, %v2041_v61  ;;  %v9524_v17 = vld [vmem:[#allocation34_spill] sm:$0xff]  ;;  %v9525_v43 = vld [vmem:[#allocation273_spill] sm:$0xff] }
 0x32e   : > { %v2307_v31 = vadd.f32 %v9517_v11, %v2306_v8  ;;  %v2425_v36 = vadd.f32 %v2424_v58, %v2167_v18  ;;  %v3504_v59 = vpop.eup %3503  ;;  %v1885_v29 = vmul.f32 0.6931472, %v3500_v9  ;;  %3509 = vlog2.f32 %v9521_v6  ;;  %v9526_v61 = vld [vmem:[#allocation110_spill] sm:$0xff] }
 0x32f   : > { %v2552_v47 = vmul.f32 %v2163_v33, %v2163_v33  ;;  %v2677_v62 = vadd.f32 %v2676_v15, %v2550_v20  ;;  %v2044_v13 = vsub.f32 %v9522_v41, %v1881_v25  ;;  %v2170_v57 = vmul.f32 %v9490_v56, %v2042_v2  ;;  %v9527_v25 = vld [vmem:[#allocation295_spill] sm:$0xff]  ;;  %v9528_v20 = vld [vmem:[#allocation274_spill] sm:$0xff] }
 0x330   : > { %v2308_v63 = vadd.f32 %v9520_v5, %v2307_v31  ;;  %v2426_v12 = vadd.f32 %v2425_v36, %v2168_v14  ;;  %v3506_v52 = vpop.eup %3505  ;;  %v1887_v51 = vmul.f32 0.6931472, %v3502_v55  ;;  %3511 = vlog2.f32 %v9524_v17  ;;  %v9529_v2 = vld [vmem:[#allocation111_spill] sm:$0xff] }
 0x331   : > { %v2553_v26 = vmul.f32 %v2164_v54, %v2164_v54  ;;  %v2678_v24 = vadd.f32 %v2677_v62, %v2551_v50  ;;  %v2045_v1 = vsub.f32 %v9525_v43, %v1883_v4  ;;  %v2171_v7 = vmul.f32 %v9493_v35, %v2043_v21  ;;  %v9530_v4 = vld [vmem:[#allocation296_spill] sm:$0xff]  ;;  %v9531_v50 = vld [vmem:[#allocation275_spill] sm:$0xff] }
 0x332   : > { %v2309_v3 = vadd.f32 %v9523_v60, %v2308_v63  ;;  %v2427_v48 = vadd.f32 %v2426_v12, %v2169_v30  ;;  %v3508_v58 = vpop.eup %3507  ;;  %v1889_v9 = vmul.f32 0.6931472, %v3504_v59  ;;  %3513 = vlog2.f32 %v9527_v25  ;;  %v9532_v21 = vld [vmem:[#allocation112_spill] sm:$0xff] }
 0x333   : > { %v2554_v56 = vmul.f32 %v2165_v32, %v2165_v32  ;;  %v2679_v44 = vadd.f32 %v2678_v24, %v2552_v47  ;;  %v2046_v27 = vsub.f32 %v9528_v20, %v1885_v29  ;;  %v2172_v0 = vmul.f32 %v9496_v34, %v2044_v13  ;;  %v9533_v29 = vld [vmem:[#allocation159_spill] sm:$0xff]  ;;  %v9534_v47 = vld [vmem:[#allocation196_spill] sm:$0xff]  ;;  %v9535_v13 = vld [vmem:[#allocation113_spill] sm:$0xff] }
 0x334   : > { %v2310_v33 = vadd.f32 %v9526_v61, %v2309_v3  ;;  %v2428_v8 = vadd.f32 %v2427_v48, %v2170_v57  ;;  %v3510_v36 = vpop.eup %3509  ;;  %v1891_v55 = vmul.f32 0.6931472, %v3506_v52  ;;  %3515 = vlog2.f32 %v9530_v4 }
 0x335   : > { %v2555_v35 = vmul.f32 %v2166_v46, %v2166_v46  ;;  %v2680_v10 = vadd.f32 %v2679_v44, %v2553_v26  ;;  %v2047_v15 = vsub.f32 %v9531_v50, %v1887_v51  ;;  %v2173_v28 = vmul.f32 %v9499_v49, %v2045_v1  ;;  %v9536_v51 = vld [vmem:[#allocation177_spill] sm:$0xff]  ;;  %v9538_v1 = vld [vmem:[#allocation114_spill] sm:$0xff] }
 0x336   : > { %v2311_v54 = vadd.f32 %v9529_v2, %v2310_v33  ;;  %v2429_v31 = vadd.f32 %v2428_v8, %v2171_v7  ;;  %v3512_v12 = vpop.eup %3511  ;;  %v1893_v59 = vmul.f32 0.6931472, %v3508_v58  ;;  %3517 = vlog2.f32 %v9533_v29  ;;  %v9537_v26 = vld [vmem:[#allocation197_spill] sm:$0xff] }
 0x337   : > { %v2556_v34 = vmul.f32 %v2167_v18, %v2167_v18  ;;  %v2681_v6 = vadd.f32 %v2680_v10, %v2554_v56  ;;  %v2048_v62 = vsub.f32 %v9534_v47, %v1889_v9  ;;  %v2174_v41 = vmul.f32 %v9502_v16, %v2046_v27  ;;  %v9539_v9 = vld [vmem:[#allocation298_spill] sm:$0xff]  ;;  %v9540_v56 = vld [vmem:[#allocation155_spill] sm:$0xff] }
 0x338   : > { %v2312_v32 = vadd.f32 %v9532_v21, %v2311_v54  ;;  %v2430_v63 = vadd.f32 %v2429_v31, %v2172_v0  ;;  %v3514_v48 = vpop.eup %3513  ;;  %v1895_v52 = vmul.f32 0.6931472, %v3510_v36  ;;  %3519 = vlog2.f32 %v9536_v51  ;;  %v9541_v27 = vld [vmem:[#allocation115_spill] sm:$0xff] }
 0x339   : > { %v2557_v49 = vmul.f32 %v2168_v14, %v2168_v14  ;;  %v2682_v17 = vadd.f32 %v2681_v6, %v2555_v35  ;;  %v2049_v24 = vsub.f32 %v9537_v26, %v1891_v55  ;;  %v2175_v43 = vmul.f32 %v9505_v45, %v2047_v15  ;;  %v9542_v55 = vld [vmem:[#allocation27_spill] sm:$0xff]  ;;  %v9543_v35 = vld [vmem:[#allocation198_spill] sm:$0xff]  ;;  %v9544_v15 = vld [vmem:[#allocation116_spill] sm:$0xff] }
 0x33a   : > { %v2313_v46 = vadd.f32 %v9535_v13, %v2312_v32  ;;  %v2431_v3 = vadd.f32 %v2430_v63, %v2173_v28  ;;  %v3516_v8 = vpop.eup %3515  ;;  %v1897_v58 = vmul.f32 0.6931472, %v3512_v12  ;;  %3521 = vlog2.f32 %v9539_v9 }
 0x33b   : > { %v2558_v16 = vmul.f32 %v2169_v30, %v2169_v30  ;;  %v2683_v25 = vadd.f32 %v2682_v17, %v2556_v34  ;;  %v2050_v44 = vsub.f32 %v9540_v56, %v1893_v59  ;;  %v2176_v20 = vmul.f32 %v9508_v23, %v2048_v62  ;;  %v9545_v59 = vld [vmem:[#allocation8_spill] sm:$0xff]  ;;  %v9546_v34 = vld [vmem:[#allocation199_spill] sm:$0xff]  ;;  %v9547_v62 = vld [vmem:[#allocation117_spill] sm:$0xff] }
 0x33c   : > { %v2314_v18 = vadd.f32 %v9538_v1, %v2313_v46  ;;  %v2432_v33 = vadd.f32 %v2431_v3, %v2174_v41  ;;  %v3518_v31 = vpop.eup %3517  ;;  %v1899_v36 = vmul.f32 0.6931472, %v3514_v48  ;;  %3523 = vlog2.f32 %v9542_v55 }
 0x33d   : > { %v2559_v45 = vmul.f32 %v2170_v57, %v2170_v57  ;;  %v2684_v4 = vadd.f32 %v2683_v25, %v2557_v49  ;;  %v2051_v10 = vsub.f32 %v9543_v35, %v1895_v52  ;;  %v2177_v50 = vmul.f32 %v9511_v42, %v2049_v24  ;;  %v9548_v52 = vld [vmem:[#allocation211_spill] sm:$0xff]  ;;  %v9549_v49 = vld [vmem:[#allocation200_spill] sm:$0xff]  ;;  %v9550_v24 = vld [vmem:[#allocation118_spill] sm:$0xff] }
 0x33e   : > { %v2315_v14 = vadd.f32 %v9541_v27, %v2314_v18  ;;  %v2433_v54 = vadd.f32 %v2432_v33, %v2175_v43  ;;  %v3520_v63 = vpop.eup %3519  ;;  %v1901_v12 = vmul.f32 0.6931472, %v3516_v8  ;;  %3525 = vlog2.f32 %v9545_v59 }
 0x33f   : > { %v2560_v23 = vmul.f32 %v2171_v7, %v2171_v7  ;;  %v2685_v29 = vadd.f32 %v2684_v4, %v2558_v16  ;;  %v2052_v6 = vsub.f32 %v9546_v34, %v1897_v58  ;;  %v2178_v47 = vmul.f32 %v9514_v38, %v2050_v44  ;;  %v9551_v58 = vld [vmem:[#allocation299_spill] sm:$0xff]  ;;  %v9552_v16 = vld [vmem:[#allocation201_spill] sm:$0xff] }
 0x340   : > { %v2316_v30 = vadd.f32 %v9544_v15, %v2315_v14  ;;  %v2434_v32 = vadd.f32 %v2433_v54, %v2176_v20  ;;  %v3522_v3 = vpop.eup %3521  ;;  %v1903_v48 = vmul.f32 0.6931472, %v3518_v31  ;;  %3527 = vlog2.f32 %v9548_v52  ;;  %v9553_v44 = vld [vmem:[#allocation119_spill] sm:$0xff] }
 0x341   : > { %v2561_v42 = vmul.f32 %v2172_v0, %v2172_v0  ;;  %v2686_v51 = vadd.f32 %v2685_v29, %v2559_v45  ;;  %v2053_v17 = vsub.f32 %v9549_v49, %v1899_v36  ;;  %v2179_v26 = vmul.f32 %v9517_v11, %v2051_v10  ;;  %v9554_v36 = vld [vmem:[#allocation247_spill] sm:$0xff]  ;;  %v9555_v45 = vld [vmem:[#allocation202_spill] sm:$0xff]  ;;  %v9556_v10 = vld [vmem:[#allocation120_spill] sm:$0xff] }
 0x342   : > { %v2317_v57 = vadd.f32 %v9547_v62, %v2316_v30  ;;  %v2435_v46 = vadd.f32 %v2434_v32, %v2177_v50  ;;  %v3524_v33 = vpop.eup %3523  ;;  %v1905_v8 = vmul.f32 0.6931472, %v3520_v63  ;;  %3529 = vlog2.f32 %v9551_v58 }
 0x343   : > { %v2562_v38 = vmul.f32 %v2173_v28, %v2173_v28  ;;  %v2687_v9 = vadd.f32 %v2686_v51, %v2560_v23  ;;  %v2054_v25 = vsub.f32 %v9552_v16, %v1901_v12  ;;  %v2180_v56 = vmul.f32 %v9520_v5, %v2052_v6  ;;  %v9557_v12 = vld [vmem:[#allocation212_spill] sm:$0xff]  ;;  %v9558_v23 = vld [vmem:[#allocation203_spill] sm:$0xff]  ;;  %v9559_v6 = vld [vmem:[#allocation121_spill] sm:$0xff] }
 0x344   : > { %v2318_v7 = vadd.f32 %v9550_v24, %v2317_v57  ;;  %v2436_v18 = vadd.f32 %v2435_v46, %v2178_v47  ;;  %v3526_v54 = vpop.eup %3525  ;;  %v1907_v31 = vmul.f32 0.6931472, %v3522_v3  ;;  %3531 = vlog2.f32 %v9554_v36 }
 0x345   : > { %v2563_v11 = vmul.f32 %v2174_v41, %v2174_v41  ;;  %v2688_v55 = vadd.f32 %v2687_v9, %v2561_v42  ;;  %v2055_v4 = vsub.f32 %v9555_v45, %v1903_v48  ;;  %v2181_v35 = vmul.f32 %v9523_v60, %v2053_v17  ;;  %v9560_v48 = vld [vmem:[#allocation35_spill] sm:$0xff]  ;;  %v9561_v42 = vld [vmem:[#allocation204_spill] sm:$0xff]  ;;  %v9562_v17 = vld [vmem:[#allocation122_spill] sm:$0xff] }
 0x346   : > { %v2319_v0 = vadd.f32 %v9553_v44, %v2318_v7  ;;  %v2437_v14 = vadd.f32 %v2436_v18, %v2179_v26  ;;  %v3528_v32 = vpop.eup %3527  ;;  %v1909_v63 = vmul.f32 0.6931472, %v3524_v33  ;;  %3533 = vlog2.f32 %v9557_v12 }
 0x347   : > { %v2564_v5 = vmul.f32 %v2175_v43, %v2175_v43  ;;  %v2689_v59 = vadd.f32 %v2688_v55, %v2562_v38  ;;  %v2056_v29 = vsub.f32 %v9558_v23, %v1905_v8  ;;  %v2182_v34 = vmul.f32 %v9526_v61, %v2054_v25  ;;  %v9563_v8 = vld [vmem:[#allocation213_spill] sm:$0xff]  ;;  %v9564_v38 = vld [vmem:[#allocation276_spill] sm:$0xff]  ;;  %v9565_v25 = vld [vmem:[#allocation123_spill] sm:$0xff] }
 0x348   : > { %v2320_v28 = vadd.f32 %v9556_v10, %v2319_v0  ;;  %v2438_v30 = vadd.f32 %v2437_v14, %v2180_v56  ;;  %v3530_v46 = vpop.eup %3529  ;;  %v1911_v3 = vmul.f32 0.6931472, %v3526_v54  ;;  %3535 = vlog2.f32 %v9560_v48 }
 0x349   : > { %v2565_v60 = vmul.f32 %v2176_v20, %v2176_v20  ;;  %v2690_v52 = vadd.f32 %v2689_v59, %v2563_v11  ;;  %v2057_v51 = vsub.f32 %v9561_v42, %v1907_v31  ;;  %v2183_v49 = vmul.f32 %v9529_v2, %v2055_v4  ;;  %v9566_v31 = vld [vmem:[#allocation178_spill] sm:$0xff]  ;;  %v9568_v4 = vld [vmem:[#allocation124_spill] sm:$0xff] }
 0x34a   : > { %v2321_v41 = vadd.f32 %v9559_v6, %v2320_v28  ;;  %v2439_v57 = vadd.f32 %v2438_v30, %v2181_v35  ;;  %v3532_v18 = vpop.eup %3531  ;;  %v1913_v33 = vmul.f32 0.6931472, %v3528_v32  ;;  %3537 = vlog2.f32 %v9563_v8  ;;  %v9567_v11 = vld [vmem:[#allocation278_spill] sm:$0xff] }
 0x34b   : > { %v2566_v61 = vmul.f32 %v2177_v50, %v2177_v50  ;;  %v2691_v58 = vadd.f32 %v2690_v52, %v2564_v5  ;;  %v2058_v9 = vsub.f32 %v9564_v38, %v1909_v63  ;;  %v2184_v16 = vmul.f32 %v9532_v21, %v2056_v29  ;;  %v9569_v63 = vld [vmem:[#allocation179_spill] sm:$0xff]  ;;  %v9571_v29 = vld [vmem:[#allocation125_spill] sm:$0xff] }
 0x34c   : > { %v2322_v43 = vadd.f32 %v9562_v17, %v2321_v41  ;;  %v2440_v7 = vadd.f32 %v2439_v57, %v2182_v34  ;;  %v3534_v14 = vpop.eup %3533  ;;  %v1915_v54 = vmul.f32 0.6931472, %v3530_v46  ;;  %3539 = vlog2.f32 %v9566_v31  ;;  %v9570_v5 = vld [vmem:[#allocation279_spill] sm:$0xff] }
 0x34d   : > { %v2567_v2 = vmul.f32 %v2178_v47, %v2178_v47  ;;  %v2692_v36 = vadd.f32 %v2691_v58, %v2565_v60  ;;  %v2059_v55 = vsub.f32 %v9567_v11, %v1911_v3  ;;  %v2185_v45 = vmul.f32 %v9535_v13, %v2057_v51  ;;  %v9572_v3 = vld [vmem:[#allocation161_spill] sm:$0xff]  ;;  %v9573_v60 = vld [vmem:[#allocation283_spill] sm:$0xff]  ;;  %v9574_v51 = vld [vmem:[#allocation126_spill] sm:$0xff] }
 0x34e   : > { %v2323_v20 = vadd.f32 %v9565_v25, %v2322_v43  ;;  %v2441_v0 = vadd.f32 %v2440_v7, %v2183_v49  ;;  %v3536_v30 = vpop.eup %3535  ;;  %v1917_v32 = vmul.f32 0.6931472, %v3532_v18  ;;  %3541 = vlog2.f32 %v9569_v63 }
 0x34f   : > { %v2568_v21 = vmul.f32 %v2179_v26, %v2179_v26  ;;  %v2693_v12 = vadd.f32 %v2692_v36, %v2566_v61  ;;  %v2060_v59 = vsub.f32 %v9570_v5, %v1913_v33  ;;  %v2186_v23 = vmul.f32 %v9538_v1, %v2058_v9  ;;  %v9575_v33 = vld [vmem:[#allocation11_spill] sm:$0xff]  ;;  %v9576_v61 = vld [vmem:[#allocation285_spill] sm:$0xff] }
 0x350   : > { %v2324_v50 = vadd.f32 %v9568_v4, %v2323_v20  ;;  %v2442_v28 = vadd.f32 %v2441_v0, %v2184_v16  ;;  %v3538_v57 = vpop.eup %3537  ;;  %v1919_v46 = vmul.f32 0.6931472, %v3534_v14  ;;  %3543 = vlog2.f32 %v9572_v3  ;;  %v9577_v9 = vld [vmem:[#allocation127_spill] sm:$0xff]  ;;  %v9584_v3 = vld [vmem:[#allocation210_spill] sm:$0xff] }
 0x351   : > { %v2569_v13 = vmul.f32 %v2180_v56, %v2180_v56  ;;  %v2694_v48 = vadd.f32 %v2693_v12, %v2567_v2  ;;  %v2061_v52 = vsub.f32 %v9573_v60, %v1915_v54  ;;  %v2187_v42 = vmul.f32 %v9541_v27, %v2059_v55  ;;  %v9578_v54 = vld [vmem:[#allocation22_spill] sm:$0xff]  ;;  %v9579_v2 = vld [vmem:[#allocation287_spill] sm:$0xff]  ;;  %v9580_v55 = vld [vmem:[#allocation128_spill] sm:$0xff] }
 0x352   : > { %v2325_v47 = vadd.f32 %v9571_v29, %v2324_v50  ;;  %v2443_v41 = vadd.f32 %v2442_v28, %v2185_v45  ;;  %v3540_v7 = vpop.eup %3539  ;;  %v1921_v18 = vmul.f32 0.6931472, %v3536_v30  ;;  %3545 = vlog2.f32 %v9575_v33  ;;  %v9585_v60 = vld [vmem:[#allocation130_spill] sm:$0xff]  ;;  %v9587_v33 = vld [vmem:[#allocation293_spill] sm:$0xff] }
 0x353   : > { %v2570_v1 = vmul.f32 %v2181_v35, %v2181_v35  ;;  %v2695_v8 = vadd.f32 %v2694_v48, %v2568_v21  ;;  %v2062_v58 = vsub.f32 %v9576_v61, %v1917_v32  ;;  %v2188_v38 = vmul.f32 %v9544_v15, %v2060_v59  ;;  %v9581_v32 = vld [vmem:[#allocation305_spill] sm:$0xff] }
 0x354   : > { %v2326_v26 = vadd.f32 %v9574_v51, %v2325_v47  ;;  %v2444_v43 = vadd.f32 %v2443_v41, %v2186_v23  ;;  %v3542_v0 = vpop.eup %3541  ;;  %v1923_v14 = vmul.f32 0.6931472, %v3538_v57  ;;  %3547 = vlog2.f32 %v9578_v54  ;;  %v9582_v21 = vld [vmem:[#allocation289_spill] sm:$0xff]  ;;  %v9590_v54 = vld [vmem:[#allocation294_spill] sm:$0xff] }
 0x355   : > { %v2571_v27 = vmul.f32 %v2182_v34, %v2182_v34  ;;  %v2696_v31 = vadd.f32 %v2695_v8, %v2569_v13  ;;  %v2063_v36 = vsub.f32 %v9579_v2, %v1919_v46  ;;  %v2189_v11 = vmul.f32 %v9547_v62, %v2061_v52  ;;  %v9583_v59 = vld [vmem:[#allocation129_spill] sm:$0xff]  ;;  %v9591_v2 = vld [vmem:[#allocation132_spill] sm:$0xff] }
 0x356   : > { %v2327_v56 = vadd.f32 %v9577_v9, %v2326_v26  ;;  %v2445_v20 = vadd.f32 %v2444_v43, %v2187_v42  ;;  %v3544_v28 = vpop.eup %3543  ;;  %v1925_v30 = vmul.f32 0.6931472, %v3540_v7  ;;  %3549 = vlog2.f32 %v9581_v32  ;;  %v9586_v7 = vld [vmem:[#allocation306_spill] sm:$0xff] }
 0x357   : > { %v2572_v15 = vmul.f32 %v2183_v49, %v2183_v49  ;;  %v2697_v63 = vadd.f32 %v2696_v31, %v2570_v1  ;;  %v2064_v12 = vsub.f32 %v9582_v21, %v1921_v18  ;;  %v2190_v5 = vmul.f32 %v9550_v24, %v2062_v58 }
 0x358   : > { %v2328_v35 = vadd.f32 %v9580_v55, %v2327_v56  ;;  %v2446_v50 = vadd.f32 %v2445_v20, %v2188_v38  ;;  %v3546_v41 = vpop.eup %3545  ;;  %v1927_v57 = vmul.f32 0.6931472, %v3542_v0  ;;  %3551 = vlog2.f32 %v7376_v37  ;;  %v9588_v37 = vld [vmem:[#allocation131_spill] sm:$0xff]  ;;  %v9589_v56 = vld [vmem:[#allocation334_spill] sm:$0xff] }
 0x359   : > { %v2573_v62 = vmul.f32 %v2184_v16, %v2184_v16  ;;  %v2698_v46 = vadd.f32 %v2697_v63, %v2571_v27  ;;  %v2065_v13 = vsub.f32 %v9584_v3, %v1923_v14  ;;  %v2191_v48 = vmul.f32 %v9553_v44, %v2063_v36 }
 0x35a   : > { %v2329_v34 = vadd.f32 %v9583_v59, %v2328_v35  ;;  %v2447_v47 = vadd.f32 %v2446_v50, %v2189_v11  ;;  %v3548_v26 = vpop.eup %3547  ;;  %v1929_v43 = vmul.f32 0.6931472, %v3544_v28  ;;  %3553 = vlog2.f32 %v9586_v7 }
 0x35b   : > { %v2574_v24 = vmul.f32 %v2185_v45, %v2185_v45  ;;  %v2699_v18 = vadd.f32 %v2698_v46, %v2572_v15  ;;  %v2066_v1 = vsub.f32 %v9587_v33, %v1925_v30  ;;  %v2192_v8 = vmul.f32 %v9556_v10, %v2064_v12  ;;  %v9592_v30 = vld [vmem:[#allocation297_spill] sm:$0xff] }
 0x35c   : > { %v2330_v49 = vadd.f32 %v9585_v60, %v2329_v34  ;;  %v2448_v52 = vadd.f32 %v2447_v47, %v2190_v5  ;;  %v3550_v58 = vpop.eup %3549  ;;  %v1695_v20 = vadd.f32 1e-06, %v9589_v56  ;;  %v1931_v44 = vmul.f32 0.6931472, %v3546_v41  ;;  %v9594_v41 = vld [vmem:[#allocation300_spill] sm:$0xff]  ;;  %v9599_v56 = vld [vmem:[#allocation303_spill] sm:$0xff] }
 0x35d   : > { %v2575_v0 = vmul.f32 %v2186_v23, %v2186_v23  ;;  %v2700_v14 = vadd.f32 %v2699_v18, %v2573_v62  ;;  %v2067_v27 = vsub.f32 %v9590_v54, %v1927_v57  ;;  %v2193_v31 = vmul.f32 %v9559_v6, %v2065_v13  ;;  %v9593_v23 = vld [vmem:[#allocation133_spill] sm:$0xff]  ;;  %v9600_v54 = vld [vmem:[#allocation302_spill] sm:$0xff] }
 0x35e   : > { %v2331_v16 = vadd.f32 %v9588_v37, %v2330_v49  ;;  %v2449_v61 = vadd.f32 %v2448_v52, %v2191_v48  ;;  %v3552_v35 = vpop.eup %3551  ;;  %v1933_v50 = vmul.f32 0.6931472, %v3548_v26  ;;  %3555 = vlog2.f32 %v7399_v53  ;;  %v9596_v52 = vld [vmem:[#allocation21_spill] sm:$0xff] }
 0x35f   : > { %v2576_v10 = vmul.f32 %v2187_v42, %v2187_v42  ;;  %v2701_v28 = vadd.f32 %v2700_v14, %v2574_v24  ;;  %v2068_v32 = vsub.f32 %v9592_v30, %v1929_v43  ;;  %v2194_v15 = vmul.f32 %v9562_v17, %v2066_v1  ;;  %v9595_v42 = vld [vmem:[#allocation134_spill] sm:$0xff]  ;;  %v9598_v1 = vld [vmem:[#allocation301_spill] sm:$0xff] }
 0x360   : > { %v2332_v45 = vadd.f32 %v9591_v2, %v2331_v16  ;;  %v2450_v36 = vadd.f32 %v2449_v61, %v2192_v8  ;;  %v3554_v12 = vpop.eup %3553  ;;  %v1935_v34 = vmul.f32 0.6931472, %v3550_v58  ;;  %3557 = vlog2.f32 %v7406_v40  ;;  %v2208_v17 = vld [vmem:[%s3798_s29] sm:$0xff]  ;;  %v9597_v40 = vld [vmem:[#allocation135_spill] sm:$0xff] }
 0x361   : > { %v2577_v6 = vmul.f32 %v2188_v38, %v2188_v38  ;;  %v2702_v47 = vadd.f32 %v2701_v28, %v2575_v0  ;;  %v2069_v57 = vsub.f32 %v9594_v41, %v1931_v44  ;;  %v2195_v53 = vmul.f32 %v9565_v25, %v2067_v27  ;;  %v9602_v28 = vld [vmem:[#allocation304_spill] sm:$0xff] }
 0x362   : > { %v2333_v63 = vadd.f32 %v9593_v23, %v2332_v45  ;;  %v2451_v21 = vadd.f32 %v2450_v36, %v2193_v31  ;;  %v1937_v3 = vmul.f32 0.6931472, %v3552_v35  ;;  %3559 = vlog2.f32 %v7413_v39  ;;  %v9601_v36 = vld [vmem:[#allocation308_spill] sm:$0xff] }
 0x363   : > { %v2578_v13 = vmul.f32 %v2189_v11, %v2189_v11  ;;  %v2703_v49 = vadd.f32 %v2702_v47, %v2576_v10  ;;  %v2070_v26 = vsub.f32 %v9596_v52, %v1933_v50  ;;  %v2196_v43 = vmul.f32 %v9568_v4, %v2068_v32  ;;  %v9605_v52 = vld [vmem:[#allocation322_spill] sm:$0xff] }
 0x364   : > { %v2334_v62 = vadd.f32 %v9595_v42, %v2333_v63  ;;  %v2452_v46 = vadd.f32 %v2451_v21, %v2194_v15  ;;  %v3556_v24 = vpop.eup %3555  ;;  %v1939_v18 = vmul.f32 0.6931472, %v3554_v12  ;;  %3561 = vlog2.f32 %v7425_v22  ;;  %v9603_v63 = vld [vmem:[#allocation313_spill] sm:$0xff] }
 0x365   : > { %v2579_v25 = vmul.f32 %v2190_v5, %v2190_v5  ;;  %v2704_v33 = vadd.f32 %v2703_v49, %v2577_v6  ;;  %v2071_v16 = vsub.f32 %v9598_v1, %v1935_v34  ;;  %v2197_v39 = vmul.f32 %v9571_v29, %v2069_v57 }
 0x366   : > { %v2335_v38 = vadd.f32 %v9597_v40, %v2334_v62  ;;  %v2453_v7 = vadd.f32 %v2452_v46, %v2195_v53  ;;  %v3558_v58 = vpop.eup %3557  ;;  %v1429_v44 = vmul.f32 0.6931472, %v9599_v56  ;;  %3563 = vlog2.f32 %v7432_v19 }
 0x367   : > { %v2580_v4 = vmul.f32 %v2191_v48, %v2191_v48  ;;  %v2705_v0 = vadd.f32 %v2704_v33, %v2578_v13  ;;  %v1941_v14 = vmul.f32 0.6931472, %v3556_v24  ;;  %v2072_v27 = vsub.f32 %v9600_v54, %v1937_v3 }
 0x368   : > { %v2336_v11 = vadd.f32 %v2335_v38, %v2208_v17  ;;  %v2454_v61 = vadd.f32 %v2453_v7, %v2196_v43  ;;  %v2198_v22 = vmul.f32 %v9574_v51, %v2070_v26  ;;  %v3560_v45 = vpop.eup %3559  ;;  %v1431_v35 = vmul.f32 0.6931472, %v9601_v36 }
 0x369   : > { %3565 = vlog2.f32 %v1695_v20  ;;  %v2581_v29 = vmul.f32 %v2192_v8, %v2192_v8  ;;  %v2706_v50 = vadd.f32 %v2705_v0, %v2579_v25  ;;  %v1943_v10 = vmul.f32 0.6931472, %v3558_v58  ;;  %v9604_v20 = vld [vmem:[#allocation318_spill] sm:$0xff]  ;;  %v9606_v25 = vld [vmem:[#allocation327_spill] sm:$0xff] }
 0x36a   : > { %2337 = vst [vmem:[%s3798_s29] sm:$0xff] %v2336_v11  ;;  %v2455_v5 = vadd.f32 %v2454_v61, %v2197_v39  ;;  %v2073_v30 = vsub.f32 %v9602_v28, %v1939_v18  ;;  %v2199_v19 = vmul.f32 %v9577_v9, %v2071_v16  ;;  %v3562_v32 = vpop.eup %3561  ;;  %v1433_v21 = vmul.f32 0.6931472, %v9603_v63 }
 0x36b   : > { %v2582_v12 = vmul.f32 %v2193_v31, %v2193_v31  ;;  %v2707_v34 = vadd.f32 %v2706_v50, %v2580_v4  ;;  %v1945_v51 = vmul.f32 0.6931472, %v3560_v45  ;;  %v2074_v6 = vsub.f32 %v1429_v44, %v1941_v14  ;;  %v2338_v50 = vld [vmem:[%s3813_s12] sm:$0xff] }
 0x36c   : > { %v2456_v48 = vadd.f32 %v2455_v5, %v2198_v22  ;;  %v2200_v47 = vmul.f32 %v9580_v55, %v2072_v27  ;;  %v3564_v57 = vpop.eup %3563  ;;  %v1435_v8 = vmul.f32 0.6931472, %v9604_v20  ;;  %v2583_v62 = vmul.f32 %v2194_v15, %v2194_v15 }
 0x36d   : > { %v2708_v46 = vadd.f32 %v2707_v34, %v2581_v29  ;;  %v1947_v3 = vmul.f32 0.6931472, %v3562_v32  ;;  %v2075_v17 = vsub.f32 %v1431_v35, %v1943_v10  ;;  %v2201_v9 = vmul.f32 %v9583_v59, %v2073_v30 }
 0x36e   : > { %v2457_v41 = vadd.f32 %v2456_v48, %v2199_v19  ;;  %v1437_v26 = vmul.f32 0.6931472, %v9605_v52  ;;  %v2584_v31 = vmul.f32 %v2195_v53, %v2195_v53  ;;  %v1949_v7 = vmul.f32 0.6931472, %v3564_v57 }
 0x36f   : > { %v3566_v49 = vpop.eup %3565  ;;  %v2709_v38 = vadd.f32 %v2708_v46, %v2582_v12  ;;  %v2076_v24 = vsub.f32 %v1433_v21, %v1945_v51  ;;  %v2202_v55 = vmul.f32 %v9585_v60, %v2074_v6  ;;  %v1439_v33 = vmul.f32 0.6931472, %v9606_v25 }
 0x370   : > { %v2458_v13 = vadd.f32 %v2457_v41, %v2200_v47  ;;  %v2585_v1 = vmul.f32 %v2196_v43, %v2196_v43  ;;  %v1951_v16 = vmul.f32 0.6931472, %v3566_v49  ;;  %v2077_v11 = vsub.f32 %v1435_v8, %v1947_v3 }
 0x371   : > { %v2710_v15 = vadd.f32 %v2709_v38, %v2583_v62  ;;  %v2203_v61 = vmul.f32 %v9588_v37, %v2075_v17  ;;  %v2586_v58 = vmul.f32 %v2197_v39, %v2197_v39  ;;  %v2078_v44 = vsub.f32 %v1437_v26, %v1949_v7 }
 0x372   : > { %v2459_v18 = vadd.f32 %v2458_v13, %v2201_v9  ;;  %v2204_v53 = vmul.f32 %v9591_v2, %v2076_v24  ;;  %v2587_v0 = vmul.f32 %v2198_v22, %v2198_v22  ;;  %v2079_v60 = vsub.f32 %v1439_v33, %v1951_v16 }
 0x373   : > { %v2711_v56 = vadd.f32 %v2710_v15, %v2584_v31  ;;  %v2205_v54 = vmul.f32 %v9593_v23, %v2077_v11  ;;  %v2588_v43 = vmul.f32 %v2199_v19, %v2199_v19  ;;  %v2206_v45 = vmul.f32 %v9595_v42, %v2078_v44 }
 0x374   : > { %v2460_v59 = vadd.f32 %v2459_v18, %v2202_v55  ;;  %v2589_v36 = vmul.f32 %v2200_v47, %v2200_v47  ;;  %v2207_v35 = vmul.f32 %v9597_v40, %v2079_v60  ;;  %v2590_v2 = vmul.f32 %v2201_v9, %v2201_v9  ;;  %v2468_v47 = vld [vmem:[%s3818_s16] sm:$0xff] }
 0x375   : > { %v2712_v14 = vadd.f32 %v2711_v56, %v2585_v1  ;;  %v2591_v28 = vmul.f32 %v2202_v55, %v2202_v55  ;;  %v2592_v19 = vmul.f32 %v2203_v61, %v2203_v61  ;;  %v2593_v32 = vmul.f32 %v2204_v53, %v2204_v53 }
 0x376   : > { %v2461_v4 = vadd.f32 %v2460_v59, %v2203_v61  ;;  %v2594_v63 = vmul.f32 %v2205_v54, %v2205_v54  ;;  %v2595_v12 = vmul.f32 %v2206_v45, %v2206_v45  ;;  %v2596_v40 = vmul.f32 %v2207_v35, %v2207_v35 }
 0x377   : > { %v2713_v5 = vadd.f32 %v2712_v14, %v2586_v58 }
 0x378   : > { %v2462_v27 = vadd.f32 %v2461_v4, %v2204_v53 }
 0x379   : > { %v2714_v39 = vadd.f32 %v2713_v5, %v2587_v0 }
 0x37a   : > { %v2463_v37 = vadd.f32 %v2462_v27, %v2205_v54 }
 0x37b   : > { %v2715_v10 = vadd.f32 %v2714_v39, %v2588_v43 }
 0x37c   : > { %v2464_v29 = vadd.f32 %v2463_v37, %v2206_v45 }
 0x37d   : > { %v2716_v30 = vadd.f32 %v2715_v10, %v2589_v36 }
 0x37e   : > { %v2465_v22 = vadd.f32 %v2464_v29, %v2207_v35 }
 0x37f   : > { %v2717_v48 = vadd.f32 %v2716_v30, %v2590_v2 }
 0x380   : > { %v2466_v23 = vadd.f32 %v2465_v22, %v2338_v50 }
 0x381   : > { %v2718_v42 = vadd.f32 %v2717_v48, %v2591_v28 }
 0x382   : > { %2467 = vst [vmem:[%s3813_s12] sm:$0xff] %v2466_v23 }
 0x383   : > { %v2719_v21 = vadd.f32 %v2718_v42, %v2592_v19 }
 0x385   : > { %v2720_v34 = vadd.f32 %v2719_v21, %v2593_v32 }
 0x387   : > { %v2721_v51 = vadd.f32 %v2720_v34, %v2594_v63 }
 0x389   : > { %v2722_v6 = vadd.f32 %v2721_v51, %v2595_v12 }
 0x38b   : > { %v2723_v41 = vadd.f32 %v2722_v6, %v2596_v40 }
 0x38d   : > { %v2724_v57 = vadd.f32 %v2723_v41, %v2468_v47 }
 0x38f   : > { %2725 = vst [vmem:[%s3818_s16] sm:$0xff] %v2724_v57 }
 0x390 PF: > { %s15_s19 = sadd.s32 1, %s3733_s19   ;;  %s9607_s15 = smov %s3725_s17 }
 0x391   : > { %p12_p8 = scmp.ge.s32.totalorder %s15_s19, 6   ;;  %s9608_s16 = smov %s3729_s18 }
 0x392   : > { %s9609_s17 = smov %s9612_s20  ;;  %s9610_s18 = smov %s9616_s21 }
 0x393   :  { %14 = sbr.rel (!%p12_p8) target bundleno = 3 (0x3), region = 89 }

</bundles_post_ra>
